<compile_context>
chip_gen: v6e
topology: v6e:2x2x1
jax: 0.10.0
libtpu: 0.0.40
codegen_flags: <defaults>
</compile_context>

<pallas_src>
import math

import jax
import jax.numpy as jnp
from jax.experimental import pallas as pl
from jax.experimental.pallas import tpu as pltpu

# ---- module hyper-parameters (PyTorch MLP defaults) --------------------------
DIM = 3                       # point dimension
C_DIM = 128                   # feature-grid channel dim
HIDDEN = 256                  # hidden_size
N_BLOCKS = 5                  # n_blocks
SKIPS = (2,)                  # concat embedded_pts after block 2
EMB = 93                      # fourier mapping_size
FOURIER_SCALE = 25.0
EMB_PAD = 128                 # embedding padded to a lane multiple; row EMB carries 1.0
N_BIAS_COLS = 4               # remaining explicit biases: b'1, b'2, b'4, b_out'


# ------------------------------------------------------------------------------
# Pallas kernel: full 5-block MLP + head on one transposed (features, tn) tile.
# ------------------------------------------------------------------------------
def _mlp_kernel(emb_ref, c_ref,
                wp0_ref, wp1_ref, wp2_ref, wp3h_ref, wp3e_ref, wp4_ref,
                wc0_ref, wc1_ref, wc2_ref, wc3_ref,
                whh_ref, whc_ref, bias_ref, o_ref):
    f32, bf16 = jnp.float32, jnp.bfloat16
    emb = emb_ref[...]          # (EMB_PAD, tn) bf16, row EMB == 1.0 (bias lane)
    c = c_ref[...]              # (C_DIM, tn) bf16

    # block 0 (bias b'0 rides the emb ones-row inside wp0; fc bias folded fwd)
    z = jnp.dot(wp0_ref[...], emb, preferred_element_type=f32)
    h = jnp.maximum(z, 0.0) + jnp.dot(wc0_ref[...], c, preferred_element_type=f32)
    # block 1
    z = jnp.dot(wp1_ref[...], h.astype(bf16), preferred_element_type=f32) + bias_ref[:, 0:1]
    h = jnp.maximum(z, 0.0) + jnp.dot(wc1_ref[...], c, preferred_element_type=f32)
    # block 2 (its output is concatenated with emb -> handled by block 3's split dot)
    z = jnp.dot(wp2_ref[...], h.astype(bf16), preferred_element_type=f32) + bias_ref[:, 1:2]
    h = jnp.maximum(z, 0.0) + jnp.dot(wc2_ref[...], c, preferred_element_type=f32)
    # block 3: input is cat([emb, h]) -> one h-dot + one emb-dot
    # (bias b'3 rides the emb ones-row inside wp3e).
    z = (jnp.dot(wp3h_ref[...], h.astype(bf16), preferred_element_type=f32)
         + jnp.dot(wp3e_ref[...], emb, preferred_element_type=f32))
    h = jnp.maximum(z, 0.0) + jnp.dot(wc3_ref[...], c, preferred_element_type=f32)
    # block 4: fc_c[4] is folded into the output head.
    z = jnp.dot(wp4_ref[...], h.astype(bf16), preferred_element_type=f32) + bias_ref[:, 2:3]
    h4 = jnp.maximum(z, 0.0).astype(bf16)

    # output head on the MXU: out = W_out relu(z4) + (W_out @ Wc4) c + b_out'.
    # Head weights padded to 8 sublanes (rows 1..7 zero); the (1, tn) result
    # row is lane-dense -> unmasked full-lane stores.
    out8 = (jnp.dot(whh_ref[...], h4, preferred_element_type=f32)
            + jnp.dot(whc_ref[...], c, preferred_element_type=f32))
    o_ref[...] = out8[0:1, :] + bias_ref[0:1, 3:4]


# ------------------------------------------------------------------------------
# XLA glue: fourier embedding + trilinear grid sampling (transposed layout).
# ------------------------------------------------------------------------------
def fourier_embed_T(p, B):
    """GaussianFourierFeatureTransform, transposed: sin(B^T p^T) -> (EMB, N)."""
    return jnp.sin(jnp.dot(B.T, p.T))


def sample_grid_feature_T(p, grid_feature):
    """F.grid_sample (trilinear, padding='border', align_corners=True), transposed.

    p: (N, 3) xyz in [-1, 1] (x->W, y->H, z->D); grid_feature: (1, C, D, H, W).
    Returns (C, N) float32.
    """
    g = grid_feature[0].astype(jnp.float32)              # (C, D, H, W)
    _, D, H, W = g.shape

    def unnorm(coord, size):
        idx = (coord + 1.0) * 0.5 * (size - 1)
        return jnp.clip(idx, 0.0, size - 1)              # border padding

    x = unnorm(p[:, 0].astype(jnp.float32), W)
    y = unnorm(p[:, 1].astype(jnp.float32), H)
    z = unnorm(p[:, 2].astype(jnp.float32), D)
    x0f, y0f, z0f = jnp.floor(x), jnp.floor(y), jnp.floor(z)
    wx, wy, wz = (x - x0f)[None, :], (y - y0f)[None, :], (z - z0f)[None, :]
    x0 = x0f.astype(jnp.int32); x1 = jnp.minimum(x0 + 1, W - 1)
    y0 = y0f.astype(jnp.int32); y1 = jnp.minimum(y0 + 1, H - 1)
    z0 = z0f.astype(jnp.int32); z1 = jnp.minimum(z0 + 1, D - 1)

    def gat(zi, yi, xi):
        return g[:, zi, yi, xi]                          # (C, N)

    c000, c001 = gat(z0, y0, x0), gat(z0, y0, x1)
    c010, c011 = gat(z0, y1, x0), gat(z0, y1, x1)
    c100, c101 = gat(z1, y0, x0), gat(z1, y0, x1)
    c110, c111 = gat(z1, y1, x0), gat(z1, y1, x1)
    c00 = c000 * (1 - wx) + c001 * wx
    c01 = c010 * (1 - wx) + c011 * wx
    c10 = c100 * (1 - wx) + c101 * wx
    c11 = c110 * (1 - wx) + c111 * wx
    c0 = c00 * (1 - wy) + c01 * wy
    c1 = c10 * (1 - wy) + c11 * wy
    return c0 * (1 - wz) + c1 * wz


# ------------------------------------------------------------------------------
# Wrapper: tiling, padding, host-side weight/bias folding, pallas_call.
# ------------------------------------------------------------------------------
def _pick_row_tile(n, *, max_tn=2048, min_tn=512, min_steps=4):
    """Largest row tile in {2048, 1024, 512} keeping the 1-D grid >= min_steps
    (>= 2 steps per TensorCore on v7x megacore, so per-step DMA can hide)."""
    tn = max_tn
    while tn > min_tn and -(-n // tn) < min_steps:
        tn //= 2
    return tn


def _prep_kernel_weights(params):
    """All folding in f32 host-side, then cast to (out, in)-layout bf16."""
    f32, bf = jnp.float32, jnp.bfloat16
    wp = [w.astype(f32) for w in params['pts_w']]
    bp = [b.astype(f32) for b in params['pts_b']]
    wc = [w.astype(f32) for w in params['fc_w']]
    bc = [b.astype(f32) for b in params['fc_b']]
    w_out = params['out_w'].astype(f32)                  # (1, HIDDEN)
    b_out = params['out_b'].astype(f32)                  # (1,)

    w3e, w3h = wp[3][:, :EMB], wp[3][:, EMB:]            # skip layer: in = [emb, h]

    # fold fc_c biases forward into the next pts bias / the output bias (f32)
    b1 = bp[1] + wp[1] @ bc[0]
    b2 = bp[2] + wp[2] @ bc[1]
    b3 = bp[3] + w3h @ bc[2]
    b4 = bp[4] + wp[4] @ bc[3]
    b_out_fold = b_out + w_out @ bc[4]                   # (1,)
    w_head_c = w_out @ wc[4]                             # (1, C_DIM): fc_c[4] -> head

    def pad_emb_weight(w, bias_vec):
        # (HIDDEN, EMB) -> (HIDDEN, EMB_PAD); column EMB multiplies emb's ones-row.
        out = jnp.zeros((HIDDEN, EMB_PAD), f32)
        out = out.at[:, :EMB].set(w)
        out = out.at[:, EMB].set(bias_vec)
        return out

    wp0 = pad_emb_weight(wp[0], bp[0]).astype(bf)        # (HIDDEN, EMB_PAD)
    wp3e = pad_emb_weight(w3e, b3).astype(bf)            # (HIDDEN, EMB_PAD)
    wp1b, wp2b, wp3hb, wp4b = (wp[1].astype(bf), wp[2].astype(bf),
                               w3h.astype(bf), wp[4].astype(bf))
    wc0, wc1, wc2, wc3 = (w.astype(bf) for w in wc[:4])

    whh = jnp.zeros((8, HIDDEN), f32).at[0].set(w_out[0]).astype(bf)
    whc = jnp.zeros((8, C_DIM), f32).at[0].set(w_head_c[0]).astype(bf)

    bias = jnp.zeros((HIDDEN, N_BIAS_COLS), f32)
    bias = bias.at[:, 0].set(b1).at[:, 1].set(b2).at[:, 2].set(b4)
    bias = bias.at[0, 3].set(b_out_fold[0])
    return (wp0, wp1b, wp2b, wp3hb, wp3e, wp4b, wc0, wc1, wc2, wc3, whh, whc, bias)


def mlp_forward_pallas(p, grid_feature, params):
    """NICE-SLAM MLP decoder forward: p (N, 3), grid (1, C, D, H, W) -> (N,)."""
    n = p.shape[0]
    tn = _pick_row_tile(n)
    n_pad = -(-n // tn) * tn

    # XLA glue, produced directly in the transposed (features, N) layout.
    emb_t = fourier_embed_T(p, params['B'])                        # (EMB, N) f32
    emb_t = jnp.pad(emb_t, ((0, EMB_PAD - EMB), (0, n_pad - n)))
    emb_t = emb_t.at[EMB, :].set(1.0).astype(jnp.bfloat16)         # ones bias row
    c_t = sample_grid_feature_T(p, grid_feature)                   # (C_DIM, N) f32
    c_t = jnp.pad(c_t, ((0, 0), (0, n_pad - n))).astype(jnp.bfloat16)

    w_inputs = _prep_kernel_weights(params)

    data_specs = [
        pl.BlockSpec((EMB_PAD, tn), lambda i: (0, i)),
        pl.BlockSpec((C_DIM, tn), lambda i: (0, i)),
    ]
    # weights/biases: full-array blocks with constant index maps (fetched once).
    w_specs = [pl.BlockSpec(w.shape, lambda i: (0, 0)) for w in w_inputs]

    macs_per_pt = (EMB_PAD * HIDDEN                       # block 0
                   + 3 * HIDDEN * HIDDEN                  # blocks 1, 2, 4
                   + HIDDEN * HIDDEN + EMB_PAD * HIDDEN   # block 3 (split skip)
                   + 4 * C_DIM * HIDDEN                   # fc_c[0..3]
                   + 8 * HIDDEN + 8 * C_DIM)              # head (8-row padded)
    weight_bytes = sum(int(w.size) * w.dtype.itemsize for w in w_inputs)
    cost = pl.CostEstimate(
        flops=2 * n_pad * macs_per_pt,
        transcendentals=0,
        bytes_accessed=n_pad * (EMB_PAD + C_DIM) * 2 + n_pad * 4 + weight_bytes,
    )

    out = pl.pallas_call(
        _mlp_kernel,
        out_shape=jax.ShapeDtypeStruct((1, n_pad), jnp.float32),
        grid_spec=pltpu.PrefetchScalarGridSpec(
            num_scalar_prefetch=0,
            grid=(n_pad // tn,),
            in_specs=data_specs + w_specs,
            out_specs=pl.BlockSpec((1, tn), lambda i: (0, i)),     # lane-dense output
        ),
        compiler_params=pltpu.CompilerParams(
            dimension_semantics=("parallel",),            # megacore-shardable (v7x)
            vmem_limit_bytes=32 * 1024 * 1024,
        ),
        cost_estimate=cost,
    )(emb_t, c_t, *w_inputs)

    return out[0, :n]                                     # (N,) == torch out.squeeze(-1)


# ------------------------------------------------------------------------------
# Deterministic parameter init matching the PyTorch module's initializers.
# ------------------------------------------------------------------------------
def init_params(key):
    keys = iter(jax.random.split(key, 16))

    def xavier(k, out_dim, in_dim, gain):                 # DenseLayer init
        bound = gain * math.sqrt(6.0 / (in_dim + out_dim))
        return jax.random.uniform(k, (out_dim, in_dim), jnp.float32, -bound, bound)

    def linear_default(k, out_dim, in_dim):               # nn.Linear default init
        kw, kb = jax.random.split(k)
        bound = 1.0 / math.sqrt(in_dim)
        return (jax.random.uniform(kw, (out_dim, in_dim), jnp.float32, -bound, bound),
                jax.random.uniform(kb, (out_dim,), jnp.float32, -bound, bound))

    params = {}
    params['B'] = jax.random.normal(next(keys), (DIM, EMB), jnp.float32) * FOURIER_SCALE
    in_dims = [EMB] + [HIDDEN + EMB if i in SKIPS else HIDDEN for i in range(N_BLOCKS - 1)]
    params['pts_w'] = [xavier(next(keys), HIDDEN, d, math.sqrt(2.0)) for d in in_dims]
    params['pts_b'] = [jnp.zeros((HIDDEN,), jnp.float32) for _ in range(N_BLOCKS)]
    fc = [linear_default(next(keys), HIDDEN, C_DIM) for _ in range(N_BLOCKS)]
    params['fc_w'] = [w for w, _ in fc]
    params['fc_b'] = [b for _, b in fc]
    params['out_w'] = xavier(next(keys), 1, HIDDEN, 1.0)
    params['out_b'] = jnp.zeros((1,), jnp.float32)
    return params


# ------------------------------------------------------------------------------
# Pure-JAX reference: exact (f32) PyTorch forward semantics.
# ------------------------------------------------------------------------------
def mlp_reference_f32(p, grid_feature, params):
    emb = fourier_embed_T(p, params['B']).T
    c = sample_grid_feature_T(p, grid_feature).T
    h = emb
    for i in range(N_BLOCKS):
        h = h @ params['pts_w'][i].T + params['pts_b'][i]
        h = jnp.maximum(h, 0.0)
        h = h + (c @ params['fc_w'][i].T + params['fc_b'][i])
        if i in SKIPS:
            h = jnp.concatenate([emb, h], axis=-1)
    out = h @ params['out_w'].T + params['out_b']
    return out[:, 0]


if __name__ == "__main__":
    key = jax.random.PRNGKey(0)
    kp, kg, kparam = jax.random.split(key, 3)

    N = 2000                    # number of query points (deliberately not a tile multiple)
    RES = 16                    # feature-grid resolution

    p = jax.random.uniform(kp, (N, DIM), jnp.float32, -1.0, 1.0)
    grid_feature = jax.random.normal(kg, (1, C_DIM, RES, RES, RES), jnp.float32)
    params = init_params(kparam)

    fwd = jax.jit(mlp_forward_pallas)
    out = fwd(p, grid_feature, params)
    jax.block_until_ready(out)
    assert out.shape == (N,), out.shape
    assert bool(jnp.all(jnp.isfinite(out)))

    # Correctness vs the exact f32 module semantics, with a tolerance sized for
    # the intentional bf16-operand / f32-accumulate kernel policy (a layout or
    # weight-plumbing bug would produce errors comparable to the output scale).
    ref = mlp_reference_f32(p, grid_feature, params)
    scale = float(jnp.maximum(jnp.max(jnp.abs(ref)), 1.0))
    max_err = float(jnp.max(jnp.abs(out - ref)))
    mean_err = float(jnp.mean(jnp.abs(out - ref)))
    assert max_err <= 5e-2 * scale, (max_err, scale)
    assert mean_err <= 2e-2 * scale, (mean_err, scale)

    print("KERNEL_OK")
</pallas_src>

<mosaic_0001>
module attributes {stable_mosaic.version = 11 : i64} {
  func.func @_mlp_kernel(%arg0: i32, %arg1: memref<128x512xbf16, #tpu.memory_space<vmem>>, %arg2: memref<128x512xbf16, #tpu.memory_space<vmem>>, %arg3: memref<256x128xbf16, #tpu.memory_space<vmem>>, %arg4: memref<256x256xbf16, #tpu.memory_space<vmem>>, %arg5: memref<256x256xbf16, #tpu.memory_space<vmem>>, %arg6: memref<256x256xbf16, #tpu.memory_space<vmem>>, %arg7: memref<256x128xbf16, #tpu.memory_space<vmem>>, %arg8: memref<256x256xbf16, #tpu.memory_space<vmem>>, %arg9: memref<256x128xbf16, #tpu.memory_space<vmem>>, %arg10: memref<256x128xbf16, #tpu.memory_space<vmem>>, %arg11: memref<256x128xbf16, #tpu.memory_space<vmem>>, %arg12: memref<256x128xbf16, #tpu.memory_space<vmem>>, %arg13: memref<8x256xbf16, #tpu.memory_space<vmem>>, %arg14: memref<8x128xbf16, #tpu.memory_space<vmem>>, %arg15: memref<256x4xf32, #tpu.memory_space<vmem>>, %arg16: memref<1x512xf32, #tpu.memory_space<vmem>>) attributes {dimension_semantics = [#tpu.dimension_semantics<parallel>], iteration_bounds = array<i64: 4>, scalar_prefetch = 0 : i64, scratch_operands = 0 : i64, tpu.core_type = #tpu.core_type<tc>, window_params = [{transform_indices = @transform_0, window_bounds = array<i64: 128, 512>}, {transform_indices = @transform_1, window_bounds = array<i64: 128, 512>}, {pipeline_mode = #tpu.pipeline_mode<synchronous>, transform_indices = @transform_2, window_bounds = array<i64: 256, 128>}, {pipeline_mode = #tpu.pipeline_mode<synchronous>, transform_indices = @transform_3, window_bounds = array<i64: 256, 256>}, {pipeline_mode = #tpu.pipeline_mode<synchronous>, transform_indices = @transform_4, window_bounds = array<i64: 256, 256>}, {pipeline_mode = #tpu.pipeline_mode<synchronous>, transform_indices = @transform_5, window_bounds = array<i64: 256, 256>}, {pipeline_mode = #tpu.pipeline_mode<synchronous>, transform_indices = @transform_6, window_bounds = array<i64: 256, 128>}, {pipeline_mode = #tpu.pipeline_mode<synchronous>, transform_indices = @transform_7, window_bounds = array<i64: 256, 256>}, {pipeline_mode = #tpu.pipeline_mode<synchronous>, transform_indices = @transform_8, window_bounds = array<i64: 256, 128>}, {pipeline_mode = #tpu.pipeline_mode<synchronous>, transform_indices = @transform_9, window_bounds = array<i64: 256, 128>}, {pipeline_mode = #tpu.pipeline_mode<synchronous>, transform_indices = @transform_10, window_bounds = array<i64: 256, 128>}, {pipeline_mode = #tpu.pipeline_mode<synchronous>, transform_indices = @transform_11, window_bounds = array<i64: 256, 128>}, {pipeline_mode = #tpu.pipeline_mode<synchronous>, transform_indices = @transform_12, window_bounds = array<i64: 8, 256>}, {pipeline_mode = #tpu.pipeline_mode<synchronous>, transform_indices = @transform_13, window_bounds = array<i64: 8, 128>}, {pipeline_mode = #tpu.pipeline_mode<synchronous>, transform_indices = @transform_14, window_bounds = array<i64: 256, 4>}, {transform_indices = @transform_15, window_bounds = array<i64: 1, 512>}]} {
    %c0 = arith.constant 0 : index
    %c0_0 = arith.constant 0 : index
    %0 = vector.load %arg1[%c0, %c0_0] : memref<128x512xbf16, #tpu.memory_space<vmem>>, vector<128x512xbf16>
    %c0_1 = arith.constant 0 : index
    %c0_2 = arith.constant 0 : index
    %1 = vector.load %arg2[%c0_1, %c0_2] : memref<128x512xbf16, #tpu.memory_space<vmem>>, vector<128x512xbf16>
    %c0_3 = arith.constant 0 : index
    %c0_4 = arith.constant 0 : index
    %2 = vector.load %arg3[%c0_3, %c0_4] : memref<256x128xbf16, #tpu.memory_space<vmem>>, vector<256x128xbf16>
    %cst = arith.constant dense<0.000000e+00> : vector<256x512xf32>
    %3 = tpu.matmul %2, %0, %cst {dimension_numbers = #tpu.dot_dimension_numbers<[1], [0], [0], [1], [0, 0, 1, 1], [], []>} : vector<256x128xbf16>, vector<128x512xbf16>, vector<256x512xf32> -> vector<256x512xf32>
    %cst_5 = arith.constant 0.000000e+00 : f32
    %4 = vector.broadcast %cst_5 : f32 to vector<256x512xf32>
    %5 = arith.maximumf %3, %4 : vector<256x512xf32>
    %c0_6 = arith.constant 0 : index
    %c0_7 = arith.constant 0 : index
    %6 = vector.load %arg9[%c0_6, %c0_7] : memref<256x128xbf16, #tpu.memory_space<vmem>>, vector<256x128xbf16>
    %cst_8 = arith.constant dense<0.000000e+00> : vector<256x512xf32>
    %7 = tpu.matmul %6, %1, %cst_8 {dimension_numbers = #tpu.dot_dimension_numbers<[1], [0], [0], [1], [0, 0, 1, 1], [], []>} : vector<256x128xbf16>, vector<128x512xbf16>, vector<256x512xf32> -> vector<256x512xf32>
    %8 = arith.addf %5, %7 : vector<256x512xf32>
    %c0_9 = arith.constant 0 : index
    %c0_10 = arith.constant 0 : index
    %9 = vector.load %arg4[%c0_9, %c0_10] : memref<256x256xbf16, #tpu.memory_space<vmem>>, vector<256x256xbf16>
    %10 = arith.truncf %8 : vector<256x512xf32> to vector<256x512xbf16>
    %cst_11 = arith.constant dense<0.000000e+00> : vector<256x512xf32>
    %11 = tpu.matmul %9, %10, %cst_11 {dimension_numbers = #tpu.dot_dimension_numbers<[1], [0], [0], [1], [0, 0, 1, 1], [], []>} : vector<256x256xbf16>, vector<256x512xbf16>, vector<256x512xf32> -> vector<256x512xf32>
    %c0_12 = arith.constant 0 : index
    %c0_13 = arith.constant 0 : index
    %12 = vector.load %arg15[%c0_12, %c0_13] : memref<256x4xf32, #tpu.memory_space<vmem>>, vector<256x1xf32>
    %13 = vector.broadcast %12 : vector<256x1xf32> to vector<256x512xf32>
    %14 = arith.addf %11, %13 : vector<256x512xf32>
    %cst_14 = arith.constant 0.000000e+00 : f32
    %15 = vector.broadcast %cst_14 : f32 to vector<256x512xf32>
    %16 = arith.maximumf %14, %15 : vector<256x512xf32>
    %c0_15 = arith.constant 0 : index
    %c0_16 = arith.constant 0 : index
    %17 = vector.load %arg10[%c0_15, %c0_16] : memref<256x128xbf16, #tpu.memory_space<vmem>>, vector<256x128xbf16>
    %cst_17 = arith.constant dense<0.000000e+00> : vector<256x512xf32>
    %18 = tpu.matmul %17, %1, %cst_17 {dimension_numbers = #tpu.dot_dimension_numbers<[1], [0], [0], [1], [0, 0, 1, 1], [], []>} : vector<256x128xbf16>, vector<128x512xbf16>, vector<256x512xf32> -> vector<256x512xf32>
    %19 = arith.addf %16, %18 : vector<256x512xf32>
    %c0_18 = arith.constant 0 : index
    %c0_19 = arith.constant 0 : index
    %20 = vector.load %arg5[%c0_18, %c0_19] : memref<256x256xbf16, #tpu.memory_space<vmem>>, vector<256x256xbf16>
    %21 = arith.truncf %19 : vector<256x512xf32> to vector<256x512xbf16>
    %cst_20 = arith.constant dense<0.000000e+00> : vector<256x512xf32>
    %22 = tpu.matmul %20, %21, %cst_20 {dimension_numbers = #tpu.dot_dimension_numbers<[1], [0], [0], [1], [0, 0, 1, 1], [], []>} : vector<256x256xbf16>, vector<256x512xbf16>, vector<256x512xf32> -> vector<256x512xf32>
    %c0_21 = arith.constant 0 : index
    %c1 = arith.constant 1 : index
    %23 = vector.load %arg15[%c0_21, %c1] : memref<256x4xf32, #tpu.memory_space<vmem>>, vector<256x1xf32>
    %24 = vector.broadcast %23 : vector<256x1xf32> to vector<256x512xf32>
    %25 = arith.addf %22, %24 : vector<256x512xf32>
    %cst_22 = arith.constant 0.000000e+00 : f32
    %26 = vector.broadcast %cst_22 : f32 to vector<256x512xf32>
    %27 = arith.maximumf %25, %26 : vector<256x512xf32>
    %c0_23 = arith.constant 0 : index
    %c0_24 = arith.constant 0 : index
    %28 = vector.load %arg11[%c0_23, %c0_24] : memref<256x128xbf16, #tpu.memory_space<vmem>>, vector<256x128xbf16>
    %cst_25 = arith.constant dense<0.000000e+00> : vector<256x512xf32>
    %29 = tpu.matmul %28, %1, %cst_25 {dimension_numbers = #tpu.dot_dimension_numbers<[1], [0], [0], [1], [0, 0, 1, 1], [], []>} : vector<256x128xbf16>, vector<128x512xbf16>, vector<256x512xf32> -> vector<256x512xf32>
    %30 = arith.addf %27, %29 : vector<256x512xf32>
    %c0_26 = arith.constant 0 : index
    %c0_27 = arith.constant 0 : index
    %31 = vector.load %arg6[%c0_26, %c0_27] : memref<256x256xbf16, #tpu.memory_space<vmem>>, vector<256x256xbf16>
    %32 = arith.truncf %30 : vector<256x512xf32> to vector<256x512xbf16>
    %cst_28 = arith.constant dense<0.000000e+00> : vector<256x512xf32>
    %33 = tpu.matmul %31, %32, %cst_28 {dimension_numbers = #tpu.dot_dimension_numbers<[1], [0], [0], [1], [0, 0, 1, 1], [], []>} : vector<256x256xbf16>, vector<256x512xbf16>, vector<256x512xf32> -> vector<256x512xf32>
    %c0_29 = arith.constant 0 : index
    %c0_30 = arith.constant 0 : index
    %34 = vector.load %arg7[%c0_29, %c0_30] : memref<256x128xbf16, #tpu.memory_space<vmem>>, vector<256x128xbf16>
    %cst_31 = arith.constant dense<0.000000e+00> : vector<256x512xf32>
    %35 = tpu.matmul %34, %0, %cst_31 {dimension_numbers = #tpu.dot_dimension_numbers<[1], [0], [0], [1], [0, 0, 1, 1], [], []>} : vector<256x128xbf16>, vector<128x512xbf16>, vector<256x512xf32> -> vector<256x512xf32>
    %36 = arith.addf %33, %35 : vector<256x512xf32>
    %cst_32 = arith.constant 0.000000e+00 : f32
    %37 = vector.broadcast %cst_32 : f32 to vector<256x512xf32>
    %38 = arith.maximumf %36, %37 : vector<256x512xf32>
    %c0_33 = arith.constant 0 : index
    %c0_34 = arith.constant 0 : index
    %39 = vector.load %arg12[%c0_33, %c0_34] : memref<256x128xbf16, #tpu.memory_space<vmem>>, vector<256x128xbf16>
    %cst_35 = arith.constant dense<0.000000e+00> : vector<256x512xf32>
    %40 = tpu.matmul %39, %1, %cst_35 {dimension_numbers = #tpu.dot_dimension_numbers<[1], [0], [0], [1], [0, 0, 1, 1], [], []>} : vector<256x128xbf16>, vector<128x512xbf16>, vector<256x512xf32> -> vector<256x512xf32>
    %41 = arith.addf %38, %40 : vector<256x512xf32>
    %c0_36 = arith.constant 0 : index
    %c0_37 = arith.constant 0 : index
    %42 = vector.load %arg8[%c0_36, %c0_37] : memref<256x256xbf16, #tpu.memory_space<vmem>>, vector<256x256xbf16>
    %43 = arith.truncf %41 : vector<256x512xf32> to vector<256x512xbf16>
    %cst_38 = arith.constant dense<0.000000e+00> : vector<256x512xf32>
    %44 = tpu.matmul %42, %43, %cst_38 {dimension_numbers = #tpu.dot_dimension_numbers<[1], [0], [0], [1], [0, 0, 1, 1], [], []>} : vector<256x256xbf16>, vector<256x512xbf16>, vector<256x512xf32> -> vector<256x512xf32>
    %c0_39 = arith.constant 0 : index
    %c2 = arith.constant 2 : index
    %45 = vector.load %arg15[%c0_39, %c2] : memref<256x4xf32, #tpu.memory_space<vmem>>, vector<256x1xf32>
    %46 = vector.broadcast %45 : vector<256x1xf32> to vector<256x512xf32>
    %47 = arith.addf %44, %46 : vector<256x512xf32>
    %cst_40 = arith.constant 0.000000e+00 : f32
    %48 = vector.broadcast %cst_40 : f32 to vector<256x512xf32>
    %49 = arith.maximumf %47, %48 : vector<256x512xf32>
    %50 = arith.truncf %49 : vector<256x512xf32> to vector<256x512xbf16>
    %c0_41 = arith.constant 0 : index
    %c0_42 = arith.constant 0 : index
    %51 = vector.load %arg13[%c0_41, %c0_42] : memref<8x256xbf16, #tpu.memory_space<vmem>>, vector<8x256xbf16>
    %cst_43 = arith.constant dense<0.000000e+00> : vector<8x512xf32>
    %52 = tpu.matmul %51, %50, %cst_43 {dimension_numbers = #tpu.dot_dimension_numbers<[1], [0], [0], [1], [0, 0, 1, 1], [], []>} : vector<8x256xbf16>, vector<256x512xbf16>, vector<8x512xf32> -> vector<8x512xf32>
    %c0_44 = arith.constant 0 : index
    %c0_45 = arith.constant 0 : index
    %53 = vector.load %arg14[%c0_44, %c0_45] : memref<8x128xbf16, #tpu.memory_space<vmem>>, vector<8x128xbf16>
    %cst_46 = arith.constant dense<0.000000e+00> : vector<8x512xf32>
    %54 = tpu.matmul %53, %1, %cst_46 {dimension_numbers = #tpu.dot_dimension_numbers<[1], [0], [0], [1], [0, 0, 1, 1], [], []>} : vector<8x128xbf16>, vector<128x512xbf16>, vector<8x512xf32> -> vector<8x512xf32>
    %55 = arith.addf %52, %54 : vector<8x512xf32>
    %56 = vector.extract_strided_slice %55 {offsets = [0, 0], sizes = [1, 512], strides = [1, 1]} : vector<8x512xf32> to vector<1x512xf32>
    %c0_47 = arith.constant 0 : index
    %c3 = arith.constant 3 : index
    %57 = vector.load %arg15[%c0_47, %c3] : memref<256x4xf32, #tpu.memory_space<vmem>>, vector<1x1xf32>
    %58 = vector.broadcast %57 : vector<1x1xf32> to vector<1x512xf32>
    %59 = arith.addf %56, %58 : vector<1x512xf32>
    %c0_48 = arith.constant 0 : index
    %c0_49 = arith.constant 0 : index
    %60 = vector.load %arg16[%c0_48, %c0_49] : memref<1x512xf32, #tpu.memory_space<vmem>>, vector<1x512xf32>
    tpu.vector_store %arg16[%c0_48, %c0_49], %59 {strides = array<i32>} : memref<1x512xf32, #tpu.memory_space<vmem>>, vector<1x512xf32>,
    return
  }
  func.func @transform_0(%arg0: i32) -> (i32, i32) {
    %c0_i32 = arith.constant 0 : i32
    %c0_i32_0 = arith.constant 0 : i32
    return %c0_i32, %arg0 : i32, i32
  }
  func.func @transform_1(%arg0: i32) -> (i32, i32) {
    %c0_i32 = arith.constant 0 : i32
    %c0_i32_0 = arith.constant 0 : i32
    return %c0_i32, %arg0 : i32, i32
  }
  func.func @transform_2(%arg0: i32) -> (i32, i32) {
    %c0_i32 = arith.constant 0 : i32
    %c0_i32_0 = arith.constant 0 : i32
    %c0_i32_1 = arith.constant 0 : i32
    return %c0_i32, %c0_i32_0 : i32, i32
  }
  func.func @transform_3(%arg0: i32) -> (i32, i32) {
    %c0_i32 = arith.constant 0 : i32
    %c0_i32_0 = arith.constant 0 : i32
    %c0_i32_1 = arith.constant 0 : i32
    return %c0_i32, %c0_i32_0 : i32, i32
  }
  func.func @transform_4(%arg0: i32) -> (i32, i32) {
    %c0_i32 = arith.constant 0 : i32
    %c0_i32_0 = arith.constant 0 : i32
    %c0_i32_1 = arith.constant 0 : i32
    return %c0_i32, %c0_i32_0 : i32, i32
  }
  func.func @transform_5(%arg0: i32) -> (i32, i32) {
    %c0_i32 = arith.constant 0 : i32
    %c0_i32_0 = arith.constant 0 : i32
    %c0_i32_1 = arith.constant 0 : i32
    return %c0_i32, %c0_i32_0 : i32, i32
  }
  func.func @transform_6(%arg0: i32) -> (i32, i32) {
    %c0_i32 = arith.constant 0 : i32
    %c0_i32_0 = arith.constant 0 : i32
    %c0_i32_1 = arith.constant 0 : i32
    return %c0_i32, %c0_i32_0 : i32, i32
  }
  func.func @transform_7(%arg0: i32) -> (i32, i32) {
    %c0_i32 = arith.constant 0 : i32
    %c0_i32_0 = arith.constant 0 : i32
    %c0_i32_1 = arith.constant 0 : i32
    return %c0_i32, %c0_i32_0 : i32, i32
  }
  func.func @transform_8(%arg0: i32) -> (i32, i32) {
    %c0_i32 = arith.constant 0 : i32
    %c0_i32_0 = arith.constant 0 : i32
    %c0_i32_1 = arith.constant 0 : i32
    return %c0_i32, %c0_i32_0 : i32, i32
  }
  func.func @transform_9(%arg0: i32) -> (i32, i32) {
    %c0_i32 = arith.constant 0 : i32
    %c0_i32_0 = arith.constant 0 : i32
    %c0_i32_1 = arith.constant 0 : i32
    return %c0_i32, %c0_i32_0 : i32, i32
  }
  func.func @transform_10(%arg0: i32) -> (i32, i32) {
    %c0_i32 = arith.constant 0 : i32
    %c0_i32_0 = arith.constant 0 : i32
    %c0_i32_1 = arith.constant 0 : i32
    return %c0_i32, %c0_i32_0 : i32, i32
  }
  func.func @transform_11(%arg0: i32) -> (i32, i32) {
    %c0_i32 = arith.constant 0 : i32
    %c0_i32_0 = arith.constant 0 : i32
    %c0_i32_1 = arith.constant 0 : i32
    return %c0_i32, %c0_i32_0 : i32, i32
  }
  func.func @transform_12(%arg0: i32) -> (i32, i32) {
    %c0_i32 = arith.constant 0 : i32
    %c0_i32_0 = arith.constant 0 : i32
    %c0_i32_1 = arith.constant 0 : i32
    return %c0_i32, %c0_i32_0 : i32, i32
  }
  func.func @transform_13(%arg0: i32) -> (i32, i32) {
    %c0_i32 = arith.constant 0 : i32
    %c0_i32_0 = arith.constant 0 : i32
    %c0_i32_1 = arith.constant 0 : i32
    return %c0_i32, %c0_i32_0 : i32, i32
  }
  func.func @transform_14(%arg0: i32) -> (i32, i32) {
    %c0_i32 = arith.constant 0 : i32
    %c0_i32_0 = arith.constant 0 : i32
    %c0_i32_1 = arith.constant 0 : i32
    return %c0_i32, %c0_i32_0 : i32, i32
  }
  func.func @transform_15(%arg0: i32) -> (i32, i32) {
    %c0_i32 = arith.constant 0 : i32
    %c0_i32_0 = arith.constant 0 : i32
    return %c0_i32, %arg0 : i32, i32
  }
}

</mosaic_0001>

<bundles_post_ra>
// kernel: mlp_forward_pallas.1
= control target key start
LH: loop header
LB: loop body
LE: loop exit
PB: predicated region body
PF: predicated region fallthrough
CT: control target
= control target key end

     0   :  { %s16134_s0 = inlined_call_operand.vmem [shape: bf16[128,2048], index: 0, kind: input, shape index: {}]   ;;  %s16135_s1 = inlined_call_operand.vmem [shape: bf16[128,2048], index: 1, kind: input, shape index: {}]   ;;  %s16136_s2 = inlined_call_operand.vmem [shape: bf16[256,128], index: 2, kind: input, shape index: {}]   ;;  %s16137_s3 = inlined_call_operand.vmem [shape: bf16[256,256], index: 3, kind: input, shape index: {}]   ;;  %s16138_s4 = inlined_call_operand.vmem [shape: bf16[256,256], index: 4, kind: input, shape index: {}]   ;;  %s16139_s5 = inlined_call_operand.vmem [shape: bf16[256,256], index: 5, kind: input, shape index: {}]   ;;  %s16140_s6 = inlined_call_operand.vmem [shape: bf16[256,128], index: 6, kind: input, shape index: {}]   ;;  %s16141_s7 = inlined_call_operand.vmem [shape: bf16[256,256], index: 7, kind: input, shape index: {}]   ;;  %s16142_s8 = inlined_call_operand.vmem [shape: bf16[256,128], index: 8, kind: input, shape index: {}]   ;;  %s16143_s9 = inlined_call_operand.vmem [shape: bf16[256,128], index: 9, kind: input, shape index: {}]   ;;  %s16144_s10 = inlined_call_operand.vmem [shape: bf16[256,128], index: 10, kind: input, shape index: {}]   ;;  %s16145_s11 = inlined_call_operand.vmem [shape: bf16[256,128], index: 11, kind: input, shape index: {}]   ;;  %s16146_s12 = inlined_call_operand.vmem [shape: bf16[8,256], index: 12, kind: input, shape index: {}]   ;;  %s16147_s13 = inlined_call_operand.vmem [shape: bf16[8,128], index: 13, kind: input, shape index: {}]   ;;  %s16148_s14 = inlined_call_operand.vmem [shape: f32[256,4], index: 14, kind: input, shape index: {}]   ;;  %s16149_s15 = inlined_call_operand.hbm [shape: f32[1,2048], index: 15, kind: output, shape index: {}]  }
   0x1   :  { %16455 = sst [smem:[#allocation229_spill]] %s16134_s0 }
   0x2   :  { %16456 = sst [smem:[#allocation230_spill]] %s16135_s1 }
   0x3   :  { %16457 = sst [smem:[#allocation231_spill]] %s16136_s2 }
   0x4   :  { %16458 = sst [smem:[#allocation232_spill]] %s16137_s3 }
   0x5   :  { %16459 = sst [smem:[#allocation233_spill]] %s16138_s4 }
   0x6   :  { %20 = vsyncpa [#allocation5], 0 }
   0x7   :  { %22 = vsyncpa [#allocation5 + $0x1], 0  ;;  %s9816_s18 = smov 0   ;;  %s9818_s19 = smov 0  }
   0x8   :  { %s9820_s20 = smov 0   ;;  %s9822_s21 = smov 0  }
   0x9 LB: > { %s16150_s22 = sadd.s32 4294967295, %s9728_s21   ;;  %s8696_s23 = sadd.s32 4294967294, %s9728_s21   ;;  %s9728_s21 = sphi %s9822_s21, %s18313_s21   ;;  %s9724_s20 = sphi %s9820_s20, %s18312_s20   ;;  %s9720_s19 = sphi %s9818_s19, %s18311_s19   ;;  %s9716_s18 = sphi %s9816_s18, %s18310_s18  }
   0xa   : > { %s9839_s24 = sadd.s32 1, %s9728_s21   ;;  %s35_s25 = sadd.s32 1, %s9724_s20 }
   0xb   : > { %s32_s26 = ssub.s32 %s9728_s21, %s9839_s24  ;;  %p42_p0 = scmp.ne.s32.totalorder %s9724_s20, %s9720_s19 }
   0xc   : > { %p33_p1 = scmp.eq.s32.totalorder %s32_s26, 0  ;;  %p43_p2 = scmp.eq.s32.totalorder %s9728_s21, 0 }
   0xd   : > { %p371_p3 = scmp.eq.s32.totalorder %s16150_s22, 3  ;;  %p376_p4 = scmp.ne.s32.totalorder %s9720_s19, %s9716_s18 }
   0xe   : > { %s9852_s27 = scalar_select %p33_p1, %s9724_s20, %s35_s25  }
   0xf   : > { %p9854_p5 = por %p43_p2, %p42_p0  ;;  %p9858_p6 = por %p371_p3, %p42_p0 }
  0x10   : > { %16460 = sst [smem:[#allocation7_spill]] %s9852_s27  ;;  %p377_p7 = scmp.eq.s32.totalorder %s8696_s23, 3 }
  0x11   : > { %p8698_p9 = scmp.ge.s32.totalorder %s9728_s21, 4 }
  0x12   : > { %p9862_p8 = por %p377_p7, %p376_p4 }
  0x13   : > { %432 = sbr.rel (%p8698_p9) target bundleno = 76 (0x4c), region = 68 }
  0x18   : > { %435 = sbr.rel (!%p9854_p5) target bundleno = 50 (0x32), region = 72  ;;  %s437_s16 = sand.u32 (%p9854_p5), 1, %s9724_s20  }
  0x19   : > { %s9004_s17 = sshll.u32 (%p9854_p5), %s9728_s21, 4  ;;  %s8699_s25 = sshll.u32 (%p9854_p5), %s437_s16, 8 }
  0x1a   : > { %s16464_s0 = sld [smem:[#allocation229_spill]] (%p9854_p5)  ;;  %s9879_s23 = scalar_lea.vmem (%p9854_p5), [#allocation2], %s8699_s25 }
  0x20   : > { %s9874_s27 = scalar_lea.vmem %s16464_s0, %s9004_s17 }
  0x21   : > { %v455_v0 = vld [vmem:[%s9874_s27] sm:$0xff]  ;;  %v457_v1 = vld [vmem:[%s9874_s27 + $0x8] sm:$0xff] }
  0x22   : > { %v459_v2 = vld [vmem:[%s9874_s27 + $0x40] sm:$0xff]  ;;  %456 = vst [vmem:[%s9879_s23] sm:$0xff] %v455_v0  ;;  %458 = vst [vmem:[%s9879_s23 + $0x8] sm:$0xff] %v457_v1  ;;  %v461_v3 = vld [vmem:[%s9874_s27 + $0x48] sm:$0xff] }
  0x23   : > { %460 = vst [vmem:[%s9879_s23 + $0x10] sm:$0xff] %v459_v2  ;;  %v463_v4 = vld [vmem:[%s9874_s27 + $0x80] sm:$0xff]  ;;  %v465_v5 = vld [vmem:[%s9874_s27 + $0x88] sm:$0xff]  ;;  %462 = vst [vmem:[%s9879_s23 + $0x18] sm:$0xff] %v461_v3 }
  0x24   : > { %464 = vst [vmem:[%s9879_s23 + $0x20] sm:$0xff] %v463_v4  ;;  %466 = vst [vmem:[%s9879_s23 + $0x28] sm:$0xff] %v465_v5  ;;  %v467_v6 = vld [vmem:[%s9874_s27 + $0xc0] sm:$0xff]  ;;  %v469_v7 = vld [vmem:[%s9874_s27 + $0xc8] sm:$0xff] }
  0x25   : > { %v471_v8 = vld [vmem:[%s9874_s27 + $0x100] sm:$0xff]  ;;  %468 = vst [vmem:[%s9879_s23 + $0x30] sm:$0xff] %v467_v6  ;;  %470 = vst [vmem:[%s9879_s23 + $0x38] sm:$0xff] %v469_v7  ;;  %v473_v9 = vld [vmem:[%s9874_s27 + $0x108] sm:$0xff] }
  0x26   : > { %472 = vst [vmem:[%s9879_s23 + $0x40] sm:$0xff] %v471_v8  ;;  %v475_v10 = vld [vmem:[%s9874_s27 + $0x140] sm:$0xff]  ;;  %v477_v11 = vld [vmem:[%s9874_s27 + $0x148] sm:$0xff]  ;;  %474 = vst [vmem:[%s9879_s23 + $0x48] sm:$0xff] %v473_v9 }
  0x27   : > { %476 = vst [vmem:[%s9879_s23 + $0x50] sm:$0xff] %v475_v10  ;;  %478 = vst [vmem:[%s9879_s23 + $0x58] sm:$0xff] %v477_v11  ;;  %v479_v12 = vld [vmem:[%s9874_s27 + $0x180] sm:$0xff]  ;;  %v481_v13 = vld [vmem:[%s9874_s27 + $0x188] sm:$0xff] }
  0x28   : > { %v483_v14 = vld [vmem:[%s9874_s27 + $0x1c0] sm:$0xff]  ;;  %480 = vst [vmem:[%s9879_s23 + $0x60] sm:$0xff] %v479_v12  ;;  %482 = vst [vmem:[%s9879_s23 + $0x68] sm:$0xff] %v481_v13  ;;  %v485_v15 = vld [vmem:[%s9874_s27 + $0x1c8] sm:$0xff] }
  0x29   : > { %484 = vst [vmem:[%s9879_s23 + $0x70] sm:$0xff] %v483_v14  ;;  %v487_v16 = vld [vmem:[%s9874_s27 + $0x200] sm:$0xff]  ;;  %v489_v17 = vld [vmem:[%s9874_s27 + $0x208] sm:$0xff]  ;;  %486 = vst [vmem:[%s9879_s23 + $0x78] sm:$0xff] %v485_v15 }
  0x2a   : > { %488 = vst [vmem:[%s9879_s23 + $0x80] sm:$0xff] %v487_v16  ;;  %490 = vst [vmem:[%s9879_s23 + $0x88] sm:$0xff] %v489_v17  ;;  %v491_v18 = vld [vmem:[%s9874_s27 + $0x240] sm:$0xff]  ;;  %v493_v19 = vld [vmem:[%s9874_s27 + $0x248] sm:$0xff] }
  0x2b   : > { %v495_v20 = vld [vmem:[%s9874_s27 + $0x280] sm:$0xff]  ;;  %492 = vst [vmem:[%s9879_s23 + $0x90] sm:$0xff] %v491_v18  ;;  %494 = vst [vmem:[%s9879_s23 + $0x98] sm:$0xff] %v493_v19  ;;  %v497_v21 = vld [vmem:[%s9874_s27 + $0x288] sm:$0xff] }
  0x2c   : > { %496 = vst [vmem:[%s9879_s23 + $0xa0] sm:$0xff] %v495_v20  ;;  %v499_v22 = vld [vmem:[%s9874_s27 + $0x2c0] sm:$0xff]  ;;  %v501_v23 = vld [vmem:[%s9874_s27 + $0x2c8] sm:$0xff]  ;;  %498 = vst [vmem:[%s9879_s23 + $0xa8] sm:$0xff] %v497_v21 }
  0x2d   : > { %500 = vst [vmem:[%s9879_s23 + $0xb0] sm:$0xff] %v499_v22  ;;  %502 = vst [vmem:[%s9879_s23 + $0xb8] sm:$0xff] %v501_v23  ;;  %v503_v24 = vld [vmem:[%s9874_s27 + $0x300] sm:$0xff]  ;;  %v505_v25 = vld [vmem:[%s9874_s27 + $0x308] sm:$0xff] }
  0x2e   : > { %v507_v26 = vld [vmem:[%s9874_s27 + $0x340] sm:$0xff]  ;;  %504 = vst [vmem:[%s9879_s23 + $0xc0] sm:$0xff] %v503_v24  ;;  %506 = vst [vmem:[%s9879_s23 + $0xc8] sm:$0xff] %v505_v25  ;;  %v509_v27 = vld [vmem:[%s9874_s27 + $0x348] sm:$0xff] }
  0x2f   : > { %508 = vst [vmem:[%s9879_s23 + $0xd0] sm:$0xff] %v507_v26  ;;  %v511_v28 = vld [vmem:[%s9874_s27 + $0x380] sm:$0xff]  ;;  %v513_v29 = vld [vmem:[%s9874_s27 + $0x388] sm:$0xff]  ;;  %510 = vst [vmem:[%s9879_s23 + $0xd8] sm:$0xff] %v509_v27 }
  0x30   : > { %512 = vst [vmem:[%s9879_s23 + $0xe0] sm:$0xff] %v511_v28  ;;  %514 = vst [vmem:[%s9879_s23 + $0xe8] sm:$0xff] %v513_v29  ;;  %v515_v30 = vld [vmem:[%s9874_s27 + $0x3c0] sm:$0xff]  ;;  %v517_v31 = vld [vmem:[%s9874_s27 + $0x3c8] sm:$0xff] }
  0x31   : > { %516 = vst [vmem:[%s9879_s23 + $0xf0] sm:$0xff] %v515_v30  ;;  %518 = vst [vmem:[%s9879_s23 + $0xf8] sm:$0xff] %v517_v31 }
  0x32 PF: > { %524 = sbr.rel (!%p9854_p5) target bundleno = 76 (0x4c), region = 95  ;;  %s526_s22 = sand.u32 (%p9854_p5), 1, %s9724_s20  }
  0x33   : > { %s9005_s16 = sshll.u32 (%p9854_p5), %s9728_s21, 4  ;;  %s8702_s17 = sshll.u32 (%p9854_p5), %s526_s22, 8 }
  0x34   : > { %s16465_s1 = sld [smem:[#allocation230_spill]] (%p9854_p5)  ;;  %s9954_s27 = scalar_lea.vmem (%p9854_p5), [#allocation3], %s8702_s17 }
  0x3a   : > { %s9949_s0 = scalar_lea.vmem %s16465_s1, %s9005_s16 }
  0x3b   : > { %v544_v32 = vld [vmem:[%s9949_s0] sm:$0xff]  ;;  %v546_v33 = vld [vmem:[%s9949_s0 + $0x8] sm:$0xff] }
  0x3c   : > { %v548_v34 = vld [vmem:[%s9949_s0 + $0x40] sm:$0xff]  ;;  %545 = vst [vmem:[%s9954_s27] sm:$0xff] %v544_v32  ;;  %547 = vst [vmem:[%s9954_s27 + $0x8] sm:$0xff] %v546_v33  ;;  %v550_v35 = vld [vmem:[%s9949_s0 + $0x48] sm:$0xff] }
  0x3d   : > { %549 = vst [vmem:[%s9954_s27 + $0x10] sm:$0xff] %v548_v34  ;;  %v552_v36 = vld [vmem:[%s9949_s0 + $0x80] sm:$0xff]  ;;  %v554_v37 = vld [vmem:[%s9949_s0 + $0x88] sm:$0xff]  ;;  %551 = vst [vmem:[%s9954_s27 + $0x18] sm:$0xff] %v550_v35 }
  0x3e   : > { %553 = vst [vmem:[%s9954_s27 + $0x20] sm:$0xff] %v552_v36  ;;  %555 = vst [vmem:[%s9954_s27 + $0x28] sm:$0xff] %v554_v37  ;;  %v556_v38 = vld [vmem:[%s9949_s0 + $0xc0] sm:$0xff]  ;;  %v558_v39 = vld [vmem:[%s9949_s0 + $0xc8] sm:$0xff] }
  0x3f   : > { %v560_v40 = vld [vmem:[%s9949_s0 + $0x100] sm:$0xff]  ;;  %557 = vst [vmem:[%s9954_s27 + $0x30] sm:$0xff] %v556_v38  ;;  %559 = vst [vmem:[%s9954_s27 + $0x38] sm:$0xff] %v558_v39  ;;  %v562_v41 = vld [vmem:[%s9949_s0 + $0x108] sm:$0xff] }
  0x40   : > { %561 = vst [vmem:[%s9954_s27 + $0x40] sm:$0xff] %v560_v40  ;;  %v564_v42 = vld [vmem:[%s9949_s0 + $0x140] sm:$0xff]  ;;  %v566_v43 = vld [vmem:[%s9949_s0 + $0x148] sm:$0xff]  ;;  %563 = vst [vmem:[%s9954_s27 + $0x48] sm:$0xff] %v562_v41 }
  0x41   : > { %565 = vst [vmem:[%s9954_s27 + $0x50] sm:$0xff] %v564_v42  ;;  %567 = vst [vmem:[%s9954_s27 + $0x58] sm:$0xff] %v566_v43  ;;  %v568_v44 = vld [vmem:[%s9949_s0 + $0x180] sm:$0xff]  ;;  %v570_v45 = vld [vmem:[%s9949_s0 + $0x188] sm:$0xff] }
  0x42   : > { %v572_v46 = vld [vmem:[%s9949_s0 + $0x1c0] sm:$0xff]  ;;  %569 = vst [vmem:[%s9954_s27 + $0x60] sm:$0xff] %v568_v44  ;;  %571 = vst [vmem:[%s9954_s27 + $0x68] sm:$0xff] %v570_v45  ;;  %v574_v47 = vld [vmem:[%s9949_s0 + $0x1c8] sm:$0xff] }
  0x43   : > { %573 = vst [vmem:[%s9954_s27 + $0x70] sm:$0xff] %v572_v46  ;;  %v576_v48 = vld [vmem:[%s9949_s0 + $0x200] sm:$0xff]  ;;  %v578_v49 = vld [vmem:[%s9949_s0 + $0x208] sm:$0xff]  ;;  %575 = vst [vmem:[%s9954_s27 + $0x78] sm:$0xff] %v574_v47 }
  0x44   : > { %577 = vst [vmem:[%s9954_s27 + $0x80] sm:$0xff] %v576_v48  ;;  %579 = vst [vmem:[%s9954_s27 + $0x88] sm:$0xff] %v578_v49  ;;  %v580_v50 = vld [vmem:[%s9949_s0 + $0x240] sm:$0xff]  ;;  %v582_v51 = vld [vmem:[%s9949_s0 + $0x248] sm:$0xff] }
  0x45   : > { %v584_v52 = vld [vmem:[%s9949_s0 + $0x280] sm:$0xff]  ;;  %581 = vst [vmem:[%s9954_s27 + $0x90] sm:$0xff] %v580_v50  ;;  %583 = vst [vmem:[%s9954_s27 + $0x98] sm:$0xff] %v582_v51  ;;  %v586_v53 = vld [vmem:[%s9949_s0 + $0x288] sm:$0xff] }
  0x46   : > { %585 = vst [vmem:[%s9954_s27 + $0xa0] sm:$0xff] %v584_v52  ;;  %v588_v54 = vld [vmem:[%s9949_s0 + $0x2c0] sm:$0xff]  ;;  %v590_v55 = vld [vmem:[%s9949_s0 + $0x2c8] sm:$0xff]  ;;  %587 = vst [vmem:[%s9954_s27 + $0xa8] sm:$0xff] %v586_v53 }
  0x47   : > { %589 = vst [vmem:[%s9954_s27 + $0xb0] sm:$0xff] %v588_v54  ;;  %591 = vst [vmem:[%s9954_s27 + $0xb8] sm:$0xff] %v590_v55  ;;  %v592_v56 = vld [vmem:[%s9949_s0 + $0x300] sm:$0xff]  ;;  %v594_v57 = vld [vmem:[%s9949_s0 + $0x308] sm:$0xff] }
  0x48   : > { %v596_v58 = vld [vmem:[%s9949_s0 + $0x340] sm:$0xff]  ;;  %593 = vst [vmem:[%s9954_s27 + $0xc0] sm:$0xff] %v592_v56  ;;  %595 = vst [vmem:[%s9954_s27 + $0xc8] sm:$0xff] %v594_v57  ;;  %v598_v59 = vld [vmem:[%s9949_s0 + $0x348] sm:$0xff] }
  0x49   : > { %597 = vst [vmem:[%s9954_s27 + $0xd0] sm:$0xff] %v596_v58  ;;  %v600_v60 = vld [vmem:[%s9949_s0 + $0x380] sm:$0xff]  ;;  %v602_v61 = vld [vmem:[%s9949_s0 + $0x388] sm:$0xff]  ;;  %599 = vst [vmem:[%s9954_s27 + $0xd8] sm:$0xff] %v598_v59 }
  0x4a   : > { %601 = vst [vmem:[%s9954_s27 + $0xe0] sm:$0xff] %v600_v60  ;;  %603 = vst [vmem:[%s9954_s27 + $0xe8] sm:$0xff] %v602_v61  ;;  %v604_v62 = vld [vmem:[%s9949_s0 + $0x3c0] sm:$0xff]  ;;  %v606_v63 = vld [vmem:[%s9949_s0 + $0x3c8] sm:$0xff] }
  0x4b   : > { %605 = vst [vmem:[%s9954_s27 + $0xf0] sm:$0xff] %v604_v62  ;;  %607 = vst [vmem:[%s9954_s27 + $0xf8] sm:$0xff] %v606_v63 }
  0x4c PF: > { %p8705_p10 = scmp.ge.s32.totalorder %s9728_s21, 1  ;;  %p612_p11 = scmp.lt.s32.totalorder %s9728_s21, 5 }
  0x4e   : > { %p613_p12 = pnand %p8705_p10, %p612_p11 }
  0x50   : > { %616 = sbr.rel (%p613_p12) target bundleno = 2633 (0xa49), region = 118 }
  0x55   : > { %s10020_s28 = sand.u32 1, %s9720_s19   ;;  %v16151_v0 = vmov 0   ;;  %s16466_s2 = sld [smem:[#allocation231_spill]] }
  0x56   : > { %s8706_s23 = sshll.u32 %s10020_s28, 8  ;;  %1065 = vmatprep.mubr.bf16.mxu0 %v16151_v0  ;;  %1258 = vmatprep.mubr.bf16.mxu1 %v16151_v0  ;;  %s16577_s3 = sld [smem:[#allocation232_spill]] }
  0x57   : > { %9051 = vset.pattern.permute.xlu0 %v16151_v0  ;;  %9052 = vset.pattern.permute.xlu1 %v16151_v0  ;;  %s10029_s0 = scalar_lea.vmem [#allocation2], %s8706_s23  ;;  %s10060_s22 = scalar_lea.vmem [#allocation3], %s8706_s23 }
  0x58   : > { %v9058_v1 = vld [vmem:[%s10029_s0 + $0xe4] ss:$16 sps:$4 sm:$0xff]   ;;  %v9060_v2 = vld [vmem:[%s10029_s0 + $0xec] ss:$16 sps:$4 sm:$0xff]   ;;  %v9062_v3 = vld [vmem:[%s10029_s0 + $0xe0] ss:$16 sps:$4 sm:$0xff]  }
  0x59   : > { %1033 = vmatprep.subr.bf16.mxu0 %v9058_v1  ;;  %v9063_v4 = vld [vmem:[%s10029_s0 + $0xe8] ss:$16 sps:$4 sm:$0xff]   ;;  %1226 = vmatprep.subr.bf16.mxu1 %v9060_v2  ;;  %v9064_v5 = vld [vmem:[%s10029_s0 + $0xc4] ss:$16 sps:$4 sm:$0xff]   ;;  %v9066_v6 = vld [vmem:[%s10029_s0 + $0xcc] ss:$16 sps:$4 sm:$0xff]  }
  0x5a   : > { %1034 = vmatpush1.bf16.msra.mxu0 %v9062_v3  ;;  %1227 = vmatpush1.bf16.msra.mxu1 %v9063_v4  ;;  %v9068_v7 = vld [vmem:[%s10029_s0 + $0xc0] ss:$16 sps:$4 sm:$0xff]   ;;  %v9069_v8 = vld [vmem:[%s10029_s0 + $0xc8] ss:$16 sps:$4 sm:$0xff]   ;;  %v9070_v9 = vld [vmem:[%s10029_s0 + $0xa4] ss:$16 sps:$4 sm:$0xff]  }
  0x5b   : > { %1035 = vmatprep.subr.bf16.mxu0 %v9064_v5  ;;  %1228 = vmatprep.subr.bf16.mxu1 %v9066_v6  ;;  %v9072_v10 = vld [vmem:[%s10029_s0 + $0xac] ss:$16 sps:$4 sm:$0xff]   ;;  %v9074_v11 = vld [vmem:[%s10029_s0 + $0xa0] ss:$16 sps:$4 sm:$0xff]   ;;  %v9075_v12 = vld [vmem:[%s10029_s0 + $0xa8] ss:$16 sps:$4 sm:$0xff]  }
  0x5c   : > { %v9076_v13 = vld [vmem:[%s10029_s0 + $0x84] ss:$16 sps:$4 sm:$0xff]   ;;  %v9078_v14 = vld [vmem:[%s10029_s0 + $0x8c] ss:$16 sps:$4 sm:$0xff]   ;;  %v9080_v15 = vld [vmem:[%s10029_s0 + $0x80] ss:$16 sps:$4 sm:$0xff]  }
  0x5d   : > { %v9081_v16 = vld [vmem:[%s10029_s0 + $0x88] ss:$16 sps:$4 sm:$0xff]   ;;  %v9082_v17 = vld [vmem:[%s10029_s0 + $0x64] ss:$16 sps:$4 sm:$0xff]   ;;  %v9084_v18 = vld [vmem:[%s10029_s0 + $0x6c] ss:$16 sps:$4 sm:$0xff]  }
  0x5e   : > { %1036 = vmatpush1.bf16.msra.mxu0 %v9068_v7  ;;  %1229 = vmatpush1.bf16.msra.mxu1 %v9069_v8  ;;  %v9086_v19 = vld [vmem:[%s10029_s0 + $0x60] ss:$16 sps:$4 sm:$0xff]   ;;  %v9087_v20 = vld [vmem:[%s10029_s0 + $0x68] ss:$16 sps:$4 sm:$0xff]   ;;  %v9088_v21 = vld [vmem:[%s10029_s0 + $0x44] ss:$16 sps:$4 sm:$0xff]  }
  0x5f   : > { %1037 = vmatprep.subr.bf16.mxu0 %v9070_v9  ;;  %1230 = vmatprep.subr.bf16.mxu1 %v9072_v10  ;;  %v9090_v22 = vld [vmem:[%s10029_s0 + $0x4c] ss:$16 sps:$4 sm:$0xff]   ;;  %v9092_v23 = vld [vmem:[%s10029_s0 + $0x40] ss:$16 sps:$4 sm:$0xff]   ;;  %v9093_v24 = vld [vmem:[%s10029_s0 + $0x48] ss:$16 sps:$4 sm:$0xff]  }
  0x60   : > { %v9094_v25 = vld [vmem:[%s10029_s0 + $0x24] ss:$16 sps:$4 sm:$0xff]   ;;  %v9096_v26 = vld [vmem:[%s10029_s0 + $0x2c] ss:$16 sps:$4 sm:$0xff]   ;;  %v9098_v27 = vld [vmem:[%s10029_s0 + $0x20] ss:$16 sps:$4 sm:$0xff]  }
  0x61   : > { %v9099_v28 = vld [vmem:[%s10029_s0 + $0x28] ss:$16 sps:$4 sm:$0xff]   ;;  %v9100_v29 = vld [vmem:[%s10029_s0 + $0x4] ss:$16 sps:$4 sm:$0xff]   ;;  %v9102_v30 = vld [vmem:[%s10029_s0 + $0xc] ss:$16 sps:$4 sm:$0xff]  }
  0x62   : > { %1038 = vmatpush1.bf16.msra.mxu0 %v9074_v11  ;;  %1231 = vmatpush1.bf16.msra.mxu1 %v9075_v12  ;;  %v9104_v31 = vld [vmem:[%s10029_s0] ss:$16 sps:$4 sm:$0xff]   ;;  %v9105_v32 = vld [vmem:[%s10029_s0 + $0x8] ss:$16 sps:$4 sm:$0xff]   ;;  %v9111_v33 = vld [vmem:[%s10060_s22 + $0xe4] ss:$16 sps:$4 sm:$0xff]  }
  0x63   : > { %1039 = vmatprep.subr.bf16.mxu0 %v9076_v13  ;;  %1232 = vmatprep.subr.bf16.mxu1 %v9078_v14  ;;  %v9113_v34 = vld [vmem:[%s10060_s22 + $0xec] ss:$16 sps:$4 sm:$0xff]   ;;  %v9106_v35 = vld [vmem:[%s16466_s2] sm:$0xff]   ;;  %v9116_v37 = vld [vmem:[%s10060_s22 + $0xe8] ss:$16 sps:$4 sm:$0xff]   ;;  %s16920_s4 = sld [smem:[#allocation233_spill]] }
  0x64   : > { %v9115_v36 = vld [vmem:[%s10060_s22 + $0xe0] ss:$16 sps:$4 sm:$0xff]   ;;  %v9119_v38 = vld [vmem:[%s10060_s22 + $0xc4] ss:$16 sps:$4 sm:$0xff]   ;;  %v9121_v39 = vld [vmem:[%s10060_s22 + $0xcc] ss:$16 sps:$4 sm:$0xff]  }
  0x65   : > { %v9123_v40 = vld [vmem:[%s10060_s22 + $0xc0] ss:$16 sps:$4 sm:$0xff]   ;;  %v9124_v41 = vld [vmem:[%s10060_s22 + $0xc8] ss:$16 sps:$4 sm:$0xff]   ;;  %v9127_v42 = vld [vmem:[%s10060_s22 + $0xa4] ss:$16 sps:$4 sm:$0xff]  }
  0x66   : > { %1040 = vmatpush1.bf16.msra.mxu0 %v9080_v15  ;;  %1233 = vmatpush1.bf16.msra.mxu1 %v9081_v16  ;;  %v9129_v43 = vld [vmem:[%s10060_s22 + $0xac] ss:$16 sps:$4 sm:$0xff]   ;;  %v9131_v45 = vld [vmem:[%s10060_s22 + $0xa0] ss:$16 sps:$4 sm:$0xff]   ;;  %v9132_v46 = vld [vmem:[%s10060_s22 + $0xa8] ss:$16 sps:$4 sm:$0xff]  }
  0x67   : > { %1041 = vmatprep.subr.bf16.mxu0 %v9082_v17  ;;  %1234 = vmatprep.subr.bf16.mxu1 %v9084_v18  ;;  %v9107_v44 = vld [vmem:[%s16466_s2 + $0x8] sm:$0xff]   ;;  %v9135_v47 = vld [vmem:[%s10060_s22 + $0x84] ss:$16 sps:$4 sm:$0xff]   ;;  %v9139_v49 = vld [vmem:[%s10060_s22 + $0x80] ss:$16 sps:$4 sm:$0xff]   ;;  %s8708_s27 = sshll.u32 %s10020_s28, 2 }
  0x68   : > { %v9137_v48 = vld [vmem:[%s10060_s22 + $0x8c] ss:$16 sps:$4 sm:$0xff]   ;;  %v9140_v50 = vld [vmem:[%s10060_s22 + $0x88] ss:$16 sps:$4 sm:$0xff]   ;;  %v9143_v51 = vld [vmem:[%s10060_s22 + $0x64] ss:$16 sps:$4 sm:$0xff]  }
  0x69   : > { %v9145_v52 = vld [vmem:[%s10060_s22 + $0x6c] ss:$16 sps:$4 sm:$0xff]   ;;  %v9108_v53 = vld [vmem:[%s16466_s2 + $0x10] sm:$0xff]   ;;  %v9148_v55 = vld [vmem:[%s10060_s22 + $0x68] ss:$16 sps:$4 sm:$0xff]   ;;  %s18308_s1 = sadd.s32 4294967295, %s9728_s21  }
  0x6a   : > { %1042 = vmatpush1.bf16.msra.mxu0 %v9086_v19  ;;  %1235 = vmatpush1.bf16.msra.mxu1 %v9087_v20  ;;  %v9147_v54 = vld [vmem:[%s10060_s22 + $0x60] ss:$16 sps:$4 sm:$0xff]   ;;  %v9151_v56 = vld [vmem:[%s10060_s22 + $0x44] ss:$16 sps:$4 sm:$0xff]   ;;  %v9153_v57 = vld [vmem:[%s10060_s22 + $0x4c] ss:$16 sps:$4 sm:$0xff]  }
  0x6b   : > { %1043 = vmatprep.subr.bf16.mxu0 %v9088_v21  ;;  %1236 = vmatprep.subr.bf16.mxu1 %v9090_v22  ;;  %v9155_v58 = vld [vmem:[%s10060_s22 + $0x40] ss:$16 sps:$4 sm:$0xff]   ;;  %v9156_v59 = vld [vmem:[%s10060_s22 + $0x48] ss:$16 sps:$4 sm:$0xff]   ;;  %v9158_v60 = vld [vmem:[%s10060_s22 + $0x24] ss:$16 sps:$4 sm:$0xff]  }
  0x6c   : > { %v9160_v61 = vld [vmem:[%s10060_s22 + $0x2c] ss:$16 sps:$4 sm:$0xff]   ;;  %v9162_v63 = vld [vmem:[%s10060_s22 + $0x20] ss:$16 sps:$4 sm:$0xff]   ;;  %v9163_v1 = vld [vmem:[%s10060_s22 + $0x28] ss:$16 sps:$4 sm:$0xff]  }
  0x6d   : > { %v9109_v62 = vld [vmem:[%s16466_s2 + $0x18] sm:$0xff]   ;;  %v9164_v2 = vld [vmem:[%s10060_s22 + $0x4] ss:$16 sps:$4 sm:$0xff]   ;;  %v9168_v4 = vld [vmem:[%s10060_s22] ss:$16 sps:$4 sm:$0xff]   ;;  %s9006_s23 = sshll.u32 %s18308_s1, 6 }
  0x6e   : > { %1044 = vmatpush1.bf16.msra.mxu0 %v9092_v23  ;;  %1237 = vmatpush1.bf16.msra.mxu1 %v9093_v24  ;;  %v9166_v3 = vld [vmem:[%s10060_s22 + $0xc] ss:$16 sps:$4 sm:$0xff]   ;;  %v9169_v5 = vld [vmem:[%s10060_s22 + $0x8] ss:$16 sps:$4 sm:$0xff]   ;;  %v9110_v6 = vld [vmem:[%s16466_s2 + $0x20] sm:$0xff]   ;;  %s676_s16 = scalar_lea.vmem [#allocation4], %s8708_s27 }
  0x6f   : > { %1045 = vmatprep.subr.bf16.mxu0 %v9094_v25  ;;  %1238 = vmatprep.subr.bf16.mxu1 %v9096_v26  ;;  %v9117_v7 = vld [vmem:[%s16466_s2 + $0x28] sm:$0xff]   ;;  %v9118_v8 = vld [vmem:[%s16466_s2 + $0x30] sm:$0xff]   ;;  %v9125_v9 = vld [vmem:[%s16466_s2 + $0x38] sm:$0xff]  }
  0x70   : > { %v9126_v10 = vld [vmem:[%s16466_s2 + $0x40] sm:$0xff]   ;;  %v9133_v11 = vld [vmem:[%s16466_s2 + $0x48] sm:$0xff]   ;;  %v9134_v12 = vld [vmem:[%s16466_s2 + $0x50] sm:$0xff]  }
  0x71   : > { %v9141_v13 = vld [vmem:[%s16466_s2 + $0x58] sm:$0xff]   ;;  %v9142_v14 = vld [vmem:[%s16466_s2 + $0x60] sm:$0xff]   ;;  %v9149_v15 = vld [vmem:[%s16466_s2 + $0x68] sm:$0xff]  }
  0x72   : > { %1046 = vmatpush1.bf16.msra.mxu0 %v9098_v27  ;;  %1239 = vmatpush1.bf16.msra.mxu1 %v9099_v28  ;;  %v9150_v16 = vld [vmem:[%s16466_s2 + $0x70] sm:$0xff]   ;;  %v9157_v17 = vld [vmem:[%s16466_s2 + $0x78] sm:$0xff]   ;;  %v9170_v18 = vld [vmem:[%s16142_s8] sm:$0xff]   ;;  %s8611_s2 = scalar_lea.hbm %s16149_s15, %s9006_s23 }
  0x73   : > { %1047 = vmatprep.subr.bf16.mxu0 %v9100_v29  ;;  %1240 = vmatprep.subr.bf16.mxu1 %v9102_v30  ;;  %v9171_v19 = vld [vmem:[%s16142_s8 + $0x8] sm:$0xff]   ;;  %v9172_v20 = vld [vmem:[%s16142_s8 + $0x10] sm:$0xff]   ;;  %v9173_v21 = vld [vmem:[%s16142_s8 + $0x18] sm:$0xff]  }
  0x74   : > { %v9174_v22 = vld [vmem:[%s16142_s8 + $0x20] sm:$0xff]   ;;  %v9175_v23 = vld [vmem:[%s16142_s8 + $0x28] sm:$0xff]   ;;  %v9176_v24 = vld [vmem:[%s16142_s8 + $0x30] sm:$0xff]  }
  0x75   : > { %v9177_v25 = vld [vmem:[%s16142_s8 + $0x38] sm:$0xff]   ;;  %v9178_v26 = vld [vmem:[%s16142_s8 + $0x40] sm:$0xff]  }
  0x76   : > { %1048 = vmatpush1.bf16.msra.mxu0 %v9104_v31  ;;  %1241 = vmatpush1.bf16.msra.mxu1 %v9105_v32 }
  0x77   : > { %1835 = vmatprep.subr.bf16.mxu0 %v9111_v33  ;;  %2028 = vmatprep.subr.bf16.mxu1 %v9113_v34  ;;  %v9179_v33 = vld [vmem:[%s16142_s8 + $0x48] sm:$0xff]  }
  0x79   : > { %1066 = vmatmul.mubr.bf16.vlgmr.msra.gmra.mxu0 %v9106_v35  ;;  %1259 = vmatmul.mubr.bf16.vlgmr.msra.gmra.mxu1 %v9106_v35 }
  0x7a   : > { %1075 = vmatprep.mubr.bf16.mxu0 %v16151_v0  ;;  %1268 = vmatprep.mubr.bf16.mxu1 %v16151_v0 }
  0x7b   : > { %1836 = vmatpush1.bf16.msra.mxu0 %v9115_v36  ;;  %2029 = vmatpush1.bf16.msra.mxu1 %v9116_v37 }
  0x7c   : > { %1837 = vmatprep.subr.bf16.mxu0 %v9119_v38  ;;  %2030 = vmatprep.subr.bf16.mxu1 %v9121_v39 }
  0x7f   : > { %1838 = vmatpush1.bf16.msra.mxu0 %v9123_v40  ;;  %2031 = vmatpush1.bf16.msra.mxu1 %v9124_v41 }
  0x80   : > { %1839 = vmatprep.subr.bf16.mxu0 %v9127_v42  ;;  %2032 = vmatprep.subr.bf16.mxu1 %v9129_v43  ;;  %v9180_v42 = vld [vmem:[%s16142_s8 + $0x50] sm:$0xff]  }
  0x81   : > { %1076 = vmatmul.mubr.bf16.gmra.mxu0 %v9107_v44  ;;  %1269 = vmatmul.mubr.bf16.gmra.mxu1 %v9107_v44 }
  0x82   : > { %1085 = vmatprep.mubr.bf16.mxu0 %v16151_v0  ;;  %1278 = vmatprep.mubr.bf16.mxu1 %v16151_v0 }
  0x83   : > { %1840 = vmatpush1.bf16.msra.mxu0 %v9131_v45  ;;  %2033 = vmatpush1.bf16.msra.mxu1 %v9132_v46 }
  0x84   : > { %1841 = vmatprep.subr.bf16.mxu0 %v9135_v47  ;;  %2034 = vmatprep.subr.bf16.mxu1 %v9137_v48 }
  0x87   : > { %1842 = vmatpush1.bf16.msra.mxu0 %v9139_v49  ;;  %2035 = vmatpush1.bf16.msra.mxu1 %v9140_v50 }
  0x88   : > { %1843 = vmatprep.subr.bf16.mxu0 %v9143_v51  ;;  %2036 = vmatprep.subr.bf16.mxu1 %v9145_v52  ;;  %v9181_v51 = vld [vmem:[%s16142_s8 + $0x58] sm:$0xff]  }
  0x89   : > { %1086 = vmatmul.mubr.bf16.gmra.mxu0 %v9108_v53  ;;  %1279 = vmatmul.mubr.bf16.gmra.mxu1 %v9108_v53 }
  0x8a   : > { %1095 = vmatprep.mubr.bf16.mxu0 %v16151_v0  ;;  %1288 = vmatprep.mubr.bf16.mxu1 %v16151_v0 }
  0x8b   : > { %1844 = vmatpush1.bf16.msra.mxu0 %v9147_v54  ;;  %2037 = vmatpush1.bf16.msra.mxu1 %v9148_v55 }
  0x8c   : > { %1845 = vmatprep.subr.bf16.mxu0 %v9151_v56  ;;  %2038 = vmatprep.subr.bf16.mxu1 %v9153_v57 }
  0x8f   : > { %1846 = vmatpush1.bf16.msra.mxu0 %v9155_v58  ;;  %2039 = vmatpush1.bf16.msra.mxu1 %v9156_v59 }
  0x90   : > { %1847 = vmatprep.subr.bf16.mxu0 %v9158_v60  ;;  %2040 = vmatprep.subr.bf16.mxu1 %v9160_v61  ;;  %v9182_v60 = vld [vmem:[%s16142_s8 + $0x60] sm:$0xff]  }
  0x91   : > { %1096 = vmatmul.mubr.bf16.gmra.mxu0 %v9109_v62  ;;  %1289 = vmatmul.mubr.bf16.gmra.mxu1 %v9109_v62 }
  0x92   : > { %1105 = vmatprep.mubr.bf16.mxu0 %v16151_v0  ;;  %1298 = vmatprep.mubr.bf16.mxu1 %v16151_v0 }
  0x93   : > { %1848 = vmatpush1.bf16.msra.mxu0 %v9162_v63  ;;  %2041 = vmatpush1.bf16.msra.mxu1 %v9163_v1 }
  0x94   : > { %1849 = vmatprep.subr.bf16.mxu0 %v9164_v2  ;;  %2042 = vmatprep.subr.bf16.mxu1 %v9166_v3 }
  0x97   : > { %1850 = vmatpush1.bf16.msra.mxu0 %v9168_v4  ;;  %2043 = vmatpush1.bf16.msra.mxu1 %v9169_v5 }
  0x99   : > { %1106 = vmatmul.mubr.bf16.gmra.mxu0 %v9110_v6  ;;  %1299 = vmatmul.mubr.bf16.gmra.mxu1 %v9110_v6  ;;  %v9183_v6 = vld [vmem:[%s16142_s8 + $0x68] sm:$0xff]  }
  0x9a   : > { %1115 = vmatprep.mubr.bf16.mxu0 %v16151_v0  ;;  %1308 = vmatprep.mubr.bf16.mxu1 %v16151_v0 }
  0xa1   : > { %1116 = vmatmul.mubr.bf16.gmra.mxu0 %v9117_v7  ;;  %1309 = vmatmul.mubr.bf16.gmra.mxu1 %v9117_v7 }
  0xa2   : > { %1125 = vmatprep.mubr.bf16.mxu0 %v16151_v0  ;;  %1318 = vmatprep.mubr.bf16.mxu1 %v16151_v0 }
  0xa9   : > { %1126 = vmatmul.mubr.bf16.gmra.mxu0 %v9118_v8  ;;  %1319 = vmatmul.mubr.bf16.gmra.mxu1 %v9118_v8 }
  0xaa   : > { %1135 = vmatprep.mubr.bf16.mxu0 %v16151_v0  ;;  %1328 = vmatprep.mubr.bf16.mxu1 %v16151_v0 }
  0xb1   : > { %1136 = vmatmul.mubr.bf16.gmra.mxu0 %v9125_v9  ;;  %1329 = vmatmul.mubr.bf16.gmra.mxu1 %v9125_v9 }
  0xb2   : > { %1145 = vmatprep.mubr.bf16.mxu0 %v16151_v0  ;;  %1338 = vmatprep.mubr.bf16.mxu1 %v16151_v0 }
  0xb9   : > { %1146 = vmatmul.mubr.bf16.gmra.mxu0 %v9126_v10  ;;  %1339 = vmatmul.mubr.bf16.gmra.mxu1 %v9126_v10 }
  0xba   : > { %1155 = vmatprep.mubr.bf16.mxu0 %v16151_v0  ;;  %1348 = vmatprep.mubr.bf16.mxu1 %v16151_v0 }
  0xc1   : > { %1156 = vmatmul.mubr.bf16.gmra.mxu0 %v9133_v11  ;;  %1349 = vmatmul.mubr.bf16.gmra.mxu1 %v9133_v11 }
  0xc2   : > { %1165 = vmatprep.mubr.bf16.mxu0 %v16151_v0  ;;  %1358 = vmatprep.mubr.bf16.mxu1 %v16151_v0 }
  0xc9   : > { %1166 = vmatmul.mubr.bf16.gmra.mxu0 %v9134_v12  ;;  %1359 = vmatmul.mubr.bf16.gmra.mxu1 %v9134_v12 }
  0xca   : > { %1175 = vmatprep.mubr.bf16.mxu0 %v16151_v0  ;;  %1368 = vmatprep.mubr.bf16.mxu1 %v16151_v0 }
  0xd1   : > { %1176 = vmatmul.mubr.bf16.gmra.mxu0 %v9141_v13  ;;  %1369 = vmatmul.mubr.bf16.gmra.mxu1 %v9141_v13 }
  0xd2   : > { %1185 = vmatprep.mubr.bf16.mxu0 %v16151_v0  ;;  %1378 = vmatprep.mubr.bf16.mxu1 %v16151_v0 }
  0xd9   : > { %1186 = vmatmul.mubr.bf16.gmra.mxu0 %v9142_v14  ;;  %1379 = vmatmul.mubr.bf16.gmra.mxu1 %v9142_v14 }
  0xda   : > { %1195 = vmatprep.mubr.bf16.mxu0 %v16151_v0  ;;  %1388 = vmatprep.mubr.bf16.mxu1 %v16151_v0 }
  0xe1   : > { %1196 = vmatmul.mubr.bf16.gmra.mxu0 %v9149_v15  ;;  %1389 = vmatmul.mubr.bf16.gmra.mxu1 %v9149_v15  ;;  %v9184_v15 = vld [vmem:[%s16142_s8 + $0x70] sm:$0xff]  }
  0xe2   : > { %1205 = vmatprep.mubr.bf16.mxu0 %v16151_v0  ;;  %1398 = vmatprep.mubr.bf16.mxu1 %v16151_v0 }
  0xe9   : > { %1206 = vmatmul.mubr.bf16.gmra.mxu0 %v9150_v16  ;;  %1399 = vmatmul.mubr.bf16.gmra.mxu1 %v9150_v16 }
  0xea   : > { %1215 = vmatprep.mubr.bf16.mxu0 %v16151_v0  ;;  %1408 = vmatprep.mubr.bf16.mxu1 %v16151_v0 }
  0xf1   : > { %1216 = vmatmul.mubr.bf16.gmra.mxu0 %v9157_v17  ;;  %1409 = vmatmul.mubr.bf16.gmra.mxu1 %v9157_v17 }
  0xf2   : > { %1867 = vmatprep.mubr.bf16.mxu0 %v16151_v0  ;;  %2060 = vmatprep.mubr.bf16.mxu1 %v16151_v0 }
  0xf9   : > { %1868 = vmatmul.mubr.bf16.vlgmr.msra.gmra.mxu0 %v9170_v18  ;;  %2061 = vmatmul.mubr.bf16.vlgmr.msra.gmra.mxu1 %v9170_v18 }
  0xfa   : > { %1877 = vmatprep.mubr.bf16.mxu0 %v16151_v0  ;;  %2070 = vmatprep.mubr.bf16.mxu1 %v16151_v0 }
 0x101   : > { %1878 = vmatmul.mubr.bf16.gmra.mxu0 %v9171_v19  ;;  %2071 = vmatmul.mubr.bf16.gmra.mxu1 %v9171_v19 }
 0x102   : > { %1887 = vmatprep.mubr.bf16.mxu0 %v16151_v0  ;;  %2080 = vmatprep.mubr.bf16.mxu1 %v16151_v0 }
 0x109   : > { %1888 = vmatmul.mubr.bf16.gmra.mxu0 %v9172_v20  ;;  %2081 = vmatmul.mubr.bf16.gmra.mxu1 %v9172_v20 }
 0x10a   : > { %1897 = vmatprep.mubr.bf16.mxu0 %v16151_v0  ;;  %2090 = vmatprep.mubr.bf16.mxu1 %v16151_v0 }
 0x111   : > { %1898 = vmatmul.mubr.bf16.gmra.mxu0 %v9173_v21  ;;  %2091 = vmatmul.mubr.bf16.gmra.mxu1 %v9173_v21 }
 0x112   : > { %1907 = vmatprep.mubr.bf16.mxu0 %v16151_v0  ;;  %2100 = vmatprep.mubr.bf16.mxu1 %v16151_v0 }
 0x119   : > { %1908 = vmatmul.mubr.bf16.gmra.mxu0 %v9174_v22  ;;  %2101 = vmatmul.mubr.bf16.gmra.mxu1 %v9174_v22 }
 0x11a   : > { %1917 = vmatprep.mubr.bf16.mxu0 %v16151_v0  ;;  %2110 = vmatprep.mubr.bf16.mxu1 %v16151_v0 }
 0x121   : > { %1918 = vmatmul.mubr.bf16.gmra.mxu0 %v9175_v23  ;;  %2111 = vmatmul.mubr.bf16.gmra.mxu1 %v9175_v23 }
 0x122   : > { %1927 = vmatprep.mubr.bf16.mxu0 %v16151_v0  ;;  %2120 = vmatprep.mubr.bf16.mxu1 %v16151_v0 }
 0x129   : > { %1928 = vmatmul.mubr.bf16.gmra.mxu0 %v9176_v24  ;;  %2121 = vmatmul.mubr.bf16.gmra.mxu1 %v9176_v24  ;;  %v9185_v24 = vld [vmem:[%s16142_s8 + $0x78] sm:$0xff]  }
 0x12a   : > { %1937 = vmatprep.mubr.bf16.mxu0 %v16151_v0  ;;  %2130 = vmatprep.mubr.bf16.mxu1 %v16151_v0 }
 0x131   : > { %1938 = vmatmul.mubr.bf16.gmra.mxu0 %v9177_v25  ;;  %2131 = vmatmul.mubr.bf16.gmra.mxu1 %v9177_v25 }
 0x132   : > { %1947 = vmatprep.mubr.bf16.mxu0 %v16151_v0  ;;  %2140 = vmatprep.mubr.bf16.mxu1 %v16151_v0 }
 0x139   : > { %v10222_v27 = vpop.f32.mrf.mxu0  ;;  %v10224_v28 = vpop.f32.mrf.mxu1  ;;  %1948 = vmatmul.mubr.bf16.gmra.mxu0 %v9178_v26  ;;  %2141 = vmatmul.mubr.bf16.gmra.mxu1 %v9178_v26 }
 0x13a   : > { %1957 = vmatprep.mubr.bf16.mxu0 %v16151_v0  ;;  %2150 = vmatprep.mubr.bf16.mxu1 %v16151_v0 }
 0x13b   : > { %v10228_v29 = vpop.f32.mrf.mxu0  ;;  %v10230_v30 = vpop.f32.mrf.mxu1 }
 0x13d   : > { %v10232_v31 = vpop.f32.mrf.mxu0  ;;  %v10234_v32 = vpop.f32.mrf.mxu1 }
 0x13f   : > { %v10239_v34 = vpop.f32.mrf.mxu0  ;;  %v10241_v35 = vpop.f32.mrf.mxu1 }
 0x141   : > { %v10243_v36 = vpop.f32.mrf.mxu0  ;;  %v10245_v37 = vpop.f32.mrf.mxu1  ;;  %1958 = vmatmul.mubr.bf16.gmra.mxu0 %v9179_v33  ;;  %2151 = vmatmul.mubr.bf16.gmra.mxu1 %v9179_v33 }
 0x142   : > { %1967 = vmatprep.mubr.bf16.mxu0 %v16151_v0  ;;  %2160 = vmatprep.mubr.bf16.mxu1 %v16151_v0 }
 0x143   : > { %v10249_v38 = vpop.f32.mrf.mxu0  ;;  %v10251_v39 = vpop.f32.mrf.mxu1 }
 0x145   : > { %v10253_v40 = vpop.f32.mrf.mxu0  ;;  %v10255_v41 = vpop.f32.mrf.mxu1 }
 0x147   : > { %v10260_v43 = vpop.f32.mrf.mxu0  ;;  %v10262_v44 = vpop.f32.mrf.mxu1 }
 0x149   : > { %v10264_v45 = vpop.f32.mrf.mxu0  ;;  %v10266_v46 = vpop.f32.mrf.mxu1  ;;  %1968 = vmatmul.mubr.bf16.gmra.mxu0 %v9180_v42  ;;  %2161 = vmatmul.mubr.bf16.gmra.mxu1 %v9180_v42 }
 0x14a   : > { %1977 = vmatprep.mubr.bf16.mxu0 %v16151_v0  ;;  %2170 = vmatprep.mubr.bf16.mxu1 %v16151_v0 }
 0x14b   : > { %v10270_v47 = vpop.f32.mrf.mxu0  ;;  %v10272_v48 = vpop.f32.mrf.mxu1 }
 0x14d   : > { %v10274_v49 = vpop.f32.mrf.mxu0  ;;  %v10276_v50 = vpop.f32.mrf.mxu1 }
 0x14f   : > { %v10281_v52 = vpop.f32.mrf.mxu0  ;;  %v10283_v53 = vpop.f32.mrf.mxu1 }
 0x151   : > { %v10285_v54 = vpop.f32.mrf.mxu0  ;;  %v10287_v55 = vpop.f32.mrf.mxu1  ;;  %1978 = vmatmul.mubr.bf16.gmra.mxu0 %v9181_v51  ;;  %2171 = vmatmul.mubr.bf16.gmra.mxu1 %v9181_v51 }
 0x152   : > { %1987 = vmatprep.mubr.bf16.mxu0 %v16151_v0  ;;  %2180 = vmatprep.mubr.bf16.mxu1 %v16151_v0 }
 0x153   : > { %v10291_v56 = vpop.f32.mrf.mxu0  ;;  %v10293_v57 = vpop.f32.mrf.mxu1 }
 0x155   : > { %v10295_v58 = vpop.f32.mrf.mxu0  ;;  %v10297_v59 = vpop.f32.mrf.mxu1 }
 0x157   : > { %v10302_v61 = vpop.f32.mrf.mxu0  ;;  %v10304_v62 = vpop.f32.mrf.mxu1 }
 0x159   : > { %v10306_v63 = vpop.f32.mrf.mxu0  ;;  %v10308_v1 = vpop.f32.mrf.mxu1  ;;  %1988 = vmatmul.mubr.bf16.gmra.mxu0 %v9182_v60  ;;  %2181 = vmatmul.mubr.bf16.gmra.mxu1 %v9182_v60 }
 0x15a   : > { %1997 = vmatprep.mubr.bf16.mxu0 %v16151_v0  ;;  %2190 = vmatprep.mubr.bf16.mxu1 %v16151_v0 }
 0x15b   : > { %v10312_v2 = vpop.f32.mrf.mxu0  ;;  %v10314_v3 = vpop.f32.mrf.mxu1 }
 0x15c   : > { %16467 = vst [vmem:[#allocation8_spill] sm:$0xff] %v10314_v3 }
 0x15d   : > { %v10316_v4 = vpop.f32.mrf.mxu0  ;;  %v10318_v5 = vpop.f32.mrf.mxu1 }
 0x15f   : > { %v10323_v7 = vpop.f32.mrf.mxu0  ;;  %v10325_v8 = vpop.f32.mrf.mxu1 }
 0x160   : > { %16468 = vst [vmem:[#allocation9_spill] sm:$0xff] %v10323_v7  ;;  %16469 = vst [vmem:[#allocation10_spill] sm:$0xff] %v10325_v8 }
 0x161   : > { %v10327_v9 = vpop.f32.mrf.mxu0  ;;  %v10329_v10 = vpop.f32.mrf.mxu1  ;;  %1998 = vmatmul.mubr.bf16.gmra.mxu0 %v9183_v6  ;;  %2191 = vmatmul.mubr.bf16.gmra.mxu1 %v9183_v6 }
 0x162   : > { %2007 = vmatprep.mubr.bf16.mxu0 %v16151_v0  ;;  %2200 = vmatprep.mubr.bf16.mxu1 %v16151_v0 }
 0x163   : > { %v10333_v11 = vpop.f32.mrf.mxu0  ;;  %v10335_v12 = vpop.f32.mrf.mxu1 }
 0x164   : > { %16470 = vst [vmem:[#allocation11_spill] sm:$0xff] %v10335_v12 }
 0x165   : > { %v10337_v13 = vpop.f32.mrf.mxu0  ;;  %v10339_v14 = vpop.f32.mrf.mxu1 }
 0x167   : > { %v10344_v16 = vpop.f32.mrf.mxu0  ;;  %v10346_v17 = vpop.f32.mrf.mxu1 }
 0x168   : > { %16471 = vst [vmem:[#allocation12_spill] sm:$0xff] %v10346_v17 }
 0x169   : > { %v10348_v18 = vpop.f32.mrf.mxu0  ;;  %v10350_v19 = vpop.f32.mrf.mxu1  ;;  %2008 = vmatmul.mubr.bf16.gmra.mxu0 %v9184_v15  ;;  %2201 = vmatmul.mubr.bf16.gmra.mxu1 %v9184_v15 }
 0x16a   : > { %2017 = vmatprep.mubr.bf16.mxu0 %v16151_v0  ;;  %2210 = vmatprep.mubr.bf16.mxu1 %v16151_v0 }
 0x16b   : > { %v10354_v20 = vpop.f32.mrf.mxu0  ;;  %v10356_v21 = vpop.f32.mrf.mxu1 }
 0x16d   : > { %v10358_v22 = vpop.f32.mrf.mxu0  ;;  %v10360_v23 = vpop.f32.mrf.mxu1 }
 0x16f   : > { %v10365_v25 = vpop.f32.mrf.mxu0  ;;  %v10367_v26 = vpop.f32.mrf.mxu1 }
 0x170   : > { %16472 = vst [vmem:[#allocation13_spill] sm:$0xff] %v10367_v26 }
 0x171   : > { %v10369_v33 = vpop.f32.mrf.mxu0  ;;  %v10371_v42 = vpop.f32.mrf.mxu1  ;;  %2018 = vmatmul.mubr.bf16.gmra.mxu0 %v9185_v24  ;;  %2211 = vmatmul.mubr.bf16.gmra.mxu1 %v9185_v24 }
 0x172   : > { %16473 = vst [vmem:[#allocation14_spill] sm:$0xff] %v10369_v33  ;;  %16474 = vst [vmem:[#allocation15_spill] sm:$0xff] %v10371_v42 }
 0x173   : > { %v10373_v51 = vpop.f32.mrf.mxu0  ;;  %v10375_v60 = vpop.f32.mrf.mxu1 }
 0x174   : > { %16475 = vst [vmem:[#allocation16_spill] sm:$0xff] %v10373_v51  ;;  %16476 = vst [vmem:[#allocation17_spill] sm:$0xff] %v10375_v60 }
 0x175   : > { %v10377_v6 = vpop.f32.mrf.mxu0  ;;  %v10379_v15 = vpop.f32.mrf.mxu1 }
 0x176   : > { %16477 = vst [vmem:[#allocation18_spill] sm:$0xff] %v10377_v6  ;;  %16478 = vst [vmem:[#allocation19_spill] sm:$0xff] %v10379_v15 }
 0x177   : > { %v10381_v0 = vpop.f32.mrf.mxu0  ;;  %v10383_v8 = vpop.f32.mrf.mxu1 }
 0x178   : > { %16479 = vst [vmem:[#allocation20_spill] sm:$0xff] %v10381_v0  ;;  %16480 = vst [vmem:[#allocation21_spill] sm:$0xff] %v10383_v8 }
 0x179   : > { %v10385_v12 = vpop.f32.mrf.mxu0  ;;  %v10387_v7 = vpop.f32.mrf.mxu1 }
 0x17a   : > { %16481 = vst [vmem:[#allocation22_spill] sm:$0xff] %v10385_v12  ;;  %16482 = vst [vmem:[#allocation23_spill] sm:$0xff] %v10387_v7 }
 0x17b   : > { %v10389_v3 = vpop.f32.mrf.mxu0  ;;  %v10391_v17 = vpop.f32.mrf.mxu1 }
 0x17c   : > { %16483 = vst [vmem:[#allocation24_spill] sm:$0xff] %v10389_v3  ;;  %16484 = vst [vmem:[#allocation25_spill] sm:$0xff] %v10391_v17 }
 0x17d   : > { %v10393_v24 = vpop.f32.mrf.mxu0  ;;  %v10395_v51 = vpop.f32.mrf.mxu1 }
 0x17e   : > { %16485 = vst [vmem:[#allocation26_spill] sm:$0xff] %v10393_v24  ;;  %16486 = vst [vmem:[#allocation27_spill] sm:$0xff] %v10395_v51 }
 0x17f   : > { %v10397_v60 = vpop.f32.mrf.mxu0  ;;  %v10399_v6 = vpop.f32.mrf.mxu1 }
 0x180   : > { %16487 = vst [vmem:[#allocation28_spill] sm:$0xff] %v10397_v60  ;;  %16488 = vst [vmem:[#allocation29_spill] sm:$0xff] %v10399_v6 }
 0x181   : > { %v10401_v15 = vpop.f32.mrf.mxu0  ;;  %v10403_v0 = vpop.f32.mrf.mxu1 }
 0x182   : > { %16489 = vst [vmem:[#allocation30_spill] sm:$0xff] %v10401_v15  ;;  %16490 = vst [vmem:[#allocation31_spill] sm:$0xff] %v10403_v0 }
 0x183   : > { %v10405_v8 = vpop.f32.mrf.mxu0  ;;  %v10407_v12 = vpop.f32.mrf.mxu1 }
 0x184   : > { %16491 = vst [vmem:[#allocation32_spill] sm:$0xff] %v10405_v8  ;;  %16492 = vst [vmem:[#allocation33_spill] sm:$0xff] %v10407_v12 }
 0x185   : > { %v10409_v7 = vpop.f32.mrf.mxu0  ;;  %v10411_v3 = vpop.f32.mrf.mxu1 }
 0x186   : > { %16493 = vst [vmem:[#allocation34_spill] sm:$0xff] %v10409_v7  ;;  %16494 = vst [vmem:[#allocation35_spill] sm:$0xff] %v10411_v3 }
 0x187   : > { %v10413_v17 = vpop.f32.mrf.mxu0  ;;  %v10415_v24 = vpop.f32.mrf.mxu1 }
 0x188   : > { %16495 = vst [vmem:[#allocation36_spill] sm:$0xff] %v10413_v17  ;;  %16496 = vst [vmem:[#allocation37_spill] sm:$0xff] %v10415_v24 }
 0x189   : > { %v10417_v51 = vpop.f32.mrf.mxu0  ;;  %v10419_v60 = vpop.f32.mrf.mxu1 }
 0x18a   : > { %16497 = vst [vmem:[#allocation38_spill] sm:$0xff] %v10417_v51  ;;  %16498 = vst [vmem:[#allocation39_spill] sm:$0xff] %v10419_v60 }
 0x18b   : > { %v10421_v6 = vpop.f32.mrf.mxu0  ;;  %v10423_v15 = vpop.f32.mrf.mxu1 }
 0x18c   : > { %16499 = vst [vmem:[#allocation40_spill] sm:$0xff] %v10421_v6  ;;  %16500 = vst [vmem:[#allocation41_spill] sm:$0xff] %v10423_v15 }
 0x18d   : > { %v10425_v0 = vpop.f32.mrf.mxu0  ;;  %v10427_v8 = vpop.f32.mrf.mxu1 }
 0x18e   : > { %16501 = vst [vmem:[#allocation42_spill] sm:$0xff] %v10425_v0  ;;  %16502 = vst [vmem:[#allocation43_spill] sm:$0xff] %v10427_v8 }
 0x18f   : > { %v10429_v12 = vpop.f32.mrf.mxu0  ;;  %v10431_v7 = vpop.f32.mrf.mxu1 }
 0x190   : > { %16503 = vst [vmem:[#allocation44_spill] sm:$0xff] %v10429_v12  ;;  %16504 = vst [vmem:[#allocation45_spill] sm:$0xff] %v10431_v7 }
 0x191   : > { %v10433_v3 = vpop.f32.mrf.mxu0  ;;  %v10435_v17 = vpop.f32.mrf.mxu1 }
 0x192   : > { %16505 = vst [vmem:[#allocation46_spill] sm:$0xff] %v10433_v3  ;;  %16506 = vst [vmem:[#allocation47_spill] sm:$0xff] %v10435_v17 }
 0x193   : > { %v10437_v24 = vpop.f32.mrf.mxu0  ;;  %v10439_v51 = vpop.f32.mrf.mxu1 }
 0x194   : > { %16507 = vst [vmem:[#allocation48_spill] sm:$0xff] %v10437_v24  ;;  %16508 = vst [vmem:[#allocation49_spill] sm:$0xff] %v10439_v51 }
 0x195   : > { %v10441_v60 = vpop.f32.mrf.mxu0  ;;  %v10443_v6 = vpop.f32.mrf.mxu1 }
 0x196   : > { %16509 = vst [vmem:[#allocation50_spill] sm:$0xff] %v10441_v60  ;;  %16510 = vst [vmem:[#allocation51_spill] sm:$0xff] %v10443_v6 }
 0x197   : > { %v10445_v15 = vpop.f32.mrf.mxu0  ;;  %v10447_v0 = vpop.f32.mrf.mxu1 }
 0x198   : > { %16511 = vst [vmem:[#allocation52_spill] sm:$0xff] %v10445_v15  ;;  %16512 = vst [vmem:[#allocation53_spill] sm:$0xff] %v10447_v0 }
 0x199   : > { %v10449_v8 = vpop.f32.mrf.mxu0  ;;  %v10451_v12 = vpop.f32.mrf.mxu1 }
 0x19a   : > { %16513 = vst [vmem:[#allocation54_spill] sm:$0xff] %v10449_v8  ;;  %16514 = vst [vmem:[#allocation55_spill] sm:$0xff] %v10451_v12 }
 0x19b   : > { %v10453_v7 = vpop.f32.mrf.mxu0  ;;  %v10455_v3 = vpop.f32.mrf.mxu1 }
 0x19c   : > { %16515 = vst [vmem:[#allocation56_spill] sm:$0xff] %v10453_v7  ;;  %16516 = vst [vmem:[#allocation57_spill] sm:$0xff] %v10455_v3 }
 0x19d   : > { %v10457_v17 = vpop.f32.mrf.mxu0  ;;  %v10459_v24 = vpop.f32.mrf.mxu1 }
 0x19e   : > { %16517 = vst [vmem:[#allocation58_spill] sm:$0xff] %v10457_v17  ;;  %16518 = vst [vmem:[#allocation59_spill] sm:$0xff] %v10459_v24 }
 0x19f   : > { %v10461_v51 = vpop.f32.mrf.mxu0  ;;  %v10463_v60 = vpop.f32.mrf.mxu1 }
 0x1a0   : > { %16519 = vst [vmem:[#allocation60_spill] sm:$0xff] %v10461_v51  ;;  %16520 = vst [vmem:[#allocation61_spill] sm:$0xff] %v10463_v60 }
 0x1a1   : > { %v10465_v6 = vpop.f32.mrf.mxu0  ;;  %v10467_v15 = vpop.f32.mrf.mxu1 }
 0x1a2   : > { %16521 = vst [vmem:[#allocation62_spill] sm:$0xff] %v10465_v6  ;;  %16522 = vst [vmem:[#allocation63_spill] sm:$0xff] %v10467_v15 }
 0x1a3   : > { %v10469_v0 = vpop.f32.mrf.mxu0  ;;  %v10471_v8 = vpop.f32.mrf.mxu1 }
 0x1a4   : > { %16523 = vst [vmem:[#allocation64_spill] sm:$0xff] %v10469_v0  ;;  %16524 = vst [vmem:[#allocation65_spill] sm:$0xff] %v10471_v8 }
 0x1a5   : > { %v10473_v12 = vpop.f32.mrf.mxu0  ;;  %v10475_v7 = vpop.f32.mrf.mxu1 }
 0x1a6   : > { %16525 = vst [vmem:[#allocation66_spill] sm:$0xff] %v10473_v12  ;;  %16526 = vst [vmem:[#allocation67_spill] sm:$0xff] %v10475_v7 }
 0x1a7   : > { %v10477_v3 = vpop.f32.mrf.mxu0  ;;  %v10479_v17 = vpop.f32.mrf.mxu1 }
 0x1a8   : > { %16527 = vst [vmem:[#allocation68_spill] sm:$0xff] %v10477_v3  ;;  %16528 = vst [vmem:[#allocation69_spill] sm:$0xff] %v10479_v17 }
 0x1a9   : > { %v10481_v24 = vpop.f32.mrf.mxu0  ;;  %v10483_v51 = vpop.f32.mrf.mxu1 }
 0x1aa   : > { %16529 = vst [vmem:[#allocation70_spill] sm:$0xff] %v10481_v24  ;;  %16530 = vst [vmem:[#allocation71_spill] sm:$0xff] %v10483_v51 }
 0x1ab   : > { %v10485_v60 = vpop.f32.mrf.mxu0  ;;  %v10487_v6 = vpop.f32.mrf.mxu1 }
 0x1ac   : > { %16531 = vst [vmem:[#allocation72_spill] sm:$0xff] %v10485_v60  ;;  %16532 = vst [vmem:[#allocation73_spill] sm:$0xff] %v10487_v6 }
 0x1ad   : > { %v10489_v15 = vpop.f32.mrf.mxu0  ;;  %v10491_v0 = vpop.f32.mrf.mxu1 }
 0x1ae   : > { %16533 = vst [vmem:[#allocation74_spill] sm:$0xff] %v10489_v15  ;;  %16534 = vst [vmem:[#allocation75_spill] sm:$0xff] %v10491_v0 }
 0x1af   : > { %v10493_v8 = vpop.f32.mrf.mxu0  ;;  %v10495_v12 = vpop.f32.mrf.mxu1 }
 0x1b0   : > { %16535 = vst [vmem:[#allocation76_spill] sm:$0xff] %v10493_v8  ;;  %16536 = vst [vmem:[#allocation77_spill] sm:$0xff] %v10495_v12  ;;  %v1419_v8 = vmax.f32 %v10222_v27, 0.0  ;;  %v1421_v12 = vmax.f32 %v10224_v28, 0.0 }
 0x1b1   : > { %v10497_v7 = vpop.f32.mrf.mxu0  ;;  %v10499_v3 = vpop.f32.mrf.mxu1 }
 0x1b2   : > { %16537 = vst [vmem:[#allocation78_spill] sm:$0xff] %v10497_v7  ;;  %16538 = vst [vmem:[#allocation79_spill] sm:$0xff] %v10499_v3  ;;  %v1420_v3 = vmax.f32 %v10228_v29, 0.0  ;;  %v1424_v29 = vmax.f32 %v10239_v34, 0.0 }
 0x1b3   : > { %v10501_v17 = vpop.f32.mrf.mxu0  ;;  %v10503_v24 = vpop.f32.mrf.mxu1 }
 0x1b4   : > { %16539 = vst [vmem:[#allocation80_spill] sm:$0xff] %v10501_v17  ;;  %16540 = vst [vmem:[#allocation81_spill] sm:$0xff] %v10503_v24  ;;  %v1422_v17 = vmax.f32 %v10230_v30, 0.0  ;;  %v1426_v30 = vmax.f32 %v10241_v35, 0.0  ;;  %v1428_v35 = vmax.f32 %v10249_v38, 0.0  ;;  %v1433_v38 = vmax.f32 %v10255_v41, 0.0 }
 0x1b5   : > { %v10505_v51 = vpop.f32.mrf.mxu0  ;;  %v10507_v60 = vpop.f32.mrf.mxu1 }
 0x1b6   : > { %16541 = vst [vmem:[#allocation82_spill] sm:$0xff] %v10505_v51  ;;  %16542 = vst [vmem:[#allocation83_spill] sm:$0xff] %v10507_v60 }
 0x1b7   : > { %v10509_v6 = vpop.f32.mrf.mxu0  ;;  %v10511_v15 = vpop.f32.mrf.mxu1 }
 0x1b8   : > { %16543 = vst [vmem:[#allocation84_spill] sm:$0xff] %v10509_v6  ;;  %16544 = vst [vmem:[#allocation85_spill] sm:$0xff] %v10511_v15  ;;  %v1423_v6 = vmax.f32 %v10232_v31, 0.0  ;;  %v1425_v15 = vmax.f32 %v10234_v32, 0.0  ;;  %v1429_v31 = vmax.f32 %v10245_v37, 0.0  ;;  %v1432_v37 = vmax.f32 %v10260_v43, 0.0 }
 0x1b9   : > { %v1869_v0 = vpop.f32.mrf.mxu0  ;;  %v2062_v7 = vpop.f32.mrf.mxu1 }
 0x1ba   : > { %v10517_v42 = vadd.f32 %v1869_v0, %v1419_v8  ;;  %v10519_v24 = vadd.f32 %v2062_v7, %v1421_v12  ;;  %v1427_v8 = vmax.f32 %v10243_v36, 0.0 }
 0x1bb   : > { %v1871_v51 = vpop.f32.mrf.mxu0  ;;  %v2064_v60 = vpop.f32.mrf.mxu1 }
 0x1bc   : > { %16545 = vst [vmem:[#allocation86_spill] sm:$0xff] %v10517_v42  ;;  %16546 = vst [vmem:[#allocation87_spill] sm:$0xff] %v10519_v24  ;;  %v10523_v33 = vadd.f32 %v1871_v51, %v1420_v3  ;;  %v10525_v27 = vadd.f32 %v2064_v60, %v1422_v17 }
 0x1bd   : > { %v1873_v28 = vpop.f32.mrf.mxu0  ;;  %v2066_v26 = vpop.f32.mrf.mxu1 }
 0x1be   : > { %16547 = vst [vmem:[#allocation88_spill] sm:$0xff] %v10523_v33  ;;  %16548 = vst [vmem:[#allocation89_spill] sm:$0xff] %v10525_v27  ;;  %v10529_v0 = vadd.f32 %v1873_v28, %v1423_v6  ;;  %v10531_v7 = vadd.f32 %v2066_v26, %v1425_v15  ;;  %v1430_v26 = vmax.f32 %v10251_v39, 0.0  ;;  %v1434_v6 = vmax.f32 %v10262_v44, 0.0 }
 0x1bf   : > { %v1875_v12 = vpop.f32.mrf.mxu0  ;;  %v2068_v32 = vpop.f32.mrf.mxu1 }
 0x1c0   : > { %16549 = vst [vmem:[#allocation90_spill] sm:$0xff] %v10529_v0  ;;  %16550 = vst [vmem:[#allocation91_spill] sm:$0xff] %v10531_v7  ;;  %v10539_v51 = vadd.f32 %v1875_v12, %v1424_v29  ;;  %v10541_v34 = vadd.f32 %v2068_v32, %v1426_v30  ;;  %v1431_v30 = vmax.f32 %v10253_v40, 0.0  ;;  %v1437_v40 = vmax.f32 %v10266_v46, 0.0 }
 0x1c1   : > { %v1879_v60 = vpop.f32.mrf.mxu0  ;;  %v2072_v36 = vpop.f32.mrf.mxu1 }
 0x1c2   : > { %16551 = vst [vmem:[#allocation92_spill] sm:$0xff] %v10539_v51  ;;  %16552 = vst [vmem:[#allocation93_spill] sm:$0xff] %v10541_v34  ;;  %v10549_v15 = vadd.f32 %v1879_v60, %v1427_v8  ;;  %v10551_v28 = vadd.f32 %v2072_v36, %v1429_v31  ;;  %v1435_v60 = vmax.f32 %v10264_v45, 0.0  ;;  %v1442_v45 = vmax.f32 %v10283_v53, 0.0 }
 0x1c3   : > { %v1881_v29 = vpop.f32.mrf.mxu0  ;;  %v2074_v12 = vpop.f32.mrf.mxu1 }
 0x1c4   : > { %16553 = vst [vmem:[#allocation94_spill] sm:$0xff] %v10549_v15  ;;  %16554 = vst [vmem:[#allocation95_spill] sm:$0xff] %v10551_v28  ;;  %v10555_v32 = vadd.f32 %v1881_v29, %v1428_v35  ;;  %v10557_v39 = vadd.f32 %v2074_v12, %v1430_v26  ;;  %v1439_v26 = vmax.f32 %v10274_v49, 0.0 }
 0x1c5   : > { %v1883_v17 = vpop.f32.mrf.mxu0  ;;  %v2076_v3 = vpop.f32.mrf.mxu1 }
 0x1c6   : > { %16555 = vst [vmem:[#allocation96_spill] sm:$0xff] %v10555_v32  ;;  %16556 = vst [vmem:[#allocation97_spill] sm:$0xff] %v10557_v39  ;;  %v10561_v8 = vadd.f32 %v1883_v17, %v1431_v30  ;;  %v10563_v31 = vadd.f32 %v2076_v3, %v1433_v38  ;;  %v1440_v3 = vmax.f32 %v10281_v52, 0.0 }
 0x1c7   : > { %v1885_v36 = vpop.f32.mrf.mxu0  ;;  %v2078_v41 = vpop.f32.mrf.mxu1 }
 0x1c8   : > { %16557 = vst [vmem:[#allocation98_spill] sm:$0xff] %v10561_v8  ;;  %16558 = vst [vmem:[#allocation99_spill] sm:$0xff] %v10563_v31  ;;  %v10571_v29 = vadd.f32 %v1885_v36, %v1432_v37  ;;  %v10573_v43 = vadd.f32 %v2078_v41, %v1434_v6  ;;  %v1441_v37 = vmax.f32 %v10276_v50, 0.0  ;;  %v1436_v6 = vmax.f32 %v10270_v47, 0.0  ;;  %v16583_v8 = vld [vmem:[#allocation15_spill] sm:$0xff] }
 0x1c9   : > { %v1889_v44 = vpop.f32.mrf.mxu0  ;;  %v2082_v17 = vpop.f32.mrf.mxu1  ;;  %v1438_v36 = vmax.f32 %v10272_v48, 0.0  ;;  %v1450_v48 = vmax.f32 %v10304_v62, 0.0 }
 0x1ca   : > { %16559 = vst [vmem:[#allocation100_spill] sm:$0xff] %v10571_v29  ;;  %16560 = vst [vmem:[#allocation101_spill] sm:$0xff] %v10573_v43  ;;  %v10579_v46 = vadd.f32 %v1889_v44, %v1435_v60  ;;  %v10581_v12 = vadd.f32 %v2082_v17, %v1437_v40  ;;  %v16584_v43 = vld [vmem:[#allocation16_spill] sm:$0xff]  ;;  %v16585_v29 = vld [vmem:[#allocation17_spill] sm:$0xff] }
 0x1cb   : > { %v1891_v30 = vpop.f32.mrf.mxu0  ;;  %v2084_v38 = vpop.f32.mrf.mxu1  ;;  %v1476_v32 = vmax.f32 %v16584_v43, 0.0 }
 0x1cc   : > { %16561 = vst [vmem:[#allocation102_spill] sm:$0xff] %v10579_v46  ;;  %16562 = vst [vmem:[#allocation103_spill] sm:$0xff] %v10581_v12  ;;  %v10593_v44 = vadd.f32 %v1891_v30, %v1436_v6  ;;  %v10595_v17 = vadd.f32 %v2084_v38, %v1438_v36  ;;  %v1443_v6 = vmax.f32 %v10285_v54, 0.0  ;;  %v1445_v36 = vmax.f32 %v10287_v55, 0.0  ;;  %v16586_v12 = vld [vmem:[#allocation18_spill] sm:$0xff]  ;;  %v16588_v46 = vld [vmem:[#allocation20_spill] sm:$0xff] }
 0x1cd   : > { %v1893_v41 = vpop.f32.mrf.mxu0  ;;  %v2086_v35 = vpop.f32.mrf.mxu1 }
 0x1ce   : > { %v10589_v60 = vadd.f32 %v1893_v41, %v1439_v26  ;;  %v10591_v40 = vadd.f32 %v2086_v35, %v1441_v37  ;;  %16565 = vst [vmem:[#allocation106_spill] sm:$0xff] %v10593_v44  ;;  %16566 = vst [vmem:[#allocation107_spill] sm:$0xff] %v10595_v17  ;;  %v1447_v41 = vmax.f32 %v10295_v58, 0.0  ;;  %v16590_v17 = vld [vmem:[#allocation22_spill] sm:$0xff] }
 0x1cf   : > { %v1895_v49 = vpop.f32.mrf.mxu0  ;;  %v2088_v50 = vpop.f32.mrf.mxu1 }
 0x1d0   : > { %16563 = vst [vmem:[#allocation104_spill] sm:$0xff] %v10589_v60  ;;  %16564 = vst [vmem:[#allocation105_spill] sm:$0xff] %v10591_v40  ;;  %v10601_v24 = vadd.f32 %v1895_v49, %v1440_v3  ;;  %v10603_v52 = vadd.f32 %v2088_v50, %v1442_v45  ;;  %v1449_v3 = vmax.f32 %v10297_v59, 0.0  ;;  %v1444_v45 = vmax.f32 %v10291_v56, 0.0  ;;  %v16587_v40 = vld [vmem:[#allocation19_spill] sm:$0xff]  ;;  %v16589_v60 = vld [vmem:[#allocation21_spill] sm:$0xff] }
 0x1d1   : > { %v1899_v53 = vpop.f32.mrf.mxu0  ;;  %v2092_v26 = vpop.f32.mrf.mxu1  ;;  %v1446_v49 = vmax.f32 %v10293_v57, 0.0  ;;  %v1448_v50 = vmax.f32 %v10302_v61, 0.0 }
 0x1d2   : > { %16567 = vst [vmem:[#allocation108_spill] sm:$0xff] %v10601_v24  ;;  %16568 = vst [vmem:[#allocation109_spill] sm:$0xff] %v10603_v52  ;;  %v10617_v35 = vadd.f32 %v1899_v53, %v1443_v6  ;;  %v10619_v7 = vadd.f32 %v2092_v26, %v1445_v36  ;;  %v16591_v52 = vld [vmem:[#allocation23_spill] sm:$0xff] }
 0x1d3   : > { %v1901_v38 = vpop.f32.mrf.mxu0  ;;  %v2094_v37 = vpop.f32.mrf.mxu1 }
 0x1d4   : > { %16569 = vst [vmem:[#allocation110_spill] sm:$0xff] %v10617_v35  ;;  %16570 = vst [vmem:[#allocation111_spill] sm:$0xff] %v10619_v7  ;;  %v10625_v58 = vadd.f32 %v1901_v38, %v1444_v45  ;;  %v10627_v59 = vadd.f32 %v2094_v37, %v1446_v49  ;;  %v1455_v45 = vmax.f32 %v10316_v4, 0.0  ;;  %v1457_v49 = vmax.f32 %v10318_v5, 0.0 }
 0x1d5   : > { %v1903_v47 = vpop.f32.mrf.mxu0  ;;  %v2096_v30 = vpop.f32.mrf.mxu1 }
 0x1d6   : > { %v10621_v54 = vadd.f32 %v1903_v47, %v1447_v41  ;;  %v10623_v55 = vadd.f32 %v2096_v30, %v1449_v3  ;;  %16573 = vst [vmem:[#allocation114_spill] sm:$0xff] %v10625_v58  ;;  %16574 = vst [vmem:[#allocation115_spill] sm:$0xff] %v10627_v59  ;;  %v9188_v30 = vld [vmem:[%s16577_s3 + $0x4] ss:$8 sps:$4 sm:$0xff]   ;;  %v1453_v3 = vmax.f32 %v10308_v1, 0.0 }
 0x1d7   : > { %v1905_v56 = vpop.f32.mrf.mxu0  ;;  %v2098_v57 = vpop.f32.mrf.mxu1  ;;  %2829 = vmatprep.mubr.bf16.mxu0 %v9188_v30  ;;  %3022 = vmatprep.mubr.bf16.mxu1 %v9188_v30 }
 0x1d8   : > { %16571 = vst [vmem:[#allocation112_spill] sm:$0xff] %v10621_v54  ;;  %16572 = vst [vmem:[#allocation113_spill] sm:$0xff] %v10623_v55  ;;  %v10633_v53 = vadd.f32 %v1905_v56, %v1448_v50  ;;  %v10635_v26 = vadd.f32 %v2098_v57, %v1450_v48  ;;  %v1451_v48 = vmax.f32 %v10306_v63, 0.0 }
 0x1d9   : > { %v1909_v47 = vpop.f32.mrf.mxu0  ;;  %v2102_v6 = vpop.f32.mrf.mxu1 }
 0x1da   : > { %16575 = vst [vmem:[#allocation116_spill] sm:$0xff] %v10633_v53  ;;  %16576 = vst [vmem:[#allocation117_spill] sm:$0xff] %v10635_v26  ;;  %v10652_v57 = vadd.f32 %v1909_v47, %v1451_v48  ;;  %v10654_v62 = vadd.f32 %v2102_v6, %v1453_v3  ;;  %v1459_v48 = vmax.f32 %v10327_v9, 0.0  ;;  %v1461_v3 = vmax.f32 %v10329_v10, 0.0  ;;  %v16592_v53 = vld [vmem:[#allocation24_spill] sm:$0xff] }
 0x1db   : > { %v10644_v36 = vpop.f32.mrf.mxu0  ;;  %v10646_v41 = vpop.f32.mrf.mxu1 }
 0x1dc   : > { %16578 = vst [vmem:[#allocation118_spill] sm:$0xff] %v10652_v57  ;;  %16579 = vst [vmem:[#allocation119_spill] sm:$0xff] %v10654_v62  ;;  %v16593_v62 = vld [vmem:[#allocation25_spill] sm:$0xff] }
 0x1dd   : > { %v1913_v50 = vpop.f32.mrf.mxu0  ;;  %v2106_v56 = vpop.f32.mrf.mxu1 }
 0x1de   : > { %v10656_v61 = vadd.f32 %v1913_v50, %v1455_v45  ;;  %v10658_v37 = vadd.f32 %v2106_v56, %v1457_v49  ;;  %v1463_v45 = vmax.f32 %v10337_v13, 0.0  ;;  %v1465_v49 = vmax.f32 %v10339_v14, 0.0 }
 0x1df   : > { %v10660_v38 = vpop.f32.mrf.mxu0  ;;  %v10662_v30 = vpop.f32.mrf.mxu1 }
 0x1e0   : > { %16580 = vst [vmem:[#allocation120_spill] sm:$0xff] %v10658_v37 }
 0x1e1   : > { %v1919_v4 = vpop.f32.mrf.mxu0  ;;  %v2112_v5 = vpop.f32.mrf.mxu1 }
 0x1e2   : > { %v10676_v63 = vadd.f32 %v1919_v4, %v1459_v48  ;;  %v10678_v42 = vadd.f32 %v2112_v5, %v1461_v3  ;;  %v1467_v5 = vmax.f32 %v10348_v18, 0.0  ;;  %v1469_v3 = vmax.f32 %v10350_v19, 0.0 }
 0x1e3   : > { %v10668_v47 = vpop.f32.mrf.mxu0  ;;  %v10670_v6 = vpop.f32.mrf.mxu1  ;;  %v1477_v19 = vmax.f32 %v16583_v8, 0.0 }
 0x1e5   : > { %v1923_v50 = vpop.f32.mrf.mxu0  ;;  %v2116_v56 = vpop.f32.mrf.mxu1 }
 0x1e6   : > { %v10680_v1 = vadd.f32 %v1923_v50, %v1463_v45  ;;  %v10682_v0 = vadd.f32 %v2116_v56, %v1465_v49  ;;  %v1471_v45 = vmax.f32 %v10358_v22, 0.0  ;;  %v1473_v49 = vmax.f32 %v10360_v23, 0.0 }
 0x1e7   : > { %v10684_v27 = vpop.f32.mrf.mxu0  ;;  %v10686_v34 = vpop.f32.mrf.mxu1 }
 0x1e9   : > { %v1929_v13 = vpop.f32.mrf.mxu0  ;;  %v2122_v14 = vpop.f32.mrf.mxu1 }
 0x1ea   : > { %v10696_v33 = vadd.f32 %v1929_v13, %v1467_v5  ;;  %v10698_v9 = vadd.f32 %v2122_v14, %v1469_v3  ;;  %v1464_v14 = vmax.f32 %v10344_v16, 0.0  ;;  %v1468_v5 = vmax.f32 %v10354_v20, 0.0 }
 0x1eb   : > { %v1931_v4 = vpop.f32.mrf.mxu0  ;;  %v2124_v48 = vpop.f32.mrf.mxu1  ;;  %v1470_v3 = vmax.f32 %v10356_v21, 0.0  ;;  %v1478_v13 = vmax.f32 %v16585_v29, 0.0  ;;  %v1479_v16 = vmax.f32 %v16586_v12, 0.0  ;;  %v1481_v20 = vmax.f32 %v16587_v40, 0.0 }
 0x1ec   : > { %v1480_v21 = vmax.f32 %v16588_v46, 0.0  ;;  %v2270_v37 = vadd.f32 %v1931_v4, %v1468_v5  ;;  %v16602_v5 = vld [vmem:[#allocation9_spill] sm:$0xff] }
 0x1ed   : > { %v1933_v50 = vpop.f32.mrf.mxu0  ;;  %v2126_v56 = vpop.f32.mrf.mxu1  ;;  %v2272_v57 = vadd.f32 %v2124_v48, %v1470_v3  ;;  %v1456_v3 = vmax.f32 %v16602_v5, 0.0 }
 0x1ee   : > { %v10700_v51 = vadd.f32 %v1933_v50, %v1471_v45  ;;  %v10702_v10 = vadd.f32 %v2126_v56, %v1473_v49  ;;  %v1472_v45 = vmax.f32 %v10365_v25, 0.0  ;;  %v16581_v49 = vld [vmem:[#allocation13_spill] sm:$0xff]  ;;  %v16582_v56 = vld [vmem:[#allocation14_spill] sm:$0xff]  ;;  %v1482_v25 = vmax.f32 %v16589_v60, 0.0 }
 0x1ef   : > { %v1935_v28 = vpop.f32.mrf.mxu0  ;;  %v2128_v31 = vpop.f32.mrf.mxu1  ;;  %v1474_v50 = vmax.f32 %v16581_v49, 0.0  ;;  %v1475_v18 = vmax.f32 %v16582_v56, 0.0  ;;  %v1483_v49 = vmax.f32 %v16590_v17, 0.0  ;;  %v1485_v56 = vmax.f32 %v16591_v52, 0.0 }
 0x1f0   : > { %v2274_v35 = vadd.f32 %v1935_v28, %v1472_v45  ;;  %v1484_v17 = vmax.f32 %v16592_v53, 0.0  ;;  %v1486_v52 = vmax.f32 %v16593_v62, 0.0  ;;  %v16598_v62 = vld [vmem:[#allocation27_spill] sm:$0xff] }
 0x1f1   : > { %v1939_v23 = vpop.f32.mrf.mxu0  ;;  %v2132_v15 = vpop.f32.mrf.mxu1  ;;  %v2276_v29 = vadd.f32 %v2128_v31, %v1474_v50  ;;  %v1489_v4 = vmax.f32 %v16598_v62, 0.0  ;;  %v16603_v45 = vld [vmem:[#allocation11_spill] sm:$0xff] }
 0x1f2   : > { %v2277_v24 = vadd.f32 %v1939_v23, %v1475_v18  ;;  %v2279_v7 = vadd.f32 %v2132_v15, %v1477_v19  ;;  %v1462_v50 = vmax.f32 %v16603_v45, 0.0 }
 0x1f3   : > { %v1941_v39 = vpop.f32.mrf.mxu0  ;;  %v2134_v22 = vpop.f32.mrf.mxu1  ;;  %v2408_v48 = vpack.c.bf16 %v2276_v29, %v2272_v57 }
 0x1f4   : > { %v2278_v54 = vadd.f32 %v1941_v39, %v1476_v32  ;;  %v2280_v12 = vadd.f32 %v2134_v22, %v1478_v13  ;;  %v16596_v39 = vld [vmem:[#allocation12_spill] sm:$0xff] }
 0x1f5   : > { %v1943_v44 = vpop.f32.mrf.mxu0  ;;  %v2136_v8 = vpop.f32.mrf.mxu1  ;;  %v1466_v31 = vmax.f32 %v16596_v39, 0.0 }
 0x1f6   : > { %v2281_v55 = vadd.f32 %v1943_v44, %v1479_v16  ;;  %v2283_v43 = vadd.f32 %v2136_v8, %v1481_v20  ;;  %v16605_v16 = vmax.f32 %v10333_v11, 0.0  ;;  %v16609_v8 = vld [vmem:[#allocation31_spill] sm:$0xff] }
 0x1f7   : > { %v1945_v59 = vpop.f32.mrf.mxu0  ;;  %v2138_v40 = vpop.f32.mrf.mxu1 }
 0x1f8   : > { %v2409_v26 = vpack.c.bf16 %v2281_v55, %v2277_v24  ;;  %v2411_v46 = vpack.c.bf16 %v2283_v43, %v2279_v7  ;;  %v2282_v58 = vadd.f32 %v1945_v59, %v1480_v21  ;;  %v2284_v60 = vadd.f32 %v2138_v40, %v1482_v25  ;;  %v16597_v24 = vld [vmem:[#allocation26_spill] sm:$0xff] }
 0x1f9   : > { %v1949_v18 = vpop.f32.mrf.mxu0  ;;  %v2142_v15 = vpop.f32.mrf.mxu1  ;;  %v1487_v7 = vmax.f32 %v16597_v24, 0.0  ;;  %v2266_v55 = vadd.f32 %v10684_v27, %v1464_v14  ;;  %v2406_v59 = vpack.c.bf16 %v2274_v35, %v2270_v37  ;;  %v2268_v27 = vadd.f32 %v10686_v34, %v1466_v31  ;;  %v16604_v14 = vld [vmem:[#allocation10_spill] sm:$0xff] }
 0x1fa   : > { %v2410_v44 = vpack.c.bf16 %v2282_v58, %v2278_v54  ;;  %v2412_v19 = vpack.c.bf16 %v2284_v60, %v2280_v12  ;;  %v10727_v28 = vadd.f32 %v1949_v18, %v1483_v49  ;;  %v10729_v32 = vadd.f32 %v2142_v15, %v1485_v56  ;;  %v16601_v58 = vld [vmem:[#allocation8_spill] sm:$0xff]  ;;  %v16608_v49 = vld [vmem:[#allocation30_spill] sm:$0xff] }
 0x1fb   : > { %v1951_v53 = vpop.f32.mrf.mxu0  ;;  %v2144_v22 = vpop.f32.mrf.mxu1  ;;  %v1454_v13 = vmax.f32 %v16601_v58, 0.0  ;;  %v1458_v57 = vmax.f32 %v16604_v14, 0.0  ;;  %v2262_v20 = vadd.f32 %v10668_v47, %v16605_v16  ;;  %v1491_v56 = vmax.f32 %v16608_v49, 0.0  ;;  %v16612_v60 = vld [vmem:[#allocation32_spill] sm:$0xff]  ;;  %v16631_v16 = vld [vmem:[#allocation118_spill] sm:$0xff] }
 0x1fc   : > { %16594 = vst [vmem:[#allocation13_spill] sm:$0xff] %v10727_v28  ;;  %16595 = vst [vmem:[#allocation14_spill] sm:$0xff] %v10729_v32  ;;  %v10735_v23 = vadd.f32 %v1951_v53, %v1484_v17  ;;  %v10737_v54 = vadd.f32 %v2144_v22, %v1486_v52  ;;  %2797 = vmatprep.subr.bf16.mxu0 %v2410_v44  ;;  %2990 = vmatprep.subr.bf16.mxu1 %v2412_v19  ;;  %v1493_v34 = vmax.f32 %v16609_v8, 0.0  ;;  %v16613_v52 = vld [vmem:[#allocation33_spill] sm:$0xff]  ;;  %v16620_v53 = vld [vmem:[#allocation35_spill] sm:$0xff] }
 0x1fd   : > { %v1953_v35 = vpop.f32.mrf.mxu0  ;;  %v2146_v37 = vpop.f32.mrf.mxu1  ;;  %2798 = vmatpush1.bf16.msra.mxu0 %v2409_v26  ;;  %2991 = vmatpush1.bf16.msra.mxu1 %v2411_v46  ;;  %v2258_v43 = vadd.f32 %v10660_v38, %v1456_v3  ;;  %v2264_v26 = vadd.f32 %v10670_v6, %v1462_v50  ;;  %v2260_v11 = vadd.f32 %v10662_v30, %v1458_v57  ;;  %v1492_v17 = vmax.f32 %v16612_v60, 0.0  ;;  %v16633_v49 = vld [vmem:[#allocation120_spill] sm:$0xff]  ;;  %v16641_v60 = vld [vmem:[#allocation117_spill] sm:$0xff] }
 0x1fe   : > { %16599 = vst [vmem:[#allocation15_spill] sm:$0xff] %v10735_v23  ;;  %16600 = vst [vmem:[#allocation16_spill] sm:$0xff] %v10737_v54  ;;  %v10747_v21 = vadd.f32 %v1953_v35, %v1487_v7  ;;  %v10749_v25 = vadd.f32 %v2146_v37, %v1489_v4  ;;  %2799 = vmatprep.subr.bf16.mxu0 %v2406_v59  ;;  %2992 = vmatprep.subr.bf16.mxu1 %v2408_v48  ;;  %v1494_v18 = vmax.f32 %v16613_v52, 0.0  ;;  %v2460_v37 = vld [vmem:[%s16148_s14 + $0x78] sm:$0xff]  ;;  %v2446_v46 = vld [vmem:[%s16148_s14 + $0x8] sm:$0xff] }
 0x1ff   : > { %v10755_v29 = vpop.f32.mrf.mxu0  ;;  %v10757_v12 = vpop.f32.mrf.mxu1  ;;  %v2402_v47 = vpack.c.bf16 %v2266_v55, %v2262_v20  ;;  %v2404_v38 = vpack.c.bf16 %v2268_v27, %v2264_v26  ;;  %v16614_v44 = vpack.c.bf16 %v10700_v51, %v10696_v33  ;;  %v16615_v30 = vpack.c.bf16 %v10702_v10, %v10698_v9  ;;  %v16619_v55 = vld [vmem:[#allocation34_spill] sm:$0xff]  ;;  %v16638_v26 = vld [vmem:[#allocation116_spill] sm:$0xff]  ;;  %v16719_v54 = vld [vmem:[#allocation79_spill] sm:$0xff] }
 0x200   : > { %16606 = vst [vmem:[#allocation17_spill] sm:$0xff] %v10747_v21  ;;  %16607 = vst [vmem:[#allocation18_spill] sm:$0xff] %v10749_v25  ;;  %v16616_v19 = vmax.f32 %v10312_v2, 0.0  ;;  %v2256_v31 = vadd.f32 %v10646_v41, %v1454_v13  ;;  %v1495_v59 = vmax.f32 %v16619_v55, 0.0  ;;  %v1497_v33 = vmax.f32 %v16620_v53, 0.0  ;;  %v2457_v41 = vld [vmem:[%s16148_s14 + $0x60] sm:$0xff] }
 0x201   : > { %16610 = vst [vmem:[#allocation19_spill] sm:$0xff] %v10755_v29  ;;  %16611 = vst [vmem:[#allocation20_spill] sm:$0xff] %v10757_v12  ;;  %v1959_v15 = vpop.f32.mrf.mxu0  ;;  %v2152_v6 = vpop.f32.mrf.mxu1  ;;  %2800 = vmatpush1.bf16.msra.mxu0 %v16614_v44  ;;  %2993 = vmatpush1.bf16.msra.mxu1 %v16615_v30  ;;  %v16623_v58 = vpack.c.bf16 %v10680_v1, %v10676_v63  ;;  %v16624_v13 = vpack.c.bf16 %v10682_v0, %v10678_v42  ;;  %v16629_v27 = vld [vmem:[#allocation38_spill] sm:$0xff]  ;;  %v16630_v63 = vld [vmem:[#allocation39_spill] sm:$0xff]  ;;  %v1541_v23 = vmax.f32 %v16719_v54, 0.0 }
 0x202   : > { %v2254_v39 = vadd.f32 %v10644_v36, %v16616_v19  ;;  %v10776_v24 = vadd.f32 %v1959_v15, %v1491_v56  ;;  %v10778_v7 = vadd.f32 %v2152_v6, %v1493_v34  ;;  %2801 = vmatprep.subr.bf16.mxu0 %v2402_v47  ;;  %2994 = vmatprep.subr.bf16.mxu1 %v2404_v38  ;;  %v2459_v36 = vld [vmem:[%s16148_s14 + $0x70] sm:$0xff]  ;;  %v1499_v35 = vmax.f32 %v16629_v27, 0.0  ;;  %v16634_v56 = vld [vmem:[#allocation119_spill] sm:$0xff]  ;;  %v16646_v38 = vld [vmem:[#allocation42_spill] sm:$0xff] }
 0x203   : > { %v1961_v51 = vpop.f32.mrf.mxu0  ;;  %v2154_v22 = vpop.f32.mrf.mxu1  ;;  %v2400_v10 = vpack.c.bf16 %v2260_v11, %v2256_v31  ;;  %2549 = vperm.xlu0 %9051, %v2459_v36   ;;  %2539 = vperm.xlu1 %9052, %v2457_v41   ;;  %v1501_v1 = vmax.f32 %v16630_v63, 0.0  ;;  %v16632_v20 = vpack.c.bf16 %v10656_v61, %v16631_v16  ;;  %v16635_v8 = vpack.c.bf16 %v16633_v49, %v16634_v56  ;;  %v16639_v11 = vld [vmem:[#allocation114_spill] sm:$0xff]  ;;  %v16647_v6 = vld [vmem:[#allocation43_spill] sm:$0xff]  ;;  %v2458_v30 = vld [vmem:[%s16148_s14 + $0x68] sm:$0xff] }
 0x204   : > { %16617 = vst [vmem:[#allocation21_spill] sm:$0xff] %v10776_v24  ;;  %16618 = vst [vmem:[#allocation22_spill] sm:$0xff] %v10778_v7  ;;  %v2398_v9 = vpack.c.bf16 %v2258_v43, %v2254_v39  ;;  %v10782_v62 = vadd.f32 %v1961_v51, %v1492_v17  ;;  %v10784_v2 = vadd.f32 %v2154_v22, %v1494_v18  ;;  %v16642_v17 = vld [vmem:[#allocation115_spill] sm:$0xff]  ;;  %v1503_v15 = vmax.f32 %v16646_v38, 0.0  ;;  %v2455_v19 = vld [vmem:[%s16148_s14 + $0x50] sm:$0xff] }
 0x205   : > { %v1963_v4 = vpop.f32.mrf.mxu0  ;;  %v2156_v48 = vpop.f32.mrf.mxu1  ;;  %2802 = vmatpush1.bf16.msra.mxu0 %v16623_v58  ;;  %2995 = vmatpush1.bf16.msra.mxu1 %v16624_v13  ;;  %v16640_v47 = vpack.c.bf16 %v16638_v26, %v16639_v11  ;;  %v16643_v52 = vpack.c.bf16 %v16641_v60, %v16642_v17  ;;  %v1505_v44 = vmax.f32 %v16647_v6, 0.0  ;;  %v16648_v55 = vld [vmem:[#allocation112_spill] sm:$0xff]  ;;  %v16652_v51 = vld [vmem:[#allocation111_spill] sm:$0xff]  ;;  %v16657_v41 = vld [vmem:[#allocation106_spill] sm:$0xff] }
 0x206   : > { %16621 = vst [vmem:[#allocation23_spill] sm:$0xff] %v10782_v62  ;;  %16622 = vst [vmem:[#allocation24_spill] sm:$0xff] %v10784_v2  ;;  %v10798_v5 = vadd.f32 %v1963_v4, %v1495_v59  ;;  %v10800_v3 = vadd.f32 %v2156_v48, %v1497_v33  ;;  %2803 = vmatprep.subr.bf16.mxu0 %v2398_v9  ;;  %2996 = vmatprep.subr.bf16.mxu1 %v2400_v10  ;;  %v16649_v59 = vld [vmem:[#allocation110_spill] sm:$0xff]  ;;  %v16651_v33 = vld [vmem:[#allocation113_spill] sm:$0xff] }
 0x207   : > { %v10802_v45 = vpop.f32.mrf.mxu0  ;;  %v10804_v50 = vpop.f32.mrf.mxu1  ;;  %2554 = vperm.xlu0 %9051, %v2460_v37   ;;  %v16650_v53 = vpack.c.bf16 %v16648_v55, %v16649_v59  ;;  %v16653_v22 = vpack.c.bf16 %v16651_v33, %v16652_v51  ;;  %v16656_v36 = vld [vmem:[#allocation108_spill] sm:$0xff]  ;;  %v16659_v48 = vld [vmem:[#allocation109_spill] sm:$0xff]  ;;  %v16660_v58 = vld [vmem:[#allocation107_spill] sm:$0xff]  ;;  %2544 = vperm.xlu1 %9052, %v2458_v30  }
 0x208   : > { %16625 = vst [vmem:[#allocation25_spill] sm:$0xff] %v10798_v5  ;;  %16626 = vst [vmem:[#allocation12_spill] sm:$0xff] %v10800_v3  ;;  %v16658_v4 = vpack.c.bf16 %v16656_v36, %v16657_v41  ;;  %v16661_v13 = vpack.c.bf16 %v16659_v48, %v16660_v58  ;;  %v2456_v37 = vld [vmem:[%s16148_s14 + $0x58] sm:$0xff]  ;;  %v16662_v16 = vld [vmem:[#allocation104_spill] sm:$0xff] }
 0x209   : > { %16627 = vst [vmem:[#allocation26_spill] sm:$0xff] %v10802_v45  ;;  %16628 = vst [vmem:[#allocation27_spill] sm:$0xff] %v10804_v50  ;;  %v1969_v14 = vpop.f32.mrf.mxu0  ;;  %v2162_v57 = vpop.f32.mrf.mxu1  ;;  %2804 = vmatpush1.bf16.msra.mxu0 %v16632_v20  ;;  %2997 = vmatpush1.bf16.msra.mxu1 %v16635_v8  ;;  %v16663_v20 = vld [vmem:[#allocation102_spill] sm:$0xff]  ;;  %v16665_v56 = vld [vmem:[#allocation105_spill] sm:$0xff] }
 0x20a   : > { %v10821_v34 = vadd.f32 %v1969_v14, %v1499_v35  ;;  %v10823_v43 = vadd.f32 %v2162_v57, %v1501_v1  ;;  %2805 = vmatprep.subr.bf16.mxu0 %v16640_v47  ;;  %2998 = vmatprep.subr.bf16.mxu1 %v16643_v52  ;;  %v16664_v49 = vpack.c.bf16 %v16662_v16, %v16663_v20  ;;  %v16666_v8 = vld [vmem:[#allocation103_spill] sm:$0xff]  ;;  %v16668_v47 = vld [vmem:[#allocation100_spill] sm:$0xff]  ;;  %v16671_v52 = vld [vmem:[#allocation46_spill] sm:$0xff] }
 0x20b   : > { %v10831_v18 = vpop.f32.mrf.mxu0  ;;  %v10833_v61 = vpop.f32.mrf.mxu1  ;;  %2529 = vperm.xlu0 %9051, %v2455_v19   ;;  %v16667_v26 = vpack.c.bf16 %v16665_v56, %v16666_v8  ;;  %v2453_v11 = vld [vmem:[%s16148_s14 + $0x40] sm:$0xff]  ;;  %v16669_v60 = vld [vmem:[#allocation96_spill] sm:$0xff]  ;;  %v1507_v38 = vmax.f32 %v16671_v52, 0.0  ;;  %v16673_v6 = vld [vmem:[#allocation97_spill] sm:$0xff]  ;;  %2534 = vperm.xlu1 %9052, %v2456_v37  }
 0x20c   : > { %16636 = vst [vmem:[#allocation8_spill] sm:$0xff] %v10821_v34  ;;  %16637 = vst [vmem:[#allocation9_spill] sm:$0xff] %v10823_v43  ;;  %v16670_v17 = vpack.c.bf16 %v16668_v47, %v16669_v60  ;;  %v16676_v55 = vld [vmem:[#allocation50_spill] sm:$0xff]  ;;  %v2454_v51 = vld [vmem:[%s16148_s14 + $0x48] sm:$0xff] }
 0x20d   : > { %16644 = vst [vmem:[#allocation11_spill] sm:$0xff] %v10831_v18  ;;  %16645 = vst [vmem:[#allocation10_spill] sm:$0xff] %v10833_v61  ;;  %v1973_v39 = vpop.f32.mrf.mxu0  ;;  %v2166_v31 = vpop.f32.mrf.mxu1  ;;  %2806 = vmatpush1.bf16.msra.mxu0 %v16650_v53  ;;  %2999 = vmatpush1.bf16.msra.mxu1 %v16653_v22  ;;  %v1511_v59 = vmax.f32 %v16676_v55, 0.0  ;;  %v16677_v53 = vld [vmem:[#allocation51_spill] sm:$0xff]  ;;  %v16680_v48 = vld [vmem:[#allocation94_spill] sm:$0xff] }
 0x20e   : > { %v10849_v9 = vadd.f32 %v1973_v39, %v1503_v15  ;;  %v10851_v10 = vadd.f32 %v2166_v31, %v1505_v44  ;;  %2807 = vmatprep.subr.bf16.mxu0 %v16658_v4  ;;  %3000 = vmatprep.subr.bf16.mxu1 %v16661_v13  ;;  %v16672_v15 = vld [vmem:[#allocation101_spill] sm:$0xff]  ;;  %v16675_v39 = vld [vmem:[#allocation47_spill] sm:$0xff]  ;;  %v1513_v33 = vmax.f32 %v16677_v53, 0.0  ;;  %v16679_v4 = vld [vmem:[#allocation98_spill] sm:$0xff] }
 0x20f   : > { %v10859_v27 = vpop.f32.mrf.mxu0  ;;  %v10861_v35 = vpop.f32.mrf.mxu1  ;;  %v16674_v44 = vpack.c.bf16 %v16672_v15, %v16673_v6  ;;  %v1509_v31 = vmax.f32 %v16675_v39, 0.0  ;;  %2519 = vperm.xlu0 %9051, %v2453_v11   ;;  %v16681_v58 = vpack.c.bf16 %v16679_v4, %v16680_v48  ;;  %v16682_v13 = vld [vmem:[#allocation99_spill] sm:$0xff]  ;;  %v2451_v20 = vld [vmem:[%s16148_s14 + $0x30] sm:$0xff]  ;;  %v16688_v8 = vld [vmem:[#allocation92_spill] sm:$0xff]  ;;  %2524 = vperm.xlu1 %9052, %v2454_v51  }
 0x210   : > { %16654 = vst [vmem:[#allocation30_spill] sm:$0xff] %v10849_v9  ;;  %16655 = vst [vmem:[#allocation31_spill] sm:$0xff] %v10851_v10  ;;  %v16683_v37 = vld [vmem:[#allocation95_spill] sm:$0xff]  ;;  %v16691_v47 = vld [vmem:[#allocation93_spill] sm:$0xff] }
 0x211   : > { %v1979_v14 = vpop.f32.mrf.mxu0  ;;  %v2172_v57 = vpop.f32.mrf.mxu1  ;;  %2808 = vmatpush1.bf16.msra.mxu0 %v16664_v49  ;;  %3001 = vmatpush1.bf16.msra.mxu1 %v16667_v26  ;;  %v16684_v16 = vpack.c.bf16 %v16682_v13, %v16683_v37  ;;  %v16689_v26 = vld [vmem:[#allocation88_spill] sm:$0xff]  ;;  %v16692_v60 = vld [vmem:[#allocation89_spill] sm:$0xff]  ;;  %v2452_v6 = vld [vmem:[%s16148_s14 + $0x38] sm:$0xff] }
 0x212   : > { %2809 = vmatprep.subr.bf16.mxu0 %v16670_v17  ;;  %3002 = vmatprep.subr.bf16.mxu1 %v16674_v44  ;;  %v10896_v22 = vadd.f32 %v1979_v14, %v1507_v38  ;;  %v10907_v49 = vadd.f32 %v2172_v57, %v1509_v31  ;;  %v16690_v11 = vpack.c.bf16 %v16688_v8, %v16689_v26  ;;  %v16694_v31 = vld [vmem:[#allocation90_spill] sm:$0xff]  ;;  %v16697_v53 = vld [vmem:[#allocation91_spill] sm:$0xff]  ;;  %v16714_v7 = vld [vmem:[#allocation72_spill] sm:$0xff] }
 0x213   : > { %v10886_v30 = vpop.f32.mrf.mxu0  ;;  %v10888_v19 = vpop.f32.mrf.mxu1  ;;  %v16693_v17 = vpack.c.bf16 %v16691_v47, %v16692_v60  ;;  %2509 = vperm.xlu0 %9051, %v2451_v20   ;;  %v16695_v55 = vld [vmem:[#allocation86_spill] sm:$0xff]  ;;  %2514 = vperm.xlu1 %9052, %v2452_v6   ;;  %v16701_v13 = vld [vmem:[#allocation55_spill] sm:$0xff]  ;;  %v1532_v3 = vmax.f32 %v16714_v7, 0.0  ;;  %v16723_v34 = vld [vmem:[#allocation81_spill] sm:$0xff] }
 0x214   : > { %16678 = vst [vmem:[#allocation32_spill] sm:$0xff] %v10896_v22  ;;  %16685 = vst [vmem:[#allocation33_spill] sm:$0xff] %v10907_v49  ;;  %v16700_v48 = vld [vmem:[#allocation54_spill] sm:$0xff]  ;;  %v1517_v37 = vmax.f32 %v16701_v13, 0.0  ;;  %v16703_v8 = vld [vmem:[#allocation59_spill] sm:$0xff]  ;;  %v1542_v7 = vmax.f32 %v16723_v34, 0.0 }
 0x215   : > { %v1983_v36 = vpop.f32.mrf.mxu0  ;;  %v2176_v41 = vpop.f32.mrf.mxu1  ;;  %2810 = vmatpush1.bf16.msra.mxu0 %v16681_v58  ;;  %3003 = vmatpush1.bf16.msra.mxu1 %v16684_v16  ;;  %v1515_v58 = vmax.f32 %v16700_v48, 0.0  ;;  %v16702_v16 = vld [vmem:[#allocation58_spill] sm:$0xff]  ;;  %v1521_v26 = vmax.f32 %v16703_v8, 0.0  ;;  %v16707_v8 = vld [vmem:[#allocation63_spill] sm:$0xff]  ;;  %v16724_v9 = vld [vmem:[#allocation84_spill] sm:$0xff] }
 0x216   : > { %v10909_v56 = vadd.f32 %v1983_v36, %v1511_v59  ;;  %v10911_v14 = vadd.f32 %v2176_v41, %v1513_v33  ;;  %2811 = vmatprep.subr.bf16.mxu0 %v16690_v11  ;;  %3004 = vmatprep.subr.bf16.mxu1 %v16693_v17  ;;  %v16696_v59 = vpack.c.bf16 %v16694_v31, %v16695_v55  ;;  %v16698_v33 = vld [vmem:[#allocation87_spill] sm:$0xff]  ;;  %v1519_v20 = vmax.f32 %v16702_v16, 0.0  ;;  %v2450_v11 = vld [vmem:[%s16148_s14 + $0x28] sm:$0xff]  ;;  %v2447_v17 = vld [vmem:[%s16148_s14 + $0x10] sm:$0xff] }
 0x217   : > { %v10919_v52 = vpop.f32.mrf.mxu0  ;;  %v10921_v38 = vpop.f32.mrf.mxu1  ;;  %v16699_v51 = vpack.c.bf16 %v16697_v53, %v16698_v33  ;;  %v2449_v36 = vld [vmem:[%s16148_s14 + $0x20] sm:$0xff]  ;;  %2504 = vperm.xlu1 %9052, %v2450_v11   ;;  %v16706_v16 = vld [vmem:[#allocation62_spill] sm:$0xff]  ;;  %v16725_v2 = vld [vmem:[#allocation85_spill] sm:$0xff] }
 0x218   : > { %16686 = vst [vmem:[#allocation34_spill] sm:$0xff] %v10909_v56  ;;  %16687 = vst [vmem:[#allocation35_spill] sm:$0xff] %v10911_v14  ;;  %2499 = vperm.xlu0 %9051, %v2449_v36   ;;  %v16708_v11 = vld [vmem:[#allocation66_spill] sm:$0xff]  ;;  %v16713_v57 = vld [vmem:[#allocation75_spill] sm:$0xff] }
 0x219   : > { %v1989_v44 = vpop.f32.mrf.mxu0  ;;  %v2182_v39 = vpop.f32.mrf.mxu1  ;;  %2812 = vmatpush1.bf16.msra.mxu0 %v16696_v59  ;;  %3005 = vmatpush1.bf16.msra.mxu1 %v16699_v51  ;;  %v1537_v36 = vmax.f32 %v16713_v57, 0.0  ;;  %v16718_v24 = vld [vmem:[#allocation78_spill] sm:$0xff]  ;;  %v16721_v43 = vld [vmem:[#allocation83_spill] sm:$0xff]  ;;  %v16726_v61 = vld [vmem:[#allocation68_spill] sm:$0xff] }
 0x21a   : > { %v10953_v6 = vadd.f32 %v1989_v44, %v1515_v58  ;;  %v10955_v31 = vadd.f32 %v2182_v39, %v1517_v37  ;;  %v2448_v44 = vld [vmem:[%s16148_s14 + $0x18] sm:$0xff]  ;;  %v2445_v58 = vld [vmem:[%s16148_s14] sm:$0xff]  ;;  %v1539_v5 = vmax.f32 %v16718_v24, 0.0  ;;  %v16727_v18 = vld [vmem:[#allocation69_spill] sm:$0xff] }
 0x21b   : > { %v10939_v41 = vpop.f32.mrf.mxu0  ;;  %v10941_v4 = vpop.f32.mrf.mxu1  ;;  %2494 = vperm.xlu1 %9052, %v2448_v44  }
 0x21c   : > { %16704 = vst [vmem:[#allocation38_spill] sm:$0xff] %v10955_v31  ;;  %2489 = vperm.xlu0 %9051, %v2447_v17  }
 0x21d   : > { %v1993_v47 = vpop.f32.mrf.mxu0  ;;  %v2186_v60 = vpop.f32.mrf.mxu1 }
 0x21e   : > { %v10957_v55 = vadd.f32 %v1993_v47, %v1519_v20  ;;  %v10959_v59 = vadd.f32 %v2186_v60, %v1521_v26  ;;  %v1523_v20 = vmax.f32 %v16706_v16, 0.0  ;;  %v1525_v26 = vmax.f32 %v16707_v8, 0.0  ;;  %v16709_v60 = vld [vmem:[#allocation67_spill] sm:$0xff] }
 0x21f   : > { %v10961_v53 = vpop.f32.mrf.mxu0  ;;  %v10963_v33 = vpop.f32.mrf.mxu1  ;;  %v1527_v47 = vmax.f32 %v16708_v11, 0.0  ;;  %v1529_v17 = vmax.f32 %v16709_v60, 0.0  ;;  %2484 = vperm.xlu1 %9052, %v2446_v46  }
 0x220   : > { %16705 = vst [vmem:[#allocation39_spill] sm:$0xff] %v10959_v59  ;;  %2479 = vperm.xlu0 %9051, %v2445_v58  }
 0x221   : > { %v1999_v39 = vpop.f32.mrf.mxu0  ;;  %v2192_v48 = vpop.f32.mrf.mxu1 }
 0x222   : > { %v10986_v42 = vadd.f32 %v1999_v39, %v1523_v20  ;;  %v10988_v1 = vadd.f32 %v2192_v48, %v1525_v26  ;;  %v16710_v48 = vld [vmem:[#allocation70_spill] sm:$0xff] }
 0x223   : > { %v10975_v13 = vpop.f32.mrf.mxu0  ;;  %v10977_v37 = vpop.f32.mrf.mxu1  ;;  %v1531_v26 = vmax.f32 %v16710_v48, 0.0 }
 0x225   : > { %v2003_v40 = vpop.f32.mrf.mxu0  ;;  %v2196_v0 = vpop.f32.mrf.mxu1 }
 0x226   : > { %v10990_v44 = vadd.f32 %v2003_v40, %v1527_v47  ;;  %v10992_v16 = vadd.f32 %v2196_v0, %v1529_v17  ;;  %v16711_v40 = vld [vmem:[#allocation71_spill] sm:$0xff]  ;;  %v16712_v0 = vld [vmem:[#allocation74_spill] sm:$0xff] }
 0x227   : > { %v2005_v8 = vpop.f32.mrf.mxu0  ;;  %v10994_v63 = vpop.f32.mrf.mxu1  ;;  %v1533_v47 = vmax.f32 %v16711_v40, 0.0  ;;  %v1535_v17 = vmax.f32 %v16712_v0, 0.0 }
 0x229   : > { %v2009_v60 = vpop.f32.mrf.mxu0  ;;  %v2202_v15 = vpop.f32.mrf.mxu1 }
 0x22a   : > { %v11004_v32 = vadd.f32 %v2009_v60, %v1531_v26  ;;  %v11006_v58 = vadd.f32 %v2202_v15, %v1533_v47  ;;  %v16715_v60 = vld [vmem:[#allocation73_spill] sm:$0xff]  ;;  %v16716_v15 = vld [vmem:[#allocation76_spill] sm:$0xff] }
 0x22b   : > { %v2011_v39 = vpop.f32.mrf.mxu0  ;;  %v2204_v20 = vpop.f32.mrf.mxu1  ;;  %v1534_v26 = vmax.f32 %v16715_v60, 0.0  ;;  %v1536_v47 = vmax.f32 %v16716_v15, 0.0  ;;  %v1544_v60 = vmax.f32 %v16724_v9, 0.0  ;;  %v1546_v15 = vmax.f32 %v16725_v2, 0.0 }
 0x22c   : > { %v1528_v9 = vmax.f32 %v16726_v61, 0.0  ;;  %v1530_v2 = vmax.f32 %v16727_v18, 0.0  ;;  %v2334_v31 = vadd.f32 %v2011_v39, %v1532_v3  ;;  %v16731_v18 = vld [vmem:[#allocation61_spill] sm:$0xff]  ;;  %v16734_v39 = vld [vmem:[#allocation52_spill] sm:$0xff] }
 0x22d   : > { %v2013_v51 = vpop.f32.mrf.mxu0  ;;  %v2206_v46 = vpop.f32.mrf.mxu1  ;;  %v2336_v59 = vadd.f32 %v2204_v20, %v1534_v26  ;;  %v1522_v3 = vmax.f32 %v16731_v18, 0.0  ;;  %v1512_v20 = vmax.f32 %v16734_v39, 0.0  ;;  %v16735_v26 = vld [vmem:[#allocation53_spill] sm:$0xff] }
 0x22e   : > { %v11008_v25 = vadd.f32 %v2013_v51, %v1535_v17  ;;  %v11010_v11 = vadd.f32 %v2206_v46, %v1537_v36  ;;  %v16717_v51 = vld [vmem:[#allocation77_spill] sm:$0xff] }
 0x22f   : > { %v2015_v28 = vpop.f32.mrf.mxu0  ;;  %v2208_v21 = vpop.f32.mrf.mxu1  ;;  %v1538_v17 = vmax.f32 %v16717_v51, 0.0  ;;  %v2471_v18 = vld [vmem:[%s16148_s14 + $0xd0] sm:$0xff] }
 0x230   : > { %v2437_v48 = vpack.c.bf16 %v11008_v25, %v11004_v32  ;;  %v2439_v40 = vpack.c.bf16 %v11010_v11, %v11006_v58  ;;  %v16720_v32 = vld [vmem:[#allocation82_spill] sm:$0xff]  ;;  %v1545_v58 = vmax.f32 %v16721_v43, 0.0  ;;  %v16722_v11 = vld [vmem:[#allocation80_spill] sm:$0xff]  ;;  %v2338_v14 = vadd.f32 %v2015_v28, %v1536_v47 }
 0x231   : > { %v2019_v0 = vpop.f32.mrf.mxu0  ;;  %v2212_v57 = vpop.f32.mrf.mxu1  ;;  %v1543_v25 = vmax.f32 %v16720_v32, 0.0  ;;  %v1540_v10 = vmax.f32 %v16722_v11, 0.0  ;;  %v2340_v54 = vadd.f32 %v2208_v21, %v1538_v17  ;;  %v2330_v28 = vadd.f32 %v2005_v8, %v1528_v9  ;;  %v16729_v21 = vld [vmem:[#allocation65_spill] sm:$0xff]  ;;  %v16745_v9 = vld [vmem:[#allocation39_spill] sm:$0xff] }
 0x232   : > { %v2341_v12 = vadd.f32 %v2019_v0, %v1539_v5  ;;  %v2343_v29 = vadd.f32 %v2212_v57, %v1541_v23  ;;  %v2332_v57 = vadd.f32 %v10994_v63, %v1530_v2  ;;  %v2438_v47 = vpack.c.bf16 %v2338_v14, %v2334_v31  ;;  %v16733_v8 = vld [vmem:[#allocation57_spill] sm:$0xff]  ;;  %v16746_v2 = vld [vmem:[#allocation38_spill] sm:$0xff] }
 0x233   : > { %v2021_v36 = vpop.f32.mrf.mxu0  ;;  %v2214_v46 = vpop.f32.mrf.mxu1  ;;  %v1518_v63 = vmax.f32 %v16733_v8, 0.0  ;;  %v2324_v31 = vadd.f32 %v10963_v33, %v1522_v3  ;;  %v2314_v33 = vadd.f32 %v10919_v52, %v1512_v20  ;;  %v16740_v52 = vld [vmem:[#allocation44_spill] sm:$0xff]  ;;  %v16754_v3 = vld [vmem:[#allocation34_spill] sm:$0xff] }
 0x234   : > { %v2342_v22 = vadd.f32 %v2021_v36, %v1540_v10  ;;  %v2344_v32 = vadd.f32 %v2214_v46, %v1542_v7  ;;  %v1526_v10 = vmax.f32 %v16729_v21, 0.0  ;;  %v16736_v36 = vld [vmem:[#allocation48_spill] sm:$0xff]  ;;  %v2475_v7 = vld [vmem:[%s16148_s14 + $0xf0] sm:$0xff]  ;;  %v16751_v21 = vld [vmem:[#allocation10_spill] sm:$0xff] }
 0x235   : > { %v2023_v62 = vpop.f32.mrf.mxu0  ;;  %v2216_v51 = vpop.f32.mrf.mxu1  ;;  %v2320_v17 = vadd.f32 %v10941_v4, %v1518_v63  ;;  %v1508_v46 = vmax.f32 %v16736_v36, 0.0  ;;  %v16738_v4 = vpack.c.bf16 %v10990_v44, %v10986_v42  ;;  %2629 = vperm.xlu0 %9051, %v2475_v7   ;;  %v16760_v63 = vld [vmem:[#allocation28_spill] sm:$0xff] }
 0x236   : > { %v2345_v49 = vadd.f32 %v2023_v62, %v1543_v25  ;;  %v2347_v24 = vadd.f32 %v2216_v51, %v1545_v58  ;;  %v16728_v62 = vld [vmem:[#allocation64_spill] sm:$0xff]  ;;  %v16737_v25 = vld [vmem:[#allocation49_spill] sm:$0xff] }
 0x237   : > { %v2025_v56 = vpop.f32.mrf.mxu0  ;;  %v2218_v43 = vpop.f32.mrf.mxu1  ;;  %v1524_v0 = vmax.f32 %v16728_v62, 0.0  ;;  %v16763_v20 = vld [vmem:[#allocation20_spill] sm:$0xff] }
 0x238   : > { %v2441_v50 = vpack.c.bf16 %v2345_v49, %v2341_v12  ;;  %v2443_v11 = vpack.c.bf16 %v2347_v24, %v2343_v29  ;;  %v2346_v45 = vadd.f32 %v2025_v56, %v1544_v60  ;;  %v2348_v34 = vadd.f32 %v2218_v43, %v1546_v15  ;;  %v16730_v29 = vld [vmem:[#allocation60_spill] sm:$0xff]  ;;  %v16741_v15 = vld [vmem:[#allocation45_spill] sm:$0xff] }
 0x239   : > { %v2440_v12 = vpack.c.bf16 %v2340_v54, %v2336_v59  ;;  %v1520_v61 = vmax.f32 %v16730_v29, 0.0  ;;  %v16732_v49 = vld [vmem:[#allocation56_spill] sm:$0xff]  ;;  %v16739_v60 = vpack.c.bf16 %v10992_v16, %v10988_v1  ;;  %v1506_v51 = vmax.f32 %v16741_v15, 0.0  ;;  %v2467_v15 = vld [vmem:[%s16148_s14 + $0xb0] sm:$0xff] }
 0x23a   : > { %v2442_v5 = vpack.c.bf16 %v2346_v45, %v2342_v22  ;;  %v2444_v23 = vpack.c.bf16 %v2348_v34, %v2344_v32  ;;  %v2326_v45 = vadd.f32 %v10975_v13, %v1524_v0  ;;  %v2328_v22 = vadd.f32 %v10977_v37, %v1526_v10  ;;  %v16742_v32 = vld [vmem:[#allocation40_spill] sm:$0xff]  ;;  %v16749_v0 = vld [vmem:[#allocation37_spill] sm:$0xff] }
 0x23b   : > { %v1516_v56 = vmax.f32 %v16732_v49, 0.0  ;;  %v2322_v14 = vadd.f32 %v10961_v53, %v1520_v61  ;;  %v1514_v13 = vmax.f32 %v16735_v26, 0.0  ;;  %v1510_v53 = vmax.f32 %v16737_v25, 0.0  ;;  %v2474_v61 = vld [vmem:[%s16148_s14 + $0xe8] sm:$0xff]  ;;  %v16757_v49 = vld [vmem:[#allocation35_spill] sm:$0xff] }
 0x23c   : > { %2813 = vmatprep.subr.bf16.mxu0 %v2442_v5  ;;  %3006 = vmatprep.subr.bf16.mxu1 %v2444_v23  ;;  %v2436_v59 = vpack.c.bf16 %v2332_v57, %v2328_v22  ;;  %v2310_v24 = vadd.f32 %v10886_v30, %v1508_v46  ;;  %v1500_v43 = vmax.f32 %v16742_v32, 0.0  ;;  %v2308_v1 = vadd.f32 %v10861_v35, %v1506_v51  ;;  %v2473_v30 = vld [vmem:[%s16148_s14 + $0xe0] sm:$0xff]  ;;  %v16748_v23 = vld [vmem:[#allocation36_spill] sm:$0xff]  ;;  %v16752_v57 = vld [vmem:[#allocation26_spill] sm:$0xff] }
 0x23d   : > { %2814 = vmatpush2.bf16.msra.mxu0 %v2441_v50  ;;  %3007 = vmatpush2.bf16.msra.mxu1 %v2443_v11  ;;  %v2434_v50 = vpack.c.bf16 %v2330_v28, %v2326_v45  ;;  %v2318_v37 = vadd.f32 %v10939_v41, %v1516_v56  ;;  %v2316_v58 = vadd.f32 %v10921_v38, %v1514_v13  ;;  %v2476_v41 = vld [vmem:[%s16148_s14 + $0xf8] sm:$0xff]  ;;  %v1504_v38 = vmax.f32 %v16740_v52, 0.0  ;;  %v16743_v11 = vld [vmem:[#allocation41_spill] sm:$0xff]  ;;  %v16750_v28 = vld [vmem:[#allocation11_spill] sm:$0xff] }
 0x23e   : > { %2815 = vmatprep.subr.bf16.mxu0 %v2438_v47  ;;  %3008 = vmatprep.subr.bf16.mxu1 %v2440_v12  ;;  %v2312_v54 = vadd.f32 %v10888_v19, %v1510_v53  ;;  %v1502_v34 = vmax.f32 %v16743_v11, 0.0  ;;  %v2426_v44 = vpack.c.bf16 %v2314_v33, %v2310_v24  ;;  %v16744_v19 = vpack.c.bf16 %v10957_v55, %v10953_v6  ;;  %v16753_v12 = vld [vmem:[#allocation27_spill] sm:$0xff]  ;;  %v16755_v45 = vld [vmem:[#allocation32_spill] sm:$0xff]  ;;  %v16758_v56 = vld [vmem:[#allocation33_spill] sm:$0xff] }
 0x23f   : > { %2634 = vperm.xlu1 %9052, %v2476_v41   ;;  %v2306_v42 = vadd.f32 %v10859_v27, %v1504_v38  ;;  %v16747_v5 = vpack.c.bf16 %v16745_v9, %v16746_v2  ;;  %v1496_v62 = vmax.f32 %v16748_v23, 0.0  ;;  %v1498_v27 = vmax.f32 %v16749_v0, 0.0  ;;  %2619 = vperm.xlu0 %9051, %v2473_v30   ;;  %v16764_v13 = vld [vmem:[#allocation23_spill] sm:$0xff]  ;;  %v2472_v46 = vld [vmem:[%s16148_s14 + $0xd8] sm:$0xff]  ;;  %v16767_v33 = vld [vmem:[#allocation8_spill] sm:$0xff] }
 0x240   : > { %v2428_v16 = vpack.c.bf16 %v2316_v58, %v2312_v54  ;;  %v2302_v35 = vadd.f32 %v16750_v28, %v1500_v43  ;;  %v2304_v10 = vadd.f32 %v16751_v21, %v1502_v34  ;;  %v16756_v22 = vpack.c.bf16 %v16754_v3, %v16755_v45  ;;  %v2469_v25 = vld [vmem:[%s16148_s14 + $0xc0] sm:$0xff]  ;;  %v16766_v53 = vld [vmem:[#allocation30_spill] sm:$0xff]  ;;  %v2470_v38 = vld [vmem:[%s16148_s14 + $0xc8] sm:$0xff] }
 0x241   : > { %2816 = vmatpush2.bf16.msra.mxu0 %v2437_v48  ;;  %3009 = vmatpush2.bf16.msra.mxu1 %v2439_v40  ;;  %v2430_v48 = vpack.c.bf16 %v2322_v14, %v2318_v37  ;;  %v2432_v40 = vpack.c.bf16 %v2324_v31, %v2320_v17  ;;  %v2298_v47 = vadd.f32 %v16752_v57, %v1496_v62  ;;  %v1488_v14 = vmax.f32 %v16760_v63, 0.0  ;;  %v16761_v31 = vld [vmem:[#allocation29_spill] sm:$0xff]  ;;  %v16765_v17 = vld [vmem:[#allocation24_spill] sm:$0xff]  ;;  %v16772_v41 = vld [vmem:[#allocation15_spill] sm:$0xff] }
 0x242   : > { %2817 = vmatprep.subr.bf16.mxu0 %v2434_v50  ;;  %3010 = vmatprep.subr.bf16.mxu1 %v2436_v59  ;;  %v2300_v6 = vadd.f32 %v16753_v12, %v1498_v27  ;;  %v2422_v55 = vpack.c.bf16 %v2306_v42, %v2302_v35  ;;  %v2424_v29 = vpack.c.bf16 %v2308_v1, %v2304_v10  ;;  %v1490_v50 = vmax.f32 %v16761_v31, 0.0  ;;  %v16762_v59 = vld [vmem:[#allocation19_spill] sm:$0xff]  ;;  %v16774_v51 = vld [vmem:[#allocation25_spill] sm:$0xff]  ;;  %v16777_v32 = vld [vmem:[#allocation12_spill] sm:$0xff] }
 0x243   : > { %v16759_v8 = vpack.c.bf16 %v16757_v49, %v16758_v56  ;;  %2624 = vperm.xlu1 %9052, %v2474_v61   ;;  %2609 = vperm.xlu0 %9051, %v2471_v18   ;;  %v2290_v39 = vadd.f32 %v16762_v59, %v1488_v14  ;;  %v2418_v37 = vpack.c.bf16 %v2298_v47, %v16764_v13  ;;  %v16775_v24 = vld [vmem:[#allocation21_spill] sm:$0xff]  ;;  %v16778_v43 = vld [vmem:[#allocation22_spill] sm:$0xff]  ;;  %v9186_v34 = vld [vmem:[%s16577_s3] ss:$8 sps:$4 sm:$0xff]  }
 0x244   : > { %v2292_v26 = vadd.f32 %v16763_v20, %v1490_v50  ;;  %v2420_v36 = vpack.c.bf16 %v2300_v6, %v16765_v17  ;;  %v16768_v58 = vpack.c.bf16 %v16766_v53, %v16767_v33  ;;  %v16776_v54 = vpack.c.bf16 %v16774_v51, %v16775_v24  ;;  %v2468_v42 = vld [vmem:[%s16148_s14 + $0xb8] sm:$0xff]  ;;  %v2465_v1 = vld [vmem:[%s16148_s14 + $0xa0] sm:$0xff]  ;;  %v2466_v0 = vld [vmem:[%s16148_s14 + $0xa8] sm:$0xff] }
 0x245   : > { %2818 = vmatpush2.bf16.msra.mxu0 %v16738_v4  ;;  %3011 = vmatpush2.bf16.msra.mxu1 %v16739_v60  ;;  %v2414_v4 = vpack.c.bf16 %v2290_v39, %v16772_v41  ;;  %v16773_v60 = vld [vmem:[#allocation16_spill] sm:$0xff]  ;;  %v16779_v11 = vpack.c.bf16 %v16777_v32, %v16778_v43  ;;  %v16784_v9 = vld [vmem:[#allocation14_spill] sm:$0xff]  ;;  %v9444_v23 = vld [vmem:[%s10060_s22 + $0xe4] ss:$16 sps:$4 sm:$0xff]  }
 0x246   : > { %2819 = vmatprep.subr.bf16.mxu0 %v2430_v48  ;;  %3012 = vmatprep.subr.bf16.mxu1 %v2432_v40  ;;  %v16769_v48 = vld [vmem:[#allocation31_spill] sm:$0xff]  ;;  %v16770_v40 = vld [vmem:[#allocation9_spill] sm:$0xff]  ;;  %v2416_v52 = vpack.c.bf16 %v2292_v26, %v16773_v60  ;;  %v9445_v62 = vld [vmem:[%s10060_s22 + $0xec] ss:$16 sps:$4 sm:$0xff]  }
 0x247   : > { %v16771_v7 = vpack.c.bf16 %v16769_v48, %v16770_v40  ;;  %2614 = vperm.xlu1 %9052, %v2472_v46   ;;  %2599 = vperm.xlu0 %9051, %v2469_v25   ;;  %v2463_v27 = vld [vmem:[%s16148_s14 + $0x90] sm:$0xff]  ;;  %v9447_v35 = vld [vmem:[%s10060_s22 + $0xe8] ss:$16 sps:$4 sm:$0xff]   ;;  %v9449_v10 = vld [vmem:[%s10060_s22 + $0xcc] ss:$16 sps:$4 sm:$0xff]  }
 0x248   : > { %v9446_v28 = vld [vmem:[%s10060_s22 + $0xe0] ss:$16 sps:$4 sm:$0xff]   ;;  %v9448_v21 = vld [vmem:[%s10060_s22 + $0xc4] ss:$16 sps:$4 sm:$0xff]   ;;  %v9451_v6 = vld [vmem:[%s10060_s22 + $0xc8] ss:$16 sps:$4 sm:$0xff]  }
 0x249   : > { %2820 = vmatpush2.bf16.msra.mxu0 %v16744_v19  ;;  %3013 = vmatpush2.bf16.msra.mxu1 %v16747_v5  ;;  %v16783_v19 = vld [vmem:[#allocation18_spill] sm:$0xff]  ;;  %v9194_v47 = vld [vmem:[%s16577_s3 + $0x24] ss:$8 sps:$4 sm:$0xff]   ;;  %v9450_v12 = vld [vmem:[%s10060_s22 + $0xc0] ss:$16 sps:$4 sm:$0xff]  }
 0x24a   : > { %2821 = vmatprep.subr.bf16.mxu0 %v2426_v44  ;;  %3014 = vmatprep.subr.bf16.mxu1 %v2428_v16  ;;  %v16780_v44 = vld [vmem:[#allocation17_spill] sm:$0xff]  ;;  %v16785_v2 = vpack.c.bf16 %v16783_v19, %v16784_v9  ;;  %v2464_v61 = vld [vmem:[%s16148_s14 + $0x98] sm:$0xff]  ;;  %v2461_v18 = vld [vmem:[%s16148_s14 + $0x80] sm:$0xff] }
 0x24b   : > { %2604 = vperm.xlu1 %9052, %v2470_v38   ;;  %2589 = vperm.xlu0 %9051, %v2467_v15   ;;  %v16781_v16 = vld [vmem:[#allocation13_spill] sm:$0xff]  ;;  %v9455_v45 = vld [vmem:[%s10060_s22 + $0xa8] ss:$16 sps:$4 sm:$0xff]   ;;  %v9457_v49 = vld [vmem:[%s10060_s22 + $0x8c] ss:$16 sps:$4 sm:$0xff]  }
 0x24c   : > { %v16782_v30 = vpack.c.bf16 %v16780_v44, %v16781_v16  ;;  %v9191_v5 = vld [vmem:[%s16577_s3 + $0x14] ss:$8 sps:$4 sm:$0xff]   ;;  %v9189_v57 = vld [vmem:[%s16577_s3 + $0x10] ss:$8 sps:$4 sm:$0xff]   ;;  %v9192_v56 = vld [vmem:[%s16577_s3 + $0x20] ss:$8 sps:$4 sm:$0xff]  }
 0x24d   : > { %2822 = vmatpush2.bf16.msra.mxu0 %v16756_v22  ;;  %3015 = vmatpush2.bf16.msra.mxu1 %v16759_v8  ;;  %v9454_v3 = vld [vmem:[%s10060_s22 + $0xa0] ss:$16 sps:$4 sm:$0xff]   ;;  %v9456_v22 = vld [vmem:[%s10060_s22 + $0x84] ss:$16 sps:$4 sm:$0xff]   ;;  %v9459_v14 = vld [vmem:[%s10060_s22 + $0x88] ss:$16 sps:$4 sm:$0xff]  }
 0x24e   : > { %2823 = vmatprep.subr.bf16.mxu0 %v2422_v55  ;;  %3016 = vmatprep.subr.bf16.mxu1 %v2424_v29  ;;  %v9452_v55 = vld [vmem:[%s10060_s22 + $0xa4] ss:$16 sps:$4 sm:$0xff]   ;;  %v9453_v29 = vld [vmem:[%s10060_s22 + $0xac] ss:$16 sps:$4 sm:$0xff]   ;;  %v9458_v63 = vld [vmem:[%s10060_s22 + $0x80] ss:$16 sps:$4 sm:$0xff]  }
 0x24f   : > { %2594 = vperm.xlu1 %9052, %v2468_v42   ;;  %2579 = vperm.xlu0 %9051, %v2465_v1   ;;  %v9197_v8 = vld [vmem:[%s16577_s3 + $0x34] ss:$8 sps:$4 sm:$0xff]   ;;  %v2462_v59 = vld [vmem:[%s16148_s14 + $0x88] sm:$0xff]  ;;  %v9462_v39 = vld [vmem:[%s10060_s22 + $0x60] ss:$16 sps:$4 sm:$0xff]  }
 0x250   : > { %v9460_v31 = vld [vmem:[%s10060_s22 + $0x64] ss:$16 sps:$4 sm:$0xff]   ;;  %v9461_v50 = vld [vmem:[%s10060_s22 + $0x6c] ss:$16 sps:$4 sm:$0xff]   ;;  %v9463_v20 = vld [vmem:[%s10060_s22 + $0x68] ss:$16 sps:$4 sm:$0xff]  }
 0x251   : > { %2824 = vmatpush2.bf16.msra.mxu0 %v16768_v58  ;;  %3017 = vmatpush2.bf16.msra.mxu1 %v16771_v7  ;;  %v9464_v26 = vld [vmem:[%s10060_s22 + $0x44] ss:$16 sps:$4 sm:$0xff]   ;;  %v9465_v13 = vld [vmem:[%s10060_s22 + $0x4c] ss:$16 sps:$4 sm:$0xff]   ;;  %v9467_v46 = vld [vmem:[%s10060_s22 + $0x48] ss:$16 sps:$4 sm:$0xff]  }
 0x252   : > { %2825 = vmatprep.subr.bf16.mxu0 %v2418_v37  ;;  %3018 = vmatprep.subr.bf16.mxu1 %v2420_v36  ;;  %v9195_v37 = vld [vmem:[%s16577_s3 + $0x30] ss:$8 sps:$4 sm:$0xff]   ;;  %v9200_v17 = vld [vmem:[%s16577_s3 + $0x44] ss:$8 sps:$4 sm:$0xff]   ;;  %v9198_v7 = vld [vmem:[%s16577_s3 + $0x40] ss:$8 sps:$4 sm:$0xff]  }
 0x253   : > { %2584 = vperm.xlu1 %9052, %v2466_v0   ;;  %2569 = vperm.xlu0 %9051, %v2463_v27   ;;  %v9466_v36 = vld [vmem:[%s10060_s22 + $0x40] ss:$16 sps:$4 sm:$0xff]   ;;  %v9468_v25 = vld [vmem:[%s10060_s22 + $0x24] ss:$16 sps:$4 sm:$0xff]   ;;  %v9469_v53 = vld [vmem:[%s10060_s22 + $0x2c] ss:$16 sps:$4 sm:$0xff]  }
 0x254   : > { %v9470_v33 = vld [vmem:[%s10060_s22 + $0x20] ss:$16 sps:$4 sm:$0xff]   ;;  %v9471_v58 = vld [vmem:[%s10060_s22 + $0x28] ss:$16 sps:$4 sm:$0xff]   ;;  %v9472_v48 = vld [vmem:[%s10060_s22 + $0x4] ss:$16 sps:$4 sm:$0xff]  }
 0x255   : > { %2826 = vmatpush2.bf16.msra.mxu0 %v16776_v54  ;;  %3019 = vmatpush2.bf16.msra.mxu1 %v16779_v11  ;;  %v9473_v40 = vld [vmem:[%s10060_s22 + $0xc] ss:$16 sps:$4 sm:$0xff]   ;;  %v9475_v60 = vld [vmem:[%s10060_s22 + $0x8] ss:$16 sps:$4 sm:$0xff]   ;;  %v16786_v0 = vmov 0   ;;  %v9234_v27 = vld [vmem:[%s16143_s9] sm:$0xff]  }
 0x256   : > { %2827 = vmatprep.subr.bf16.mxu0 %v2414_v4  ;;  %3020 = vmatprep.subr.bf16.mxu1 %v2416_v52  ;;  %v9203_v41 = vld [vmem:[%s16577_s3 + $0x54] ss:$8 sps:$4 sm:$0xff]   ;;  %v9474_v4 = vld [vmem:[%s10060_s22] ss:$16 sps:$4 sm:$0xff]   ;;  %v9206_v38 = vld [vmem:[%s16577_s3 + $0x64] ss:$8 sps:$4 sm:$0xff]  }
 0x257   : > { %2574 = vperm.xlu1 %9052, %v2464_v61   ;;  %2559 = vperm.xlu0 %9051, %v2461_v18   ;;  %v9201_v52 = vld [vmem:[%s16577_s3 + $0x50] ss:$8 sps:$4 sm:$0xff]   ;;  %v9204_v15 = vld [vmem:[%s16577_s3 + $0x60] ss:$8 sps:$4 sm:$0xff]   ;;  %v9209_v51 = vld [vmem:[%s16577_s3 + $0x74] ss:$8 sps:$4 sm:$0xff]  }
 0x258   : > { %v9207_v24 = vld [vmem:[%s16577_s3 + $0x70] ss:$8 sps:$4 sm:$0xff]   ;;  %v9212_v54 = vld [vmem:[%s16577_s3 + $0x84] ss:$8 sps:$4 sm:$0xff]   ;;  %v9210_v32 = vld [vmem:[%s16577_s3 + $0x80] ss:$8 sps:$4 sm:$0xff]  }
 0x259   : > { %2828 = vmatpush2.bf16.msra.mxu0 %v16782_v30  ;;  %3021 = vmatpush2.bf16.msra.mxu1 %v16785_v2  ;;  %v9215_v43 = vld [vmem:[%s16577_s3 + $0x94] ss:$8 sps:$4 sm:$0xff]   ;;  %v9213_v11 = vld [vmem:[%s16577_s3 + $0x90] ss:$8 sps:$4 sm:$0xff]   ;;  %v9216_v42 = vld [vmem:[%s16577_s3 + $0xa0] ss:$8 sps:$4 sm:$0xff]  }
 0x25a   : > { %3439 = vmatprep.subr.bf16.mxu0 %v9444_v23  ;;  %3632 = vmatprep.subr.bf16.mxu1 %v9445_v62  ;;  %v9221_v1 = vld [vmem:[%s16577_s3 + $0xb4] ss:$8 sps:$4 sm:$0xff]   ;;  %v9219_v44 = vld [vmem:[%s16577_s3 + $0xb0] ss:$8 sps:$4 sm:$0xff]   ;;  %v9224_v16 = vld [vmem:[%s16577_s3 + $0xc4] ss:$8 sps:$4 sm:$0xff]  }
 0x25b   : > { %2564 = vperm.xlu1 %9052, %v2462_v59   ;;  %v9222_v30 = vld [vmem:[%s16577_s3 + $0xc0] ss:$8 sps:$4 sm:$0xff]   ;;  %v9227_v19 = vld [vmem:[%s16577_s3 + $0xd4] ss:$8 sps:$4 sm:$0xff]   ;;  %v9225_v9 = vld [vmem:[%s16577_s3 + $0xd0] ss:$8 sps:$4 sm:$0xff]  }
 0x25c   : > { %2830 = vmatmul.mubr.bf16.vlgmr.msra.gmra.mxu0 %v9186_v34  ;;  %3023 = vmatmul.mubr.bf16.vlgmr.msra.gmra.mxu1 %v9186_v34  ;;  %v9218_v34 = vld [vmem:[%s16577_s3 + $0xa4] ss:$8 sps:$4 sm:$0xff]   ;;  %v9233_v23 = vld [vmem:[%s16577_s3 + $0xf4] ss:$8 sps:$4 sm:$0xff]   ;;  %v9231_v62 = vld [vmem:[%s16577_s3 + $0xf0] ss:$8 sps:$4 sm:$0xff]  }
 0x25d   : > { %2839 = vmatprep.mubr.bf16.mxu0 %v9191_v5  ;;  %3032 = vmatprep.mubr.bf16.mxu1 %v9191_v5  ;;  %v9230_v2 = vld [vmem:[%s16577_s3 + $0xe4] ss:$8 sps:$4 sm:$0xff]   ;;  %v9228_v5 = vld [vmem:[%s16577_s3 + $0xe0] ss:$8 sps:$4 sm:$0xff]   ;;  %s9735_s3 = smov [#allocation4]  }
 0x25e   : > { %3440 = vmatpush1.bf16.msra.mxu0 %v9446_v28  ;;  %3633 = vmatpush1.bf16.msra.mxu1 %v9447_v35  ;;  %v9235_v28 = vld [vmem:[%s16143_s9 + $0x8] sm:$0xff]   ;;  %v9236_v35 = vld [vmem:[%s16143_s9 + $0x10] sm:$0xff]  }
 0x25f   : > { %3441 = vmatprep.subr.bf16.mxu0 %v9448_v21  ;;  %3634 = vmatprep.subr.bf16.mxu1 %v9449_v10  ;;  %v9237_v21 = vld [vmem:[%s16143_s9 + $0x18] sm:$0xff]   ;;  %v9238_v10 = vld [vmem:[%s16143_s9 + $0x20] sm:$0xff]  }
 0x262   : > { %3442 = vmatpush1.bf16.msra.mxu0 %v9450_v12  ;;  %3635 = vmatpush1.bf16.msra.mxu1 %v9451_v6  ;;  %v9241_v12 = vld [vmem:[%s16143_s9 + $0x38] sm:$0xff]   ;;  %v9242_v6 = vld [vmem:[%s16143_s9 + $0x40] sm:$0xff]  }
 0x263   : > { %3443 = vmatprep.subr.bf16.mxu0 %v9452_v55  ;;  %3636 = vmatprep.subr.bf16.mxu1 %v9453_v29 }
 0x264   : > { %2840 = vmatmul.mubr.bf16.gmra.mxu0 %v9189_v57  ;;  %3033 = vmatmul.mubr.bf16.gmra.mxu1 %v9189_v57  ;;  %v9239_v57 = vld [vmem:[%s16143_s9 + $0x28] sm:$0xff]  }
 0x265   : > { %2849 = vmatprep.mubr.bf16.mxu0 %v9194_v47  ;;  %3042 = vmatprep.mubr.bf16.mxu1 %v9194_v47  ;;  %v9240_v47 = vld [vmem:[%s16143_s9 + $0x30] sm:$0xff]  }
 0x266   : > { %3444 = vmatpush1.bf16.msra.mxu0 %v9454_v3  ;;  %3637 = vmatpush1.bf16.msra.mxu1 %v9455_v45 }
 0x267   : > { %3445 = vmatprep.subr.bf16.mxu0 %v9456_v22  ;;  %3638 = vmatprep.subr.bf16.mxu1 %v9457_v49  ;;  %v9243_v22 = vld [vmem:[%s16143_s9 + $0x48] sm:$0xff]  }
 0x26a   : > { %3446 = vmatpush1.bf16.msra.mxu0 %v9458_v63  ;;  %3639 = vmatpush1.bf16.msra.mxu1 %v9459_v14 }
 0x26b   : > { %3447 = vmatprep.subr.bf16.mxu0 %v9460_v31  ;;  %3640 = vmatprep.subr.bf16.mxu1 %v9461_v50 }
 0x26c   : > { %2850 = vmatmul.mubr.bf16.gmra.mxu0 %v9192_v56  ;;  %3043 = vmatmul.mubr.bf16.gmra.mxu1 %v9192_v56 }
 0x26d   : > { %2859 = vmatprep.mubr.bf16.mxu0 %v9197_v8  ;;  %3052 = vmatprep.mubr.bf16.mxu1 %v9197_v8 }
 0x26e   : > { %3448 = vmatpush1.bf16.msra.mxu0 %v9462_v39  ;;  %3641 = vmatpush1.bf16.msra.mxu1 %v9463_v20  ;;  %v9244_v39 = vld [vmem:[%s16143_s9 + $0x50] sm:$0xff]  }
 0x26f   : > { %3449 = vmatprep.subr.bf16.mxu0 %v9464_v26  ;;  %3642 = vmatprep.subr.bf16.mxu1 %v9465_v13 }
 0x272   : > { %3450 = vmatpush1.bf16.msra.mxu0 %v9466_v36  ;;  %3643 = vmatpush1.bf16.msra.mxu1 %v9467_v46 }
 0x273   : > { %3451 = vmatprep.subr.bf16.mxu0 %v9468_v25  ;;  %3644 = vmatprep.subr.bf16.mxu1 %v9469_v53  ;;  %v9245_v53 = vld [vmem:[%s16143_s9 + $0x58] sm:$0xff]  }
 0x274   : > { %2860 = vmatmul.mubr.bf16.gmra.mxu0 %v9195_v37  ;;  %3053 = vmatmul.mubr.bf16.gmra.mxu1 %v9195_v37 }
 0x275   : > { %2869 = vmatprep.mubr.bf16.mxu0 %v9200_v17  ;;  %3062 = vmatprep.mubr.bf16.mxu1 %v9200_v17 }
 0x276   : > { %3452 = vmatpush1.bf16.msra.mxu0 %v9470_v33  ;;  %3645 = vmatpush1.bf16.msra.mxu1 %v9471_v58 }
 0x277   : > { %3453 = vmatprep.subr.bf16.mxu0 %v9472_v48  ;;  %3646 = vmatprep.subr.bf16.mxu1 %v9473_v40 }
 0x27a   : > { %3454 = vmatpush1.bf16.msra.mxu0 %v9474_v4  ;;  %3647 = vmatpush1.bf16.msra.mxu1 %v9475_v60 }
 0x27c   : > { %2870 = vmatmul.mubr.bf16.gmra.mxu0 %v9198_v7  ;;  %3063 = vmatmul.mubr.bf16.gmra.mxu1 %v9198_v7 }
 0x27d   : > { %2879 = vmatprep.mubr.bf16.mxu0 %v9203_v41  ;;  %3072 = vmatprep.mubr.bf16.mxu1 %v9203_v41 }
 0x284   : > { %2880 = vmatmul.mubr.bf16.gmra.mxu0 %v9201_v52  ;;  %3073 = vmatmul.mubr.bf16.gmra.mxu1 %v9201_v52  ;;  %v9246_v52 = vld [vmem:[%s16143_s9 + $0x60] sm:$0xff]  }
 0x285   : > { %2889 = vmatprep.mubr.bf16.mxu0 %v9206_v38  ;;  %3082 = vmatprep.mubr.bf16.mxu1 %v9206_v38 }
 0x28c   : > { %2890 = vmatmul.mubr.bf16.gmra.mxu0 %v9204_v15  ;;  %3083 = vmatmul.mubr.bf16.gmra.mxu1 %v9204_v15 }
 0x28d   : > { %2899 = vmatprep.mubr.bf16.mxu0 %v9209_v51  ;;  %3092 = vmatprep.mubr.bf16.mxu1 %v9209_v51 }
 0x294   : > { %2900 = vmatmul.mubr.bf16.gmra.mxu0 %v9207_v24  ;;  %3093 = vmatmul.mubr.bf16.gmra.mxu1 %v9207_v24 }
 0x295   : > { %2909 = vmatprep.mubr.bf16.mxu0 %v9212_v54  ;;  %3102 = vmatprep.mubr.bf16.mxu1 %v9212_v54 }
 0x29c   : > { %2910 = vmatmul.mubr.bf16.gmra.mxu0 %v9210_v32  ;;  %3103 = vmatmul.mubr.bf16.gmra.mxu1 %v9210_v32 }
 0x29d   : > { %2919 = vmatprep.mubr.bf16.mxu0 %v9215_v43  ;;  %3112 = vmatprep.mubr.bf16.mxu1 %v9215_v43 }
 0x2a4   : > { %2920 = vmatmul.mubr.bf16.gmra.mxu0 %v9213_v11  ;;  %3113 = vmatmul.mubr.bf16.gmra.mxu1 %v9213_v11 }
 0x2a5   : > { %2929 = vmatprep.mubr.bf16.mxu0 %v9218_v34  ;;  %3122 = vmatprep.mubr.bf16.mxu1 %v9218_v34  ;;  %v9247_v34 = vld [vmem:[%s16143_s9 + $0x68] sm:$0xff]  }
 0x2ac   : > { %2930 = vmatmul.mubr.bf16.gmra.mxu0 %v9216_v42  ;;  %3123 = vmatmul.mubr.bf16.gmra.mxu1 %v9216_v42 }
 0x2ad   : > { %2939 = vmatprep.mubr.bf16.mxu0 %v9221_v1  ;;  %3132 = vmatprep.mubr.bf16.mxu1 %v9221_v1 }
 0x2b4   : > { %2940 = vmatmul.mubr.bf16.gmra.mxu0 %v9219_v44  ;;  %3133 = vmatmul.mubr.bf16.gmra.mxu1 %v9219_v44 }
 0x2b5   : > { %2949 = vmatprep.mubr.bf16.mxu0 %v9224_v16  ;;  %3142 = vmatprep.mubr.bf16.mxu1 %v9224_v16 }
 0x2bc   : > { %2950 = vmatmul.mubr.bf16.gmra.mxu0 %v9222_v30  ;;  %3143 = vmatmul.mubr.bf16.gmra.mxu1 %v9222_v30 }
 0x2bd   : > { %2959 = vmatprep.mubr.bf16.mxu0 %v9227_v19  ;;  %3152 = vmatprep.mubr.bf16.mxu1 %v9227_v19 }
 0x2c4   : > { %2960 = vmatmul.mubr.bf16.gmra.mxu0 %v9225_v9  ;;  %3153 = vmatmul.mubr.bf16.gmra.mxu1 %v9225_v9 }
 0x2c5   : > { %2969 = vmatprep.mubr.bf16.mxu0 %v9230_v2  ;;  %3162 = vmatprep.mubr.bf16.mxu1 %v9230_v2 }
 0x2cc   : > { %2970 = vmatmul.mubr.bf16.gmra.mxu0 %v9228_v5  ;;  %3163 = vmatmul.mubr.bf16.gmra.mxu1 %v9228_v5  ;;  %v9248_v5 = vld [vmem:[%s16143_s9 + $0x70] sm:$0xff]  }
 0x2cd   : > { %2979 = vmatprep.mubr.bf16.mxu0 %v9233_v23  ;;  %3172 = vmatprep.mubr.bf16.mxu1 %v9233_v23 }
 0x2d4   : > { %2980 = vmatmul.mubr.bf16.gmra.mxu0 %v9231_v62  ;;  %3173 = vmatmul.mubr.bf16.gmra.mxu1 %v9231_v62 }
 0x2d5   : > { %3471 = vmatprep.mubr.bf16.mxu0 %v16786_v0  ;;  %3664 = vmatprep.mubr.bf16.mxu1 %v16786_v0 }
 0x2dc   : > { %3472 = vmatmul.mubr.bf16.vlgmr.msra.gmra.mxu0 %v9234_v27  ;;  %3665 = vmatmul.mubr.bf16.vlgmr.msra.gmra.mxu1 %v9234_v27 }
 0x2dd   : > { %3481 = vmatprep.mubr.bf16.mxu0 %v16786_v0  ;;  %3674 = vmatprep.mubr.bf16.mxu1 %v16786_v0 }
 0x2e4   : > { %3482 = vmatmul.mubr.bf16.gmra.mxu0 %v9235_v28  ;;  %3675 = vmatmul.mubr.bf16.gmra.mxu1 %v9235_v28 }
 0x2e5   : > { %3491 = vmatprep.mubr.bf16.mxu0 %v16786_v0  ;;  %3684 = vmatprep.mubr.bf16.mxu1 %v16786_v0 }
 0x2ec   : > { %3492 = vmatmul.mubr.bf16.gmra.mxu0 %v9236_v35  ;;  %3685 = vmatmul.mubr.bf16.gmra.mxu1 %v9236_v35 }
 0x2ed   : > { %3501 = vmatprep.mubr.bf16.mxu0 %v16786_v0  ;;  %3694 = vmatprep.mubr.bf16.mxu1 %v16786_v0 }
 0x2f4   : > { %3502 = vmatmul.mubr.bf16.gmra.mxu0 %v9237_v21  ;;  %3695 = vmatmul.mubr.bf16.gmra.mxu1 %v9237_v21 }
 0x2f5   : > { %3511 = vmatprep.mubr.bf16.mxu0 %v16786_v0  ;;  %3704 = vmatprep.mubr.bf16.mxu1 %v16786_v0 }
 0x2fc   : > { %3512 = vmatmul.mubr.bf16.gmra.mxu0 %v9238_v10  ;;  %3705 = vmatmul.mubr.bf16.gmra.mxu1 %v9238_v10 }
 0x2fd   : > { %3521 = vmatprep.mubr.bf16.mxu0 %v16786_v0  ;;  %3714 = vmatprep.mubr.bf16.mxu1 %v16786_v0 }
 0x304   : > { %3522 = vmatmul.mubr.bf16.gmra.mxu0 %v9239_v57  ;;  %3715 = vmatmul.mubr.bf16.gmra.mxu1 %v9239_v57 }
 0x305   : > { %3531 = vmatprep.mubr.bf16.mxu0 %v16786_v0  ;;  %3724 = vmatprep.mubr.bf16.mxu1 %v16786_v0 }
 0x30c   : > { %3532 = vmatmul.mubr.bf16.gmra.mxu0 %v9240_v47  ;;  %3725 = vmatmul.mubr.bf16.gmra.mxu1 %v9240_v47  ;;  %v9249_v47 = vld [vmem:[%s16143_s9 + $0x78] sm:$0xff]  }
 0x30d   : > { %3541 = vmatprep.mubr.bf16.mxu0 %v16786_v0  ;;  %3734 = vmatprep.mubr.bf16.mxu1 %v16786_v0 }
 0x314   : > { %3542 = vmatmul.mubr.bf16.gmra.mxu0 %v9241_v12  ;;  %3735 = vmatmul.mubr.bf16.gmra.mxu1 %v9241_v12 }
 0x315   : > { %3551 = vmatprep.mubr.bf16.mxu0 %v16786_v0  ;;  %3744 = vmatprep.mubr.bf16.mxu1 %v16786_v0 }
 0x31c   : > { %v11325_v55 = vpop.f32.mrf.mxu0  ;;  %v11327_v29 = vpop.f32.mrf.mxu1  ;;  %3552 = vmatmul.mubr.bf16.gmra.mxu0 %v9242_v6  ;;  %3745 = vmatmul.mubr.bf16.gmra.mxu1 %v9242_v6 }
 0x31d   : > { %3561 = vmatprep.mubr.bf16.mxu0 %v16786_v0  ;;  %3754 = vmatprep.mubr.bf16.mxu1 %v16786_v0 }
 0x31e   : > { %v11331_v61 = vpop.f32.mrf.mxu0  ;;  %v11333_v18 = vpop.f32.mrf.mxu1 }
 0x320   : > { %v11335_v3 = vpop.f32.mrf.mxu0  ;;  %v11337_v45 = vpop.f32.mrf.mxu1 }
 0x322   : > { %v11342_v49 = vpop.f32.mrf.mxu0  ;;  %v11344_v56 = vpop.f32.mrf.mxu1 }
 0x324   : > { %v11346_v8 = vpop.f32.mrf.mxu0  ;;  %v11348_v63 = vpop.f32.mrf.mxu1  ;;  %3562 = vmatmul.mubr.bf16.gmra.mxu0 %v9243_v22  ;;  %3755 = vmatmul.mubr.bf16.gmra.mxu1 %v9243_v22 }
 0x325   : > { %3571 = vmatprep.mubr.bf16.mxu0 %v16786_v0  ;;  %3764 = vmatprep.mubr.bf16.mxu1 %v16786_v0 }
 0x326   : > { %v11352_v14 = vpop.f32.mrf.mxu0  ;;  %v11354_v31 = vpop.f32.mrf.mxu1 }
 0x328   : > { %v11356_v50 = vpop.f32.mrf.mxu0  ;;  %v11358_v59 = vpop.f32.mrf.mxu1 }
 0x32a   : > { %v11363_v20 = vpop.f32.mrf.mxu0  ;;  %v11365_v26 = vpop.f32.mrf.mxu1 }
 0x32c   : > { %v11367_v13 = vpop.f32.mrf.mxu0  ;;  %v11369_v37 = vpop.f32.mrf.mxu1  ;;  %3572 = vmatmul.mubr.bf16.gmra.mxu0 %v9244_v39  ;;  %3765 = vmatmul.mubr.bf16.gmra.mxu1 %v9244_v39 }
 0x32d   : > { %3581 = vmatprep.mubr.bf16.mxu0 %v16786_v0  ;;  %3774 = vmatprep.mubr.bf16.mxu1 %v16786_v0 }
 0x32e   : > { %v11373_v17 = vpop.f32.mrf.mxu0  ;;  %v11375_v36 = vpop.f32.mrf.mxu1 }
 0x330   : > { %v11377_v46 = vpop.f32.mrf.mxu0  ;;  %v11379_v25 = vpop.f32.mrf.mxu1 }
 0x332   : > { %v11384_v33 = vpop.f32.mrf.mxu0  ;;  %v11386_v58 = vpop.f32.mrf.mxu1 }
 0x334   : > { %v11388_v48 = vpop.f32.mrf.mxu0  ;;  %v11390_v40 = vpop.f32.mrf.mxu1  ;;  %3582 = vmatmul.mubr.bf16.gmra.mxu0 %v9245_v53  ;;  %3775 = vmatmul.mubr.bf16.gmra.mxu1 %v9245_v53 }
 0x335   : > { %3591 = vmatprep.mubr.bf16.mxu0 %v16786_v0  ;;  %3784 = vmatprep.mubr.bf16.mxu1 %v16786_v0 }
 0x336   : > { %v11394_v7 = vpop.f32.mrf.mxu0  ;;  %v11396_v41 = vpop.f32.mrf.mxu1 }
 0x338   : > { %v11398_v4 = vpop.f32.mrf.mxu0  ;;  %v11400_v60 = vpop.f32.mrf.mxu1 }
 0x33a   : > { %v11405_v38 = vpop.f32.mrf.mxu0  ;;  %v11407_v15 = vpop.f32.mrf.mxu1 }
 0x33c   : > { %v11409_v51 = vpop.f32.mrf.mxu0  ;;  %v11411_v24 = vpop.f32.mrf.mxu1  ;;  %3592 = vmatmul.mubr.bf16.gmra.mxu0 %v9246_v52  ;;  %3785 = vmatmul.mubr.bf16.gmra.mxu1 %v9246_v52 }
 0x33d   : > { %3601 = vmatprep.mubr.bf16.mxu0 %v16786_v0  ;;  %3794 = vmatprep.mubr.bf16.mxu1 %v16786_v0 }
 0x33e   : > { %v11415_v54 = vpop.f32.mrf.mxu0  ;;  %v11417_v32 = vpop.f32.mrf.mxu1 }
 0x33f   : > { %16787 = vst [vmem:[#allocation118_spill] sm:$0xff] %v11415_v54  ;;  %16788 = vst [vmem:[#allocation120_spill] sm:$0xff] %v11417_v32 }
 0x340   : > { %v11419_v43 = vpop.f32.mrf.mxu0  ;;  %v11421_v11 = vpop.f32.mrf.mxu1 }
 0x342   : > { %v11426_v42 = vpop.f32.mrf.mxu0  ;;  %v11428_v1 = vpop.f32.mrf.mxu1 }
 0x343   : > { %16789 = vst [vmem:[#allocation119_spill] sm:$0xff] %v11426_v42  ;;  %16790 = vst [vmem:[#allocation116_spill] sm:$0xff] %v11428_v1 }
 0x344   : > { %v11430_v44 = vpop.f32.mrf.mxu0  ;;  %v11432_v16 = vpop.f32.mrf.mxu1  ;;  %3602 = vmatmul.mubr.bf16.gmra.mxu0 %v9247_v34  ;;  %3795 = vmatmul.mubr.bf16.gmra.mxu1 %v9247_v34 }
 0x345   : > { %3611 = vmatprep.mubr.bf16.mxu0 %v16786_v0  ;;  %3804 = vmatprep.mubr.bf16.mxu1 %v16786_v0 }
 0x346   : > { %v11436_v30 = vpop.f32.mrf.mxu0  ;;  %v11438_v19 = vpop.f32.mrf.mxu1 }
 0x347   : > { %16791 = vst [vmem:[#allocation114_spill] sm:$0xff] %v11436_v30  ;;  %16792 = vst [vmem:[#allocation117_spill] sm:$0xff] %v11438_v19 }
 0x348   : > { %v11440_v9 = vpop.f32.mrf.mxu0  ;;  %v11442_v2 = vpop.f32.mrf.mxu1 }
 0x349   : > { %16793 = vst [vmem:[#allocation115_spill] sm:$0xff] %v11440_v9  ;;  %16794 = vst [vmem:[#allocation42_spill] sm:$0xff] %v11442_v2 }
 0x34a   : > { %v11447_v23 = vpop.f32.mrf.mxu0  ;;  %v11449_v62 = vpop.f32.mrf.mxu1 }
 0x34b   : > { %16795 = vst [vmem:[#allocation43_spill] sm:$0xff] %v11447_v23  ;;  %16796 = vst [vmem:[#allocation112_spill] sm:$0xff] %v11449_v62 }
 0x34c   : > { %v11451_v27 = vpop.f32.mrf.mxu0  ;;  %v11453_v28 = vpop.f32.mrf.mxu1  ;;  %3612 = vmatmul.mubr.bf16.gmra.mxu0 %v9248_v5  ;;  %3805 = vmatmul.mubr.bf16.gmra.mxu1 %v9248_v5 }
 0x34d   : > { %16797 = vst [vmem:[#allocation110_spill] sm:$0xff] %v11451_v27  ;;  %16798 = vst [vmem:[#allocation113_spill] sm:$0xff] %v11453_v28  ;;  %3621 = vmatprep.mubr.bf16.mxu0 %v16786_v0  ;;  %3814 = vmatprep.mubr.bf16.mxu1 %v16786_v0 }
 0x34e   : > { %v11457_v35 = vpop.f32.mrf.mxu0  ;;  %v11459_v21 = vpop.f32.mrf.mxu1 }
 0x34f   : > { %16799 = vst [vmem:[#allocation111_spill] sm:$0xff] %v11457_v35  ;;  %16800 = vst [vmem:[#allocation108_spill] sm:$0xff] %v11459_v21 }
 0x350   : > { %v11461_v10 = vpop.f32.mrf.mxu0  ;;  %v11463_v57 = vpop.f32.mrf.mxu1 }
 0x351   : > { %16801 = vst [vmem:[#allocation106_spill] sm:$0xff] %v11461_v10  ;;  %16802 = vst [vmem:[#allocation109_spill] sm:$0xff] %v11463_v57 }
 0x352   : > { %v11468_v12 = vpop.f32.mrf.mxu0  ;;  %v11470_v6 = vpop.f32.mrf.mxu1 }
 0x353   : > { %16803 = vst [vmem:[#allocation107_spill] sm:$0xff] %v11468_v12  ;;  %16804 = vst [vmem:[#allocation104_spill] sm:$0xff] %v11470_v6 }
 0x354   : > { %v11472_v22 = vpop.f32.mrf.mxu0  ;;  %v11474_v39 = vpop.f32.mrf.mxu1  ;;  %3622 = vmatmul.mubr.bf16.gmra.mxu0 %v9249_v47  ;;  %3815 = vmatmul.mubr.bf16.gmra.mxu1 %v9249_v47 }
 0x355   : > { %16805 = vst [vmem:[#allocation102_spill] sm:$0xff] %v11472_v22  ;;  %16806 = vst [vmem:[#allocation105_spill] sm:$0xff] %v11474_v39 }
 0x356   : > { %v11476_v53 = vpop.f32.mrf.mxu0  ;;  %v11478_v52 = vpop.f32.mrf.mxu1 }
 0x357   : > { %16807 = vst [vmem:[#allocation103_spill] sm:$0xff] %v11476_v53  ;;  %16808 = vst [vmem:[#allocation100_spill] sm:$0xff] %v11478_v52 }
 0x358   : > { %v11480_v34 = vpop.f32.mrf.mxu0  ;;  %v11482_v5 = vpop.f32.mrf.mxu1 }
 0x359   : > { %16809 = vst [vmem:[#allocation96_spill] sm:$0xff] %v11480_v34  ;;  %16810 = vst [vmem:[#allocation46_spill] sm:$0xff] %v11482_v5 }
 0x35a   : > { %v11484_v0 = vpop.f32.mrf.mxu0  ;;  %v11486_v21 = vpop.f32.mrf.mxu1 }
 0x35b   : > { %16811 = vst [vmem:[#allocation101_spill] sm:$0xff] %v11484_v0  ;;  %16812 = vst [vmem:[#allocation97_spill] sm:$0xff] %v11486_v21 }
 0x35c   : > { %v11488_v12 = vpop.f32.mrf.mxu0  ;;  %v11490_v6 = vpop.f32.mrf.mxu1 }
 0x35d   : > { %16813 = vst [vmem:[#allocation47_spill] sm:$0xff] %v11488_v12  ;;  %16814 = vst [vmem:[#allocation50_spill] sm:$0xff] %v11490_v6 }
 0x35e   : > { %v11492_v22 = vpop.f32.mrf.mxu0  ;;  %v11494_v39 = vpop.f32.mrf.mxu1 }
 0x35f   : > { %16815 = vst [vmem:[#allocation51_spill] sm:$0xff] %v11492_v22  ;;  %16816 = vst [vmem:[#allocation98_spill] sm:$0xff] %v11494_v39  ;;  %v11516_v39 = vpop.permute.xlu0 %2549 }
 0x360   : > { %v11496_v47 = vpop.f32.mrf.mxu0  ;;  %v11498_v53 = vpop.f32.mrf.mxu1  ;;  %16827 = vst [vmem:[#allocation87_spill] sm:$0xff] %v11516_v39 }
 0x361   : > { %16817 = vst [vmem:[#allocation94_spill] sm:$0xff] %v11496_v47  ;;  %16818 = vst [vmem:[#allocation99_spill] sm:$0xff] %v11498_v53 }
 0x362   : > { %v11500_v52 = vpop.f32.mrf.mxu0  ;;  %v11502_v34 = vpop.f32.mrf.mxu1 }
 0x363   : > { %16819 = vst [vmem:[#allocation95_spill] sm:$0xff] %v11500_v52  ;;  %16820 = vst [vmem:[#allocation92_spill] sm:$0xff] %v11502_v34 }
 0x364   : > { %v11504_v5 = vpop.f32.mrf.mxu0  ;;  %v11506_v0 = vpop.f32.mrf.mxu1 }
 0x365   : > { %16821 = vst [vmem:[#allocation88_spill] sm:$0xff] %v11504_v5  ;;  %16822 = vst [vmem:[#allocation93_spill] sm:$0xff] %v11506_v0  ;;  %v11526_v5 = vpop.permute.xlu1 %2539 }
 0x366   : > { %v11508_v21 = vpop.f32.mrf.mxu0  ;;  %v11510_v12 = vpop.f32.mrf.mxu1  ;;  %16832 = vst [vmem:[#allocation62_spill] sm:$0xff] %v11526_v5 }
 0x367   : > { %16823 = vst [vmem:[#allocation89_spill] sm:$0xff] %v11508_v21  ;;  %16824 = vst [vmem:[#allocation90_spill] sm:$0xff] %v11510_v12  ;;  %v11532_v12 = vpop.permute.xlu0 %2554 }
 0x368   : > { %v11512_v6 = vpop.f32.mrf.mxu0  ;;  %v11514_v22 = vpop.f32.mrf.mxu1  ;;  %16835 = vst [vmem:[#allocation67_spill] sm:$0xff] %v11532_v12 }
 0x369   : > { %16825 = vst [vmem:[#allocation86_spill] sm:$0xff] %v11512_v6  ;;  %16826 = vst [vmem:[#allocation91_spill] sm:$0xff] %v11514_v22 }
 0x36a   : > { %v11518_v47 = vpop.f32.mrf.mxu0  ;;  %v11520_v53 = vpop.f32.mrf.mxu1 }
 0x36b   : > { %16828 = vst [vmem:[#allocation54_spill] sm:$0xff] %v11518_v47  ;;  %16829 = vst [vmem:[#allocation55_spill] sm:$0xff] %v11520_v53  ;;  %v11542_v53 = vpop.permute.xlu1 %2544  ;;  %v11548_v35 = vpop.permute.xlu0 %2529 }
 0x36c   : > { %v11522_v52 = vpop.f32.mrf.mxu0  ;;  %v11524_v34 = vpop.f32.mrf.mxu1  ;;  %16840 = vst [vmem:[#allocation72_spill] sm:$0xff] %v11542_v53 }
 0x36d   : > { %16830 = vst [vmem:[#allocation58_spill] sm:$0xff] %v11522_v52  ;;  %16831 = vst [vmem:[#allocation59_spill] sm:$0xff] %v11524_v34 }
 0x36e   : > { %v11528_v0 = vpop.f32.mrf.mxu0  ;;  %v11530_v21 = vpop.f32.mrf.mxu1 }
 0x36f   : > { %16833 = vst [vmem:[#allocation63_spill] sm:$0xff] %v11528_v0  ;;  %16834 = vst [vmem:[#allocation66_spill] sm:$0xff] %v11530_v21  ;;  %v11564_v57 = vpop.permute.xlu0 %2519 }
 0x370   : > { %v11534_v6 = vpop.f32.mrf.mxu0  ;;  %v11536_v22 = vpop.f32.mrf.mxu1 }
 0x371   : > { %16836 = vst [vmem:[#allocation70_spill] sm:$0xff] %v11534_v6  ;;  %16837 = vst [vmem:[#allocation71_spill] sm:$0xff] %v11536_v22  ;;  %v11558_v22 = vpop.permute.xlu1 %2534 }
 0x372   : > { %v11538_v39 = vpop.f32.mrf.mxu0  ;;  %v11540_v47 = vpop.f32.mrf.mxu1 }
 0x373   : > { %16838 = vst [vmem:[#allocation74_spill] sm:$0xff] %v11538_v39  ;;  %16839 = vst [vmem:[#allocation75_spill] sm:$0xff] %v11540_v47  ;;  %v11580_v53 = vpop.permute.xlu0 %2509 }
 0x374   : > { %v11544_v52 = vpop.f32.mrf.mxu0  ;;  %v11546_v34 = vpop.f32.mrf.mxu1 }
 0x375   : > { %16841 = vst [vmem:[#allocation73_spill] sm:$0xff] %v11544_v52  ;;  %16842 = vst [vmem:[#allocation76_spill] sm:$0xff] %v11546_v34 }
 0x376   : > { %v11550_v0 = vpop.f32.mrf.mxu0  ;;  %v11552_v21 = vpop.f32.mrf.mxu1 }
 0x377   : > { %16843 = vst [vmem:[#allocation77_spill] sm:$0xff] %v11550_v0  ;;  %16844 = vst [vmem:[#allocation78_spill] sm:$0xff] %v11552_v21  ;;  %v11574_v21 = vpop.permute.xlu1 %2524  ;;  %v11596_v27 = vpop.permute.xlu0 %2499 }
 0x378   : > { %v11554_v12 = vpop.f32.mrf.mxu0  ;;  %v11556_v6 = vpop.f32.mrf.mxu1 }
 0x379   : > { %16845 = vst [vmem:[#allocation79_spill] sm:$0xff] %v11554_v12  ;;  %16846 = vst [vmem:[#allocation82_spill] sm:$0xff] %v11556_v6 }
 0x37a   : > { %v11560_v39 = vpop.f32.mrf.mxu0  ;;  %v11562_v47 = vpop.f32.mrf.mxu1 }
 0x37b   : > { %16847 = vst [vmem:[#allocation83_spill] sm:$0xff] %v11560_v39  ;;  %16848 = vst [vmem:[#allocation80_spill] sm:$0xff] %v11562_v47  ;;  %v2490_v62 = vpop.permute.xlu0 %2489 }
 0x37c   : > { %v11566_v52 = vpop.f32.mrf.mxu0  ;;  %v11568_v34 = vpop.f32.mrf.mxu1 }
 0x37d   : > { %16849 = vst [vmem:[#allocation81_spill] sm:$0xff] %v11566_v52  ;;  %16850 = vst [vmem:[#allocation84_spill] sm:$0xff] %v11568_v34  ;;  %v11590_v34 = vpop.permute.xlu1 %2514 }
 0x37e   : > { %v11570_v10 = vpop.f32.mrf.mxu0  ;;  %v11572_v0 = vpop.f32.mrf.mxu1 }
 0x37f   : > { %16851 = vst [vmem:[#allocation85_spill] sm:$0xff] %v11570_v10  ;;  %16852 = vst [vmem:[#allocation68_spill] sm:$0xff] %v11572_v0 }
 0x380   : > { %v11576_v12 = vpop.f32.mrf.mxu0  ;;  %v11578_v6 = vpop.f32.mrf.mxu1 }
 0x381   : > { %16853 = vst [vmem:[#allocation69_spill] sm:$0xff] %v11576_v12  ;;  %16854 = vst [vmem:[#allocation64_spill] sm:$0xff] %v11578_v6 }
 0x382   : > { %v11582_v39 = vpop.f32.mrf.mxu0  ;;  %v11584_v47 = vpop.f32.mrf.mxu1 }
 0x383   : > { %16855 = vst [vmem:[#allocation65_spill] sm:$0xff] %v11582_v39  ;;  %16856 = vst [vmem:[#allocation60_spill] sm:$0xff] %v11584_v47  ;;  %v11606_v47 = vpop.permute.xlu1 %2504 }
 0x384   : > { %v11586_v28 = vpop.f32.mrf.mxu0  ;;  %v11588_v52 = vpop.f32.mrf.mxu1 }
 0x385   : > { %16857 = vst [vmem:[#allocation61_spill] sm:$0xff] %v11586_v28  ;;  %16858 = vst [vmem:[#allocation56_spill] sm:$0xff] %v11588_v52 }
 0x386   : > { %v11592_v10 = vpop.f32.mrf.mxu0  ;;  %v11594_v0 = vpop.f32.mrf.mxu1 }
 0x387   : > { %16859 = vst [vmem:[#allocation57_spill] sm:$0xff] %v11592_v10  ;;  %16860 = vst [vmem:[#allocation52_spill] sm:$0xff] %v11594_v0 }
 0x388   : > { %v11598_v12 = vpop.f32.mrf.mxu0  ;;  %v11600_v6 = vpop.f32.mrf.mxu1 }
 0x389   : > { %16861 = vst [vmem:[#allocation53_spill] sm:$0xff] %v11598_v12  ;;  %16862 = vst [vmem:[#allocation48_spill] sm:$0xff] %v11600_v6  ;;  %v2495_v6 = vpop.permute.xlu1 %2494 }
 0x38a   : > { %v11602_v5 = vpop.f32.mrf.mxu0  ;;  %v11604_v39 = vpop.f32.mrf.mxu1 }
 0x38b   : > { %16863 = vst [vmem:[#allocation49_spill] sm:$0xff] %v11602_v5  ;;  %16864 = vst [vmem:[#allocation44_spill] sm:$0xff] %v11604_v39  ;;  %v2480_v39 = vpop.permute.xlu0 %2479 }
 0x38c   : > { %v11608_v28 = vpop.f32.mrf.mxu0  ;;  %v11610_v52 = vpop.f32.mrf.mxu1 }
 0x38d   : > { %16865 = vst [vmem:[#allocation45_spill] sm:$0xff] %v11608_v28  ;;  %16866 = vst [vmem:[#allocation40_spill] sm:$0xff] %v11610_v52 }
 0x38e   : > { %v11612_v10 = vpop.f32.mrf.mxu0  ;;  %v11614_v0 = vpop.f32.mrf.mxu1 }
 0x38f   : > { %16867 = vst [vmem:[#allocation41_spill] sm:$0xff] %v11612_v10  ;;  %16868 = vst [vmem:[#allocation39_spill] sm:$0xff] %v11614_v0  ;;  %v2832_v0 = vadd.f32 %v11325_v55, %v2480_v39  ;;  %v3025_v10 = vadd.f32 %v11327_v29, %v2480_v39 }
 0x390   : > { %v11616_v23 = vpop.f32.mrf.mxu0  ;;  %v11618_v12 = vpop.f32.mrf.mxu1 }
 0x391   : > { %16869 = vst [vmem:[#allocation38_spill] sm:$0xff] %v11616_v23  ;;  %16870 = vst [vmem:[#allocation36_spill] sm:$0xff] %v11618_v12  ;;  %v2485_v23 = vpop.permute.xlu1 %2484  ;;  %v2834_v12 = vadd.f32 %v11331_v61, %v2480_v39  ;;  %v3185_v32 = vmax.f32 %v3025_v10, 0.0 }
 0x392   : > { %v11620_v19 = vpop.f32.mrf.mxu0  ;;  %v11622_v5 = vpop.f32.mrf.mxu1  ;;  %v3029_v55 = vadd.f32 %v11337_v45, %v2485_v23  ;;  %v2838_v61 = vadd.f32 %v11342_v49, %v2485_v23  ;;  %v3037_v45 = vadd.f32 %v11354_v31, %v2490_v62 }
 0x393   : > { %16871 = vst [vmem:[#allocation37_spill] sm:$0xff] %v11620_v19  ;;  %16872 = vst [vmem:[#allocation11_spill] sm:$0xff] %v11622_v5  ;;  %v3027_v19 = vadd.f32 %v11333_v18, %v2480_v39  ;;  %v3184_v29 = vmax.f32 %v2834_v12, 0.0  ;;  %v3031_v18 = vadd.f32 %v11344_v56, %v2485_v23 }
 0x394   : > { %v11624_v30 = vpop.f32.mrf.mxu0  ;;  %v11626_v28 = vpop.f32.mrf.mxu1  ;;  %v3189_v49 = vmax.f32 %v3029_v55, 0.0  ;;  %v3194_v31 = vmax.f32 %v3037_v45, 0.0 }
 0x395   : > { %16873 = vst [vmem:[#allocation10_spill] sm:$0xff] %v11624_v30  ;;  %16874 = vst [vmem:[#allocation26_spill] sm:$0xff] %v11626_v28  ;;  %v3186_v54 = vmax.f32 %v3027_v19, 0.0 }
 0x396   : > { %v11628_v52 = vpop.f32.mrf.mxu0  ;;  %v11630_v1 = vpop.f32.mrf.mxu1 }
 0x397   : > { %16875 = vst [vmem:[#allocation27_spill] sm:$0xff] %v11628_v52  ;;  %16876 = vst [vmem:[#allocation34_spill] sm:$0xff] %v11630_v1  ;;  %v3183_v52 = vmax.f32 %v2832_v0, 0.0  ;;  %v2836_v1 = vadd.f32 %v11335_v3, %v2485_v23  ;;  %v2844_v3 = vadd.f32 %v11352_v14, %v2490_v62  ;;  %v3188_v23 = vmax.f32 %v2838_v61, 0.0 }
 0x398   : > { %v11636_v42 = vpop.f32.mrf.mxu0  ;;  %v11638_v5 = vpop.f32.mrf.mxu1 }
 0x399   : > { %16877 = vst [vmem:[#allocation32_spill] sm:$0xff] %v11636_v42  ;;  %16878 = vst [vmem:[#allocation35_spill] sm:$0xff] %v11638_v5  ;;  %v2842_v5 = vadd.f32 %v11346_v8, %v2490_v62  ;;  %v3187_v12 = vmax.f32 %v2836_v1, 0.0  ;;  %v3190_v8 = vmax.f32 %v3031_v18, 0.0  ;;  %v3192_v14 = vmax.f32 %v2844_v3, 0.0 }
 0x39a   : > { %v11640_v30 = vpop.f32.mrf.mxu0  ;;  %v11642_v28 = vpop.f32.mrf.mxu1  ;;  %v3039_v1 = vadd.f32 %v11358_v59, %v2495_v6  ;;  %v3041_v18 = vadd.f32 %v11365_v26, %v2495_v6  ;;  %v3045_v59 = vadd.f32 %v11369_v37, %v11596_v27 }
 0x39b   : > { %16879 = vst [vmem:[#allocation33_spill] sm:$0xff] %v11640_v30  ;;  %16880 = vst [vmem:[#allocation28_spill] sm:$0xff] %v11642_v28  ;;  %v3035_v30 = vadd.f32 %v11348_v63, %v2490_v62  ;;  %v2846_v62 = vadd.f32 %v11356_v50, %v2495_v6  ;;  %v2852_v50 = vadd.f32 %v11367_v13, %v11596_v27 }
 0x39c   : > { %v3473_v39 = vpop.f32.mrf.mxu0  ;;  %v3666_v42 = vpop.f32.mrf.mxu1 }
 0x39d   : > { %v11650_v2 = vadd.f32 %v3473_v39, %v3183_v52  ;;  %v11652_v0 = vadd.f32 %v3666_v42, %v3185_v32  ;;  %v3191_v52 = vmax.f32 %v2842_v5, 0.0  ;;  %v3193_v39 = vmax.f32 %v3035_v30, 0.0 }
 0x39e   : > { %v3475_v10 = vpop.f32.mrf.mxu0  ;;  %v3668_v19 = vpop.f32.mrf.mxu1  ;;  %v3195_v13 = vmax.f32 %v2846_v62, 0.0  ;;  %v3047_v62 = vadd.f32 %v11375_v36, %v11596_v27 }
 0x39f   : > { %16881 = vst [vmem:[#allocation29_spill] sm:$0xff] %v11650_v2  ;;  %16882 = vst [vmem:[#allocation19_spill] sm:$0xff] %v11652_v0  ;;  %v11656_v28 = vadd.f32 %v3475_v10, %v3184_v29  ;;  %v11658_v56 = vadd.f32 %v3668_v19, %v3186_v54  ;;  %v11680_v10 = vpop.permute.xlu0 %2629  ;;  %v3199_v54 = vmax.f32 %v2852_v50, 0.0  ;;  %v3201_v19 = vmax.f32 %v3045_v59, 0.0 }
 0x3a0   : > { %v3477_v9 = vpop.f32.mrf.mxu0  ;;  %v3670_v63 = vpop.f32.mrf.mxu1  ;;  %16889 = vst [vmem:[#allocation9_spill] sm:$0xff] %v11680_v10 }
 0x3a1   : > { %16883 = vst [vmem:[#allocation20_spill] sm:$0xff] %v11656_v28  ;;  %16884 = vst [vmem:[#allocation23_spill] sm:$0xff] %v11658_v56  ;;  %v11660_v32 = vadd.f32 %v3477_v9, %v3187_v12  ;;  %v11662_v42 = vadd.f32 %v3670_v63, %v3189_v49  ;;  %v2848_v9 = vadd.f32 %v11363_v20, %v2495_v6  ;;  %v16949_v28 = vld [vmem:[#allocation110_spill] sm:$0xff] }
 0x3a2   : > { %v3479_v55 = vpop.f32.mrf.mxu0  ;;  %v3672_v29 = vpop.f32.mrf.mxu1  ;;  %v3055_v12 = vadd.f32 %v11390_v40, %v11580_v53  ;;  %v3059_v40 = vadd.f32 %v11400_v60, %v11590_v34  ;;  %v3061_v60 = vadd.f32 %v11407_v15, %v11590_v34 }
 0x3a3   : > { %16885 = vst [vmem:[#allocation24_spill] sm:$0xff] %v11660_v32  ;;  %16886 = vst [vmem:[#allocation30_spill] sm:$0xff] %v11662_v42  ;;  %v11670_v5 = vadd.f32 %v3479_v55, %v3188_v23  ;;  %v11672_v30 = vadd.f32 %v3672_v29, %v3190_v8  ;;  %v3197_v23 = vmax.f32 %v3039_v1, 0.0  ;;  %v3196_v63 = vmax.f32 %v2848_v9, 0.0  ;;  %v11708_v50 = vpop.permute.xlu0 %2619 }
 0x3a4   : > { %v3483_v3 = vpop.f32.mrf.mxu0  ;;  %v3676_v45 = vpop.f32.mrf.mxu1  ;;  %v3198_v55 = vmax.f32 %v3041_v18, 0.0  ;;  %16897 = vst [vmem:[#allocation13_spill] sm:$0xff] %v11708_v50 }
 0x3a5   : > { %16887 = vst [vmem:[#allocation8_spill] sm:$0xff] %v11670_v5  ;;  %16888 = vst [vmem:[#allocation31_spill] sm:$0xff] %v11672_v30  ;;  %v11686_v49 = vadd.f32 %v3483_v3, %v3191_v52  ;;  %v11688_v20 = vadd.f32 %v3676_v45, %v3193_v39  ;;  %v2854_v39 = vadd.f32 %v11373_v17, %v11596_v27  ;;  %v11706_v18 = vpop.permute.xlu1 %2634 }
 0x3a6   : > { %v3485_v26 = vpop.f32.mrf.mxu0  ;;  %v3678_v6 = vpop.f32.mrf.mxu1  ;;  %16896 = vst [vmem:[#allocation17_spill] sm:$0xff] %v11706_v18 }
 0x3a7   : > { %16890 = vst [vmem:[#allocation15_spill] sm:$0xff] %v11686_v49  ;;  %16891 = vst [vmem:[#allocation16_spill] sm:$0xff] %v11688_v20  ;;  %v11690_v8 = vadd.f32 %v3485_v26, %v3192_v14  ;;  %v11692_v37 = vadd.f32 %v3678_v6, %v3194_v31  ;;  %v2856_v14 = vadd.f32 %v11377_v46, %v11606_v47  ;;  %v3213_v26 = vmax.f32 %v3059_v40, 0.0  ;;  %v16951_v49 = vld [vmem:[#allocation72_spill] sm:$0xff] }
 0x3a8   : > { %v3487_v29 = vpop.f32.mrf.mxu0  ;;  %v3680_v61 = vpop.f32.mrf.mxu1  ;;  %v3049_v31 = vadd.f32 %v11379_v25, %v11606_v47  ;;  %v2858_v46 = vadd.f32 %v11384_v33, %v11606_v47  ;;  %v3051_v25 = vadd.f32 %v11386_v58, %v11606_v47  ;;  %v2862_v47 = vadd.f32 %v11388_v48, %v11580_v53 }
 0x3a9   : > { %16892 = vst [vmem:[#allocation25_spill] sm:$0xff] %v11690_v8  ;;  %16893 = vst [vmem:[#allocation21_spill] sm:$0xff] %v11692_v37  ;;  %v11694_v10 = vadd.f32 %v3487_v29, %v3195_v13  ;;  %v11696_v52 = vadd.f32 %v3680_v61, %v3197_v23  ;;  %v3202_v29 = vmax.f32 %v3047_v62, 0.0  ;;  %v3203_v33 = vmax.f32 %v2856_v14, 0.0  ;;  %v11740_v62 = vpop.permute.xlu0 %2609 }
 0x3aa   : > { %v3489_v1 = vpop.f32.mrf.mxu0  ;;  %v3682_v9 = vpop.f32.mrf.mxu1  ;;  %v3206_v58 = vmax.f32 %v3051_v25, 0.0  ;;  %16903 = vst [vmem:[#allocation124_spill] sm:$0xff] %v11740_v62  ;;  %v2866_v48 = vadd.f32 %v11398_v4, %v11590_v34  ;;  %v2868_v4 = vadd.f32 %v11405_v38, %v11590_v34  ;;  %v3214_v34 = vmax.f32 %v3061_v60, 0.0  ;;  %v16938_v62 = vld [vmem:[#allocation116_spill] sm:$0xff] }
 0x3ab   : > { %16894 = vst [vmem:[#allocation12_spill] sm:$0xff] %v11694_v10  ;;  %16895 = vst [vmem:[#allocation22_spill] sm:$0xff] %v11696_v52  ;;  %v11714_v59 = vadd.f32 %v3489_v1, %v3196_v63  ;;  %v11716_v36 = vadd.f32 %v3682_v9, %v3198_v55  ;;  %v3200_v55 = vmax.f32 %v2854_v39, 0.0  ;;  %v3205_v1 = vmax.f32 %v3049_v31, 0.0  ;;  %v11738_v39 = vpop.permute.xlu1 %2624  ;;  %v16952_v10 = vld [vmem:[#allocation106_spill] sm:$0xff] }
 0x3ac   : > { %v3493_v27 = vpop.f32.mrf.mxu0  ;;  %v3686_v3 = vpop.f32.mrf.mxu1  ;;  %v3204_v9 = vmax.f32 %v2858_v46, 0.0  ;;  %16902 = vst [vmem:[#allocation123_spill] sm:$0xff] %v11738_v39  ;;  %v3212_v15 = vmax.f32 %v2868_v4, 0.0  ;;  %v2876_v40 = vadd.f32 %v11419_v43, %v11574_v21  ;;  %v3069_v4 = vadd.f32 %v11421_v11, %v11574_v21  ;;  %v9252_v11 = vld [vmem:[%s16920_s4 + $0x4] ss:$8 sps:$4 sm:$0xff]  }
 0x3ad   : > { %16898 = vst [vmem:[#allocation18_spill] sm:$0xff] %v11714_v59  ;;  %16899 = vst [vmem:[#allocation14_spill] sm:$0xff] %v11716_v36  ;;  %v11726_v6 = vadd.f32 %v3493_v27, %v3199_v54  ;;  %v11728_v13 = vadd.f32 %v3686_v3, %v3201_v19  ;;  %v2864_v54 = vadd.f32 %v11394_v7, %v11580_v53  ;;  %v11772_v45 = vpop.permute.xlu0 %2599  ;;  %4369 = vmatprep.mubr.bf16.mxu0 %v9252_v11  ;;  %v16956_v36 = vld [vmem:[#allocation107_spill] sm:$0xff] }
 0x3ae   : > { %v3495_v23 = vpop.f32.mrf.mxu0  ;;  %v3688_v63 = vpop.f32.mrf.mxu1  ;;  %v3057_v19 = vadd.f32 %v11396_v41, %v11580_v53  ;;  %16911 = vst [vmem:[#allocation132_spill] sm:$0xff] %v11772_v45  ;;  %v3065_v53 = vadd.f32 %v11411_v24, %v11564_v57  ;;  %4562 = vmatprep.mubr.bf16.mxu1 %v9252_v11  ;;  %v3075_v11 = vadd.f32 %v11432_v16, %v11548_v35  ;;  %v16941_v45 = vld [vmem:[#allocation43_spill] sm:$0xff] }
 0x3af   : > { %16900 = vst [vmem:[#allocation121_spill] sm:$0xff] %v11726_v6  ;;  %16901 = vst [vmem:[#allocation122_spill] sm:$0xff] %v11728_v13  ;;  %v11750_v46 = vadd.f32 %v3495_v23, %v3200_v55  ;;  %v11752_v7 = vadd.f32 %v3688_v63, %v3202_v29  ;;  %v3207_v29 = vmax.f32 %v2862_v47, 0.0  ;;  %v11770_v38 = vpop.permute.xlu1 %2614  ;;  %v16958_v6 = vld [vmem:[#allocation87_spill] sm:$0xff] }
 0x3b0   : > { %v3497_v17 = vpop.f32.mrf.mxu0  ;;  %v3690_v61 = vpop.f32.mrf.mxu1  ;;  %16910 = vst [vmem:[#allocation131_spill] sm:$0xff] %v11770_v38  ;;  %v3225_v2 = vmax.f32 %v3075_v11, 0.0 }
 0x3b1   : > { %v11742_v14 = vadd.f32 %v3497_v17, %v3203_v33  ;;  %v11744_v31 = vadd.f32 %v3690_v61, %v3205_v1  ;;  %16906 = vst [vmem:[#allocation127_spill] sm:$0xff] %v11750_v46  ;;  %16907 = vst [vmem:[#allocation128_spill] sm:$0xff] %v11752_v7  ;;  %v3209_v33 = vmax.f32 %v3055_v12, 0.0  ;;  %v2872_v17 = vadd.f32 %v11409_v51, %v11564_v57 }
 0x3b2   : > { %v3499_v25 = vpop.f32.mrf.mxu0  ;;  %v3692_v41 = vpop.f32.mrf.mxu1 }
 0x3b3   : > { %16904 = vst [vmem:[#allocation125_spill] sm:$0xff] %v11742_v14  ;;  %16905 = vst [vmem:[#allocation126_spill] sm:$0xff] %v11744_v31  ;;  %v11758_v61 = vadd.f32 %v3499_v25, %v3204_v9  ;;  %v11760_v27 = vadd.f32 %v3692_v41, %v3206_v58  ;;  %v3208_v58 = vmax.f32 %v2864_v54, 0.0  ;;  %v3210_v25 = vmax.f32 %v3057_v19, 0.0  ;;  %v16959_v14 = vld [vmem:[#allocation102_spill] sm:$0xff] }
 0x3b4   : > { %v3503_v3 = vpop.f32.mrf.mxu0  ;;  %v3696_v23 = vpop.f32.mrf.mxu1  ;;  %v3211_v41 = vmax.f32 %v2866_v48, 0.0  ;;  %v2898_v31 = vadd.f32 %v16956_v36, %v16951_v49 }
 0x3b5   : > { %16908 = vst [vmem:[#allocation129_spill] sm:$0xff] %v11758_v61  ;;  %16909 = vst [vmem:[#allocation130_spill] sm:$0xff] %v11760_v27  ;;  %v11778_v55 = vadd.f32 %v3503_v3, %v3207_v29  ;;  %v11780_v54 = vadd.f32 %v3696_v23, %v3209_v33 }
 0x3b6   : > { %v3505_v1 = vpop.f32.mrf.mxu0  ;;  %v3698_v9 = vpop.f32.mrf.mxu1 }
 0x3b7   : > { %16912 = vst [vmem:[#allocation133_spill] sm:$0xff] %v11778_v55  ;;  %16913 = vst [vmem:[#allocation134_spill] sm:$0xff] %v11780_v54  ;;  %v11790_v51 = vadd.f32 %v3505_v1, %v3208_v58  ;;  %v11792_v60 = vadd.f32 %v3698_v9, %v3210_v25  ;;  %v11805_v1 = vpop.permute.xlu1 %2604  ;;  %v11807_v9 = vpop.permute.xlu0 %2589  ;;  %v2882_v25 = vadd.f32 %v11430_v44, %v11548_v35  ;;  %v16964_v54 = vld [vmem:[#allocation96_spill] sm:$0xff] }
 0x3b8   : > { %v3507_v47 = vpop.f32.mrf.mxu0  ;;  %v3700_v12 = vpop.f32.mrf.mxu1  ;;  %16921 = vst [vmem:[#allocation141_spill] sm:$0xff] %v11805_v1  ;;  %16922 = vst [vmem:[#allocation142_spill] sm:$0xff] %v11807_v9  ;;  %v11859_v44 = vadd.f32 %v16938_v62, %v11574_v21  ;;  %v16939_v1 = vld [vmem:[#allocation114_spill] sm:$0xff]  ;;  %v16942_v62 = vld [vmem:[#allocation112_spill] sm:$0xff] }
 0x3b9   : > { %v11782_v19 = vadd.f32 %v3507_v47, %v3211_v41  ;;  %v11784_v48 = vadd.f32 %v3700_v12, %v3213_v26  ;;  %16916 = vst [vmem:[#allocation137_spill] sm:$0xff] %v11790_v51  ;;  %16917 = vst [vmem:[#allocation138_spill] sm:$0xff] %v11792_v60  ;;  %v3219_v47 = vmax.f32 %v2876_v40, 0.0  ;;  %v3221_v12 = vmax.f32 %v3069_v4, 0.0  ;;  %v16929_v40 = vld [vmem:[#allocation115_spill] sm:$0xff] }
 0x3ba   : > { %v3509_v24 = vpop.f32.mrf.mxu0  ;;  %v3702_v63 = vpop.f32.mrf.mxu1  ;;  %v2886_v4 = vadd.f32 %v16929_v40, %v11558_v22  ;;  %v16935_v40 = vld [vmem:[#allocation120_spill] sm:$0xff]  ;;  %v3223_v42 = vmax.f32 %v2882_v25, 0.0  ;;  %v11879_v56 = vadd.f32 %v16942_v62, %v11558_v22  ;;  %v16961_v9 = vld [vmem:[#allocation103_spill] sm:$0xff] }
 0x3bb   : > { %16914 = vst [vmem:[#allocation135_spill] sm:$0xff] %v11782_v19  ;;  %16915 = vst [vmem:[#allocation136_spill] sm:$0xff] %v11784_v48  ;;  %v11798_v26 = vadd.f32 %v3509_v24, %v3212_v15  ;;  %v11800_v29 = vadd.f32 %v3702_v63, %v3214_v34  ;;  %v3215_v15 = vmax.f32 %v2872_v17, 0.0  ;;  %v3217_v34 = vmax.f32 %v3065_v53, 0.0 }
 0x3bc   : > { %v3513_v43 = vpop.f32.mrf.mxu0  ;;  %v3706_v33 = vpop.f32.mrf.mxu1  ;;  %v11851_v50 = vadd.f32 %v16935_v40, %v11564_v57  ;;  %v16940_v40 = vld [vmem:[#allocation117_spill] sm:$0xff]  ;;  %v2904_v7 = vadd.f32 %v16961_v9, %v16958_v6 }
 0x3bd   : > { %16918 = vst [vmem:[#allocation139_spill] sm:$0xff] %v11798_v26  ;;  %16919 = vst [vmem:[#allocation140_spill] sm:$0xff] %v11800_v29  ;;  %v11817_v3 = vadd.f32 %v3513_v43, %v3215_v15  ;;  %v11819_v18 = vadd.f32 %v3706_v33, %v3217_v34  ;;  %v16930_v43 = vld [vmem:[#allocation42_spill] sm:$0xff]  ;;  %v11837_v15 = vpop.permute.xlu1 %2594  ;;  %v16966_v9 = vld [vmem:[#allocation101_spill] sm:$0xff]  ;;  %v3236_v26 = vmax.f32 %v2898_v31, 0.0 }
 0x3be   : > { %v11813_v41 = vpop.f32.mrf.mxu0  ;;  %v11815_v63 = vpop.f32.mrf.mxu1  ;;  %v3079_v33 = vadd.f32 %v16930_v43, %v11558_v22  ;;  %16931 = vst [vmem:[#allocation115_spill] sm:$0xff] %v11837_v15  ;;  %16936 = vst [vmem:[#allocation120_spill] sm:$0xff] %v11851_v50  ;;  %v16937_v43 = vld [vmem:[#allocation119_spill] sm:$0xff]  ;;  %v2902_v15 = vadd.f32 %v16959_v14, %v16958_v6  ;;  %v16971_v29 = vld [vmem:[#allocation98_spill] sm:$0xff] }
 0x3bf   : > { %16923 = vst [vmem:[#allocation143_spill] sm:$0xff] %v11813_v41  ;;  %16924 = vst [vmem:[#allocation144_spill] sm:$0xff] %v11815_v63  ;;  %v11855_v38 = vadd.f32 %v16937_v43, %v11574_v21  ;;  %v11871_v43 = vadd.f32 %v16940_v40, %v11548_v35  ;;  %v11875_v21 = vadd.f32 %v16941_v45, %v11558_v22  ;;  %v16948_v45 = vld [vmem:[#allocation62_spill] sm:$0xff]  ;;  %v16950_v22 = vld [vmem:[#allocation113_spill] sm:$0xff] }
 0x3c0   : > { %v3517_v24 = vpop.f32.mrf.mxu0  ;;  %v3710_v23 = vpop.f32.mrf.mxu1  ;;  %16925 = vst [vmem:[#allocation145_spill] sm:$0xff] %v11817_v3  ;;  %16926 = vst [vmem:[#allocation146_spill] sm:$0xff] %v11819_v18  ;;  %v3229_v32 = vmax.f32 %v3079_v33, 0.0  ;;  %v2892_v5 = vadd.f32 %v16949_v28, %v16948_v45  ;;  %v3085_v62 = vadd.f32 %v16950_v22, %v16948_v45  ;;  %v16954_v28 = vld [vmem:[#allocation111_spill] sm:$0xff]  ;;  %v3239_v18 = vmax.f32 %v2902_v15, 0.0 }
 0x3c1   : > { %v11821_v58 = vadd.f32 %v3517_v24, %v3219_v47  ;;  %v11823_v39 = vadd.f32 %v3710_v23, %v3221_v12  ;;  %v11839_v23 = vpop.permute.xlu0 %2579  ;;  %v16933_v12 = vld [vmem:[#allocation118_spill] sm:$0xff]  ;;  %v11919_v59 = vadd.f32 %v16954_v28, %v16948_v45  ;;  %v16963_v14 = vld [vmem:[#allocation67_spill] sm:$0xff] }
 0x3c2   : > { %v11829_v17 = vpop.f32.mrf.mxu0  ;;  %v11831_v53 = vpop.f32.mrf.mxu1  ;;  %16932 = vst [vmem:[#allocation42_spill] sm:$0xff] %v11839_v23  ;;  %v11847_v24 = vadd.f32 %v16933_v12, %v11564_v57  ;;  %v3227_v12 = vmax.f32 %v2886_v4, 0.0  ;;  %v11867_v57 = vadd.f32 %v16939_v1, %v11548_v35  ;;  %v3231_v8 = vmax.f32 %v2892_v5, 0.0  ;;  %v16957_v5 = vld [vmem:[#allocation104_spill] sm:$0xff]  ;;  %v16974_v15 = vld [vmem:[#allocation99_spill] sm:$0xff] }
 0x3c3   : > { %16927 = vst [vmem:[#allocation147_spill] sm:$0xff] %v11821_v58  ;;  %16928 = vst [vmem:[#allocation148_spill] sm:$0xff] %v11823_v39  ;;  %v11881_v4 = vpop.permute.xlu1 %2584  ;;  %v2906_v48 = vadd.f32 %v16964_v54, %v16963_v14  ;;  %v2908_v19 = vadd.f32 %v16966_v9, %v16963_v14  ;;  %v16970_v9 = vld [vmem:[#allocation51_spill] sm:$0xff] }
 0x3c4   : > { %v3523_v34 = vpop.f32.mrf.mxu0  ;;  %v3716_v47 = vpop.f32.mrf.mxu1  ;;  %16934 = vst [vmem:[#allocation118_spill] sm:$0xff] %v11847_v24  ;;  %16943 = vst [vmem:[#allocation119_spill] sm:$0xff] %v11881_v4  ;;  %v16975_v24 = vld [vmem:[#allocation88_spill] sm:$0xff] }
 0x3c5   : > { %v11883_v33 = vpop.permute.xlu0 %2569  ;;  %v11885_v1 = vadd.f32 %v3523_v34, %v3223_v42  ;;  %v11887_v30 = vadd.f32 %v3716_v47, %v3225_v2  ;;  %v2896_v42 = vadd.f32 %v16952_v10, %v16951_v49  ;;  %v16953_v2 = vld [vmem:[#allocation109_spill] sm:$0xff]  ;;  %v3233_v47 = vmax.f32 %v3085_v62, 0.0 }
 0x3c6   : > { %v11861_v0 = vpop.f32.mrf.mxu0  ;;  %v11863_v16 = vpop.f32.mrf.mxu1  ;;  %v3089_v34 = vadd.f32 %v16953_v2, %v16951_v49  ;;  %v3091_v62 = vadd.f32 %v16957_v5, %v16951_v49  ;;  %v3243_v58 = vmax.f32 %v2906_v48, 0.0 }
 0x3c7   : > { %16944 = vst [vmem:[#allocation116_spill] sm:$0xff] %v11885_v1  ;;  %16945 = vst [vmem:[#allocation114_spill] sm:$0xff] %v11887_v30  ;;  %v3235_v10 = vmax.f32 %v2896_v42, 0.0  ;;  %v16962_v42 = vld [vmem:[#allocation100_spill] sm:$0xff]  ;;  %v3244_v30 = vmax.f32 %v2908_v19, 0.0 }
 0x3c8   : > { %v3527_v25 = vpop.f32.mrf.mxu0  ;;  %v3720_v11 = vpop.f32.mrf.mxu1  ;;  %v3237_v2 = vmax.f32 %v3089_v34, 0.0  ;;  %v3097_v34 = vadd.f32 %v16962_v42, %v16958_v6 }
 0x3c9   : > { %v11889_v35 = vadd.f32 %v3527_v25, %v3227_v12  ;;  %v11891_v40 = vadd.f32 %v3720_v11, %v3229_v32  ;;  %v16955_v12 = vld [vmem:[#allocation108_spill] sm:$0xff]  ;;  %v11933_v32 = vpop.permute.xlu1 %2574  ;;  %v2560_v28 = vpop.permute.xlu0 %2559 }
 0x3ca   : > { %v11897_v20 = vpop.f32.mrf.mxu0  ;;  %v11899_v52 = vpop.f32.mrf.mxu1  ;;  %v11923_v25 = vadd.f32 %v16955_v12, %v16948_v45  ;;  %v16960_v45 = vld [vmem:[#allocation105_spill] sm:$0xff]  ;;  %v2914_v60 = vadd.f32 %v16970_v9, %v2560_v28  ;;  %v3242_v3 = vmax.f32 %v3097_v34, 0.0 }
 0x3cb   : > { %16946 = vst [vmem:[#allocation117_spill] sm:$0xff] %v11889_v35  ;;  %16947 = vst [vmem:[#allocation43_spill] sm:$0xff] %v11891_v40  ;;  %v3095_v12 = vadd.f32 %v16960_v45, %v16958_v6  ;;  %v16965_v45 = vld [vmem:[#allocation46_spill] sm:$0xff]  ;;  %v16967_v6 = vld [vmem:[#allocation97_spill] sm:$0xff] }
 0x3cc   : > { %v3533_v22 = vpop.f32.mrf.mxu0  ;;  %v3726_v37 = vpop.f32.mrf.mxu1  ;;  %v3099_v55 = vadd.f32 %v16965_v45, %v16963_v14  ;;  %v3101_v42 = vadd.f32 %v16967_v6, %v16963_v14  ;;  %v3234_v45 = vmax.f32 %v11923_v25, 0.0  ;;  %v3107_v14 = vadd.f32 %v16971_v29, %v2560_v28 }
 0x3cd   : > { %v11943_v46 = vadd.f32 %v3533_v22, %v3231_v8  ;;  %v11945_v49 = vadd.f32 %v3726_v37, %v3233_v47  ;;  %v16968_v37 = vld [vmem:[#allocation47_spill] sm:$0xff]  ;;  %v11969_v39 = vpop.permute.xlu1 %2564  ;;  %v3248_v1 = vmax.f32 %v2914_v60, 0.0 }
 0x3ce   : > { %v11925_v11 = vpop.f32.mrf.mxu0  ;;  %v11927_v13 = vpop.f32.mrf.mxu1  ;;  %v2912_v47 = vadd.f32 %v16968_v37, %v2560_v28  ;;  %v3238_v37 = vmax.f32 %v3091_v62, 0.0  ;;  %16972 = vst [vmem:[#allocation112_spill] sm:$0xff] %v11969_v39  ;;  %v3245_v54 = vmax.f32 %v3099_v55, 0.0  ;;  %v3246_v25 = vmax.f32 %v3101_v42, 0.0 }
 0x3cf   : > { %v3250_v29 = vmax.f32 %v3107_v14, 0.0  ;;  %v3109_v62 = vadd.f32 %v16974_v15, %v11969_v39  ;;  %v2922_v15 = vadd.f32 %v16975_v24, %v11883_v33  ;;  %v16980_v24 = vmax.f32 %v11875_v21, 0.0 }
 0x3d0   : > { %v3537_v27 = vpop.f32.mrf.mxu0  ;;  %v3730_v36 = vpop.f32.mrf.mxu1  ;;  %v3247_v40 = vmax.f32 %v2912_v47, 0.0  ;;  %v16985_v21 = vmax.f32 %v11879_v56, 0.0  ;;  %v16989_v56 = vld [vmem:[#allocation91_spill] sm:$0xff] }
 0x3d1   : > { %v11947_v5 = vadd.f32 %v3537_v27, %v3235_v10  ;;  %v11949_v61 = vadd.f32 %v3730_v36, %v3237_v2  ;;  %v16969_v27 = vld [vmem:[#allocation50_spill] sm:$0xff]  ;;  %v3232_v36 = vmax.f32 %v11919_v59, 0.0  ;;  %v3240_v2 = vmax.f32 %v2904_v7, 0.0 }
 0x3d2   : > { %v3539_v8 = vpop.f32.mrf.mxu0  ;;  %v3732_v22 = vpop.f32.mrf.mxu1  ;;  %v3105_v10 = vadd.f32 %v16969_v27, %v2560_v28  ;;  %v3241_v27 = vmax.f32 %v3095_v12, 0.0  ;;  %v16973_v28 = vld [vmem:[#allocation94_spill] sm:$0xff] }
 0x3d3   : > { %v2916_v31 = vadd.f32 %v16973_v28, %v11969_v39  ;;  %v3878_v23 = vadd.f32 %v3539_v8, %v3236_v26  ;;  %v3880_v63 = vadd.f32 %v3732_v22, %v3238_v37  ;;  %v3874_v39 = vadd.f32 %v11925_v11, %v3232_v36  ;;  %v16978_v8 = vld [vmem:[#allocation93_spill] sm:$0xff] }
 0x3d4   : > { %v3543_v6 = vpop.f32.mrf.mxu0  ;;  %v3736_v51 = vpop.f32.mrf.mxu1  ;;  %v3249_v9 = vmax.f32 %v3105_v10, 0.0  ;;  %v16979_v22 = vld [vmem:[#allocation89_spill] sm:$0xff]  ;;  %v3870_v11 = vadd.f32 %v11897_v20, %v16980_v24  ;;  %v3872_v20 = vadd.f32 %v11899_v52, %v16985_v21  ;;  %v16990_v52 = vmax.f32 %v11855_v38, 0.0 }
 0x3d5   : > { %v3881_v7 = vadd.f32 %v3543_v6, %v3239_v18  ;;  %v3883_v34 = vadd.f32 %v3736_v51, %v3241_v27  ;;  %v3251_v28 = vmax.f32 %v2916_v31, 0.0  ;;  %v3876_v18 = vadd.f32 %v11927_v13, %v3234_v45  ;;  %v16983_v6 = vld [vmem:[#allocation90_spill] sm:$0xff]  ;;  %v17010_v21 = vld [vmem:[#allocation117_spill] sm:$0xff] }
 0x3d6   : > { %v3545_v4 = vpop.f32.mrf.mxu0  ;;  %v3738_v59 = vpop.f32.mrf.mxu1  ;;  %v4010_v13 = vpack.c.bf16 %v3878_v23, %v3874_v39  ;;  %v3117_v37 = vadd.f32 %v16983_v6, %v11883_v33  ;;  %v16984_v27 = vld [vmem:[#allocation86_spill] sm:$0xff]  ;;  %v3119_v31 = vadd.f32 %v16989_v56, %v11933_v32 }
 0x3d7   : > { %v3882_v19 = vadd.f32 %v3545_v4, %v3240_v2  ;;  %v3884_v42 = vadd.f32 %v3738_v59, %v3242_v3  ;;  %v11987_v2 = vadd.f32 %v16979_v22, %v11883_v33  ;;  %v2926_v59 = vadd.f32 %v16984_v27, %v11933_v32 }
 0x3d8   : > { %v3547_v12 = vpop.f32.mrf.mxu0  ;;  %v3740_v35 = vpop.f32.mrf.mxu1 }
 0x3d9   : > { %v3885_v48 = vadd.f32 %v3547_v12, %v3243_v58  ;;  %v3887_v55 = vadd.f32 %v3740_v35, %v3245_v54  ;;  %v16991_v12 = vmax.f32 %v11871_v43, 0.0  ;;  %v3256_v43 = vmax.f32 %v11987_v2, 0.0  ;;  %v17006_v2 = vld [vmem:[#allocation58_spill] sm:$0xff] }
 0x3da   : > { %v3549_v47 = vpop.f32.mrf.mxu0  ;;  %v3742_v10 = vpop.f32.mrf.mxu1  ;;  %v3259_v22 = vmax.f32 %v2926_v59, 0.0 }
 0x3db   : > { %v4013_v60 = vpack.c.bf16 %v3885_v48, %v3881_v7  ;;  %v4015_v14 = vpack.c.bf16 %v3887_v55, %v3883_v34  ;;  %v3886_v50 = vadd.f32 %v3549_v47, %v3244_v30  ;;  %v3888_v41 = vadd.f32 %v3742_v10, %v3246_v25 }
 0x3dc   : > { %v3553_v51 = vpop.f32.mrf.mxu0  ;;  %v3746_v58 = vpop.f32.mrf.mxu1  ;;  %v3115_v30 = vadd.f32 %v16978_v8, %v11883_v33  ;;  %v9731_v34 = vmov 1   ;;  %v16994_v48 = vmax.f32 %v11859_v44, 0.0 }
 0x3dd   : > { %v4014_v26 = vpack.c.bf16 %v3886_v50, %v3882_v19  ;;  %v4016_v35 = vpack.c.bf16 %v3888_v41, %v3884_v42  ;;  %v11979_v4 = vadd.f32 %v3553_v51, %v3247_v40  ;;  %v11981_v3 = vadd.f32 %v3746_v58, %v3249_v9  ;;  %9054 = vset.pattern.permute.xlu1 %v9731_v34  ;;  %v17000_v51 = vld [vmem:[#allocation120_spill] sm:$0xff] }
 0x3de   : > { %v3555_v54 = vpop.f32.mrf.mxu0  ;;  %v3748_v36 = vpop.f32.mrf.mxu1  ;;  %v3253_v50 = vmax.f32 %v3109_v62, 0.0  ;;  %v4012_v41 = vpack.c.bf16 %v3880_v63, %v3876_v18  ;;  %v3255_v63 = vmax.f32 %v2922_v15, 0.0  ;;  %v3257_v33 = vmax.f32 %v3115_v30, 0.0  ;;  %9053 = vset.pattern.permute.xlu0 %v9731_v34  ;;  %v16999_v15 = vld [vmem:[#allocation143_spill] sm:$0xff]  ;;  %v17021_v34 = vld [vmem:[#allocation70_spill] sm:$0xff] }
 0x3df   : > { %16976 = vst [vmem:[#allocation62_spill] sm:$0xff] %v11979_v4  ;;  %16977 = vst [vmem:[#allocation110_spill] sm:$0xff] %v11981_v3  ;;  %v11992_v40 = vadd.f32 %v3555_v54, %v3248_v1  ;;  %v11994_v45 = vadd.f32 %v3748_v36, %v3250_v29  ;;  %4337 = vmatprep.subr.bf16.mxu0 %v4014_v26  ;;  %4530 = vmatprep.subr.bf16.mxu1 %v4016_v35  ;;  %v16986_v1 = vmax.f32 %v11867_v57, 0.0  ;;  %v17002_v26 = vld [vmem:[#allocation144_spill] sm:$0xff]  ;;  %v9477_v54 = vld [vmem:[%s16148_s14 + $0x70] sm:$0xff] }
 0x3e0   : > { %v3557_v39 = vpop.f32.mrf.mxu0  ;;  %v3750_v23 = vpop.f32.mrf.mxu1  ;;  %4338 = vmatpush1.bf16.msra.mxu0 %v4013_v60  ;;  %4531 = vmatpush1.bf16.msra.mxu1 %v4015_v14  ;;  %v3862_v62 = vadd.f32 %v11829_v17, %v16990_v52  ;;  %v3868_v57 = vadd.f32 %v11863_v16, %v16991_v12  ;;  %v3864_v55 = vadd.f32 %v11831_v53, %v16994_v48  ;;  %v9476_v16 = vld [vmem:[%s16148_s14 + $0x78] sm:$0xff]  ;;  %v3258_v42 = vmax.f32 %v3117_v37, 0.0  ;;  %v9478_v37 = vld [vmem:[%s16148_s14 + $0x60] sm:$0xff]  ;;  %v9479_v12 = vld [vmem:[%s16148_s14 + $0x68] sm:$0xff] }
 0x3e1   : > { %16981 = vst [vmem:[#allocation113_spill] sm:$0xff] %v11992_v40  ;;  %16982 = vst [vmem:[#allocation72_spill] sm:$0xff] %v11994_v45  ;;  %v3866_v25 = vadd.f32 %v11861_v0, %v16986_v1  ;;  %v12006_v9 = vadd.f32 %v3557_v39, %v3251_v28  ;;  %v12008_v29 = vadd.f32 %v3750_v23, %v3253_v50  ;;  %4339 = vmatprep.subr.bf16.mxu0 %v4010_v13  ;;  %v16997_v14 = vld [vmem:[#allocation118_spill] sm:$0xff]  ;;  %v17013_v23 = vld [vmem:[#allocation43_spill] sm:$0xff] }
 0x3e2   : > { %4532 = vmatprep.subr.bf16.mxu1 %v4012_v41  ;;  %v12018_v7 = vpop.f32.mrf.mxu0  ;;  %v12020_v0 = vpop.f32.mrf.mxu1  ;;  %4110 = vperm.xlu1 %9054, %v9476_v16   ;;  %v4008_v47 = vpack.c.bf16 %v3872_v20, %v3868_v57  ;;  %v16995_v53 = vpack.c.bf16 %v11947_v5, %v11943_v46  ;;  %v16996_v60 = vpack.c.bf16 %v11949_v61, %v11945_v49  ;;  %v16998_v28 = vmax.f32 %v16997_v14, 0.0  ;;  %v17005_v5 = vld [vmem:[#allocation42_spill] sm:$0xff]  ;;  %v17007_v61 = vld [vmem:[#allocation59_spill] sm:$0xff]  ;;  %v17011_v20 = vld [vmem:[#allocation116_spill] sm:$0xff] }
 0x3e3   : > { %16987 = vst [vmem:[#allocation106_spill] sm:$0xff] %v12006_v9  ;;  %16988 = vst [vmem:[#allocation109_spill] sm:$0xff] %v12008_v29  ;;  %v4006_v19 = vpack.c.bf16 %v3870_v11, %v3866_v25  ;;  %v17001_v58 = vmax.f32 %v17000_v51, 0.0  ;;  %v3261_v46 = vmax.f32 %v3119_v31, 0.0  ;;  %v2932_v24 = vadd.f32 %v17006_v2, %v17005_v5  ;;  %4106 = vperm.xlu0 %9053, %v9477_v54   ;;  %v17020_v57 = vld [vmem:[#allocation119_spill] sm:$0xff]  ;;  %v17026_v14 = vld [vmem:[#allocation148_spill] sm:$0xff] }
 0x3e4   : > { %16992 = vst [vmem:[#allocation111_spill] sm:$0xff] %v12018_v7  ;;  %16993 = vst [vmem:[#allocation108_spill] sm:$0xff] %v12020_v0  ;;  %v3563_v10 = vpop.f32.mrf.mxu0  ;;  %v3756_v44 = vpop.f32.mrf.mxu1  ;;  %4340 = vmatpush1.bf16.msra.mxu0 %v16995_v53  ;;  %4533 = vmatpush1.bf16.msra.mxu1 %v16996_v60  ;;  %v3858_v18 = vadd.f32 %v16999_v15, %v16998_v28  ;;  %v3125_v49 = vadd.f32 %v17007_v61, %v17005_v5  ;;  %v17024_v53 = vld [vmem:[#allocation145_spill] sm:$0xff]  ;;  %v17027_v28 = vld [vmem:[#allocation146_spill] sm:$0xff] }
 0x3e5   : > { %v3860_v35 = vadd.f32 %v17002_v26, %v17001_v58  ;;  %v12045_v8 = vadd.f32 %v3563_v10, %v3255_v63  ;;  %v12047_v30 = vadd.f32 %v3756_v44, %v3257_v33  ;;  %4341 = vmatprep.subr.bf16.mxu0 %v4006_v19  ;;  %4534 = vmatprep.subr.bf16.mxu1 %v4008_v47  ;;  %v17014_v63 = vld [vmem:[#allocation114_spill] sm:$0xff]  ;;  %v3263_v56 = vmax.f32 %v2932_v24, 0.0  ;;  %v17023_v44 = vld [vmem:[#allocation147_spill] sm:$0xff]  ;;  %v17032_v26 = vld [vmem:[#allocation137_spill] sm:$0xff] }
 0x3e6   : > { %v3565_v11 = vpop.f32.mrf.mxu0  ;;  %v3758_v13 = vpop.f32.mrf.mxu1  ;;  %v4002_v36 = vpack.c.bf16 %v3862_v62, %v3858_v18  ;;  %4098 = vperm.xlu1 %9054, %v9478_v37   ;;  %v17012_v39 = vpack.c.bf16 %v17010_v21, %v17011_v20  ;;  %v17015_v1 = vpack.c.bf16 %v17013_v23, %v17014_v63  ;;  %v3265_v31 = vmax.f32 %v3125_v49, 0.0  ;;  %v17031_v58 = vld [vmem:[#allocation139_spill] sm:$0xff]  ;;  %v9481_v49 = vld [vmem:[%s16148_s14 + $0x58] sm:$0xff]  ;;  %v17042_v21 = vld [vmem:[#allocation136_spill] sm:$0xff] }
 0x3e7   : > { %17003 = vst [vmem:[#allocation107_spill] sm:$0xff] %v12045_v8  ;;  %17004 = vst [vmem:[#allocation104_spill] sm:$0xff] %v12047_v30  ;;  %v4004_v50 = vpack.c.bf16 %v3864_v55, %v3860_v35  ;;  %v12056_v41 = vadd.f32 %v3565_v11, %v3256_v43  ;;  %v12058_v6 = vadd.f32 %v3758_v13, %v3258_v42  ;;  %4102 = vperm.xlu0 %9053, %v9479_v12   ;;  %v17022_v55 = vld [vmem:[#allocation71_spill] sm:$0xff]  ;;  %v9480_v42 = vld [vmem:[%s16148_s14 + $0x50] sm:$0xff] }
 0x3e8   : > { %v3567_v27 = vpop.f32.mrf.mxu0  ;;  %v3760_v59 = vpop.f32.mrf.mxu1  ;;  %4342 = vmatpush1.bf16.msra.mxu0 %v17012_v39  ;;  %4535 = vmatpush1.bf16.msra.mxu1 %v17015_v1  ;;  %v2936_v48 = vadd.f32 %v17021_v34, %v17020_v57  ;;  %v3129_v19 = vadd.f32 %v17022_v55, %v17020_v57  ;;  %v17025_v60 = vpack.c.bf16 %v17023_v44, %v17024_v53  ;;  %v9482_v54 = vld [vmem:[%s16148_s14 + $0x40] sm:$0xff]  ;;  %v17043_v20 = vld [vmem:[#allocation134_spill] sm:$0xff]  ;;  %v17047_v1 = vld [vmem:[#allocation129_spill] sm:$0xff] }
 0x3e9   : > { %17008 = vst [vmem:[#allocation87_spill] sm:$0xff] %v12056_v41  ;;  %17009 = vst [vmem:[#allocation102_spill] sm:$0xff] %v12058_v6  ;;  %v12069_v25 = vadd.f32 %v3567_v27, %v3259_v22  ;;  %v12071_v33 = vadd.f32 %v3760_v59, %v3261_v46  ;;  %4343 = vmatprep.subr.bf16.mxu0 %v4002_v36  ;;  %4536 = vmatprep.subr.bf16.mxu1 %v4004_v50  ;;  %v17034_v22 = vld [vmem:[#allocation140_spill] sm:$0xff]  ;;  %v17035_v46 = vld [vmem:[#allocation138_spill] sm:$0xff] }
 0x3ea   : > { %v12073_v52 = vpop.f32.mrf.mxu0  ;;  %v12075_v62 = vpop.f32.mrf.mxu1  ;;  %4090 = vperm.xlu1 %9054, %v9480_v42   ;;  %v17028_v15 = vpack.c.bf16 %v17026_v14, %v17027_v28  ;;  %v17033_v35 = vpack.c.bf16 %v17031_v58, %v17032_v26  ;;  %v17036_v2 = vpack.c.bf16 %v17034_v22, %v17035_v46  ;;  %v3267_v11 = vmax.f32 %v2936_v48, 0.0  ;;  %v17039_v37 = vld [vmem:[#allocation135_spill] sm:$0xff]  ;;  %v17040_v27 = vld [vmem:[#allocation133_spill] sm:$0xff]  ;;  %v17050_v12 = vld [vmem:[#allocation130_spill] sm:$0xff] }
 0x3eb   : > { %17016 = vst [vmem:[#allocation105_spill] sm:$0xff] %v12069_v25  ;;  %17017 = vst [vmem:[#allocation103_spill] sm:$0xff] %v12071_v33  ;;  %4094 = vperm.xlu0 %9053, %v9481_v49   ;;  %v3269_v13 = vmax.f32 %v3129_v19, 0.0  ;;  %v17041_v59 = vpack.c.bf16 %v17039_v37, %v17040_v27  ;;  %v17044_v39 = vpack.c.bf16 %v17042_v21, %v17043_v20  ;;  %v17051_v34 = vld [vmem:[#allocation128_spill] sm:$0xff]  ;;  %v17053_v55 = vld [vmem:[#allocation142_spill] sm:$0xff] }
 0x3ec   : > { %17018 = vst [vmem:[#allocation100_spill] sm:$0xff] %v12073_v52  ;;  %17019 = vst [vmem:[#allocation67_spill] sm:$0xff] %v12075_v62  ;;  %v3573_v47 = vpop.f32.mrf.mxu0  ;;  %v3766_v10 = vpop.f32.mrf.mxu1  ;;  %4344 = vmatpush1.bf16.msra.mxu0 %v17025_v60  ;;  %4537 = vmatpush1.bf16.msra.mxu1 %v17028_v15  ;;  %v17052_v48 = vpack.c.bf16 %v17050_v12, %v17051_v34  ;;  %v17054_v19 = vld [vmem:[#allocation73_spill] sm:$0xff]  ;;  %v9483_v60 = vld [vmem:[%s16148_s14 + $0x48] sm:$0xff] }
 0x3ed   : > { %v12097_v18 = vadd.f32 %v3573_v47, %v3263_v56  ;;  %v12099_v51 = vadd.f32 %v3766_v10, %v3265_v31  ;;  %4345 = vmatprep.subr.bf16.mxu0 %v17033_v35  ;;  %4538 = vmatprep.subr.bf16.mxu1 %v17036_v2  ;;  %v17048_v56 = vld [vmem:[#allocation127_spill] sm:$0xff]  ;;  %v2942_v42 = vadd.f32 %v17054_v19, %v17053_v55  ;;  %v17055_v47 = vld [vmem:[#allocation76_spill] sm:$0xff]  ;;  %v17060_v58 = vld [vmem:[#allocation82_spill] sm:$0xff] }
 0x3ee   : > { %v12107_v24 = vpop.f32.mrf.mxu0  ;;  %v12109_v61 = vpop.f32.mrf.mxu1  ;;  %4082 = vperm.xlu1 %9054, %v9482_v54   ;;  %v17049_v31 = vpack.c.bf16 %v17047_v1, %v17048_v56  ;;  %v3135_v10 = vadd.f32 %v17055_v47, %v17053_v55  ;;  %v17058_v14 = vld [vmem:[#allocation115_spill] sm:$0xff]  ;;  %v9484_v46 = vld [vmem:[%s16148_s14 + $0x30] sm:$0xff]  ;;  %v17067_v27 = vld [vmem:[#allocation18_spill] sm:$0xff] }
 0x3ef   : > { %17029 = vst [vmem:[#allocation96_spill] sm:$0xff] %v12097_v18  ;;  %17030 = vst [vmem:[#allocation46_spill] sm:$0xff] %v12099_v51  ;;  %4086 = vperm.xlu0 %9053, %v9483_v60   ;;  %v17059_v28 = vld [vmem:[#allocation79_spill] sm:$0xff]  ;;  %v3139_v26 = vadd.f32 %v17060_v58, %v17058_v14  ;;  %v3271_v20 = vmax.f32 %v2942_v42, 0.0  ;;  %v17071_v1 = vld [vmem:[#allocation21_spill] sm:$0xff] }
 0x3f0   : > { %17037 = vst [vmem:[#allocation101_spill] sm:$0xff] %v12107_v24  ;;  %17038 = vst [vmem:[#allocation97_spill] sm:$0xff] %v12109_v61  ;;  %v3577_v36 = vpop.f32.mrf.mxu0  ;;  %v3770_v50 = vpop.f32.mrf.mxu1  ;;  %4346 = vmatpush1.bf16.msra.mxu0 %v17041_v59  ;;  %4539 = vmatpush1.bf16.msra.mxu1 %v17044_v39  ;;  %v2946_v15 = vadd.f32 %v17059_v28, %v17058_v14  ;;  %v17068_v59 = vld [vmem:[#allocation25_spill] sm:$0xff]  ;;  %v17070_v39 = vld [vmem:[#allocation14_spill] sm:$0xff] }
 0x3f1   : > { %v12123_v23 = vadd.f32 %v3577_v36, %v3267_v11  ;;  %v12125_v63 = vadd.f32 %v3770_v50, %v3269_v13  ;;  %4347 = vmatprep.subr.bf16.mxu0 %v17049_v31  ;;  %4540 = vmatprep.subr.bf16.mxu1 %v17052_v48  ;;  %v17061_v11 = vld [vmem:[#allocation125_spill] sm:$0xff]  ;;  %v17064_v36 = vld [vmem:[#allocation126_spill] sm:$0xff]  ;;  %v17069_v21 = vpack.c.bf16 %v17067_v27, %v17068_v59  ;;  %v3273_v48 = vmax.f32 %v3135_v10, 0.0  ;;  %v9486_v42 = vld [vmem:[%s16148_s14 + $0x20] sm:$0xff] }
 0x3f2   : > { %v12137_v44 = vpop.f32.mrf.mxu0  ;;  %v12139_v53 = vpop.f32.mrf.mxu1  ;;  %4074 = vperm.xlu1 %9054, %v9484_v46   ;;  %v17062_v13 = vld [vmem:[#allocation121_spill] sm:$0xff]  ;;  %v17065_v50 = vld [vmem:[#allocation122_spill] sm:$0xff]  ;;  %v17072_v56 = vpack.c.bf16 %v17070_v39, %v17071_v1  ;;  %v3275_v19 = vmax.f32 %v2946_v15, 0.0  ;;  %v3277_v47 = vmax.f32 %v3139_v26, 0.0  ;;  %v17076_v46 = vld [vmem:[#allocation12_spill] sm:$0xff] }
 0x3f3   : > { %17045 = vst [vmem:[#allocation47_spill] sm:$0xff] %v12123_v23  ;;  %17046 = vst [vmem:[#allocation50_spill] sm:$0xff] %v12125_v63  ;;  %v17063_v54 = vpack.c.bf16 %v17061_v11, %v17062_v13  ;;  %v17066_v37 = vpack.c.bf16 %v17064_v36, %v17065_v50  ;;  %v9485_v34 = vld [vmem:[%s16148_s14 + $0x38] sm:$0xff]  ;;  %v17077_v11 = vld [vmem:[#allocation15_spill] sm:$0xff] }
 0x3f4   : > { %17056 = vst [vmem:[#allocation51_spill] sm:$0xff] %v12137_v44  ;;  %17057 = vst [vmem:[#allocation98_spill] sm:$0xff] %v12139_v53  ;;  %v3583_v2 = vpop.f32.mrf.mxu0  ;;  %v3776_v49 = vpop.f32.mrf.mxu1  ;;  %4078 = vperm.xlu0 %9053, %v9485_v34   ;;  %v17078_v13 = vpack.c.bf16 %v17076_v46, %v17077_v11  ;;  %v17080_v36 = vld [vmem:[#allocation16_spill] sm:$0xff]  ;;  %v17088_v59 = vld [vmem:[#allocation31_spill] sm:$0xff] }
 0x3f5   : > { %4348 = vmatpush1.bf16.msra.mxu0 %v17063_v54  ;;  %4541 = vmatpush1.bf16.msra.mxu1 %v17066_v37  ;;  %v12177_v60 = vadd.f32 %v3583_v2, %v3271_v20  ;;  %v17079_v54 = vld [vmem:[#allocation22_spill] sm:$0xff]  ;;  %v12185_v10 = vadd.f32 %v3776_v49, %v3273_v48  ;;  %v17085_v37 = vld [vmem:[#allocation8_spill] sm:$0xff]  ;;  %v17092_v1 = vld [vmem:[#allocation81_spill] sm:$0xff] }
 0x3f6   : > { %4349 = vmatprep.subr.bf16.mxu0 %v17069_v21  ;;  %4542 = vmatprep.subr.bf16.mxu1 %v17072_v56  ;;  %v12167_v31 = vpop.f32.mrf.mxu0  ;;  %v12169_v12 = vpop.f32.mrf.mxu1  ;;  %v17081_v50 = vpack.c.bf16 %v17079_v54, %v17080_v36  ;;  %v17086_v27 = vld [vmem:[#allocation20_spill] sm:$0xff]  ;;  %v17089_v21 = vld [vmem:[#allocation23_spill] sm:$0xff]  ;;  %v9488_v36 = vld [vmem:[%s16148_s14 + $0x10] sm:$0xff] }
 0x3f7   : > { %17073 = vst [vmem:[#allocation94_spill] sm:$0xff] %v12167_v31  ;;  %17074 = vst [vmem:[#allocation99_spill] sm:$0xff] %v12169_v12  ;;  %4066 = vperm.xlu1 %9054, %v9486_v42   ;;  %v17087_v2 = vpack.c.bf16 %v17085_v37, %v17086_v27  ;;  %v17090_v20 = vpack.c.bf16 %v17088_v59, %v17089_v21  ;;  %v17091_v39 = vld [vmem:[#allocation132_spill] sm:$0xff]  ;;  %v17100_v21 = vld [vmem:[#allocation30_spill] sm:$0xff] }
 0x3f8   : > { %17075 = vst [vmem:[#allocation88_spill] sm:$0xff] %v12177_v60  ;;  %v3587_v28 = vpop.f32.mrf.mxu0  ;;  %v3780_v58 = vpop.f32.mrf.mxu1  ;;  %17082 = vst [vmem:[#allocation93_spill] sm:$0xff] %v12185_v10  ;;  %v2952_v56 = vadd.f32 %v17092_v1, %v17091_v39  ;;  %v17093_v34 = vld [vmem:[#allocation84_spill] sm:$0xff]  ;;  %v9498_v40 = vld [vmem:[%s16148_s14 + $0xc0] sm:$0xff] }
 0x3f9   : > { %4350 = vmatpush1.bf16.msra.mxu0 %v17078_v13  ;;  %4543 = vmatpush1.bf16.msra.mxu1 %v17081_v50  ;;  %v12187_v15 = vadd.f32 %v3587_v28, %v3275_v19  ;;  %v12189_v26 = vadd.f32 %v3780_v58, %v3277_v47  ;;  %v3145_v42 = vadd.f32 %v17093_v34, %v17091_v39  ;;  %v9487_v19 = vld [vmem:[%s16148_s14 + $0x28] sm:$0xff]  ;;  %v17094_v47 = vld [vmem:[#allocation141_spill] sm:$0xff]  ;;  %v17122_v63 = vld [vmem:[#allocation39_spill] sm:$0xff] }
 0x3fa   : > { %4351 = vmatprep.subr.bf16.mxu0 %v17087_v2  ;;  %4544 = vmatprep.subr.bf16.mxu1 %v17090_v20  ;;  %v12201_v49 = vpop.f32.mrf.mxu0  ;;  %v12203_v48 = vpop.f32.mrf.mxu1  ;;  %v17095_v28 = vld [vmem:[#allocation69_spill] sm:$0xff]  ;;  %v17096_v46 = vld [vmem:[#allocation64_spill] sm:$0xff]  ;;  %v17101_v20 = vld [vmem:[#allocation19_spill] sm:$0xff] }
 0x3fb   : > { %17083 = vst [vmem:[#allocation89_spill] sm:$0xff] %v12187_v15  ;;  %17084 = vst [vmem:[#allocation90_spill] sm:$0xff] %v12189_v26  ;;  %4070 = vperm.xlu0 %9053, %v9487_v19   ;;  %v2956_v58 = vadd.f32 %v17095_v28, %v17094_v47  ;;  %v3149_v11 = vadd.f32 %v17096_v46, %v17094_v47  ;;  %4058 = vperm.xlu1 %9054, %v9488_v36   ;;  %v17097_v27 = vld [vmem:[#allocation24_spill] sm:$0xff]  ;;  %v17098_v2 = vld [vmem:[#allocation29_spill] sm:$0xff]  ;;  %v3279_v46 = vmax.f32 %v2952_v56, 0.0 }
 0x3fc   : > { %v3593_v50 = vpop.f32.mrf.mxu0  ;;  %v3786_v37 = vpop.f32.mrf.mxu1  ;;  %v17099_v59 = vpack.c.bf16 %v17097_v27, %v17098_v2  ;;  %v17102_v1 = vpack.c.bf16 %v17100_v21, %v17101_v20  ;;  %v9489_v28 = vld [vmem:[%s16148_s14 + $0x18] sm:$0xff]  ;;  %v3281_v36 = vmax.f32 %v3145_v42, 0.0  ;;  %v9490_v27 = vld [vmem:[%s16148_s14] sm:$0xff]  ;;  %v17108_v56 = vld [vmem:[#allocation61_spill] sm:$0xff] }
 0x3fd   : > { %v3283_v17 = vmax.f32 %v2956_v58, 0.0  ;;  %v3285_v38 = vmax.f32 %v3149_v11, 0.0  ;;  %v12235_v21 = vadd.f32 %v3593_v50, %v3279_v46  ;;  %v17109_v58 = vld [vmem:[#allocation56_spill] sm:$0xff]  ;;  %v17125_v0 = vld [vmem:[#allocation9_spill] sm:$0xff]  ;;  %v17126_v7 = vld [vmem:[#allocation10_spill] sm:$0xff] }
 0x3fe   : > { %4352 = vmatpush1.bf16.msra.mxu0 %v17099_v59  ;;  %4545 = vmatpush1.bf16.msra.mxu1 %v17102_v1  ;;  %v12225_v34 = vpop.f32.mrf.mxu0  ;;  %v12227_v19 = vpop.f32.mrf.mxu1  ;;  %v12237_v20 = vadd.f32 %v3786_v37, %v3281_v36  ;;  %v9491_v50 = vld [vmem:[%s16148_s14 + $0x8] sm:$0xff]  ;;  %v17110_v37 = vld [vmem:[#allocation131_spill] sm:$0xff]  ;;  %v17133_v26 = vld [vmem:[#allocation33_spill] sm:$0xff] }
 0x3ff   : > { %4062 = vperm.xlu0 %9053, %v9489_v28   ;;  %4050 = vperm.xlu1 %9054, %v9490_v27   ;;  %17103 = vst [vmem:[#allocation86_spill] sm:$0xff] %v12235_v21  ;;  %v17107_v28 = vld [vmem:[#allocation124_spill] sm:$0xff]  ;;  %v9494_v27 = vld [vmem:[%s16148_s14 + $0xe0] sm:$0xff] }
 0x400   : > { %v3597_v2 = vpop.f32.mrf.mxu0  ;;  %v3790_v59 = vpop.f32.mrf.mxu1  ;;  %17104 = vst [vmem:[#allocation91_spill] sm:$0xff] %v12237_v20  ;;  %v2962_v42 = vadd.f32 %v17108_v56, %v17107_v28  ;;  %v3155_v11 = vadd.f32 %v17109_v58, %v17107_v28  ;;  %v17134_v60 = vld [vmem:[#allocation28_spill] sm:$0xff] }
 0x401   : > { %v12239_v1 = vadd.f32 %v3597_v2, %v3283_v17  ;;  %v12241_v43 = vadd.f32 %v3790_v59, %v3285_v38  ;;  %v17111_v17 = vld [vmem:[#allocation53_spill] sm:$0xff]  ;;  %v17112_v38 = vld [vmem:[#allocation48_spill] sm:$0xff] }
 0x402   : > { %v12247_v16 = vpop.f32.mrf.mxu0  ;;  %v12249_v22 = vpop.f32.mrf.mxu1  ;;  %v2966_v46 = vadd.f32 %v17111_v17, %v17110_v37  ;;  %v3159_v36 = vadd.f32 %v17112_v38, %v17110_v37  ;;  %v9492_v59 = vld [vmem:[%s16148_s14 + $0xf0] sm:$0xff]  ;;  %v9493_v17 = vld [vmem:[%s16148_s14 + $0xf8] sm:$0xff]  ;;  %v3287_v38 = vmax.f32 %v2962_v42, 0.0  ;;  %v3289_v54 = vmax.f32 %v3155_v11, 0.0 }
 0x403   : > { %17105 = vst [vmem:[#allocation118_spill] sm:$0xff] %v12239_v1  ;;  %17106 = vst [vmem:[#allocation143_spill] sm:$0xff] %v12241_v43  ;;  %4054 = vperm.xlu0 %9053, %v9491_v50   ;;  %4170 = vperm.xlu1 %9054, %v9492_v59   ;;  %v17116_v42 = vld [vmem:[#allocation45_spill] sm:$0xff] }
 0x404   : > { %v3603_v56 = vpop.f32.mrf.mxu0  ;;  %v3796_v58 = vpop.f32.mrf.mxu1  ;;  %v3291_v13 = vmax.f32 %v2966_v46, 0.0  ;;  %v3293_v2 = vmax.f32 %v3159_v36, 0.0  ;;  %v17117_v46 = vld [vmem:[#allocation40_spill] sm:$0xff] }
 0x405   : > { %v12275_v29 = vadd.f32 %v3603_v56, %v3287_v38  ;;  %v12277_v4 = vadd.f32 %v3796_v58, %v3289_v54  ;;  %v17118_v54 = vld [vmem:[#allocation123_spill] sm:$0xff] }
 0x406   : > { %v12265_v50 = vpop.f32.mrf.mxu0  ;;  %v12267_v35 = vpop.f32.mrf.mxu1 }
 0x407   : > { %4174 = vperm.xlu0 %9053, %v9493_v17   ;;  %4162 = vperm.xlu1 %9054, %v9494_v27   ;;  %17113 = vst [vmem:[#allocation120_spill] sm:$0xff] %v12277_v4  ;;  %v17115_v17 = vld [vmem:[#allocation13_spill] sm:$0xff]  ;;  %v9495_v27 = vld [vmem:[%s16148_s14 + $0xe8] sm:$0xff] }
 0x408   : > { %v3607_v59 = vpop.f32.mrf.mxu0  ;;  %v3800_v3 = vpop.f32.mrf.mxu1  ;;  %v2972_v11 = vadd.f32 %v17116_v42, %v17115_v17  ;;  %v3165_v36 = vadd.f32 %v17117_v46, %v17115_v17  ;;  %v12321_v18 = vadd.f32 %v17122_v63, %v17115_v17  ;;  %v2982_v63 = vadd.f32 %v17126_v7, %v17125_v0  ;;  %v17135_v7 = vld [vmem:[#allocation57_spill] sm:$0xff] }
 0x409   : > { %v12279_v9 = vadd.f32 %v3607_v59, %v3291_v13  ;;  %v12281_v30 = vadd.f32 %v3800_v3, %v3293_v2  ;;  %v17119_v13 = vld [vmem:[#allocation38_spill] sm:$0xff]  ;;  %v17120_v3 = vld [vmem:[#allocation36_spill] sm:$0xff]  ;;  %v9496_v59 = vld [vmem:[%s16148_s14 + $0xd0] sm:$0xff]  ;;  %v12363_v52 = vadd.f32 %v17135_v7, %v17107_v28 }
 0x40a   : > { %v12287_v33 = vpop.f32.mrf.mxu0  ;;  %v12289_v8 = vpop.f32.mrf.mxu1  ;;  %v2976_v56 = vadd.f32 %v17119_v13, %v17118_v54  ;;  %v3169_v2 = vadd.f32 %v17120_v3, %v17118_v54  ;;  %v9497_v13 = vld [vmem:[%s16148_s14 + $0xd8] sm:$0xff]  ;;  %v3295_v3 = vmax.f32 %v2972_v11, 0.0  ;;  %v3297_v58 = vmax.f32 %v3165_v36, 0.0 }
 0x40b   : > { %17114 = vst [vmem:[#allocation144_spill] sm:$0xff] %v12281_v30  ;;  %4166 = vperm.xlu0 %9053, %v9495_v27   ;;  %4154 = vperm.xlu1 %9054, %v9496_v59   ;;  %v17121_v59 = vld [vmem:[#allocation41_spill] sm:$0xff]  ;;  %v9501_v7 = vld [vmem:[%s16148_s14 + $0xb8] sm:$0xff] }
 0x40c   : > { %v3613_v42 = vpop.f32.mrf.mxu0  ;;  %v3806_v46 = vpop.f32.mrf.mxu1  ;;  %v3299_v45 = vmax.f32 %v2976_v56, 0.0  ;;  %v3301_v38 = vmax.f32 %v3169_v2, 0.0  ;;  %v12317_v51 = vadd.f32 %v17121_v59, %v17115_v17  ;;  %v17124_v59 = vld [vmem:[#allocation11_spill] sm:$0xff]  ;;  %v17127_v17 = vld [vmem:[#allocation26_spill] sm:$0xff] }
 0x40d   : > { %v12325_v11 = vadd.f32 %v3806_v46, %v3297_v58  ;;  %v3171_v41 = vadd.f32 %v17124_v59, %v17118_v54  ;;  %v3175_v10 = vadd.f32 %v17127_v17, %v17125_v0  ;;  %v17131_v59 = vld [vmem:[#allocation27_spill] sm:$0xff] }
 0x40e   : > { %v12305_v27 = vpop.f32.mrf.mxu0  ;;  %v12307_v25 = vpop.f32.mrf.mxu1  ;;  %v2984_v17 = vadd.f32 %v17131_v59, %v17125_v0  ;;  %v17137_v59 = vld [vmem:[#allocation49_spill] sm:$0xff] }
 0x40f   : > { %4158 = vperm.xlu0 %9053, %v9497_v13   ;;  %4146 = vperm.xlu1 %9054, %v9498_v40   ;;  %v12323_v13 = vadd.f32 %v3613_v42, %v3295_v3  ;;  %v17123_v40 = vld [vmem:[#allocation37_spill] sm:$0xff]  ;;  %v2968_v24 = vadd.f32 %v17137_v59, %v17110_v37  ;;  %v3302_v20 = vmax.f32 %v3171_v41, 0.0 }
 0x410   : > { %v3617_v23 = vpop.f32.mrf.mxu0  ;;  %v3810_v6 = vpop.f32.mrf.mxu1  ;;  %v2978_v2 = vadd.f32 %v17123_v40, %v17118_v54  ;;  %v9500_v40 = vld [vmem:[%s16148_s14 + $0xb0] sm:$0xff] }
 0x411   : > { %v12327_v36 = vadd.f32 %v3617_v23, %v3299_v45  ;;  %v12329_v56 = vadd.f32 %v3810_v6, %v3301_v38  ;;  %v9499_v45 = vld [vmem:[%s16148_s14 + $0xc8] sm:$0xff]  ;;  %v17128_v6 = vld [vmem:[#allocation17_spill] sm:$0xff]  ;;  %v17130_v38 = vld [vmem:[#allocation35_spill] sm:$0xff] }
 0x412   : > { %v3619_v42 = vpop.f32.mrf.mxu0  ;;  %v3812_v3 = vpop.f32.mrf.mxu1  ;;  %v17129_v23 = vld [vmem:[#allocation32_spill] sm:$0xff]  ;;  %v3179_v46 = vadd.f32 %v17130_v38, %v17128_v6  ;;  %v2988_v38 = vadd.f32 %v17133_v26, %v17128_v6  ;;  %v3181_v54 = vadd.f32 %v17134_v60, %v17128_v6  ;;  %v3296_v26 = vmax.f32 %v12317_v51, 0.0 }
 0x413   : > { %4150 = vperm.xlu0 %9053, %v9499_v45   ;;  %v2986_v58 = vadd.f32 %v17129_v23, %v17128_v6  ;;  %4138 = vperm.xlu1 %9054, %v9500_v40   ;;  %v17132_v45 = vld [vmem:[#allocation34_spill] sm:$0xff]  ;;  %v17136_v40 = vld [vmem:[#allocation52_spill] sm:$0xff]  ;;  %v3298_v60 = vmax.f32 %v12321_v18, 0.0  ;;  %v3300_v6 = vmax.f32 %v2978_v2, 0.0  ;;  %v3304_v51 = vmax.f32 %v2984_v17, 0.0 }
 0x414   : > { %v3177_v23 = vadd.f32 %v17132_v45, %v17125_v0  ;;  %v3623_v15 = vpop.f32.mrf.mxu0  ;;  %v3816_v62 = vpop.f32.mrf.mxu1  ;;  %v12367_v61 = vadd.f32 %v17136_v40, %v17107_v28  ;;  %v17138_v0 = vld [vmem:[#allocation44_spill] sm:$0xff]  ;;  %v3303_v28 = vmax.f32 %v2982_v63, 0.0  ;;  %v3305_v40 = vmax.f32 %v3175_v10, 0.0 }
 0x415   : > { %v3161_v45 = vadd.f32 %v17138_v0, %v17110_v37  ;;  %v3307_v1 = vmax.f32 %v2986_v58, 0.0  ;;  %v3309_v59 = vmax.f32 %v3179_v46, 0.0  ;;  %v9502_v37 = vld [vmem:[%s16148_s14 + $0xa0] sm:$0xff]  ;;  %v3308_v2 = vmax.f32 %v2988_v38, 0.0 }
 0x416   : > { %v3625_v43 = vpop.f32.mrf.mxu0  ;;  %v3818_v21 = vpop.f32.mrf.mxu1  ;;  %v3306_v18 = vmax.f32 %v3177_v23, 0.0  ;;  %v3310_v41 = vmax.f32 %v3181_v54, 0.0  ;;  %v3945_v44 = vadd.f32 %v3623_v15, %v3303_v28  ;;  %v3947_v12 = vadd.f32 %v3816_v62, %v3305_v40  ;;  %v9504_v62 = vld [vmem:[%s16148_s14 + $0x90] sm:$0xff]  ;;  %v17140_v15 = vld [vmem:[#allocation60_spill] sm:$0xff] }
 0x417   : > { %4142 = vperm.xlu0 %9053, %v9501_v7   ;;  %4130 = vperm.xlu1 %9054, %v9502_v37   ;;  %v3942_v7 = vadd.f32 %v3619_v42, %v3300_v6  ;;  %v3944_v63 = vadd.f32 %v3812_v3, %v3302_v20  ;;  %v3946_v10 = vadd.f32 %v3625_v43, %v3304_v51  ;;  %v9503_v37 = vld [vmem:[%s16148_s14 + $0xa8] sm:$0xff]  ;;  %v3292_v20 = vmax.f32 %v2968_v24, 0.0  ;;  %v9505_v24 = vld [vmem:[%s16148_s14 + $0x98] sm:$0xff] }
 0x418   : > { %v3627_v0 = vpop.f32.mrf.mxu0  ;;  %v3820_v53 = vpop.f32.mrf.mxu1  ;;  %v3948_v58 = vadd.f32 %v3818_v21, %v3306_v18  ;;  %v3151_v21 = vadd.f32 %v17140_v15, %v17094_v47  ;;  %v3938_v42 = vadd.f32 %v12305_v27, %v3296_v26  ;;  %v17142_v3 = vld [vmem:[#allocation68_spill] sm:$0xff]  ;;  %v3288_v28 = vmax.f32 %v12363_v52, 0.0  ;;  %v17143_v26 = vld [vmem:[#allocation83_spill] sm:$0xff] }
 0x419   : > { %v3949_v31 = vadd.f32 %v3627_v0, %v3307_v1  ;;  %v3951_v4 = vadd.f32 %v3820_v53, %v3309_v59  ;;  %v17139_v53 = vld [vmem:[#allocation65_spill] sm:$0xff]  ;;  %v3294_v1 = vmax.f32 %v3161_v45, 0.0  ;;  %v3147_v6 = vadd.f32 %v17142_v3, %v17091_v39  ;;  %v17144_v52 = vld [vmem:[#allocation80_spill] sm:$0xff]  ;;  %v17160_v3 = vld [vmem:[#allocation99_spill] sm:$0xff] }
 0x41a   : > { %v3629_v46 = vpop.f32.mrf.mxu0  ;;  %v3822_v30 = vpop.f32.mrf.mxu1  ;;  %v2958_v43 = vadd.f32 %v17139_v53, %v17094_v47  ;;  %v3934_v40 = vadd.f32 %v12287_v33, %v3292_v20  ;;  %v3290_v47 = vmax.f32 %v12367_v61, 0.0  ;;  %v4042_v27 = vpack.c.bf16 %v3942_v7, %v3938_v42  ;;  %v17151_v53 = vld [vmem:[#allocation63_spill] sm:$0xff] }
 0x41b   : > { %4134 = vperm.xlu0 %9053, %v9503_v37   ;;  %v4045_v17 = vpack.c.bf16 %v3949_v31, %v3945_v44  ;;  %v4047_v23 = vpack.c.bf16 %v3951_v4, %v3947_v12  ;;  %v3950_v54 = vadd.f32 %v3629_v46, %v3308_v2  ;;  %v3952_v38 = vadd.f32 %v3822_v30, %v3310_v41  ;;  %v17141_v30 = vld [vmem:[#allocation85_spill] sm:$0xff]  ;;  %v17146_v2 = vld [vmem:[#allocation78_spill] sm:$0xff]  ;;  %v17148_v37 = vld [vmem:[#allocation75_spill] sm:$0xff] }
 0x41c   : > { %4122 = vperm.xlu1 %9054, %v9504_v62   ;;  %v3940_v44 = vadd.f32 %v12307_v25, %v3298_v60  ;;  %v2954_v12 = vadd.f32 %v17141_v30, %v17091_v39  ;;  %v3936_v25 = vadd.f32 %v12289_v8, %v3294_v1  ;;  %v2948_v39 = vadd.f32 %v17143_v26, %v17058_v14  ;;  %v17145_v8 = vld [vmem:[#allocation77_spill] sm:$0xff] }
 0x41d   : > { %v4046_v4 = vpack.c.bf16 %v3950_v54, %v3946_v10  ;;  %v4048_v31 = vpack.c.bf16 %v3952_v38, %v3948_v58  ;;  %v3141_v60 = vadd.f32 %v17144_v52, %v17058_v14  ;;  %v3284_v33 = vmax.f32 %v2958_v43, 0.0  ;;  %v9506_v14 = vld [vmem:[%s16148_s14 + $0x80] sm:$0xff] }
 0x41e   : > { %v4044_v45 = vpack.c.bf16 %v3944_v63, %v3940_v44  ;;  %v3286_v59 = vmax.f32 %v3151_v21, 0.0  ;;  %v3930_v51 = vadd.f32 %v12265_v50, %v3288_v28  ;;  %v3932_v61 = vadd.f32 %v12267_v35, %v3290_v47  ;;  %v9507_v50 = vld [vmem:[%s16148_s14 + $0x88] sm:$0xff]  ;;  %v17162_v47 = vld [vmem:[#allocation98_spill] sm:$0xff] }
 0x41f   : > { %4126 = vperm.xlu0 %9053, %v9505_v24   ;;  %4353 = vmatprep.subr.bf16.mxu0 %v4046_v4  ;;  %v2944_v18 = vadd.f32 %v17145_v8, %v17053_v55  ;;  %v3137_v41 = vadd.f32 %v17146_v2, %v17053_v55  ;;  %v3280_v0 = vmax.f32 %v2954_v12, 0.0  ;;  %v3282_v7 = vmax.f32 %v3147_v6, 0.0  ;;  %v17147_v55 = vld [vmem:[#allocation74_spill] sm:$0xff]  ;;  %v17156_v4 = vld [vmem:[#allocation144_spill] sm:$0xff]  ;;  %v17161_v24 = vld [vmem:[#allocation51_spill] sm:$0xff] }
 0x420   : > { %4546 = vmatprep.subr.bf16.mxu1 %v4048_v31  ;;  %4354 = vmatpush2.bf16.msra.mxu0 %v4045_v17  ;;  %v3926_v35 = vadd.f32 %v12247_v16, %v3284_v33  ;;  %v3928_v63 = vadd.f32 %v12249_v22, %v3286_v59  ;;  %v4038_v10 = vpack.c.bf16 %v3934_v40, %v3930_v51  ;;  %v3276_v38 = vmax.f32 %v2948_v39, 0.0  ;;  %v17159_v12 = vld [vmem:[#allocation94_spill] sm:$0xff]  ;;  %v17165_v39 = vld [vmem:[#allocation92_spill] sm:$0xff]  ;;  %v17169_v51 = vld [vmem:[#allocation143_spill] sm:$0xff] }
 0x421   : > { %4547 = vmatpush2.bf16.msra.mxu1 %v4047_v23  ;;  %4355 = vmatprep.subr.bf16.mxu0 %v4042_v27  ;;  %v4040_v58 = vpack.c.bf16 %v3936_v25, %v3932_v61  ;;  %v2938_v46 = vadd.f32 %v17147_v55, %v17020_v57  ;;  %v3131_v17 = vadd.f32 %v17148_v37, %v17020_v57  ;;  %v3278_v16 = vmax.f32 %v3141_v60, 0.0  ;;  %v17152_v57 = vld [vmem:[#allocation66_spill] sm:$0xff]  ;;  %v17163_v27 = vld [vmem:[#allocation112_spill] sm:$0xff]  ;;  %v17170_v61 = vld [vmem:[#allocation91_spill] sm:$0xff] }
 0x422   : > { %4548 = vmatprep.subr.bf16.mxu1 %v4044_v45  ;;  %4114 = vperm.xlu1 %9054, %v9506_v14   ;;  %v17149_v23 = vpack.c.bf16 %v12327_v36, %v12323_v13  ;;  %v17150_v54 = vpack.c.bf16 %v12329_v56, %v12325_v11  ;;  %v3922_v22 = vadd.f32 %v12225_v34, %v3280_v0  ;;  %v3272_v13 = vmax.f32 %v2944_v18, 0.0  ;;  %v17153_v34 = vld [vmem:[#allocation54_spill] sm:$0xff]  ;;  %v17164_v45 = vld [vmem:[#allocation95_spill] sm:$0xff]  ;;  %v17177_v37 = vld [vmem:[#allocation88_spill] sm:$0xff] }
 0x423   : > { %4118 = vperm.xlu0 %9053, %v9507_v50   ;;  %v3924_v62 = vadd.f32 %v12227_v19, %v3282_v7  ;;  %v2934_v43 = vadd.f32 %v17151_v53, %v17005_v5  ;;  %v3127_v15 = vadd.f32 %v17152_v57, %v17005_v5  ;;  %v3274_v36 = vmax.f32 %v3137_v41, 0.0  ;;  %v17154_v19 = vld [vmem:[#allocation55_spill] sm:$0xff]  ;;  %v17157_v5 = vld [vmem:[#allocation120_spill] sm:$0xff]  ;;  %v17166_v60 = vld [vmem:[#allocation118_spill] sm:$0xff] }
 0x424   : > { %4356 = vmatpush2.bf16.msra.mxu0 %v17149_v23  ;;  %v3918_v21 = vadd.f32 %v12201_v49, %v3276_v38  ;;  %v3920_v11 = vadd.f32 %v12203_v48, %v3278_v16  ;;  %v4034_v56 = vpack.c.bf16 %v3926_v35, %v3922_v22  ;;  %v2928_v1 = vadd.f32 %v17153_v34, %v11933_v32  ;;  %v17167_v33 = vld [vmem:[#allocation86_spill] sm:$0xff]  ;;  %v17172_v41 = vld [vmem:[#allocation101_spill] sm:$0xff]  ;;  %v17174_v50 = vld [vmem:[#allocation100_spill] sm:$0xff] }
 0x425   : > { %4549 = vmatpush2.bf16.msra.mxu1 %v17150_v54  ;;  %4357 = vmatprep.subr.bf16.mxu0 %v4038_v10  ;;  %v4036_v20 = vpack.c.bf16 %v3928_v63, %v3924_v62  ;;  %v3121_v42 = vadd.f32 %v17154_v19, %v11933_v32  ;;  %v17155_v44 = vpack.c.bf16 %v12279_v9, %v12275_v29  ;;  %v3268_v30 = vmax.f32 %v2938_v46, 0.0  ;;  %v17173_v7 = vld [vmem:[#allocation97_spill] sm:$0xff]  ;;  %v17175_v63 = vld [vmem:[#allocation67_spill] sm:$0xff]  ;;  %v17179_v23 = vld [vmem:[#allocation90_spill] sm:$0xff] }
 0x426   : > { %4550 = vmatprep.subr.bf16.mxu1 %v4040_v58  ;;  %v17158_v31 = vpack.c.bf16 %v17156_v4, %v17157_v5  ;;  %v3270_v49 = vmax.f32 %v3131_v17, 0.0  ;;  %v3914_v48 = vadd.f32 %v17159_v12, %v3272_v13  ;;  %v3916_v6 = vadd.f32 %v17160_v3, %v3274_v36  ;;  %v17176_v46 = vld [vmem:[#allocation89_spill] sm:$0xff]  ;;  %v17182_v62 = vld [vmem:[#allocation111_spill] sm:$0xff]  ;;  %v17185_v36 = vld [vmem:[#allocation102_spill] sm:$0xff] }
 0x427   : > { %v3264_v28 = vmax.f32 %v2934_v43, 0.0  ;;  %v3266_v40 = vmax.f32 %v3127_v15, 0.0  ;;  %v3910_v32 = vadd.f32 %v17161_v24, %v3268_v30  ;;  %v2918_v26 = vadd.f32 %v17164_v45, %v17163_v27  ;;  %v17180_v54 = vld [vmem:[#allocation93_spill] sm:$0xff]  ;;  %v17183_v43 = vld [vmem:[#allocation108_spill] sm:$0xff]  ;;  %v17184_v15 = vld [vmem:[#allocation87_spill] sm:$0xff] }
 0x428   : > { %4358 = vmatpush2.bf16.msra.mxu0 %v17155_v44  ;;  %v3912_v25 = vadd.f32 %v17162_v47, %v3270_v49  ;;  %v4030_v9 = vpack.c.bf16 %v3918_v21, %v3914_v48  ;;  %v4032_v29 = vpack.c.bf16 %v3920_v11, %v3916_v6  ;;  %v3111_v52 = vadd.f32 %v17165_v39, %v17163_v27  ;;  %v17186_v11 = vld [vmem:[#allocation47_spill] sm:$0xff]  ;;  %v17189_v34 = vld [vmem:[#allocation50_spill] sm:$0xff]  ;;  %v17193_v4 = vld [vmem:[#allocation72_spill] sm:$0xff] }
 0x429   : > { %4551 = vmatpush2.bf16.msra.mxu1 %v17158_v31  ;;  %4359 = vmatprep.subr.bf16.mxu0 %v4034_v56  ;;  %v17168_v59 = vpack.c.bf16 %v17166_v60, %v17167_v33  ;;  %v17171_v8 = vpack.c.bf16 %v17169_v51, %v17170_v61  ;;  %v3260_v18 = vmax.f32 %v2928_v1, 0.0  ;;  %v3262_v2 = vmax.f32 %v3121_v42, 0.0  ;;  %v17187_v56 = vld [vmem:[#allocation96_spill] sm:$0xff]  ;;  %v17190_v1 = vld [vmem:[#allocation46_spill] sm:$0xff]  ;;  %v17192_v42 = vld [vmem:[#allocation113_spill] sm:$0xff] }
 0x42a   : > { %4552 = vmatprep.subr.bf16.mxu1 %v4036_v20  ;;  %v3906_v0 = vadd.f32 %v17172_v41, %v3264_v28  ;;  %v3908_v14 = vadd.f32 %v17173_v7, %v3266_v40  ;;  %v17178_v17 = vpack.c.bf16 %v17176_v46, %v17177_v37  ;;  %v17181_v38 = vpack.c.bf16 %v17179_v23, %v17180_v54  ;;  %v17194_v31 = vld [vmem:[#allocation105_spill] sm:$0xff]  ;;  %v17195_v30 = vld [vmem:[#allocation107_spill] sm:$0xff]  ;;  %v17198_v48 = vld [vmem:[#allocation104_spill] sm:$0xff] }
 0x42b   : > { %v3902_v35 = vadd.f32 %v17174_v50, %v3260_v18  ;;  %v3904_v10 = vadd.f32 %v17175_v63, %v3262_v2  ;;  %v3252_v16 = vmax.f32 %v2918_v26, 0.0  ;;  %v3254_v22 = vmax.f32 %v3111_v52, 0.0  ;;  %v17197_v12 = vld [vmem:[#allocation103_spill] sm:$0xff]  ;;  %v17200_v28 = vld [vmem:[#allocation106_spill] sm:$0xff] }
 0x42c   : > { %4360 = vmatpush2.bf16.msra.mxu0 %v17168_v59  ;;  %v4026_v58 = vpack.c.bf16 %v3910_v32, %v3906_v0  ;;  %v4028_v55 = vpack.c.bf16 %v3912_v25, %v3908_v14  ;;  %v17188_v20 = vpack.c.bf16 %v17186_v11, %v17187_v56  ;;  %v17191_v19 = vpack.c.bf16 %v17189_v34, %v17190_v1  ;;  %v9250_v6 = vld [vmem:[%s16920_s4] ss:$8 sps:$4 sm:$0xff]   ;;  %v17201_v40 = vld [vmem:[#allocation62_spill] sm:$0xff]  ;;  %v17203_v32 = vld [vmem:[#allocation109_spill] sm:$0xff] }
 0x42d   : > { %4553 = vmatpush2.bf16.msra.mxu1 %v17171_v8  ;;  %4361 = vmatprep.subr.bf16.mxu0 %v4030_v9  ;;  %v3894_v53 = vadd.f32 %v17182_v62, %v3252_v16  ;;  %v3896_v57 = vadd.f32 %v17183_v43, %v3254_v22  ;;  %v4022_v13 = vpack.c.bf16 %v3902_v35, %v17184_v15  ;;  %v17204_v47 = vld [vmem:[#allocation110_spill] sm:$0xff]  ;;  %v9510_v45 = vld [vmem:[%s10060_s22 + $0xe0] ss:$16 sps:$4 sm:$0xff]   ;;  %v9512_v39 = vld [vmem:[%s10060_s22 + $0xc4] ss:$16 sps:$4 sm:$0xff]  }
 0x42e   : > { %4554 = vmatprep.subr.bf16.mxu1 %v4032_v29  ;;  %v4024_v21 = vpack.c.bf16 %v3904_v10, %v17185_v36  ;;  %v17196_v49 = vpack.c.bf16 %v17194_v31, %v17195_v30  ;;  %v17199_v3 = vpack.c.bf16 %v17197_v12, %v17198_v48  ;;  %v17202_v24 = vpack.c.bf16 %v17200_v28, %v17201_v40  ;;  %v9255_v9 = vld [vmem:[%s16920_s4 + $0x14] ss:$8 sps:$4 sm:$0xff]   ;;  %v9511_v26 = vld [vmem:[%s10060_s22 + $0xe8] ss:$16 sps:$4 sm:$0xff]   ;;  %v9258_v33 = vld [vmem:[%s16920_s4 + $0x24] ss:$8 sps:$4 sm:$0xff]  }
 0x42f   : > { %v4018_v44 = vpack.c.bf16 %v3894_v53, %v17192_v42  ;;  %v4020_v5 = vpack.c.bf16 %v3896_v57, %v17193_v4  ;;  %v17205_v25 = vpack.c.bf16 %v17203_v32, %v17204_v47  ;;  %v9508_v29 = vld [vmem:[%s10060_s22 + $0xe4] ss:$16 sps:$4 sm:$0xff]   ;;  %v9509_v27 = vld [vmem:[%s10060_s22 + $0xec] ss:$16 sps:$4 sm:$0xff]   ;;  %v9253_v60 = vld [vmem:[%s16920_s4 + $0x10] ss:$8 sps:$4 sm:$0xff]  }
 0x430   : > { %4362 = vmatpush2.bf16.msra.mxu0 %v17178_v17  ;;  %v9513_v52 = vld [vmem:[%s10060_s22 + $0xcc] ss:$16 sps:$4 sm:$0xff]   ;;  %v9514_v59 = vld [vmem:[%s10060_s22 + $0xc0] ss:$16 sps:$4 sm:$0xff]   ;;  %v9515_v51 = vld [vmem:[%s10060_s22 + $0xc8] ss:$16 sps:$4 sm:$0xff]  }
 0x431   : > { %4555 = vmatpush2.bf16.msra.mxu1 %v17181_v38  ;;  %4363 = vmatprep.subr.bf16.mxu0 %v4026_v58  ;;  %v9516_v61 = vld [vmem:[%s10060_s22 + $0xa4] ss:$16 sps:$4 sm:$0xff]   ;;  %v9517_v8 = vld [vmem:[%s10060_s22 + $0xac] ss:$16 sps:$4 sm:$0xff]   ;;  %v9518_v18 = vld [vmem:[%s10060_s22 + $0xa0] ss:$16 sps:$4 sm:$0xff]  }
 0x432   : > { %4556 = vmatprep.subr.bf16.mxu1 %v4028_v55  ;;  %v9519_v2 = vld [vmem:[%s10060_s22 + $0xa8] ss:$16 sps:$4 sm:$0xff]   ;;  %v9520_v41 = vld [vmem:[%s10060_s22 + $0x84] ss:$16 sps:$4 sm:$0xff]   ;;  %v9521_v0 = vld [vmem:[%s10060_s22 + $0x8c] ss:$16 sps:$4 sm:$0xff]  }
 0x433   : > { %v9256_v7 = vld [vmem:[%s16920_s4 + $0x20] ss:$8 sps:$4 sm:$0xff]   ;;  %v9261_v14 = vld [vmem:[%s16920_s4 + $0x34] ss:$8 sps:$4 sm:$0xff]   ;;  %v9259_v17 = vld [vmem:[%s16920_s4 + $0x30] ss:$8 sps:$4 sm:$0xff]  }
 0x434   : > { %4364 = vmatpush2.bf16.msra.mxu0 %v17188_v20  ;;  %v9522_v50 = vld [vmem:[%s10060_s22 + $0x80] ss:$16 sps:$4 sm:$0xff]   ;;  %v9523_v35 = vld [vmem:[%s10060_s22 + $0x88] ss:$16 sps:$4 sm:$0xff]   ;;  %v9524_v63 = vld [vmem:[%s10060_s22 + $0x64] ss:$16 sps:$4 sm:$0xff]  }
 0x435   : > { %4557 = vmatpush2.bf16.msra.mxu1 %v17191_v19  ;;  %4365 = vmatprep.subr.bf16.mxu0 %v4022_v13  ;;  %v9525_v10 = vld [vmem:[%s10060_s22 + $0x6c] ss:$16 sps:$4 sm:$0xff]   ;;  %v9526_v58 = vld [vmem:[%s10060_s22 + $0x60] ss:$16 sps:$4 sm:$0xff]   ;;  %v9527_v55 = vld [vmem:[%s10060_s22 + $0x68] ss:$16 sps:$4 sm:$0xff]  }
 0x436   : > { %4558 = vmatprep.subr.bf16.mxu1 %v4024_v21  ;;  %v9528_v46 = vld [vmem:[%s10060_s22 + $0x44] ss:$16 sps:$4 sm:$0xff]   ;;  %v9529_v37 = vld [vmem:[%s10060_s22 + $0x4c] ss:$16 sps:$4 sm:$0xff]   ;;  %v9530_v54 = vld [vmem:[%s10060_s22 + $0x40] ss:$16 sps:$4 sm:$0xff]  }
 0x437   : > { %v9264_v23 = vld [vmem:[%s16920_s4 + $0x44] ss:$8 sps:$4 sm:$0xff]   ;;  %v9531_v38 = vld [vmem:[%s10060_s22 + $0x48] ss:$16 sps:$4 sm:$0xff]   ;;  %v9534_v62 = vld [vmem:[%s10060_s22 + $0x20] ss:$16 sps:$4 sm:$0xff]  }
 0x438   : > { %4366 = vmatpush2.bf16.msra.mxu0 %v17196_v49  ;;  %v9532_v16 = vld [vmem:[%s10060_s22 + $0x24] ss:$16 sps:$4 sm:$0xff]   ;;  %v9533_v22 = vld [vmem:[%s10060_s22 + $0x2c] ss:$16 sps:$4 sm:$0xff]   ;;  %v9535_v53 = vld [vmem:[%s10060_s22 + $0x28] ss:$16 sps:$4 sm:$0xff]  }
 0x439   : > { %4559 = vmatpush2.bf16.msra.mxu1 %v17199_v3  ;;  %4367 = vmatprep.subr.bf16.mxu0 %v4018_v44  ;;  %v9536_v43 = vld [vmem:[%s10060_s22 + $0x4] ss:$16 sps:$4 sm:$0xff]   ;;  %v9537_v57 = vld [vmem:[%s10060_s22 + $0xc] ss:$16 sps:$4 sm:$0xff]   ;;  %v9262_v15 = vld [vmem:[%s16920_s4 + $0x40] ss:$8 sps:$4 sm:$0xff]  }
 0x43a   : > { %4560 = vmatprep.subr.bf16.mxu1 %v4020_v5  ;;  %v9267_v13 = vld [vmem:[%s16920_s4 + $0x54] ss:$8 sps:$4 sm:$0xff]   ;;  %v9538_v36 = vld [vmem:[%s10060_s22] ss:$16 sps:$4 sm:$0xff]   ;;  %v9539_v21 = vld [vmem:[%s10060_s22 + $0x8] ss:$16 sps:$4 sm:$0xff]  }
 0x43b   : > { %v9540_v11 = vld [vmem:[%s10029_s0 + $0xe4] ss:$16 sps:$4 sm:$0xff]   ;;  %v9541_v56 = vld [vmem:[%s10029_s0 + $0xec] ss:$16 sps:$4 sm:$0xff]   ;;  %v9265_v20 = vld [vmem:[%s16920_s4 + $0x50] ss:$8 sps:$4 sm:$0xff]  }
 0x43c   : > { %4368 = vmatpush2.bf16.msra.mxu0 %v17202_v24  ;;  %v9270_v34 = vld [vmem:[%s16920_s4 + $0x64] ss:$8 sps:$4 sm:$0xff]   ;;  %v9268_v1 = vld [vmem:[%s16920_s4 + $0x60] ss:$8 sps:$4 sm:$0xff]   ;;  %v9273_v19 = vld [vmem:[%s16920_s4 + $0x74] ss:$8 sps:$4 sm:$0xff]  }
 0x43d   : > { %4561 = vmatpush2.bf16.msra.mxu1 %v17205_v25  ;;  %4979 = vmatprep.subr.bf16.mxu0 %v9508_v29  ;;  %v9271_v42 = vld [vmem:[%s16920_s4 + $0x70] ss:$8 sps:$4 sm:$0xff]   ;;  %v9276_v44 = vld [vmem:[%s16920_s4 + $0x84] ss:$8 sps:$4 sm:$0xff]   ;;  %v9274_v4 = vld [vmem:[%s16920_s4 + $0x80] ss:$8 sps:$4 sm:$0xff]  }
 0x43e   : > { %5172 = vmatprep.subr.bf16.mxu1 %v9509_v27  ;;  %v9279_v5 = vld [vmem:[%s16920_s4 + $0x94] ss:$8 sps:$4 sm:$0xff]   ;;  %v9277_v31 = vld [vmem:[%s16920_s4 + $0x90] ss:$8 sps:$4 sm:$0xff]   ;;  %v9282_v30 = vld [vmem:[%s16920_s4 + $0xa4] ss:$8 sps:$4 sm:$0xff]  }
 0x43f   : > { %4370 = vmatmul.mubr.bf16.vlgmr.msra.gmra.mxu0 %v9250_v6  ;;  %v9280_v49 = vld [vmem:[%s16920_s4 + $0xa0] ss:$8 sps:$4 sm:$0xff]   ;;  %v9285_v12 = vld [vmem:[%s16920_s4 + $0xb4] ss:$8 sps:$4 sm:$0xff]   ;;  %v9283_v48 = vld [vmem:[%s16920_s4 + $0xb0] ss:$8 sps:$4 sm:$0xff]  }
 0x440   : > { %4563 = vmatmul.mubr.bf16.vlgmr.msra.gmra.mxu1 %v9250_v6  ;;  %4379 = vmatprep.mubr.bf16.mxu0 %v9255_v9  ;;  %v9288_v3 = vld [vmem:[%s16920_s4 + $0xc4] ss:$8 sps:$4 sm:$0xff]   ;;  %v9286_v6 = vld [vmem:[%s16920_s4 + $0xc0] ss:$8 sps:$4 sm:$0xff]   ;;  %v9291_v28 = vld [vmem:[%s16920_s4 + $0xd4] ss:$8 sps:$4 sm:$0xff]  }
 0x441   : > { %4572 = vmatprep.mubr.bf16.mxu1 %v9255_v9  ;;  %4980 = vmatpush1.bf16.msra.mxu0 %v9510_v45  ;;  %v9289_v40 = vld [vmem:[%s16920_s4 + $0xd0] ss:$8 sps:$4 sm:$0xff]   ;;  %v9294_v24 = vld [vmem:[%s16920_s4 + $0xe4] ss:$8 sps:$4 sm:$0xff]   ;;  %v9292_v32 = vld [vmem:[%s16920_s4 + $0xe0] ss:$8 sps:$4 sm:$0xff]  }
 0x442   : > { %5173 = vmatpush1.bf16.msra.mxu1 %v9511_v26  ;;  %4981 = vmatprep.subr.bf16.mxu0 %v9512_v39  ;;  %v9297_v47 = vld [vmem:[%s16920_s4 + $0xf4] ss:$8 sps:$4 sm:$0xff]   ;;  %v9295_v25 = vld [vmem:[%s16920_s4 + $0xf0] ss:$8 sps:$4 sm:$0xff]   ;;  %v17206_v9 = vmov 0   ;;  %v9298_v29 = vld [vmem:[%s16144_s10] sm:$0xff]  }
 0x443   : > { %5174 = vmatprep.subr.bf16.mxu1 %v9513_v52  ;;  %v9542_v27 = vld [vmem:[%s10029_s0 + $0xe0] ss:$16 sps:$4 sm:$0xff]   ;;  %v9543_v45 = vld [vmem:[%s10029_s0 + $0xe8] ss:$16 sps:$4 sm:$0xff]   ;;  %v9544_v26 = vld [vmem:[%s10029_s0 + $0xc4] ss:$16 sps:$4 sm:$0xff]  }
 0x444   : > { %v9545_v39 = vld [vmem:[%s10029_s0 + $0xcc] ss:$16 sps:$4 sm:$0xff]   ;;  %s9672_s4 = sshll.u32 %s9735_s3, 4  ;;  %s9673_s4 = int_to_ptr.vmem [resolvable:$false] %s9672_s4 }
 0x445   : > { %4982 = vmatpush1.bf16.msra.mxu0 %v9514_v59  ;;  %v9299_v52 = vld [vmem:[%s16144_s10 + $0x8] sm:$0xff]   ;;  %v9548_v59 = vld [vmem:[%s10029_s0 + $0xa4] ss:$16 sps:$4 sm:$0xff]   ;;  %s9674_s27 = scalar_lea.vmem %s9673_s4, 128 }
 0x446   : > { %5175 = vmatpush1.bf16.msra.mxu1 %v9515_v51  ;;  %4983 = vmatprep.subr.bf16.mxu0 %v9516_v61  ;;  %v9549_v51 = vld [vmem:[%s10029_s0 + $0xac] ss:$16 sps:$4 sm:$0xff]   ;;  %v9550_v61 = vld [vmem:[%s10029_s0 + $0xa0] ss:$16 sps:$4 sm:$0xff]  }
 0x447   : > { %5176 = vmatprep.subr.bf16.mxu1 %v9517_v8  ;;  %4380 = vmatmul.mubr.bf16.gmra.mxu0 %v9253_v60  ;;  %v9551_v8 = vld [vmem:[%s10029_s0 + $0xa8] ss:$16 sps:$4 sm:$0xff]  }
 0x448   : > { %4573 = vmatmul.mubr.bf16.gmra.mxu1 %v9253_v60  ;;  %4389 = vmatprep.mubr.bf16.mxu0 %v9258_v33  ;;  %v9546_v60 = vld [vmem:[%s10029_s0 + $0xc0] ss:$16 sps:$4 sm:$0xff]  }
 0x449   : > { %4582 = vmatprep.mubr.bf16.mxu1 %v9258_v33  ;;  %4984 = vmatpush1.bf16.msra.mxu0 %v9518_v18  ;;  %v9547_v33 = vld [vmem:[%s10029_s0 + $0xc8] ss:$16 sps:$4 sm:$0xff]   ;;  %v9552_v18 = vld [vmem:[%s10029_s0 + $0x84] ss:$16 sps:$4 sm:$0xff]  }
 0x44a   : > { %5177 = vmatpush1.bf16.msra.mxu1 %v9519_v2  ;;  %4985 = vmatprep.subr.bf16.mxu0 %v9520_v41  ;;  %v9553_v2 = vld [vmem:[%s10029_s0 + $0x8c] ss:$16 sps:$4 sm:$0xff]   ;;  %v9300_v41 = vld [vmem:[%s16144_s10 + $0x10] sm:$0xff]  }
 0x44b   : > { %5178 = vmatprep.subr.bf16.mxu1 %v9521_v0  ;;  %v9554_v0 = vld [vmem:[%s10029_s0 + $0x80] ss:$16 sps:$4 sm:$0xff]  }
 0x44d   : > { %4986 = vmatpush1.bf16.msra.mxu0 %v9522_v50  ;;  %v9557_v50 = vld [vmem:[%s10029_s0 + $0x6c] ss:$16 sps:$4 sm:$0xff]  }
 0x44e   : > { %5179 = vmatpush1.bf16.msra.mxu1 %v9523_v35  ;;  %4987 = vmatprep.subr.bf16.mxu0 %v9524_v63  ;;  %v9558_v35 = vld [vmem:[%s10029_s0 + $0x60] ss:$16 sps:$4 sm:$0xff]   ;;  %v9559_v63 = vld [vmem:[%s10029_s0 + $0x68] ss:$16 sps:$4 sm:$0xff]  }
 0x44f   : > { %5180 = vmatprep.subr.bf16.mxu1 %v9525_v10  ;;  %4390 = vmatmul.mubr.bf16.gmra.mxu0 %v9256_v7  ;;  %v9560_v10 = vld [vmem:[%s10029_s0 + $0x44] ss:$16 sps:$4 sm:$0xff]  }
 0x450   : > { %4583 = vmatmul.mubr.bf16.gmra.mxu1 %v9256_v7  ;;  %4399 = vmatprep.mubr.bf16.mxu0 %v9261_v14  ;;  %v9555_v7 = vld [vmem:[%s10029_s0 + $0x88] ss:$16 sps:$4 sm:$0xff]  }
 0x451   : > { %4592 = vmatprep.mubr.bf16.mxu1 %v9261_v14  ;;  %4988 = vmatpush1.bf16.msra.mxu0 %v9526_v58  ;;  %v9556_v14 = vld [vmem:[%s10029_s0 + $0x64] ss:$16 sps:$4 sm:$0xff]   ;;  %v9561_v58 = vld [vmem:[%s10029_s0 + $0x4c] ss:$16 sps:$4 sm:$0xff]  }
 0x452   : > { %5181 = vmatpush1.bf16.msra.mxu1 %v9527_v55  ;;  %4989 = vmatprep.subr.bf16.mxu0 %v9528_v46  ;;  %v9301_v55 = vld [vmem:[%s16144_s10 + $0x18] sm:$0xff]   ;;  %v9562_v46 = vld [vmem:[%s10029_s0 + $0x40] ss:$16 sps:$4 sm:$0xff]  }
 0x453   : > { %5182 = vmatprep.subr.bf16.mxu1 %v9529_v37  ;;  %v9563_v37 = vld [vmem:[%s10029_s0 + $0x48] ss:$16 sps:$4 sm:$0xff]  }
 0x455   : > { %4990 = vmatpush1.bf16.msra.mxu0 %v9530_v54  ;;  %v9566_v54 = vld [vmem:[%s10029_s0 + $0x20] ss:$16 sps:$4 sm:$0xff]  }
 0x456   : > { %5183 = vmatpush1.bf16.msra.mxu1 %v9531_v38  ;;  %4991 = vmatprep.subr.bf16.mxu0 %v9532_v16  ;;  %v9567_v38 = vld [vmem:[%s10029_s0 + $0x28] ss:$16 sps:$4 sm:$0xff]   ;;  %v9568_v16 = vld [vmem:[%s10029_s0 + $0x4] ss:$16 sps:$4 sm:$0xff]  }
 0x457   : > { %5184 = vmatprep.subr.bf16.mxu1 %v9533_v22  ;;  %4400 = vmatmul.mubr.bf16.gmra.mxu0 %v9259_v17  ;;  %v9569_v22 = vld [vmem:[%s10029_s0 + $0xc] ss:$16 sps:$4 sm:$0xff]  }
 0x458   : > { %4593 = vmatmul.mubr.bf16.gmra.mxu1 %v9259_v17  ;;  %4409 = vmatprep.mubr.bf16.mxu0 %v9264_v23  ;;  %v9564_v17 = vld [vmem:[%s10029_s0 + $0x24] ss:$16 sps:$4 sm:$0xff]  }
 0x459   : > { %4602 = vmatprep.mubr.bf16.mxu1 %v9264_v23  ;;  %4992 = vmatpush1.bf16.msra.mxu0 %v9534_v62  ;;  %v9565_v23 = vld [vmem:[%s10029_s0 + $0x2c] ss:$16 sps:$4 sm:$0xff]   ;;  %v9302_v62 = vld [vmem:[%s16144_s10 + $0x20] sm:$0xff]  }
 0x45a   : > { %5185 = vmatpush1.bf16.msra.mxu1 %v9535_v53  ;;  %4993 = vmatprep.subr.bf16.mxu0 %v9536_v43  ;;  %v9570_v53 = vld [vmem:[%s10029_s0] ss:$16 sps:$4 sm:$0xff]   ;;  %v9571_v43 = vld [vmem:[%s10029_s0 + $0x8] ss:$16 sps:$4 sm:$0xff]   ;;  %s8613_s0 = sshll.u32 %s676_s16, 4  ;;  %s8614_s0 = int_to_ptr.vmem [resolvable:$true] %s8613_s0 }
 0x45b   : > { %5186 = vmatprep.subr.bf16.mxu1 %v9537_v57  ;;  %v9303_v57 = vld [vmem:[%s16144_s10 + $0x28] sm:$0xff]   ;;  %s9668_s26 = scalar_lea.vmem %s8614_s0, 64  ;;  %p9675_p2 = scmp.lt.s32.totalorder %s8614_s0, %s9673_s4 }
 0x45c   : > { %p9669_p13 = scmp.ne.s32.totalorder %s8614_s0, %s9668_s26  ;;  %p9676_p3 = scmp.lt.s32.totalorder %s9674_s27, %s9668_s26 }
 0x45d   : > { %4994 = vmatpush1.bf16.msra.mxu0 %v9538_v36  ;;  %v9306_v36 = vld [vmem:[%s16144_s10 + $0x40] sm:$0xff]  }
 0x45e   : > { %5187 = vmatpush1.bf16.msra.mxu1 %v9539_v21  ;;  %5717 = vmatprep.subr.bf16.mxu0 %v9540_v11  ;;  %p9670_p0 = pnand %p9669_p13, %p9858_p6  ;;  %p9677_p4 = por %p9676_p3, %p9675_p2 }
 0x45f   : > { %5910 = vmatprep.subr.bf16.mxu1 %v9541_v56  ;;  %4410 = vmatmul.mubr.bf16.gmra.mxu0 %v9262_v15 }
 0x460   : > { %4603 = vmatmul.mubr.bf16.gmra.mxu1 %v9262_v15  ;;  %4419 = vmatprep.mubr.bf16.mxu0 %v9267_v13  ;;  %v9304_v15 = vld [vmem:[%s16144_s10 + $0x30] sm:$0xff]   ;;  %p9671_p1 = pneg %p9670_p0 }
 0x461   : > { %4612 = vmatprep.mubr.bf16.mxu1 %v9267_v13  ;;  %v9305_v13 = vld [vmem:[%s16144_s10 + $0x38] sm:$0xff]  }
 0x462   : > { %p9678_p5 = pnand %p9677_p4, %p9671_p1 }
 0x467   : > { %4420 = vmatmul.mubr.bf16.gmra.mxu0 %v9265_v20 }
 0x468   : > { %4613 = vmatmul.mubr.bf16.gmra.mxu1 %v9265_v20  ;;  %4429 = vmatprep.mubr.bf16.mxu0 %v9270_v34 }
 0x469   : > { %4622 = vmatprep.mubr.bf16.mxu1 %v9270_v34 }
 0x46f   : > { %4430 = vmatmul.mubr.bf16.gmra.mxu0 %v9268_v1 }
 0x470   : > { %4623 = vmatmul.mubr.bf16.gmra.mxu1 %v9268_v1  ;;  %4439 = vmatprep.mubr.bf16.mxu0 %v9273_v19 }
 0x471   : > { %4632 = vmatprep.mubr.bf16.mxu1 %v9273_v19  ;;  %v9307_v19 = vld [vmem:[%s16144_s10 + $0x48] sm:$0xff]  }
 0x477   : > { %4440 = vmatmul.mubr.bf16.gmra.mxu0 %v9271_v42 }
 0x478   : > { %4633 = vmatmul.mubr.bf16.gmra.mxu1 %v9271_v42  ;;  %4449 = vmatprep.mubr.bf16.mxu0 %v9276_v44 }
 0x479   : > { %4642 = vmatprep.mubr.bf16.mxu1 %v9276_v44 }
 0x47f   : > { %4450 = vmatmul.mubr.bf16.gmra.mxu0 %v9274_v4 }
 0x480   : > { %4643 = vmatmul.mubr.bf16.gmra.mxu1 %v9274_v4  ;;  %4459 = vmatprep.mubr.bf16.mxu0 %v9279_v5 }
 0x481   : > { %4652 = vmatprep.mubr.bf16.mxu1 %v9279_v5 }
 0x487   : > { %4460 = vmatmul.mubr.bf16.gmra.mxu0 %v9277_v31 }
 0x488   : > { %4653 = vmatmul.mubr.bf16.gmra.mxu1 %v9277_v31  ;;  %4469 = vmatprep.mubr.bf16.mxu0 %v9282_v30 }
 0x489   : > { %4662 = vmatprep.mubr.bf16.mxu1 %v9282_v30 }
 0x48f   : > { %4470 = vmatmul.mubr.bf16.gmra.mxu0 %v9280_v49 }
 0x490   : > { %4663 = vmatmul.mubr.bf16.gmra.mxu1 %v9280_v49  ;;  %4479 = vmatprep.mubr.bf16.mxu0 %v9285_v12 }
 0x491   : > { %4672 = vmatprep.mubr.bf16.mxu1 %v9285_v12 }
 0x497   : > { %4480 = vmatmul.mubr.bf16.gmra.mxu0 %v9283_v48 }
 0x498   : > { %4673 = vmatmul.mubr.bf16.gmra.mxu1 %v9283_v48  ;;  %4489 = vmatprep.mubr.bf16.mxu0 %v9288_v3  ;;  %v9308_v48 = vld [vmem:[%s16144_s10 + $0x50] sm:$0xff]  }
 0x499   : > { %4682 = vmatprep.mubr.bf16.mxu1 %v9288_v3 }
 0x49f   : > { %4490 = vmatmul.mubr.bf16.gmra.mxu0 %v9286_v6 }
 0x4a0   : > { %4683 = vmatmul.mubr.bf16.gmra.mxu1 %v9286_v6  ;;  %4499 = vmatprep.mubr.bf16.mxu0 %v9291_v28 }
 0x4a1   : > { %4692 = vmatprep.mubr.bf16.mxu1 %v9291_v28 }
 0x4a7   : > { %4500 = vmatmul.mubr.bf16.gmra.mxu0 %v9289_v40 }
 0x4a8   : > { %4693 = vmatmul.mubr.bf16.gmra.mxu1 %v9289_v40  ;;  %4509 = vmatprep.mubr.bf16.mxu0 %v9294_v24 }
 0x4a9   : > { %4702 = vmatprep.mubr.bf16.mxu1 %v9294_v24 }
 0x4af   : > { %4510 = vmatmul.mubr.bf16.gmra.mxu0 %v9292_v32 }
 0x4b0   : > { %4703 = vmatmul.mubr.bf16.gmra.mxu1 %v9292_v32  ;;  %4519 = vmatprep.mubr.bf16.mxu0 %v9297_v47 }
 0x4b1   : > { %4712 = vmatprep.mubr.bf16.mxu1 %v9297_v47 }
 0x4b7   : > { %4520 = vmatmul.mubr.bf16.gmra.mxu0 %v9295_v25 }
 0x4b8   : > { %4713 = vmatmul.mubr.bf16.gmra.mxu1 %v9295_v25  ;;  %5011 = vmatprep.mubr.bf16.mxu0 %v17206_v9 }
 0x4b9   : > { %5204 = vmatprep.mubr.bf16.mxu1 %v17206_v9 }
 0x4bf   : > { %5012 = vmatmul.mubr.bf16.vlgmr.msra.gmra.mxu0 %v9298_v29 }
 0x4c0   : > { %5205 = vmatmul.mubr.bf16.vlgmr.msra.gmra.mxu1 %v9298_v29  ;;  %5021 = vmatprep.mubr.bf16.mxu0 %v17206_v9  ;;  %v9309_v29 = vld [vmem:[%s16144_s10 + $0x58] sm:$0xff]  }
 0x4c1   : > { %5214 = vmatprep.mubr.bf16.mxu1 %v17206_v9  ;;  %5718 = vmatpush1.bf16.msra.mxu0 %v9542_v27 }
 0x4c2   : > { %5911 = vmatpush1.bf16.msra.mxu1 %v9543_v45  ;;  %5719 = vmatprep.subr.bf16.mxu0 %v9544_v26 }
 0x4c3   : > { %5912 = vmatprep.subr.bf16.mxu1 %v9545_v39 }
 0x4c5   : > { %5720 = vmatpush1.bf16.msra.mxu0 %v9546_v60 }
 0x4c6   : > { %5913 = vmatpush1.bf16.msra.mxu1 %v9547_v33  ;;  %5721 = vmatprep.subr.bf16.mxu0 %v9548_v59 }
 0x4c7   : > { %5914 = vmatprep.subr.bf16.mxu1 %v9549_v51  ;;  %5022 = vmatmul.mubr.bf16.gmra.mxu0 %v9299_v52  ;;  %v9310_v51 = vld [vmem:[%s16144_s10 + $0x60] sm:$0xff]  }
 0x4c8   : > { %5215 = vmatmul.mubr.bf16.gmra.mxu1 %v9299_v52  ;;  %5031 = vmatprep.mubr.bf16.mxu0 %v17206_v9 }
 0x4c9   : > { %5224 = vmatprep.mubr.bf16.mxu1 %v17206_v9  ;;  %5722 = vmatpush1.bf16.msra.mxu0 %v9550_v61 }
 0x4ca   : > { %5915 = vmatpush1.bf16.msra.mxu1 %v9551_v8  ;;  %5723 = vmatprep.subr.bf16.mxu0 %v9552_v18 }
 0x4cb   : > { %5916 = vmatprep.subr.bf16.mxu1 %v9553_v2 }
 0x4cd   : > { %5724 = vmatpush1.bf16.msra.mxu0 %v9554_v0 }
 0x4ce   : > { %5917 = vmatpush1.bf16.msra.mxu1 %v9555_v7  ;;  %5725 = vmatprep.subr.bf16.mxu0 %v9556_v14 }
 0x4cf   : > { %5918 = vmatprep.subr.bf16.mxu1 %v9557_v50  ;;  %5032 = vmatmul.mubr.bf16.gmra.mxu0 %v9300_v41  ;;  %v9311_v50 = vld [vmem:[%s16144_s10 + $0x68] sm:$0xff]  }
 0x4d0   : > { %5225 = vmatmul.mubr.bf16.gmra.mxu1 %v9300_v41  ;;  %5041 = vmatprep.mubr.bf16.mxu0 %v17206_v9 }
 0x4d1   : > { %5234 = vmatprep.mubr.bf16.mxu1 %v17206_v9  ;;  %5726 = vmatpush1.bf16.msra.mxu0 %v9558_v35 }
 0x4d2   : > { %5919 = vmatpush1.bf16.msra.mxu1 %v9559_v63  ;;  %5727 = vmatprep.subr.bf16.mxu0 %v9560_v10 }
 0x4d3   : > { %5920 = vmatprep.subr.bf16.mxu1 %v9561_v58 }
 0x4d5   : > { %5728 = vmatpush1.bf16.msra.mxu0 %v9562_v46 }
 0x4d6   : > { %5921 = vmatpush1.bf16.msra.mxu1 %v9563_v37  ;;  %5729 = vmatprep.subr.bf16.mxu0 %v9564_v17 }
 0x4d7   : > { %5922 = vmatprep.subr.bf16.mxu1 %v9565_v23  ;;  %5042 = vmatmul.mubr.bf16.gmra.mxu0 %v9301_v55  ;;  %v9312_v23 = vld [vmem:[%s16144_s10 + $0x70] sm:$0xff]  }
 0x4d8   : > { %5235 = vmatmul.mubr.bf16.gmra.mxu1 %v9301_v55  ;;  %5051 = vmatprep.mubr.bf16.mxu0 %v17206_v9 }
 0x4d9   : > { %5244 = vmatprep.mubr.bf16.mxu1 %v17206_v9  ;;  %5730 = vmatpush1.bf16.msra.mxu0 %v9566_v54 }
 0x4da   : > { %5923 = vmatpush1.bf16.msra.mxu1 %v9567_v38  ;;  %5731 = vmatprep.subr.bf16.mxu0 %v9568_v16 }
 0x4db   : > { %5924 = vmatprep.subr.bf16.mxu1 %v9569_v22 }
 0x4dd   : > { %5732 = vmatpush1.bf16.msra.mxu0 %v9570_v53 }
 0x4de   : > { %5925 = vmatpush1.bf16.msra.mxu1 %v9571_v43 }
 0x4df   : > { %5052 = vmatmul.mubr.bf16.gmra.mxu0 %v9302_v62 }
 0x4e0   : > { %5245 = vmatmul.mubr.bf16.gmra.mxu1 %v9302_v62  ;;  %5061 = vmatprep.mubr.bf16.mxu0 %v17206_v9 }
 0x4e1   : > { %5254 = vmatprep.mubr.bf16.mxu1 %v17206_v9 }
 0x4e7   : > { %5062 = vmatmul.mubr.bf16.gmra.mxu0 %v9303_v57 }
 0x4e8   : > { %5255 = vmatmul.mubr.bf16.gmra.mxu1 %v9303_v57  ;;  %5071 = vmatprep.mubr.bf16.mxu0 %v17206_v9 }
 0x4e9   : > { %5264 = vmatprep.mubr.bf16.mxu1 %v17206_v9 }
 0x4ef   : > { %5072 = vmatmul.mubr.bf16.gmra.mxu0 %v9304_v15 }
 0x4f0   : > { %5265 = vmatmul.mubr.bf16.gmra.mxu1 %v9304_v15  ;;  %5081 = vmatprep.mubr.bf16.mxu0 %v17206_v9  ;;  %v9313_v15 = vld [vmem:[%s16144_s10 + $0x78] sm:$0xff]  }
 0x4f1   : > { %5274 = vmatprep.mubr.bf16.mxu1 %v17206_v9 }
 0x4f7   : > { %5082 = vmatmul.mubr.bf16.gmra.mxu0 %v9305_v13 }
 0x4f8   : > { %5275 = vmatmul.mubr.bf16.gmra.mxu1 %v9305_v13  ;;  %5091 = vmatprep.mubr.bf16.mxu0 %v17206_v9 }
 0x4f9   : > { %5284 = vmatprep.mubr.bf16.mxu1 %v17206_v9 }
 0x4ff   : > { %v12700_v21 = vpop.f32.mrf.mxu0  ;;  %5092 = vmatmul.mubr.bf16.gmra.mxu0 %v9306_v36 }
 0x500   : > { %v12702_v11 = vpop.f32.mrf.mxu1  ;;  %5285 = vmatmul.mubr.bf16.gmra.mxu1 %v9306_v36  ;;  %5101 = vmatprep.mubr.bf16.mxu0 %v17206_v9 }
 0x501   : > { %5294 = vmatprep.mubr.bf16.mxu1 %v17206_v9  ;;  %v12706_v56 = vpop.f32.mrf.mxu0 }
 0x502   : > { %v12708_v20 = vpop.f32.mrf.mxu1 }
 0x503   : > { %v12710_v34 = vpop.f32.mrf.mxu0 }
 0x504   : > { %v12712_v1 = vpop.f32.mrf.mxu1 }
 0x505   : > { %v12717_v42 = vpop.f32.mrf.mxu0 }
 0x506   : > { %v12719_v44 = vpop.f32.mrf.mxu1 }
 0x507   : > { %v12721_v4 = vpop.f32.mrf.mxu0  ;;  %5102 = vmatmul.mubr.bf16.gmra.mxu0 %v9307_v19 }
 0x508   : > { %v12723_v5 = vpop.f32.mrf.mxu1  ;;  %5295 = vmatmul.mubr.bf16.gmra.mxu1 %v9307_v19  ;;  %5111 = vmatprep.mubr.bf16.mxu0 %v17206_v9 }
 0x509   : > { %5304 = vmatprep.mubr.bf16.mxu1 %v17206_v9  ;;  %v12727_v31 = vpop.f32.mrf.mxu0 }
 0x50a   : > { %v12729_v30 = vpop.f32.mrf.mxu1 }
 0x50b   : > { %v12731_v49 = vpop.f32.mrf.mxu0 }
 0x50c   : > { %v12733_v12 = vpop.f32.mrf.mxu1 }
 0x50d   : > { %v12738_v3 = vpop.f32.mrf.mxu0 }
 0x50e   : > { %v12740_v6 = vpop.f32.mrf.mxu1 }
 0x50f   : > { %v12742_v28 = vpop.f32.mrf.mxu0  ;;  %5112 = vmatmul.mubr.bf16.gmra.mxu0 %v9308_v48 }
 0x510   : > { %v12744_v40 = vpop.f32.mrf.mxu1  ;;  %5305 = vmatmul.mubr.bf16.gmra.mxu1 %v9308_v48  ;;  %5121 = vmatprep.mubr.bf16.mxu0 %v17206_v9 }
 0x511   : > { %5314 = vmatprep.mubr.bf16.mxu1 %v17206_v9  ;;  %v12748_v24 = vpop.f32.mrf.mxu0 }
 0x512   : > { %v12750_v32 = vpop.f32.mrf.mxu1 }
 0x513   : > { %v12752_v47 = vpop.f32.mrf.mxu0 }
 0x514   : > { %v12754_v25 = vpop.f32.mrf.mxu1 }
 0x515   : > { %v12759_v27 = vpop.f32.mrf.mxu0 }
 0x516   : > { %v12761_v45 = vpop.f32.mrf.mxu1 }
 0x517   : > { %v12763_v26 = vpop.f32.mrf.mxu0  ;;  %5122 = vmatmul.mubr.bf16.gmra.mxu0 %v9309_v29 }
 0x518   : > { %v12765_v39 = vpop.f32.mrf.mxu1  ;;  %5315 = vmatmul.mubr.bf16.gmra.mxu1 %v9309_v29  ;;  %5131 = vmatprep.mubr.bf16.mxu0 %v17206_v9 }
 0x519   : > { %5324 = vmatprep.mubr.bf16.mxu1 %v17206_v9  ;;  %v12769_v52 = vpop.f32.mrf.mxu0 }
 0x51a   : > { %v12771_v60 = vpop.f32.mrf.mxu1 }
 0x51b   : > { %v12773_v33 = vpop.f32.mrf.mxu0 }
 0x51c   : > { %v12775_v59 = vpop.f32.mrf.mxu1 }
 0x51d   : > { %v12780_v61 = vpop.f32.mrf.mxu0 }
 0x51e   : > { %v12782_v8 = vpop.f32.mrf.mxu1 }
 0x51f   : > { %v12784_v18 = vpop.f32.mrf.mxu0  ;;  %5132 = vmatmul.mubr.bf16.gmra.mxu0 %v9310_v51 }
 0x520   : > { %v12786_v2 = vpop.f32.mrf.mxu1  ;;  %5325 = vmatmul.mubr.bf16.gmra.mxu1 %v9310_v51  ;;  %5141 = vmatprep.mubr.bf16.mxu0 %v17206_v9 }
 0x521   : > { %5334 = vmatprep.mubr.bf16.mxu1 %v17206_v9  ;;  %v12790_v41 = vpop.f32.mrf.mxu0 }
 0x522   : > { %v12792_v0 = vpop.f32.mrf.mxu1 }
 0x523   : > { %v12794_v7 = vpop.f32.mrf.mxu0 }
 0x524   : > { %v12796_v14 = vpop.f32.mrf.mxu1 }
 0x525   : > { %v12801_v35 = vpop.f32.mrf.mxu0 }
 0x526   : > { %v12803_v63 = vpop.f32.mrf.mxu1 }
 0x527   : > { %17207 = vst [vmem:[#allocation42_spill] sm:$0xff] %v12803_v63  ;;  %v12805_v10 = vpop.f32.mrf.mxu0  ;;  %5142 = vmatmul.mubr.bf16.gmra.mxu0 %v9311_v50 }
 0x528   : > { %17208 = vst [vmem:[#allocation58_spill] sm:$0xff] %v12805_v10  ;;  %v12807_v58 = vpop.f32.mrf.mxu1  ;;  %5335 = vmatmul.mubr.bf16.gmra.mxu1 %v9311_v50  ;;  %5151 = vmatprep.mubr.bf16.mxu0 %v17206_v9 }
 0x529   : > { %17209 = vst [vmem:[#allocation59_spill] sm:$0xff] %v12807_v58  ;;  %5344 = vmatprep.mubr.bf16.mxu1 %v17206_v9  ;;  %v12811_v55 = vpop.f32.mrf.mxu0 }
 0x52a   : > { %17210 = vst [vmem:[#allocation117_spill] sm:$0xff] %v12811_v55  ;;  %v12813_v46 = vpop.f32.mrf.mxu1 }
 0x52b   : > { %17211 = vst [vmem:[#allocation116_spill] sm:$0xff] %v12813_v46  ;;  %v12815_v37 = vpop.f32.mrf.mxu0 }
 0x52c   : > { %17212 = vst [vmem:[#allocation43_spill] sm:$0xff] %v12815_v37  ;;  %v12817_v17 = vpop.f32.mrf.mxu1 }
 0x52d   : > { %17213 = vst [vmem:[#allocation114_spill] sm:$0xff] %v12817_v17  ;;  %v12822_v54 = vpop.f32.mrf.mxu0 }
 0x52e   : > { %17214 = vst [vmem:[#allocation119_spill] sm:$0xff] %v12822_v54  ;;  %v12824_v38 = vpop.f32.mrf.mxu1 }
 0x52f   : > { %17215 = vst [vmem:[#allocation70_spill] sm:$0xff] %v12824_v38  ;;  %v12826_v16 = vpop.f32.mrf.mxu0  ;;  %5152 = vmatmul.mubr.bf16.gmra.mxu0 %v9312_v23 }
 0x530   : > { %17216 = vst [vmem:[#allocation71_spill] sm:$0xff] %v12826_v16  ;;  %v12828_v22 = vpop.f32.mrf.mxu1  ;;  %5345 = vmatmul.mubr.bf16.gmra.mxu1 %v9312_v23  ;;  %5161 = vmatprep.mubr.bf16.mxu0 %v17206_v9 }
 0x531   : > { %17217 = vst [vmem:[#allocation147_spill] sm:$0xff] %v12828_v22  ;;  %5354 = vmatprep.mubr.bf16.mxu1 %v17206_v9  ;;  %v12832_v62 = vpop.f32.mrf.mxu0 }
 0x532   : > { %17218 = vst [vmem:[#allocation145_spill] sm:$0xff] %v12832_v62  ;;  %v12834_v53 = vpop.f32.mrf.mxu1 }
 0x533   : > { %17219 = vst [vmem:[#allocation148_spill] sm:$0xff] %v12834_v53  ;;  %v12836_v43 = vpop.f32.mrf.mxu0 }
 0x534   : > { %17220 = vst [vmem:[#allocation146_spill] sm:$0xff] %v12836_v43  ;;  %v12838_v57 = vpop.f32.mrf.mxu1 }
 0x535   : > { %17221 = vst [vmem:[#allocation139_spill] sm:$0xff] %v12838_v57  ;;  %v12843_v13 = vpop.f32.mrf.mxu0 }
 0x536   : > { %17222 = vst [vmem:[#allocation137_spill] sm:$0xff] %v12843_v13  ;;  %v12845_v36 = vpop.f32.mrf.mxu1 }
 0x537   : > { %17223 = vst [vmem:[#allocation140_spill] sm:$0xff] %v12845_v36  ;;  %v12847_v19 = vpop.f32.mrf.mxu0  ;;  %5162 = vmatmul.mubr.bf16.gmra.mxu0 %v9313_v15 }
 0x538   : > { %17224 = vst [vmem:[#allocation138_spill] sm:$0xff] %v12847_v19  ;;  %v12849_v48 = vpop.f32.mrf.mxu1  ;;  %5355 = vmatmul.mubr.bf16.gmra.mxu1 %v9313_v15  ;;  %5749 = vmatprep.mubr.bf16.mxu0 %v17206_v9  ;;  %v9314_v19 = vld [vmem:[%s16140_s6] sm:$0xff]  }
 0x539   : > { %17225 = vst [vmem:[#allocation135_spill] sm:$0xff] %v12849_v48  ;;  %5942 = vmatprep.mubr.bf16.mxu1 %v17206_v9  ;;  %v12853_v29 = vpop.f32.mrf.mxu0 }
 0x53a   : > { %17226 = vst [vmem:[#allocation133_spill] sm:$0xff] %v12853_v29  ;;  %v12855_v51 = vpop.f32.mrf.mxu1 }
 0x53b   : > { %17227 = vst [vmem:[#allocation136_spill] sm:$0xff] %v12855_v51  ;;  %v12857_v50 = vpop.f32.mrf.mxu0 }
 0x53c   : > { %17228 = vst [vmem:[#allocation134_spill] sm:$0xff] %v12857_v50  ;;  %v12859_v23 = vpop.f32.mrf.mxu1 }
 0x53d   : > { %17229 = vst [vmem:[#allocation129_spill] sm:$0xff] %v12859_v23  ;;  %v12864_v36 = vpop.f32.mrf.mxu0 }
 0x53e   : > { %17230 = vst [vmem:[#allocation127_spill] sm:$0xff] %v12864_v36  ;;  %v12866_v48 = vpop.f32.mrf.mxu1 }
 0x53f   : > { %17231 = vst [vmem:[#allocation130_spill] sm:$0xff] %v12866_v48  ;;  %v12868_v15 = vpop.f32.mrf.mxu0  ;;  %5750 = vmatmul.mubr.bf16.vlgmr.msra.gmra.mxu0 %v9314_v19 }
 0x540   : > { %17232 = vst [vmem:[#allocation128_spill] sm:$0xff] %v12868_v15  ;;  %v12870_v13 = vpop.f32.mrf.mxu1  ;;  %5943 = vmatmul.mubr.bf16.vlgmr.msra.gmra.mxu1 %v9314_v19  ;;  %5759 = vmatprep.mubr.bf16.mxu0 %v17206_v9  ;;  %v9315_v15 = vld [vmem:[%s16140_s6 + $0x8] sm:$0xff]  }
 0x541   : > { %17233 = vst [vmem:[#allocation142_spill] sm:$0xff] %v12870_v13  ;;  %5952 = vmatprep.mubr.bf16.mxu1 %v17206_v9  ;;  %v12874_v50 = vpop.f32.mrf.mxu0 }
 0x542   : > { %17234 = vst [vmem:[#allocation73_spill] sm:$0xff] %v12874_v50  ;;  %v12876_v23 = vpop.f32.mrf.mxu1 }
 0x543   : > { %17235 = vst [vmem:[#allocation76_spill] sm:$0xff] %v12876_v23  ;;  %v12878_v51 = vpop.f32.mrf.mxu0 }
 0x544   : > { %17236 = vst [vmem:[#allocation115_spill] sm:$0xff] %v12878_v51  ;;  %v12880_v29 = vpop.f32.mrf.mxu1 }
 0x545   : > { %17237 = vst [vmem:[#allocation79_spill] sm:$0xff] %v12880_v29  ;;  %v12885_v48 = vpop.f32.mrf.mxu0 }
 0x546   : > { %17238 = vst [vmem:[#allocation82_spill] sm:$0xff] %v12885_v48  ;;  %v12887_v13 = vpop.f32.mrf.mxu1 }
 0x547   : > { %17239 = vst [vmem:[#allocation125_spill] sm:$0xff] %v12887_v13  ;;  %v12889_v19 = vpop.f32.mrf.mxu0  ;;  %5760 = vmatmul.mubr.bf16.gmra.mxu0 %v9315_v15  ;;  %v12906_v13 = vpop.permute.xlu1 %4110 }
 0x548   : > { %17240 = vst [vmem:[#allocation121_spill] sm:$0xff] %v12889_v19  ;;  %v12891_v36 = vpop.f32.mrf.mxu1  ;;  %5953 = vmatmul.mubr.bf16.gmra.mxu1 %v9315_v15  ;;  %5769 = vmatprep.mubr.bf16.mxu0 %v17206_v9  ;;  %v9316_v19 = vld [vmem:[%s16140_s6 + $0x10] sm:$0xff]   ;;  %17246 = vst [vmem:[#allocation21_spill] sm:$0xff] %v12906_v13 }
 0x549   : > { %17241 = vst [vmem:[#allocation126_spill] sm:$0xff] %v12891_v36  ;;  %5962 = vmatprep.mubr.bf16.mxu1 %v17206_v9  ;;  %v12895_v51 = vpop.f32.mrf.mxu0 }
 0x54a   : > { %17242 = vst [vmem:[#allocation122_spill] sm:$0xff] %v12895_v51  ;;  %v12897_v29 = vpop.f32.mrf.mxu1 }
 0x54b   : > { %17243 = vst [vmem:[#allocation18_spill] sm:$0xff] %v12897_v29  ;;  %v12899_v23 = vpop.f32.mrf.mxu0  ;;  %v12916_v29 = vpop.permute.xlu0 %4106 }
 0x54c   : > { %17244 = vst [vmem:[#allocation25_spill] sm:$0xff] %v12899_v23  ;;  %v12901_v50 = vpop.f32.mrf.mxu1  ;;  %17251 = vst [vmem:[#allocation8_spill] sm:$0xff] %v12916_v29  ;;  %v12924_v51 = vpop.permute.xlu1 %4098 }
 0x54d   : > { %17245 = vst [vmem:[#allocation14_spill] sm:$0xff] %v12901_v50  ;;  %v12908_v36 = vpop.f32.mrf.mxu0  ;;  %17254 = vst [vmem:[#allocation23_spill] sm:$0xff] %v12924_v51 }
 0x54e   : > { %17247 = vst [vmem:[#allocation12_spill] sm:$0xff] %v12908_v36  ;;  %v12910_v15 = vpop.f32.mrf.mxu1 }
 0x54f   : > { %17248 = vst [vmem:[#allocation15_spill] sm:$0xff] %v12910_v15  ;;  %v12912_v48 = vpop.f32.mrf.mxu0  ;;  %5770 = vmatmul.mubr.bf16.gmra.mxu0 %v9316_v19  ;;  %v12937_v13 = vpop.permute.xlu0 %4102 }
 0x550   : > { %17249 = vst [vmem:[#allocation22_spill] sm:$0xff] %v12912_v48  ;;  %v12914_v57 = vpop.f32.mrf.mxu1  ;;  %5963 = vmatmul.mubr.bf16.gmra.mxu1 %v9316_v19  ;;  %5779 = vmatprep.mubr.bf16.mxu0 %v17206_v9  ;;  %v9317_v19 = vld [vmem:[%s16140_s6 + $0x18] sm:$0xff]   ;;  %17259 = vst [vmem:[#allocation69_spill] sm:$0xff] %v12937_v13 }
 0x551   : > { %17250 = vst [vmem:[#allocation16_spill] sm:$0xff] %v12914_v57  ;;  %5972 = vmatprep.mubr.bf16.mxu1 %v17206_v9  ;;  %v12920_v50 = vpop.f32.mrf.mxu0 }
 0x552   : > { %17252 = vst [vmem:[#allocation20_spill] sm:$0xff] %v12920_v50  ;;  %v12922_v23 = vpop.f32.mrf.mxu1 }
 0x553   : > { %17253 = vst [vmem:[#allocation31_spill] sm:$0xff] %v12922_v23  ;;  %v12926_v36 = vpop.f32.mrf.mxu0  ;;  %v12943_v23 = vpop.permute.xlu1 %4090 }
 0x554   : > { %17255 = vst [vmem:[#allocation132_spill] sm:$0xff] %v12926_v36  ;;  %v12928_v15 = vpop.f32.mrf.mxu1  ;;  %17262 = vst [vmem:[#allocation29_spill] sm:$0xff] %v12943_v23 }
 0x555   : > { %17256 = vst [vmem:[#allocation81_spill] sm:$0xff] %v12928_v15  ;;  %v12933_v57 = vpop.f32.mrf.mxu0 }
 0x556   : > { %17257 = vst [vmem:[#allocation84_spill] sm:$0xff] %v12933_v57  ;;  %v12935_v48 = vpop.f32.mrf.mxu1 }
 0x557   : > { %17258 = vst [vmem:[#allocation141_spill] sm:$0xff] %v12935_v48  ;;  %v12939_v29 = vpop.f32.mrf.mxu0  ;;  %5780 = vmatmul.mubr.bf16.gmra.mxu0 %v9317_v19  ;;  %v12964_v13 = vpop.permute.xlu1 %4082 }
 0x558   : > { %17260 = vst [vmem:[#allocation64_spill] sm:$0xff] %v12939_v29  ;;  %v12941_v50 = vpop.f32.mrf.mxu1  ;;  %5973 = vmatmul.mubr.bf16.gmra.mxu1 %v9317_v19  ;;  %5789 = vmatprep.mubr.bf16.mxu0 %v17206_v9  ;;  %v12958_v29 = vpop.permute.xlu0 %4094 }
 0x559   : > { %17261 = vst [vmem:[#allocation24_spill] sm:$0xff] %v12941_v50  ;;  %5982 = vmatprep.mubr.bf16.mxu1 %v17206_v9  ;;  %v12947_v15 = vpop.f32.mrf.mxu0  ;;  %v9318_v50 = vld [vmem:[%s16140_s6 + $0x20] sm:$0xff]   ;;  %17267 = vst [vmem:[#allocation56_spill] sm:$0xff] %v12958_v29 }
 0x55a   : > { %17263 = vst [vmem:[#allocation30_spill] sm:$0xff] %v12947_v15  ;;  %v12949_v36 = vpop.f32.mrf.mxu1 }
 0x55b   : > { %17264 = vst [vmem:[#allocation19_spill] sm:$0xff] %v12949_v36  ;;  %v12951_v57 = vpop.f32.mrf.mxu0 }
 0x55c   : > { %17265 = vst [vmem:[#allocation124_spill] sm:$0xff] %v12951_v57  ;;  %v12953_v48 = vpop.f32.mrf.mxu1  ;;  %v12976_v36 = vpop.permute.xlu0 %4086 }
 0x55d   : > { %17266 = vst [vmem:[#allocation61_spill] sm:$0xff] %v12953_v48  ;;  %v12960_v19 = vpop.f32.mrf.mxu0 }
 0x55e   : > { %17268 = vst [vmem:[#allocation131_spill] sm:$0xff] %v12960_v19  ;;  %v12962_v43 = vpop.f32.mrf.mxu1 }
 0x55f   : > { %17269 = vst [vmem:[#allocation53_spill] sm:$0xff] %v12962_v43  ;;  %v12966_v53 = vpop.f32.mrf.mxu0  ;;  %5790 = vmatmul.mubr.bf16.gmra.mxu0 %v9318_v50 }
 0x560   : > { %17270 = vst [vmem:[#allocation48_spill] sm:$0xff] %v12966_v53  ;;  %v12968_v15 = vpop.f32.mrf.mxu1  ;;  %5983 = vmatmul.mubr.bf16.gmra.mxu1 %v9318_v50  ;;  %5799 = vmatprep.mubr.bf16.mxu0 %v17206_v9  ;;  %v12985_v53 = vpop.permute.xlu1 %4074 }
 0x561   : > { %17271 = vst [vmem:[#allocation13_spill] sm:$0xff] %v12968_v15  ;;  %5992 = vmatprep.mubr.bf16.mxu1 %v17206_v9  ;;  %v12972_v48 = vpop.f32.mrf.mxu0  ;;  %v9319_v15 = vld [vmem:[%s16140_s6 + $0x28] sm:$0xff]  }
 0x562   : > { %17272 = vst [vmem:[#allocation45_spill] sm:$0xff] %v12972_v48  ;;  %v12974_v57 = vpop.f32.mrf.mxu1 }
 0x563   : > { %17273 = vst [vmem:[#allocation40_spill] sm:$0xff] %v12974_v57  ;;  %v12978_v19 = vpop.f32.mrf.mxu0  ;;  %v12995_v57 = vpop.permute.xlu0 %4078 }
 0x564   : > { %17274 = vst [vmem:[#allocation123_spill] sm:$0xff] %v12978_v19  ;;  %v12980_v43 = vpop.f32.mrf.mxu1  ;;  %v13003_v16 = vpop.permute.xlu1 %4066 }
 0x565   : > { %17275 = vst [vmem:[#allocation38_spill] sm:$0xff] %v12980_v43  ;;  %v12987_v50 = vpop.f32.mrf.mxu0 }
 0x566   : > { %17276 = vst [vmem:[#allocation36_spill] sm:$0xff] %v12987_v50  ;;  %v12989_v62 = vpop.f32.mrf.mxu1 }
 0x567   : > { %17277 = vst [vmem:[#allocation41_spill] sm:$0xff] %v12989_v62  ;;  %v12991_v22 = vpop.f32.mrf.mxu0  ;;  %5800 = vmatmul.mubr.bf16.gmra.mxu0 %v9319_v15  ;;  %v13016_v51 = vpop.permute.xlu0 %4070 }
 0x568   : > { %17278 = vst [vmem:[#allocation39_spill] sm:$0xff] %v12991_v22  ;;  %v12993_v48 = vpop.f32.mrf.mxu1  ;;  %5993 = vmatmul.mubr.bf16.gmra.mxu1 %v9319_v15  ;;  %5809 = vmatprep.mubr.bf16.mxu0 %v17206_v9  ;;  %v9320_v15 = vld [vmem:[%s16140_s6 + $0x30] sm:$0xff]  }
 0x569   : > { %17279 = vst [vmem:[#allocation37_spill] sm:$0xff] %v12993_v48  ;;  %6002 = vmatprep.mubr.bf16.mxu1 %v17206_v9  ;;  %v12999_v43 = vpop.f32.mrf.mxu0 }
 0x56a   : > { %17280 = vst [vmem:[#allocation11_spill] sm:$0xff] %v12999_v43  ;;  %v13001_v19 = vpop.f32.mrf.mxu1 }
 0x56b   : > { %17281 = vst [vmem:[#allocation9_spill] sm:$0xff] %v13001_v19  ;;  %v13005_v50 = vpop.f32.mrf.mxu0  ;;  %v4059_v19 = vpop.permute.xlu1 %4058 }
 0x56c   : > { %17282 = vst [vmem:[#allocation10_spill] sm:$0xff] %v13005_v50  ;;  %v13007_v62 = vpop.f32.mrf.mxu1  ;;  %v4382_v10 = vadd.f32 %v12721_v4, %v4059_v19 }
 0x56d   : > { %17283 = vst [vmem:[#allocation26_spill] sm:$0xff] %v13007_v62  ;;  %v13012_v48 = vpop.f32.mrf.mxu0 }
 0x56e   : > { %17284 = vst [vmem:[#allocation17_spill] sm:$0xff] %v13012_v48  ;;  %v13014_v22 = vpop.f32.mrf.mxu1 }
 0x56f   : > { %17285 = vst [vmem:[#allocation32_spill] sm:$0xff] %v13014_v22  ;;  %v13018_v38 = vpop.f32.mrf.mxu0  ;;  %5810 = vmatmul.mubr.bf16.gmra.mxu0 %v9320_v15  ;;  %v4051_v17 = vpop.permute.xlu1 %4050 }
 0x570   : > { %17286 = vst [vmem:[#allocation35_spill] sm:$0xff] %v13018_v38  ;;  %v13020_v43 = vpop.f32.mrf.mxu1  ;;  %6003 = vmatmul.mubr.bf16.gmra.mxu1 %v9320_v15  ;;  %5819 = vmatprep.mubr.bf16.mxu0 %v17206_v9  ;;  %v9321_v38 = vld [vmem:[%s16140_s6 + $0x38] sm:$0xff]   ;;  %v4374_v29 = vadd.f32 %v12706_v56, %v4051_v17  ;;  %v4567_v46 = vadd.f32 %v12708_v20, %v4051_v17 }
 0x571   : > { %17287 = vst [vmem:[#allocation27_spill] sm:$0xff] %v13020_v43  ;;  %6012 = vmatprep.mubr.bf16.mxu1 %v17206_v9  ;;  %v13024_v62 = vpop.f32.mrf.mxu0  ;;  %v13035_v43 = vpop.permute.xlu0 %4062 }
 0x572   : > { %17288 = vst [vmem:[#allocation34_spill] sm:$0xff] %v13024_v62  ;;  %v13026_v50 = vpop.f32.mrf.mxu1  ;;  %v4724_v58 = vmax.f32 %v4374_v29, 0.0  ;;  %v4726_v20 = vmax.f32 %v4567_v46, 0.0 }
 0x573   : > { %17289 = vst [vmem:[#allocation33_spill] sm:$0xff] %v13026_v50  ;;  %v13028_v48 = vpop.f32.mrf.mxu0  ;;  %v4372_v50 = vadd.f32 %v12700_v21, %v4051_v17 }
 0x574   : > { %17290 = vst [vmem:[#allocation28_spill] sm:$0xff] %v13028_v48  ;;  %v13030_v22 = vpop.f32.mrf.mxu1 }
 0x575   : > { %17291 = vst [vmem:[#allocation57_spill] sm:$0xff] %v13030_v22  ;;  %v13037_v15 = vpop.f32.mrf.mxu0  ;;  %v4723_v21 = vmax.f32 %v4372_v50, 0.0 }
 0x576   : > { %17292 = vst [vmem:[#allocation52_spill] sm:$0xff] %v13037_v15  ;;  %v13039_v54 = vpop.f32.mrf.mxu1  ;;  %v4565_v15 = vadd.f32 %v12702_v11, %v4051_v17  ;;  %v4575_v17 = vadd.f32 %v12723_v5, %v4059_v19 }
 0x577   : > { %17293 = vst [vmem:[#allocation49_spill] sm:$0xff] %v13039_v54  ;;  %v13041_v37 = vpop.f32.mrf.mxu0  ;;  %5820 = vmatmul.mubr.bf16.gmra.mxu0 %v9321_v38  ;;  %v4055_v54 = vpop.permute.xlu0 %4054 }
 0x578   : > { %17294 = vst [vmem:[#allocation44_spill] sm:$0xff] %v13041_v37  ;;  %v13043_v62 = vpop.f32.mrf.mxu1  ;;  %6013 = vmatmul.mubr.bf16.gmra.mxu1 %v9321_v38  ;;  %5829 = vmatprep.mubr.bf16.mxu0 %v17206_v9  ;;  %v9322_v38 = vld [vmem:[%s16140_s6 + $0x40] sm:$0xff]   ;;  %v4725_v55 = vmax.f32 %v4565_v15, 0.0  ;;  %v4376_v11 = vadd.f32 %v12710_v34, %v4055_v54  ;;  %v4569_v56 = vadd.f32 %v12712_v1, %v4055_v54 }
 0x579   : > { %17295 = vst [vmem:[#allocation65_spill] sm:$0xff] %v13043_v62  ;;  %6022 = vmatprep.mubr.bf16.mxu1 %v17206_v9  ;;  %v13047_v22 = vpop.f32.mrf.mxu0  ;;  %v4384_v34 = vadd.f32 %v12727_v31, %v4059_v19  ;;  %v4733_v31 = vmax.f32 %v4575_v17, 0.0 }
 0x57a   : > { %17296 = vst [vmem:[#allocation60_spill] sm:$0xff] %v13047_v22  ;;  %v13049_v48 = vpop.f32.mrf.mxu1  ;;  %v4729_v4 = vmax.f32 %v4569_v56, 0.0  ;;  %v4386_v56 = vadd.f32 %v12731_v49, %v13035_v43  ;;  %v4581_v49 = vadd.f32 %v12740_v6, %v13035_v43 }
 0x57b   : > { %17297 = vst [vmem:[#allocation85_spill] sm:$0xff] %v13049_v48  ;;  %v13054_v37 = vpop.f32.mrf.mxu0 }
 0x57c   : > { %17298 = vst [vmem:[#allocation68_spill] sm:$0xff] %v13054_v37  ;;  %v13056_v62 = vpop.f32.mrf.mxu1  ;;  %v4378_v37 = vadd.f32 %v12717_v42, %v4055_v54 }
 0x57d   : > { %17299 = vst [vmem:[#allocation83_spill] sm:$0xff] %v13056_v62  ;;  %v13062_v22 = vpop.f32.mrf.mxu0  ;;  %v4571_v62 = vadd.f32 %v12719_v44, %v4055_v54  ;;  %v4727_v44 = vmax.f32 %v4376_v11, 0.0 }
 0x57e   : > { %17300 = vst [vmem:[#allocation80_spill] sm:$0xff] %v13062_v22  ;;  %v13064_v48 = vpop.f32.mrf.mxu1  ;;  %v4728_v46 = vmax.f32 %v4378_v37, 0.0  ;;  %v4579_v37 = vadd.f32 %v12733_v12, %v13035_v43  ;;  %v4392_v12 = vadd.f32 %v12742_v28, %v13003_v16 }
 0x57f   : > { %17301 = vst [vmem:[#allocation77_spill] sm:$0xff] %v13064_v48  ;;  %v5013_v23 = vpop.f32.mrf.mxu0  ;;  %5830 = vmatmul.mubr.bf16.gmra.mxu0 %v9322_v38  ;;  %v4730_v5 = vmax.f32 %v4571_v62, 0.0 }
 0x580   : > { %v5206_v63 = vpop.f32.mrf.mxu1  ;;  %6023 = vmatmul.mubr.bf16.gmra.mxu1 %v9322_v38  ;;  %v13072_v50 = vadd.f32 %v5013_v23, %v4723_v21  ;;  %5839 = vmatprep.mubr.bf16.mxu0 %v17206_v9  ;;  %v4577_v23 = vadd.f32 %v12729_v30, %v4059_v19  ;;  %v9323_v38 = vld [vmem:[%s16140_s6 + $0x48] sm:$0xff]   ;;  %v4731_v21 = vmax.f32 %v4382_v10, 0.0  ;;  %v4388_v30 = vadd.f32 %v12738_v3, %v13035_v43 }
 0x581   : > { %v13074_v15 = vadd.f32 %v5206_v63, %v4725_v55  ;;  %6032 = vmatprep.mubr.bf16.mxu1 %v17206_v9  ;;  %v5015_v1 = vpop.f32.mrf.mxu0  ;;  %v4585_v3 = vadd.f32 %v12744_v40, %v13003_v16  ;;  %v4735_v43 = vmax.f32 %v4386_v56, 0.0  ;;  %v4587_v56 = vadd.f32 %v12750_v32, %v13003_v16 }
 0x582   : > { %17302 = vst [vmem:[#allocation78_spill] sm:$0xff] %v13072_v50  ;;  %v5208_v42 = vpop.f32.mrf.mxu1  ;;  %v13079_v54 = vadd.f32 %v5015_v1, %v4724_v58  ;;  %v4732_v58 = vmax.f32 %v4384_v34, 0.0  ;;  %v4734_v1 = vmax.f32 %v4577_v23, 0.0 }
 0x583   : > { %17303 = vst [vmem:[#allocation74_spill] sm:$0xff] %v13074_v15  ;;  %v13081_v29 = vadd.f32 %v5208_v42, %v4726_v20  ;;  %v5017_v63 = vpop.f32.mrf.mxu0  ;;  %v4739_v20 = vmax.f32 %v4392_v12, 0.0  ;;  %v4741_v10 = vmax.f32 %v4585_v3, 0.0  ;;  %v4591_v12 = vadd.f32 %v12761_v45, %v13016_v51 }
 0x584   : > { %17304 = vst [vmem:[#allocation75_spill] sm:$0xff] %v13079_v54  ;;  %v5210_v55 = vpop.f32.mrf.mxu1  ;;  %v13087_v48 = vadd.f32 %v5017_v63, %v4727_v44  ;;  %v4737_v63 = vmax.f32 %v4579_v37, 0.0 }
 0x585   : > { %17305 = vst [vmem:[#allocation63_spill] sm:$0xff] %v13081_v29  ;;  %v13089_v11 = vadd.f32 %v5210_v55, %v4729_v4  ;;  %v5019_v62 = vpop.f32.mrf.mxu0  ;;  %v13111_v4 = vpop.permute.xlu1 %4170 }
 0x586   : > { %17306 = vst [vmem:[#allocation66_spill] sm:$0xff] %v13087_v48  ;;  %v5212_v19 = vpop.f32.mrf.mxu1  ;;  %v13101_v17 = vadd.f32 %v5019_v62, %v4728_v46  ;;  %17310 = vst [vmem:[#allocation120_spill] sm:$0xff] %v13111_v4  ;;  %v4736_v62 = vmax.f32 %v4388_v30, 0.0  ;;  %v4396_v30 = vadd.f32 %v12752_v47, %v13016_v51  ;;  %v4746_v46 = vmax.f32 %v4591_v12, 0.0 }
 0x587   : > { %17307 = vst [vmem:[#allocation54_spill] sm:$0xff] %v13089_v11  ;;  %v13103_v34 = vadd.f32 %v5212_v19, %v4730_v5  ;;  %v5023_v42 = vpop.f32.mrf.mxu0  ;;  %5840 = vmatmul.mubr.bf16.gmra.mxu0 %v9323_v38  ;;  %v4738_v19 = vmax.f32 %v4581_v49, 0.0  ;;  %v4398_v49 = vadd.f32 %v12759_v27, %v13016_v51  ;;  %v13156_v27 = vpop.permute.xlu0 %4174 }
 0x588   : > { %17308 = vst [vmem:[#allocation55_spill] sm:$0xff] %v13101_v17  ;;  %v5216_v44 = vpop.f32.mrf.mxu1  ;;  %6033 = vmatmul.mubr.bf16.gmra.mxu1 %v9323_v38  ;;  %v13117_v23 = vadd.f32 %v5023_v42, %v4731_v21  ;;  %5849 = vmatprep.mubr.bf16.mxu0 %v17206_v9  ;;  %17320 = vst [vmem:[#allocation143_spill] sm:$0xff] %v13156_v27 }
 0x589   : > { %17309 = vst [vmem:[#allocation144_spill] sm:$0xff] %v13103_v34  ;;  %v13119_v6 = vadd.f32 %v5216_v44, %v4733_v31  ;;  %v5025_v28 = vpop.f32.mrf.mxu0  ;;  %6042 = vmatprep.mubr.bf16.mxu1 %v17206_v9  ;;  %v9324_v31 = vld [vmem:[%s16140_s6 + $0x50] sm:$0xff]   ;;  %v4394_v44 = vadd.f32 %v12748_v24, %v13003_v16  ;;  %v4744_v5 = vmax.f32 %v4398_v49, 0.0  ;;  %v4402_v16 = vadd.f32 %v12763_v26, %v12985_v53 }
 0x58a   : > { %17311 = vst [vmem:[#allocation94_spill] sm:$0xff] %v13117_v23  ;;  %v5218_v40 = vpop.f32.mrf.mxu1  ;;  %v13123_v55 = vadd.f32 %v5025_v28, %v4732_v58  ;;  %v13146_v28 = vpop.permute.xlu1 %4162  ;;  %v4599_v26 = vadd.f32 %v12775_v59, %v12995_v57 }
 0x58b   : > { %17312 = vst [vmem:[#allocation99_spill] sm:$0xff] %v13119_v6  ;;  %v13125_v38 = vadd.f32 %v5218_v40, %v4734_v1  ;;  %v5027_v21 = vpop.f32.mrf.mxu0  ;;  %v4589_v1 = vadd.f32 %v12754_v25, %v13016_v51  ;;  %17317 = vst [vmem:[#allocation92_spill] sm:$0xff] %v13146_v28  ;;  %v13197_v51 = vpop.permute.xlu0 %4166  ;;  %v17365_v6 = vld [vmem:[#allocation139_spill] sm:$0xff] }
 0x58c   : > { %17313 = vst [vmem:[#allocation51_spill] sm:$0xff] %v13123_v55  ;;  %v5220_v42 = vpop.f32.mrf.mxu1  ;;  %v13134_v58 = vadd.f32 %v5027_v21, %v4735_v43  ;;  %17328 = vst [vmem:[#allocation90_spill] sm:$0xff] %v13197_v51  ;;  %v17350_v51 = vld [vmem:[#allocation43_spill] sm:$0xff] }
 0x58d   : > { %17314 = vst [vmem:[#allocation98_spill] sm:$0xff] %v13125_v38  ;;  %v13136_v37 = vadd.f32 %v5220_v42, %v4737_v63  ;;  %v5029_v24 = vpop.f32.mrf.mxu0 }
 0x58e   : > { %17315 = vst [vmem:[#allocation112_spill] sm:$0xff] %v13134_v58  ;;  %v5222_v3 = vpop.f32.mrf.mxu1  ;;  %v13152_v47 = vadd.f32 %v5029_v24, %v4736_v62  ;;  %v4740_v62 = vmax.f32 %v4394_v44, 0.0  ;;  %v4597_v44 = vadd.f32 %v12771_v60, %v12985_v53  ;;  %v13183_v49 = vpop.permute.xlu1 %4154  ;;  %v4408_v60 = vadd.f32 %v12780_v61, %v12995_v57 }
 0x58f   : > { %17316 = vst [vmem:[#allocation95_spill] sm:$0xff] %v13136_v37  ;;  %v13154_v40 = vadd.f32 %v5222_v3, %v4738_v19  ;;  %v5033_v25 = vpop.f32.mrf.mxu0  ;;  %5850 = vmatmul.mubr.bf16.gmra.mxu0 %v9324_v31  ;;  %v4742_v19 = vmax.f32 %v4587_v56, 0.0  ;;  %v4745_v3 = vmax.f32 %v4589_v1, 0.0  ;;  %v4406_v1 = vadd.f32 %v12773_v33, %v12995_v57  ;;  %17323 = vst [vmem:[#allocation97_spill] sm:$0xff] %v13183_v49 }
 0x590   : > { %17318 = vst [vmem:[#allocation118_spill] sm:$0xff] %v13152_v47  ;;  %v5226_v43 = vpop.f32.mrf.mxu1  ;;  %6043 = vmatmul.mubr.bf16.gmra.mxu1 %v9324_v31  ;;  %v13162_v63 = vadd.f32 %v5033_v25, %v4739_v20  ;;  %5859 = vmatprep.mubr.bf16.mxu0 %v17206_v9  ;;  %v4743_v31 = vmax.f32 %v4396_v30, 0.0  ;;  %v4595_v20 = vadd.f32 %v12765_v39, %v12985_v53  ;;  %v9325_v30 = vld [vmem:[%s16140_s6 + $0x58] sm:$0xff]   ;;  %v4752_v45 = vmax.f32 %v4408_v60, 0.0 }
 0x591   : > { %17319 = vst [vmem:[#allocation86_spill] sm:$0xff] %v13154_v40  ;;  %v13164_v21 = vadd.f32 %v5226_v43, %v4741_v10  ;;  %v5035_v42 = vpop.f32.mrf.mxu0  ;;  %6052 = vmatprep.mubr.bf16.mxu1 %v17206_v9  ;;  %v4404_v10 = vadd.f32 %v12769_v52, %v12985_v53  ;;  %v4601_v53 = vadd.f32 %v12782_v8, %v12995_v57  ;;  %v4747_v57 = vmax.f32 %v4402_v16, 0.0 }
 0x592   : > { %17321 = vst [vmem:[#allocation91_spill] sm:$0xff] %v13162_v63  ;;  %v5228_v24 = vpop.f32.mrf.mxu1  ;;  %v13193_v12 = vadd.f32 %v5035_v42, %v4740_v62  ;;  %v4749_v62 = vmax.f32 %v4595_v20, 0.0  ;;  %v4412_v16 = vadd.f32 %v12784_v18, %v12964_v13  ;;  %v4605_v20 = vadd.f32 %v12786_v2, %v12964_v13  ;;  %v9326_v18 = vld [vmem:[%s16140_s6 + $0x60] sm:$0xff]   ;;  %v13230_v2 = vpop.permute.xlu0 %4158 }
 0x593   : > { %17322 = vst [vmem:[#allocation101_spill] sm:$0xff] %v13164_v21  ;;  %v5037_v56 = vpop.f32.mrf.mxu0  ;;  %v13195_v43 = vadd.f32 %v5228_v24, %v4742_v19  ;;  %v4748_v24 = vmax.f32 %v4404_v10, 0.0  ;;  %v4414_v10 = vadd.f32 %v12790_v41, %v12964_v13  ;;  %17332 = vst [vmem:[#allocation87_spill] sm:$0xff] %v13230_v2  ;;  %v17375_v21 = vld [vmem:[#allocation129_spill] sm:$0xff] }
 0x594   : > { %v5230_v25 = vpop.f32.mrf.mxu1  ;;  %v13185_v39 = vadd.f32 %v5037_v56, %v4743_v31  ;;  %17326 = vst [vmem:[#allocation89_spill] sm:$0xff] %v13193_v12  ;;  %v13217_v31 = vpop.permute.xlu1 %4146 }
 0x595   : > { %v13187_v52 = vadd.f32 %v5230_v25, %v4745_v3  ;;  %17327 = vst [vmem:[#allocation88_spill] sm:$0xff] %v13195_v43  ;;  %v5039_v33 = vpop.f32.mrf.mxu0  ;;  %v4750_v25 = vmax.f32 %v4597_v44, 0.0  ;;  %17331 = vst [vmem:[#allocation108_spill] sm:$0xff] %v13217_v31  ;;  %v4607_v44 = vadd.f32 %v12792_v0, %v12964_v13  ;;  %v17378_v43 = vld [vmem:[#allocation128_spill] sm:$0xff] }
 0x596   : > { %17324 = vst [vmem:[#allocation100_spill] sm:$0xff] %v13185_v39  ;;  %v5232_v32 = vpop.f32.mrf.mxu1  ;;  %v13203_v3 = vadd.f32 %v5039_v33, %v4744_v5  ;;  %v4751_v5 = vmax.f32 %v4406_v1, 0.0  ;;  %v4753_v33 = vmax.f32 %v4599_v26, 0.0  ;;  %v4416_v1 = vadd.f32 %v12794_v7, %v12976_v36 }
 0x597   : > { %17325 = vst [vmem:[#allocation67_spill] sm:$0xff] %v13187_v52  ;;  %v13205_v61 = vadd.f32 %v5232_v32, %v4746_v46  ;;  %v5043_v56 = vpop.f32.mrf.mxu0  ;;  %5860 = vmatmul.mubr.bf16.gmra.mxu0 %v9325_v30  ;;  %v4609_v26 = vadd.f32 %v12796_v14, %v12976_v36  ;;  %v4418_v7 = vadd.f32 %v12801_v35, %v12976_v36  ;;  %v17337_v14 = vld [vmem:[#allocation42_spill] sm:$0xff] }
 0x598   : > { %17329 = vst [vmem:[#allocation93_spill] sm:$0xff] %v13203_v3  ;;  %v5236_v8 = vpop.f32.mrf.mxu1  ;;  %6053 = vmatmul.mubr.bf16.gmra.mxu1 %v9325_v30  ;;  %5869 = vmatprep.mubr.bf16.mxu0 %v17206_v9  ;;  %v4754_v30 = vmax.f32 %v4601_v53, 0.0  ;;  %v13232_v59 = vadd.f32 %v5043_v56, %v4747_v57  ;;  %v4611_v13 = vadd.f32 %v17337_v14, %v12976_v36  ;;  %v4755_v36 = vmax.f32 %v4412_v16, 0.0 }
 0x599   : > { %17330 = vst [vmem:[#allocation111_spill] sm:$0xff] %v13205_v61  ;;  %v5045_v46 = vpop.f32.mrf.mxu0  ;;  %6062 = vmatprep.mubr.bf16.mxu1 %v17206_v9  ;;  %v13234_v41 = vadd.f32 %v5236_v8, %v4749_v62  ;;  %v4760_v16 = vmax.f32 %v4418_v7, 0.0  ;;  %v17345_v8 = vld [vmem:[#allocation59_spill] sm:$0xff]  ;;  %v17351_v7 = vld [vmem:[#allocation114_spill] sm:$0xff] }
 0x59a   : > { %v5238_v32 = vpop.f32.mrf.mxu1  ;;  %17333 = vst [vmem:[#allocation102_spill] sm:$0xff] %v13232_v59  ;;  %v13244_v19 = vadd.f32 %v5045_v46, %v4748_v24  ;;  %v4757_v24 = vmax.f32 %v4605_v20, 0.0  ;;  %v4762_v20 = vmax.f32 %v4611_v13, 0.0  ;;  %v17347_v46 = vld [vmem:[#allocation117_spill] sm:$0xff] }
 0x59b   : > { %v5047_v60 = vpop.f32.mrf.mxu0  ;;  %17334 = vst [vmem:[#allocation47_spill] sm:$0xff] %v13234_v41  ;;  %v13246_v22 = vadd.f32 %v5238_v32, %v4750_v25  ;;  %v13256_v25 = vpop.permute.xlu1 %4138  ;;  %v4761_v32 = vmax.f32 %v4609_v26, 0.0  ;;  %v17349_v26 = vld [vmem:[#allocation56_spill] sm:$0xff] }
 0x59c   : > { %v5240_v53 = vpop.f32.mrf.mxu1  ;;  %v13236_v42 = vadd.f32 %v5047_v60, %v4751_v5  ;;  %17338 = vst [vmem:[#allocation46_spill] sm:$0xff] %v13244_v19  ;;  %17342 = vst [vmem:[#allocation107_spill] sm:$0xff] %v13256_v25  ;;  %v4426_v28 = vadd.f32 %v17350_v51, %v17349_v26  ;;  %v4619_v13 = vadd.f32 %v17351_v7, %v17349_v26  ;;  %v17383_v19 = vld [vmem:[#allocation79_spill] sm:$0xff] }
 0x59d   : > { %v13238_v0 = vadd.f32 %v5240_v53, %v4753_v33  ;;  %17339 = vst [vmem:[#allocation113_spill] sm:$0xff] %v13246_v22  ;;  %v5049_v27 = vpop.f32.mrf.mxu0  ;;  %v17343_v53 = vld [vmem:[#allocation29_spill] sm:$0xff]  ;;  %v13268_v33 = vpop.permute.xlu0 %4150 }
 0x59e   : > { %17335 = vst [vmem:[#allocation96_spill] sm:$0xff] %v13236_v42  ;;  %v5242_v4 = vpop.f32.mrf.mxu1  ;;  %v13252_v57 = vadd.f32 %v5049_v27, %v4752_v45  ;;  %v4756_v27 = vmax.f32 %v4414_v10, 0.0  ;;  %v4758_v45 = vmax.f32 %v4607_v44, 0.0  ;;  %v4615_v56 = vadd.f32 %v17345_v8, %v17343_v53  ;;  %17346 = vst [vmem:[#allocation103_spill] sm:$0xff] %v13268_v33  ;;  %v17348_v44 = vld [vmem:[#allocation116_spill] sm:$0xff] }
 0x59f   : > { %17336 = vst [vmem:[#allocation50_spill] sm:$0xff] %v13238_v0  ;;  %v13254_v62 = vadd.f32 %v5242_v4, %v4754_v30  ;;  %v5053_v35 = vpop.f32.mrf.mxu0  ;;  %5870 = vmatmul.mubr.bf16.gmra.mxu0 %v9326_v18  ;;  %v4759_v4 = vmax.f32 %v4416_v1, 0.0  ;;  %v4424_v10 = vadd.f32 %v17347_v46, %v17343_v53  ;;  %v4617_v1 = vadd.f32 %v17348_v44, %v17343_v53  ;;  %v9327_v8 = vld [vmem:[%s16140_s6 + $0x68] sm:$0xff]   ;;  %v17356_v44 = vld [vmem:[#allocation70_spill] sm:$0xff] }
 0x5a0   : > { %17340 = vst [vmem:[#allocation72_spill] sm:$0xff] %v13252_v57  ;;  %v5246_v5 = vpop.f32.mrf.mxu1  ;;  %6063 = vmatmul.mubr.bf16.gmra.mxu1 %v9326_v18  ;;  %5879 = vmatprep.mubr.bf16.mxu0 %v17206_v9  ;;  %v17344_v18 = vld [vmem:[#allocation58_spill] sm:$0xff]  ;;  %v4621_v7 = vadd.f32 %v17356_v44, %v17349_v26  ;;  %v17359_v44 = vld [vmem:[#allocation71_spill] sm:$0xff] }
 0x5a1   : > { %17341 = vst [vmem:[#allocation105_spill] sm:$0xff] %v13254_v62  ;;  %v5055_v30 = vpop.f32.mrf.mxu0  ;;  %6072 = vmatprep.mubr.bf16.mxu1 %v17206_v9  ;;  %v4422_v14 = vadd.f32 %v17344_v18, %v17343_v53  ;;  %v13281_v18 = vadd.f32 %v5053_v35, %v4755_v36  ;;  %v13283_v15 = vadd.f32 %v5246_v5, %v4757_v24  ;;  %v17355_v53 = vld [vmem:[#allocation119_spill] sm:$0xff]  ;;  %v13297_v35 = vpop.permute.xlu1 %4130 }
 0x5a2   : > { %v5248_v60 = vpop.f32.mrf.mxu1  ;;  %v4428_v51 = vadd.f32 %v17355_v53, %v17349_v26  ;;  %v13293_v50 = vadd.f32 %v5055_v30, %v4756_v27 }
 0x5a3   : > { %v5057_v2 = vpop.f32.mrf.mxu0  ;;  %17352 = vst [vmem:[#allocation104_spill] sm:$0xff] %v13281_v18  ;;  %17353 = vst [vmem:[#allocation106_spill] sm:$0xff] %v13283_v15  ;;  %v13295_v48 = vadd.f32 %v5248_v60, %v4758_v45  ;;  %v4763_v27 = vmax.f32 %v4422_v14, 0.0  ;;  %v4765_v45 = vmax.f32 %v4615_v56, 0.0  ;;  %v4770_v56 = vmax.f32 %v4621_v7, 0.0  ;;  %v17361_v60 = vld [vmem:[#allocation145_spill] sm:$0xff] }
 0x5a4   : > { %v5250_v49 = vpop.f32.mrf.mxu1  ;;  %v13285_v46 = vadd.f32 %v5057_v2, %v4759_v4  ;;  %v4768_v14 = vmax.f32 %v4428_v51, 0.0  ;;  %v17360_v2 = vld [vmem:[#allocation147_spill] sm:$0xff] }
 0x5a5   : > { %v13287_v11 = vadd.f32 %v5250_v49, %v4761_v32  ;;  %v5059_v29 = vpop.f32.mrf.mxu0  ;;  %v13307_v32 = vpop.permute.xlu0 %4142 }
 0x5a6   : > { %v5252_v34 = vpop.f32.mrf.mxu1  ;;  %v13303_v5 = vadd.f32 %v5059_v29, %v4760_v16  ;;  %17357 = vst [vmem:[#allocation109_spill] sm:$0xff] %v13307_v32  ;;  %v4764_v29 = vmax.f32 %v4424_v10, 0.0  ;;  %v4766_v16 = vmax.f32 %v4617_v1, 0.0  ;;  %v17362_v10 = vld [vmem:[#allocation148_spill] sm:$0xff]  ;;  %v13330_v23 = vpop.permute.xlu1 %4122 }
 0x5a7   : > { %17354 = vst [vmem:[#allocation62_spill] sm:$0xff] %v13287_v11  ;;  %v13305_v36 = vadd.f32 %v5252_v34, %v4762_v20  ;;  %v5063_v24 = vpop.f32.mrf.mxu0  ;;  %5880 = vmatmul.mubr.bf16.gmra.mxu0 %v9327_v8  ;;  %v4767_v34 = vmax.f32 %v4426_v28, 0.0  ;;  %v4769_v20 = vmax.f32 %v4619_v13, 0.0  ;;  %v17363_v28 = vld [vmem:[#allocation69_spill] sm:$0xff]  ;;  %v17364_v13 = vld [vmem:[#allocation146_spill] sm:$0xff] }
 0x5a8   : > { %v5256_v4 = vpop.f32.mrf.mxu1  ;;  %6073 = vmatmul.mubr.bf16.gmra.mxu1 %v9327_v8  ;;  %5889 = vmatprep.mubr.bf16.mxu0 %v17206_v9  ;;  %v17358_v8 = vld [vmem:[#allocation23_spill] sm:$0xff]  ;;  %v4436_v17 = vadd.f32 %v17364_v13, %v17363_v28  ;;  %v4629_v37 = vadd.f32 %v17365_v6, %v17363_v28  ;;  %v17367_v6 = vld [vmem:[#allocation140_spill] sm:$0xff]  ;;  %v17385_v11 = vld [vmem:[#allocation125_spill] sm:$0xff] }
 0x5a9   : > { %v5065_v26 = vpop.f32.mrf.mxu0  ;;  %6082 = vmatprep.mubr.bf16.mxu1 %v17206_v9  ;;  %v4432_v49 = vadd.f32 %v17359_v44, %v17358_v8  ;;  %v4625_v30 = vadd.f32 %v17360_v2, %v17358_v8  ;;  %v4434_v54 = vadd.f32 %v17361_v60, %v17358_v8  ;;  %v4627_v1 = vadd.f32 %v17362_v10, %v17358_v8  ;;  %v9328_v44 = vld [vmem:[%s16140_s6 + $0x70] sm:$0xff]  }
 0x5aa   : > { %v5258_v53 = vpop.f32.mrf.mxu1  ;;  %v13332_v2 = vadd.f32 %v5063_v24, %v4763_v27  ;;  %v13334_v60 = vadd.f32 %v5256_v4, %v4765_v45  ;;  %v17366_v10 = vld [vmem:[#allocation137_spill] sm:$0xff]  ;;  %v4631_v33 = vadd.f32 %v17367_v6, %v17363_v28  ;;  %v13344_v31 = vadd.f32 %v5065_v26, %v4764_v29  ;;  %v13348_v24 = vpop.permute.xlu0 %4134  ;;  %v17370_v6 = vld [vmem:[#allocation135_spill] sm:$0xff] }
 0x5ab   : > { %v5067_v51 = vpop.f32.mrf.mxu0  ;;  %v4438_v13 = vadd.f32 %v17366_v10, %v17363_v28  ;;  %v13346_v38 = vadd.f32 %v5258_v53, %v4766_v16  ;;  %v4773_v16 = vmax.f32 %v4625_v30, 0.0  ;;  %v4772_v26 = vmax.f32 %v4434_v54, 0.0  ;;  %v17369_v30 = vld [vmem:[#allocation138_spill] sm:$0xff]  ;;  %v17371_v4 = vld [vmem:[#allocation133_spill] sm:$0xff]  ;;  %v4115_v53 = vpop.permute.xlu1 %4114 }
 0x5ac   : > { %v5260_v7 = vpop.f32.mrf.mxu1  ;;  %v13336_v58 = vadd.f32 %v5067_v51, %v4767_v34  ;;  %v4778_v10 = vmax.f32 %v4631_v33, 0.0  ;;  %v17376_v33 = vld [vmem:[#allocation127_spill] sm:$0xff]  ;;  %v4452_v61 = vadd.f32 %v17378_v43, %v4115_v53 }
 0x5ad   : > { %v13338_v8 = vadd.f32 %v5260_v7, %v4769_v20  ;;  %v5069_v40 = vpop.f32.mrf.mxu0  ;;  %v4771_v20 = vmax.f32 %v4432_v49, 0.0  ;;  %v4774_v7 = vmax.f32 %v4627_v1, 0.0  ;;  %v17372_v1 = vld [vmem:[#allocation136_spill] sm:$0xff] }
 0x5ae   : > { %v5262_v55 = vpop.f32.mrf.mxu1  ;;  %v13354_v45 = vadd.f32 %v5069_v40, %v4768_v14  ;;  %v4775_v40 = vmax.f32 %v4436_v17, 0.0  ;;  %v4777_v14 = vmax.f32 %v4629_v37, 0.0  ;;  %v17373_v37 = vld [vmem:[#allocation21_spill] sm:$0xff] }
 0x5af   : > { %v13356_v34 = vadd.f32 %v5262_v55, %v4770_v56  ;;  %v5073_v28 = vpop.f32.mrf.mxu0  ;;  %5890 = vmatmul.mubr.bf16.gmra.mxu0 %v9328_v44  ;;  %v4776_v55 = vmax.f32 %v4438_v13, 0.0  ;;  %v17374_v13 = vld [vmem:[#allocation134_spill] sm:$0xff]  ;;  %v4448_v52 = vadd.f32 %v17376_v33, %v17373_v37 }
 0x5b0   : > { %v5266_v29 = vpop.f32.mrf.mxu1  ;;  %6083 = vmatmul.mubr.bf16.gmra.mxu1 %v9328_v44  ;;  %5899 = vmatprep.mubr.bf16.mxu0 %v17206_v9  ;;  %v17368_v44 = vld [vmem:[#allocation8_spill] sm:$0xff]  ;;  %v4446_v47 = vadd.f32 %v17374_v13, %v17373_v37  ;;  %v13383_v39 = vadd.f32 %v5073_v28, %v4771_v20  ;;  %v17377_v33 = vld [vmem:[#allocation130_spill] sm:$0xff] }
 0x5b1   : > { %v5075_v56 = vpop.f32.mrf.mxu0  ;;  %6092 = vmatprep.mubr.bf16.mxu1 %v17206_v9  ;;  %v4442_v54 = vadd.f32 %v17369_v30, %v17368_v44  ;;  %v4635_v27 = vadd.f32 %v17370_v6, %v17368_v44  ;;  %v4444_v51 = vadd.f32 %v17371_v4, %v17368_v44  ;;  %v4637_v17 = vadd.f32 %v17372_v1, %v17368_v44  ;;  %v9329_v6 = vld [vmem:[%s16140_s6 + $0x78] sm:$0xff]   ;;  %v13381_v4 = vpop.permute.xlu0 %4126 }
 0x5b2   : > { %v5268_v49 = vpop.f32.mrf.mxu1  ;;  %v4639_v9 = vadd.f32 %v17375_v21, %v17373_v37  ;;  %v13385_v44 = vadd.f32 %v5266_v29, %v4773_v16  ;;  %v9332_v21 = vld [vmem:[%s16139_s5 + $0x4] ss:$8 sps:$4 sm:$0xff]   ;;  %v4641_v32 = vadd.f32 %v17377_v33, %v17373_v37  ;;  %v13397_v12 = vadd.f32 %v5075_v56, %v4772_v26 }
 0x5b3   : > { %v5077_v30 = vpop.f32.mrf.mxu0  ;;  %v13399_v3 = vadd.f32 %v5268_v49, %v4774_v7  ;;  %v17381_v26 = vld [vmem:[#allocation76_spill] sm:$0xff] }
 0x5b4   : > { %v5270_v63 = vpop.f32.mrf.mxu1  ;;  %v13387_v1 = vadd.f32 %v5077_v30, %v4775_v40  ;;  %v17380_v30 = vld [vmem:[#allocation73_spill] sm:$0xff]  ;;  %v4647_v56 = vadd.f32 %v17381_v26, %v4115_v53  ;;  %v4784_v26 = vmax.f32 %v4448_v52, 0.0  ;;  %v4786_v41 = vmax.f32 %v4641_v32, 0.0 }
 0x5b5   : > { %v13389_v13 = vadd.f32 %v5270_v63, %v4777_v14  ;;  %v5079_v20 = vpop.f32.mrf.mxu0  ;;  %v17379_v14 = vld [vmem:[#allocation142_spill] sm:$0xff]  ;;  %v4454_v43 = vadd.f32 %v17380_v30, %v4115_v53  ;;  %v4783_v30 = vmax.f32 %v4446_v47, 0.0  ;;  %v4119_v0 = vpop.permute.xlu0 %4118 }
 0x5b6   : > { %v5272_v28 = vpop.f32.mrf.mxu1  ;;  %v13405_v16 = vadd.f32 %v5079_v20, %v4776_v55  ;;  %v4645_v37 = vadd.f32 %v17379_v14, %v4115_v53  ;;  %v4779_v55 = vmax.f32 %v4442_v54, 0.0  ;;  %v4780_v20 = vmax.f32 %v4444_v51, 0.0  ;;  %v17382_v51 = vld [vmem:[#allocation115_spill] sm:$0xff] }
 0x5b7   : > { %v13407_v40 = vadd.f32 %v5272_v28, %v4778_v10  ;;  %v5083_v7 = vpop.f32.mrf.mxu0  ;;  %5900 = vmatmul.mubr.bf16.gmra.mxu0 %v9329_v6  ;;  %v4781_v10 = vmax.f32 %v4635_v27, 0.0  ;;  %v4782_v28 = vmax.f32 %v4637_v17, 0.0  ;;  %v4785_v53 = vmax.f32 %v4639_v9, 0.0 }
 0x5b8   : > { %v5276_v49 = vpop.f32.mrf.mxu1  ;;  %6093 = vmatmul.mubr.bf16.gmra.mxu1 %v9329_v6  ;;  %6295 = vmatprep.mubr.bf16.mxu0 %v9332_v21  ;;  %v4787_v6 = vmax.f32 %v4452_v61, 0.0  ;;  %v4789_v59 = vmax.f32 %v4645_v37, 0.0  ;;  %v4788_v42 = vmax.f32 %v4454_v43, 0.0  ;;  %v4790_v33 = vmax.f32 %v4647_v56, 0.0  ;;  %v17384_v43 = vld [vmem:[#allocation82_spill] sm:$0xff] }
 0x5b9   : > { %v5085_v14 = vpop.f32.mrf.mxu0  ;;  %6488 = vmatprep.mubr.bf16.mxu1 %v9332_v21  ;;  %v5421_v63 = vadd.f32 %v5083_v7, %v4779_v55  ;;  %v5423_v62 = vadd.f32 %v5276_v49, %v4781_v10  ;;  %v4456_v17 = vadd.f32 %v17382_v51, %v4119_v0  ;;  %v4649_v57 = vadd.f32 %v17383_v19, %v4119_v0  ;;  %v17386_v7 = vld [vmem:[#allocation121_spill] sm:$0xff] }
 0x5ba   : > { %v5278_v29 = vpop.f32.mrf.mxu1  ;;  %v5422_v21 = vadd.f32 %v5085_v14, %v4780_v20  ;;  %v4458_v56 = vadd.f32 %v17384_v43, %v4119_v0  ;;  %v4651_v18 = vadd.f32 %v17385_v11, %v4119_v0 }
 0x5bb   : > { %v5087_v25 = vpop.f32.mrf.mxu0  ;;  %v5424_v47 = vadd.f32 %v5278_v29, %v4782_v28  ;;  %v4791_v11 = vmax.f32 %v4456_v17, 0.0  ;;  %v4793_v0 = vmax.f32 %v4649_v57, 0.0 }
 0x5bc   : > { %v5280_v22 = vpop.f32.mrf.mxu1  ;;  %v5425_v54 = vadd.f32 %v5087_v25, %v4783_v30  ;;  %v4462_v25 = vadd.f32 %v17386_v7, %v13330_v23  ;;  %v17403_v7 = vld [vmem:[#allocation15_spill] sm:$0xff] }
 0x5bd   : > { %v5427_v27 = vadd.f32 %v5280_v22, %v4785_v53  ;;  %v5089_v9 = vpop.f32.mrf.mxu0  ;;  %v17387_v22 = vld [vmem:[#allocation126_spill] sm:$0xff] }
 0x5be   : > { %v5282_v52 = vpop.f32.mrf.mxu1  ;;  %v5553_v32 = vpack.c.bf16 %v5425_v54, %v5421_v63  ;;  %v5426_v61 = vadd.f32 %v5089_v9, %v4784_v26  ;;  %v4655_v49 = vadd.f32 %v17387_v22, %v13330_v23  ;;  %v4792_v26 = vmax.f32 %v4458_v56, 0.0  ;;  %v17404_v22 = vld [vmem:[#allocation22_spill] sm:$0xff] }
 0x5bf   : > { %v5555_v15 = vpack.c.bf16 %v5427_v27, %v5423_v62  ;;  %v5428_v37 = vadd.f32 %v5282_v52, %v4786_v41  ;;  %v5093_v55 = vpop.f32.mrf.mxu0  ;;  %v17390_v41 = vld [vmem:[#allocation122_spill] sm:$0xff]  ;;  %v4794_v54 = vmax.f32 %v4651_v18, 0.0  ;;  %v17397_v18 = vpack.c.bf16 %v13407_v40, %v13399_v3 }
 0x5c0   : > { %v5286_v19 = vpop.f32.mrf.mxu1  ;;  %v5554_v10 = vpack.c.bf16 %v5426_v61, %v5422_v21  ;;  %v13424_v20 = vadd.f32 %v5093_v55, %v4787_v6  ;;  %v4464_v62 = vadd.f32 %v17390_v41, %v13330_v23  ;;  %v17393_v6 = vld [vmem:[#allocation18_spill] sm:$0xff]  ;;  %v4795_v21 = vmax.f32 %v4462_v25, 0.0  ;;  %v17405_v55 = vld [vmem:[#allocation16_spill] sm:$0xff] }
 0x5c1   : > { %v5556_v29 = vpack.c.bf16 %v5428_v37, %v5424_v47  ;;  %v13426_v63 = vadd.f32 %v5286_v19, %v4789_v59  ;;  %v5095_v28 = vpop.f32.mrf.mxu0  ;;  %v4657_v27 = vadd.f32 %v17393_v6, %v13330_v23  ;;  %v4797_v47 = vmax.f32 %v4655_v49, 0.0  ;;  %v17398_v23 = vld [vmem:[#allocation25_spill] sm:$0xff] }
 0x5c2   : > { %17388 = vst [vmem:[#allocation110_spill] sm:$0xff] %v13424_v20  ;;  %v5288_v14 = vpop.f32.mrf.mxu1  ;;  %v13430_v30 = vadd.f32 %v5095_v28, %v4788_v42  ;;  %6263 = vmatprep.subr.bf16.mxu0 %v5554_v10  ;;  %v17396_v42 = vpack.c.bf16 %v13405_v16, %v13397_v12  ;;  %v4466_v17 = vadd.f32 %v17398_v23, %v13381_v4  ;;  %v17422_v23 = vld [vmem:[#allocation132_spill] sm:$0xff]  ;;  %v17488_v28 = vld [vmem:[#allocation95_spill] sm:$0xff] }
 0x5c3   : > { %17389 = vst [vmem:[#allocation42_spill] sm:$0xff] %v13426_v63  ;;  %v13432_v53 = vadd.f32 %v5288_v14, %v4790_v33  ;;  %6456 = vmatprep.subr.bf16.mxu1 %v5556_v29  ;;  %v5097_v59 = vpop.f32.mrf.mxu0  ;;  %6264 = vmatpush1.bf16.msra.mxu0 %v5553_v32  ;;  %v4796_v33 = vmax.f32 %v4464_v62, 0.0  ;;  %v17400_v32 = vld [vmem:[#allocation12_spill] sm:$0xff]  ;;  %v4798_v56 = vmax.f32 %v4657_v27, 0.0  ;;  %v4661_v25 = vadd.f32 %v17403_v7, %v13381_v4 }
 0x5c4   : > { %17391 = vst [vmem:[#allocation29_spill] sm:$0xff] %v13430_v30  ;;  %v5290_v51 = vpop.f32.mrf.mxu1  ;;  %6457 = vmatpush1.bf16.msra.mxu1 %v5555_v15  ;;  %v13436_v9 = vadd.f32 %v5097_v59, %v4791_v11  ;;  %6265 = vmatprep.subr.bf16.mxu0 %v17396_v42  ;;  %v17399_v15 = vld [vmem:[#allocation14_spill] sm:$0xff]  ;;  %v4468_v61 = vadd.f32 %v17400_v32, %v13381_v4  ;;  %v17485_v12 = vld [vmem:[#allocation112_spill] sm:$0xff] }
 0x5c5   : > { %17392 = vst [vmem:[#allocation58_spill] sm:$0xff] %v13432_v53  ;;  %v13438_v57 = vadd.f32 %v5290_v51, %v4793_v0  ;;  %6458 = vmatprep.subr.bf16.mxu1 %v17397_v18  ;;  %v4659_v52 = vadd.f32 %v17399_v15, %v13381_v4  ;;  %v5099_v37 = vpop.f32.mrf.mxu0  ;;  %v4472_v49 = vadd.f32 %v17404_v22, %v13297_v35  ;;  %v4802_v59 = vmax.f32 %v4661_v25, 0.0  ;;  %v17423_v15 = vld [vmem:[#allocation81_spill] sm:$0xff]  ;;  %v17428_v22 = vld [vmem:[#allocation104_spill] sm:$0xff]  ;;  %v17486_v4 = vld [vmem:[#allocation94_spill] sm:$0xff] }
 0x5c6   : > { %17394 = vst [vmem:[#allocation59_spill] sm:$0xff] %v13436_v9  ;;  %v5292_v43 = vpop.f32.mrf.mxu1  ;;  %v13456_v3 = vadd.f32 %v5099_v37, %v4792_v26  ;;  %v4665_v19 = vadd.f32 %v17405_v55, %v13297_v35  ;;  %v17406_v41 = vpack.c.bf16 %v13387_v1, %v13383_v39  ;;  %v17407_v62 = vpack.c.bf16 %v13389_v13, %v13385_v44  ;;  %v17430_v55 = vld [vmem:[#allocation62_spill] sm:$0xff] }
 0x5c7   : > { %17395 = vst [vmem:[#allocation117_spill] sm:$0xff] %v13438_v57  ;;  %v13458_v40 = vadd.f32 %v5292_v43, %v4794_v54  ;;  %v5103_v10 = vpop.f32.mrf.mxu0  ;;  %v17410_v0 = vpack.c.bf16 %v13354_v45, %v13344_v31  ;;  %v17411_v39 = vpack.c.bf16 %v13356_v34, %v13346_v38  ;;  %v4799_v13 = vmax.f32 %v4466_v17, 0.0  ;;  %v17427_v43 = vld [vmem:[#allocation141_spill] sm:$0xff]  ;;  %v17517_v57 = vld [vmem:[#allocation27_spill] sm:$0xff] }
 0x5c8   : > { %17401 = vst [vmem:[#allocation116_spill] sm:$0xff] %v13456_v3  ;;  %v5296_v29 = vpop.f32.mrf.mxu1  ;;  %6266 = vmatpush1.bf16.msra.mxu0 %v17406_v41  ;;  %6459 = vmatpush1.bf16.msra.mxu1 %v17407_v62  ;;  %v13476_v14 = vadd.f32 %v5103_v10, %v4795_v21  ;;  %v4801_v26 = vmax.f32 %v4659_v52, 0.0  ;;  %v4800_v27 = vmax.f32 %v4468_v61, 0.0  ;;  %v17414_v31 = vpack.c.bf16 %v13336_v58, %v13332_v2  ;;  %v17420_v58 = vld [vmem:[#allocation20_spill] sm:$0xff]  ;;  %v17495_v41 = vld [vmem:[#allocation63_spill] sm:$0xff] }
 0x5c9   : > { %17402 = vst [vmem:[#allocation56_spill] sm:$0xff] %v13458_v40  ;;  %v13478_v11 = vadd.f32 %v5296_v29, %v4797_v47  ;;  %6267 = vmatprep.subr.bf16.mxu0 %v17410_v0  ;;  %6460 = vmatprep.subr.bf16.mxu1 %v17411_v39  ;;  %v5105_v44 = vpop.f32.mrf.mxu0  ;;  %v17415_v38 = vpack.c.bf16 %v13338_v8, %v13334_v60  ;;  %v4803_v45 = vmax.f32 %v4472_v49, 0.0  ;;  %v4805_v34 = vmax.f32 %v4665_v19, 0.0  ;;  %v17421_v60 = vld [vmem:[#allocation31_spill] sm:$0xff]  ;;  %v17431_v19 = vld [vmem:[#allocation106_spill] sm:$0xff] }
 0x5ca   : > { %17408 = vst [vmem:[#allocation43_spill] sm:$0xff] %v13476_v14  ;;  %v5298_v1 = vpop.f32.mrf.mxu1  ;;  %v13486_v54 = vadd.f32 %v5105_v44, %v4796_v33  ;;  %v17418_v18 = vpack.c.bf16 %v13303_v5, %v13293_v50  ;;  %v17419_v33 = vpack.c.bf16 %v13305_v36, %v13295_v48  ;;  %v4474_v2 = vadd.f32 %v17420_v58, %v13297_v35  ;;  %v17436_v39 = vld [vmem:[#allocation46_spill] sm:$0xff]  ;;  %v17494_v50 = vld [vmem:[#allocation144_spill] sm:$0xff] }
 0x5cb   : > { %17409 = vst [vmem:[#allocation114_spill] sm:$0xff] %v13478_v11  ;;  %v13488_v6 = vadd.f32 %v5298_v1, %v4798_v56  ;;  %v5107_v51 = vpop.f32.mrf.mxu0  ;;  %v4667_v8 = vadd.f32 %v17421_v60, %v13297_v35  ;;  %v4476_v17 = vadd.f32 %v17422_v23, %v13348_v24  ;;  %v4669_v52 = vadd.f32 %v17423_v15, %v13348_v24  ;;  %v17426_v35 = vld [vmem:[#allocation84_spill] sm:$0xff]  ;;  %v17439_v1 = vld [vmem:[#allocation113_spill] sm:$0xff]  ;;  %v17444_v60 = vld [vmem:[#allocation30_spill] sm:$0xff] }
 0x5cc   : > { %17412 = vst [vmem:[#allocation119_spill] sm:$0xff] %v13486_v54  ;;  %v5300_v21 = vpop.f32.mrf.mxu1  ;;  %6268 = vmatpush1.bf16.msra.mxu0 %v17414_v31  ;;  %6461 = vmatpush1.bf16.msra.mxu1 %v17415_v38  ;;  %v13496_v47 = vadd.f32 %v5107_v51, %v4799_v13  ;;  %v4478_v37 = vadd.f32 %v17426_v35, %v13348_v24  ;;  %v17446_v35 = vld [vmem:[#allocation102_spill] sm:$0xff]  ;;  %v17525_v11 = vld [vmem:[#allocation120_spill] sm:$0xff] }
 0x5cd   : > { %17413 = vst [vmem:[#allocation70_spill] sm:$0xff] %v13488_v6  ;;  %v13498_v42 = vadd.f32 %v5300_v21, %v4801_v26  ;;  %6269 = vmatprep.subr.bf16.mxu0 %v17418_v18  ;;  %6462 = vmatprep.subr.bf16.mxu1 %v17419_v33  ;;  %v5109_v32 = vpop.f32.mrf.mxu0  ;;  %v4671_v56 = vadd.f32 %v17427_v43, %v13348_v24  ;;  %v17435_v24 = vld [vmem:[#allocation72_spill] sm:$0xff]  ;;  %v4806_v51 = vmax.f32 %v4667_v8, 0.0  ;;  %v4807_v21 = vmax.f32 %v4476_v17, 0.0  ;;  %v17441_v18 = vld [vmem:[#allocation107_spill] sm:$0xff] }
 0x5ce   : > { %17416 = vst [vmem:[#allocation23_spill] sm:$0xff] %v13496_v47  ;;  %v5302_v61 = vpop.f32.mrf.mxu1  ;;  %v13518_v5 = vadd.f32 %v5109_v32, %v4800_v27  ;;  %v17429_v49 = vpack.c.bf16 %v13285_v46, %v17428_v22  ;;  %v17432_v10 = vpack.c.bf16 %v17430_v55, %v17431_v19  ;;  %v17437_v44 = vpack.c.bf16 %v17435_v24, %v17436_v39  ;;  %v17438_v46 = vld [vmem:[#allocation105_spill] sm:$0xff]  ;;  %v17449_v8 = vld [vmem:[#allocation47_spill] sm:$0xff]  ;;  %v17458_v24 = vld [vmem:[#allocation88_spill] sm:$0xff] }
 0x5cf   : > { %17417 = vst [vmem:[#allocation71_spill] sm:$0xff] %v13498_v42  ;;  %v13520_v36 = vadd.f32 %v5302_v61, %v4802_v59  ;;  %v5113_v7 = vpop.f32.mrf.mxu0  ;;  %v17440_v13 = vpack.c.bf16 %v17438_v46, %v17439_v1  ;;  %v4804_v59 = vmax.f32 %v4474_v2, 0.0  ;;  %v4809_v31 = vmax.f32 %v4669_v52, 0.0  ;;  %v17445_v61 = vld [vmem:[#allocation96_spill] sm:$0xff]  ;;  %v17448_v2 = vld [vmem:[#allocation50_spill] sm:$0xff]  ;;  %v17455_v55 = vld [vmem:[#allocation89_spill] sm:$0xff] }
 0x5d0   : > { %17424 = vst [vmem:[#allocation147_spill] sm:$0xff] %v13518_v5  ;;  %v5306_v25 = vpop.f32.mrf.mxu1  ;;  %6270 = vmatpush1.bf16.msra.mxu0 %v17429_v49  ;;  %6463 = vmatpush1.bf16.msra.mxu1 %v17432_v10  ;;  %v13536_v62 = vadd.f32 %v5113_v7, %v4803_v45  ;;  %v4808_v38 = vmax.f32 %v4478_v37, 0.0  ;;  %v17442_v45 = vld [vmem:[#allocation64_spill] sm:$0xff]  ;;  %v4484_v23 = vadd.f32 %v17444_v60, %v17441_v18  ;;  %v4810_v52 = vmax.f32 %v4671_v56, 0.0  ;;  %v17451_v37 = vld [vmem:[#allocation19_spill] sm:$0xff]  ;;  %v17454_v49 = vld [vmem:[#allocation93_spill] sm:$0xff] }
 0x5d1   : > { %17425 = vst [vmem:[#allocation145_spill] sm:$0xff] %v13520_v36  ;;  %v13538_v0 = vadd.f32 %v5306_v25, %v4805_v34  ;;  %6271 = vmatprep.subr.bf16.mxu0 %v17437_v44  ;;  %6464 = vmatprep.subr.bf16.mxu1 %v17440_v13  ;;  %v5115_v26 = vpop.f32.mrf.mxu0  ;;  %v4482_v33 = vadd.f32 %v17442_v45, %v17441_v18  ;;  %v17443_v34 = vld [vmem:[#allocation24_spill] sm:$0xff]  ;;  %v17457_v10 = vld [vmem:[#allocation111_spill] sm:$0xff]  ;;  %v17460_v44 = vld [vmem:[#allocation109_spill] sm:$0xff] }
 0x5d2   : > { %17433 = vst [vmem:[#allocation148_spill] sm:$0xff] %v13536_v62  ;;  %v5308_v27 = vpop.f32.mrf.mxu1  ;;  %v4675_v58 = vadd.f32 %v17443_v34, %v17441_v18  ;;  %v17447_v43 = vpack.c.bf16 %v17445_v61, %v17446_v35  ;;  %v17450_v17 = vpack.c.bf16 %v17448_v2, %v17449_v8  ;;  %v4677_v7 = vadd.f32 %v17451_v37, %v17441_v18  ;;  %v17461_v46 = vld [vmem:[#allocation124_spill] sm:$0xff]  ;;  %v17462_v56 = vld [vmem:[#allocation61_spill] sm:$0xff]  ;;  %v17463_v35 = vld [vmem:[#allocation131_spill] sm:$0xff] }
 0x5d3   : > { %17434 = vst [vmem:[#allocation69_spill] sm:$0xff] %v13538_v0  ;;  %v5117_v15 = vpop.f32.mrf.mxu0  ;;  %v17456_v19 = vpack.c.bf16 %v17454_v49, %v17455_v55  ;;  %v17459_v39 = vpack.c.bf16 %v17457_v10, %v17458_v24  ;;  %v4486_v1 = vadd.f32 %v17461_v46, %v17460_v44  ;;  %v4679_v13 = vadd.f32 %v17462_v56, %v17460_v44  ;;  %v17467_v8 = vld [vmem:[#allocation67_spill] sm:$0xff]  ;;  %v17509_v34 = vld [vmem:[#allocation9_spill] sm:$0xff]  ;;  %v17529_v54 = vld [vmem:[#allocation68_spill] sm:$0xff] }
 0x5d4   : > { %v5310_v32 = vpop.f32.mrf.mxu1  ;;  %6272 = vmatpush1.bf16.msra.mxu0 %v17447_v43  ;;  %6465 = vmatpush1.bf16.msra.mxu1 %v17450_v17  ;;  %v13560_v25 = vadd.f32 %v5117_v15, %v4807_v21  ;;  %v13574_v45 = vadd.f32 %v5115_v26, %v4804_v59  ;;  %v13576_v21 = vadd.f32 %v5308_v27, %v4806_v51  ;;  %v4811_v61 = vmax.f32 %v4482_v33, 0.0  ;;  %v17464_v27 = vld [vmem:[#allocation100_spill] sm:$0xff]  ;;  %v17465_v51 = vld [vmem:[#allocation91_spill] sm:$0xff]  ;;  %v17468_v17 = vld [vmem:[#allocation101_spill] sm:$0xff] }
 0x5d5   : > { %v13562_v22 = vadd.f32 %v5310_v32, %v4809_v31  ;;  %6273 = vmatprep.subr.bf16.mxu0 %v17456_v19  ;;  %6466 = vmatprep.subr.bf16.mxu1 %v17459_v39  ;;  %v5119_v31 = vpop.f32.mrf.mxu0  ;;  %v4488_v43 = vadd.f32 %v17463_v35, %v17460_v44  ;;  %v17466_v2 = vpack.c.bf16 %v17464_v27, %v17465_v51  ;;  %v4813_v49 = vmax.f32 %v4675_v58, 0.0  ;;  %v17471_v19 = vld [vmem:[#allocation118_spill] sm:$0xff]  ;;  %v17472_v10 = vld [vmem:[#allocation51_spill] sm:$0xff]  ;;  %v17477_v51 = vld [vmem:[#allocation108_spill] sm:$0xff] }
 0x5d6   : > { %17452 = vst [vmem:[#allocation146_spill] sm:$0xff] %v13560_v25  ;;  %v5312_v18 = vpop.f32.mrf.mxu1  ;;  %v13582_v15 = vadd.f32 %v5119_v31, %v4808_v38  ;;  %v17469_v37 = vpack.c.bf16 %v17467_v8, %v17468_v17  ;;  %v17470_v38 = vld [vmem:[#allocation53_spill] sm:$0xff]  ;;  %v17473_v24 = vpack.c.bf16 %v17471_v19, %v17472_v10  ;;  %v4812_v39 = vmax.f32 %v4484_v23, 0.0  ;;  %v17475_v35 = vld [vmem:[#allocation98_spill] sm:$0xff]  ;;  %v17481_v23 = vld [vmem:[#allocation40_spill] sm:$0xff] }
 0x5d7   : > { %17453 = vst [vmem:[#allocation139_spill] sm:$0xff] %v13562_v22  ;;  %v13584_v32 = vadd.f32 %v5312_v18, %v4810_v52  ;;  %v5123_v26 = vpop.f32.mrf.mxu0  ;;  %v4681_v55 = vadd.f32 %v17470_v38, %v17460_v44  ;;  %v4814_v46 = vmax.f32 %v4677_v7, 0.0  ;;  %v4815_v56 = vmax.f32 %v4486_v1, 0.0  ;;  %v17474_v18 = vld [vmem:[#allocation86_spill] sm:$0xff]  ;;  %v17479_v17 = vld [vmem:[#allocation13_spill] sm:$0xff]  ;;  %v17483_v10 = vld [vmem:[#allocation123_spill] sm:$0xff] }
 0x5d8   : > { %v5316_v59 = vpop.f32.mrf.mxu1  ;;  %6274 = vmatpush1.bf16.msra.mxu0 %v17466_v2  ;;  %6467 = vmatpush1.bf16.msra.mxu1 %v17469_v37  ;;  %v4817_v31 = vmax.f32 %v4679_v13, 0.0  ;;  %v17476_v58 = vpack.c.bf16 %v17474_v18, %v17475_v35  ;;  %v17478_v2 = vld [vmem:[#allocation48_spill] sm:$0xff]  ;;  %v4685_v37 = vadd.f32 %v17479_v17, %v17477_v51  ;;  %v17480_v38 = vld [vmem:[#allocation45_spill] sm:$0xff]  ;;  %v4687_v7 = vadd.f32 %v17481_v23, %v17477_v51  ;;  %v17482_v13 = vld [vmem:[#allocation103_spill] sm:$0xff] }
 0x5d9   : > { %6275 = vmatprep.subr.bf16.mxu0 %v17473_v24  ;;  %v5125_v27 = vpop.f32.mrf.mxu0  ;;  %v4492_v8 = vadd.f32 %v17478_v2, %v17477_v51  ;;  %v4494_v19 = vadd.f32 %v17480_v38, %v17477_v51  ;;  %v4816_v1 = vmax.f32 %v4488_v43, 0.0  ;;  %v4496_v24 = vadd.f32 %v17483_v10, %v17482_v13  ;;  %v17484_v18 = vld [vmem:[#allocation38_spill] sm:$0xff]  ;;  %v17489_v38 = vld [vmem:[#allocation99_spill] sm:$0xff]  ;;  %v17527_v42 = vld [vmem:[#allocation65_spill] sm:$0xff] }
 0x5da   : > { %6468 = vmatprep.subr.bf16.mxu1 %v17476_v58  ;;  %v5318_v44 = vpop.f32.mrf.mxu1  ;;  %v4689_v35 = vadd.f32 %v17484_v18, %v17482_v13  ;;  %v13618_v58 = vadd.f32 %v5123_v26, %v4811_v61  ;;  %v17487_v17 = vpack.c.bf16 %v17485_v12, %v17486_v4  ;;  %v17490_v48 = vpack.c.bf16 %v17488_v28, %v17489_v38  ;;  %v17491_v18 = vld [vmem:[#allocation55_spill] sm:$0xff]  ;;  %v17497_v12 = vld [vmem:[#allocation36_spill] sm:$0xff]  ;;  %v17498_v28 = vld [vmem:[#allocation41_spill] sm:$0xff] }
 0x5db   : > { %v5127_v16 = vpop.f32.mrf.mxu0  ;;  %v4818_v51 = vmax.f32 %v4681_v55, 0.0  ;;  %v13626_v43 = vadd.f32 %v5316_v59, %v4813_v49  ;;  %v17492_v61 = vld [vmem:[#allocation75_spill] sm:$0xff]  ;;  %v17496_v29 = vpack.c.bf16 %v17494_v50, %v17495_v41  ;;  %v4498_v4 = vadd.f32 %v17497_v12, %v17482_v13  ;;  %v17531_v62 = vld [vmem:[#allocation60_spill] sm:$0xff] }
 0x5dc   : > { %v5320_v2 = vpop.f32.mrf.mxu1  ;;  %6276 = vmatpush1.bf16.msra.mxu0 %v17487_v17  ;;  %6469 = vmatpush1.bf16.msra.mxu1 %v17490_v48  ;;  %v13628_v23 = vadd.f32 %v5127_v16, %v4815_v56  ;;  %v17493_v26 = vpack.c.bf16 %v17491_v18, %v17492_v61  ;;  %v4691_v48 = vadd.f32 %v17498_v28, %v17482_v13  ;;  %v17499_v17 = vld [vmem:[#allocation66_spill] sm:$0xff]  ;;  %v4819_v38 = vmax.f32 %v4492_v8, 0.0  ;;  %v17506_v60 = vld [vmem:[#allocation39_spill] sm:$0xff]  ;;  %v17507_v8 = vld [vmem:[#allocation37_spill] sm:$0xff] }
 0x5dd   : > { %v13630_v10 = vadd.f32 %v5320_v2, %v4817_v31  ;;  %6470 = vmatprep.subr.bf16.mxu1 %v17496_v29  ;;  %v13642_v59 = vadd.f32 %v5125_v27, %v4812_v39  ;;  %v13644_v16 = vadd.f32 %v5318_v44, %v4814_v46  ;;  %v5129_v49 = vpop.f32.mrf.mxu0  ;;  %v17500_v13 = vld [vmem:[#allocation78_spill] sm:$0xff]  ;;  %v4821_v18 = vmax.f32 %v4685_v37, 0.0  ;;  %v17528_v36 = vld [vmem:[#allocation143_spill] sm:$0xff] }
 0x5de   : > { %6277 = vmatprep.subr.bf16.mxu0 %v17493_v26  ;;  %v5322_v55 = vpop.f32.mrf.mxu1  ;;  %v13650_v50 = vadd.f32 %v5129_v49, %v4816_v1  ;;  %v17501_v39 = vpack.c.bf16 %v17499_v17, %v17500_v13  ;;  %v17502_v46 = vld [vmem:[#allocation54_spill] sm:$0xff]  ;;  %v4822_v26 = vmax.f32 %v4687_v7, 0.0  ;;  %v4823_v12 = vmax.f32 %v4496_v24, 0.0 }
 0x5df   : > { %v13652_v29 = vadd.f32 %v5322_v55, %v4818_v51  ;;  %v5133_v41 = vpop.f32.mrf.mxu0  ;;  %v17503_v27 = vld [vmem:[#allocation74_spill] sm:$0xff]  ;;  %v4820_v51 = vmax.f32 %v4494_v19, 0.0  ;;  %v4825_v28 = vmax.f32 %v4689_v35, 0.0  ;;  %v4824_v17 = vmax.f32 %v4498_v4, 0.0  ;;  %v17510_v19 = vld [vmem:[#allocation87_spill] sm:$0xff] }
 0x5e0   : > { %v5326_v2 = vpop.f32.mrf.mxu1  ;;  %6278 = vmatpush1.bf16.msra.mxu0 %v17501_v39  ;;  %v17504_v44 = vpack.c.bf16 %v17502_v46, %v17503_v27  ;;  %v4826_v13 = vmax.f32 %v4691_v48, 0.0  ;;  %v17505_v39 = vld [vmem:[#allocation97_spill] sm:$0xff]  ;;  %v17508_v27 = vld [vmem:[#allocation11_spill] sm:$0xff]  ;;  %v17511_v7 = vld [vmem:[#allocation10_spill] sm:$0xff]  ;;  %v13676_v31 = vadd.f32 %v5133_v41, %v4819_v38  ;;  %v4715_v14 = vadd.f32 %v17527_v42, %v17525_v11 }
 0x5e1   : > { %v5135_v49 = vpop.f32.mrf.mxu0  ;;  %v4502_v46 = vadd.f32 %v17506_v60, %v17505_v39  ;;  %v4695_v37 = vadd.f32 %v17507_v8, %v17505_v39  ;;  %v4697_v52 = vadd.f32 %v17509_v34, %v17505_v39  ;;  %v4506_v24 = vadd.f32 %v17511_v7, %v17510_v19  ;;  %v17512_v35 = vld [vmem:[#allocation26_spill] sm:$0xff]  ;;  %v17514_v34 = vld [vmem:[#allocation32_spill] sm:$0xff] }
 0x5e2   : > { %6471 = vmatpush1.bf16.msra.mxu1 %v17504_v44  ;;  %v5328_v55 = vpop.f32.mrf.mxu1  ;;  %v4504_v44 = vadd.f32 %v17508_v27, %v17505_v39  ;;  %v4699_v33 = vadd.f32 %v17512_v35, %v17510_v19  ;;  %v13678_v60 = vadd.f32 %v5326_v2, %v4821_v18  ;;  %v17513_v27 = vld [vmem:[#allocation17_spill] sm:$0xff]  ;;  %v4701_v39 = vadd.f32 %v17514_v34, %v17510_v19 }
 0x5e3   : > { %v5137_v4 = vpop.f32.mrf.mxu0  ;;  %v4508_v1 = vadd.f32 %v17513_v27, %v17510_v19  ;;  %v13688_v7 = vadd.f32 %v5135_v49, %v4820_v51  ;;  %v13690_v61 = vadd.f32 %v5328_v55, %v4822_v26  ;;  %v4827_v49 = vmax.f32 %v4502_v46, 0.0  ;;  %v17518_v51 = vld [vmem:[#allocation34_spill] sm:$0xff]  ;;  %v17519_v46 = vld [vmem:[#allocation33_spill] sm:$0xff] }
 0x5e4   : > { %v5330_v48 = vpop.f32.mrf.mxu1  ;;  %v13680_v56 = vadd.f32 %v5137_v4, %v4823_v12  ;;  %v4829_v55 = vmax.f32 %v4695_v37, 0.0  ;;  %v4828_v19 = vmax.f32 %v4504_v44, 0.0  ;;  %v4830_v4 = vmax.f32 %v4697_v52, 0.0 }
 0x5e5   : > { %v13682_v8 = vadd.f32 %v5330_v48, %v4825_v28  ;;  %v5139_v35 = vpop.f32.mrf.mxu0  ;;  %v4831_v34 = vmax.f32 %v4506_v24, 0.0  ;;  %v4833_v2 = vmax.f32 %v4699_v33, 0.0 }
 0x5e6   : > { %v5332_v63 = vpop.f32.mrf.mxu1  ;;  %v13696_v38 = vadd.f32 %v5139_v35, %v4824_v17  ;;  %v4832_v17 = vmax.f32 %v4508_v1, 0.0  ;;  %v4834_v35 = vmax.f32 %v4701_v39, 0.0  ;;  %v17520_v39 = vld [vmem:[#allocation90_spill] sm:$0xff] }
 0x5e7   : > { %v13698_v18 = vadd.f32 %v5332_v63, %v4826_v13  ;;  %v5143_v12 = vpop.f32.mrf.mxu0  ;;  %v17515_v63 = vld [vmem:[#allocation92_spill] sm:$0xff]  ;;  %v17516_v13 = vld [vmem:[#allocation35_spill] sm:$0xff] }
 0x5e8   : > { %v5336_v28 = vpop.f32.mrf.mxu1  ;;  %v4512_v41 = vadd.f32 %v17516_v13, %v17515_v63  ;;  %v4705_v20 = vadd.f32 %v17517_v57, %v17515_v63  ;;  %v4514_v9 = vadd.f32 %v17518_v51, %v17515_v63  ;;  %v4707_v37 = vadd.f32 %v17519_v46, %v17515_v63  ;;  %v17521_v13 = vld [vmem:[#allocation28_spill] sm:$0xff]  ;;  %v17522_v57 = vld [vmem:[#allocation57_spill] sm:$0xff] }
 0x5e9   : > { %v5145_v48 = vpop.f32.mrf.mxu0  ;;  %v13712_v26 = vadd.f32 %v5143_v12, %v4827_v49  ;;  %v13714_v24 = vadd.f32 %v5336_v28, %v4829_v55  ;;  %v4516_v53 = vadd.f32 %v17521_v13, %v17520_v39  ;;  %v4709_v40 = vadd.f32 %v17522_v57, %v17520_v39  ;;  %v17523_v55 = vld [vmem:[#allocation52_spill] sm:$0xff] }
 0x5ea   : > { %v5338_v27 = vpop.f32.mrf.mxu1  ;;  %v13724_v51 = vadd.f32 %v5145_v48, %v4828_v19  ;;  %v17524_v19 = vld [vmem:[#allocation49_spill] sm:$0xff]  ;;  %v4835_v13 = vmax.f32 %v4512_v41, 0.0  ;;  %v4837_v57 = vmax.f32 %v4705_v20, 0.0 }
 0x5eb   : > { %v5147_v44 = vpop.f32.mrf.mxu0  ;;  %v13726_v30 = vadd.f32 %v5338_v27, %v4830_v4  ;;  %v4711_v48 = vadd.f32 %v17524_v19, %v17520_v39  ;;  %v4839_v28 = vmax.f32 %v4516_v53, 0.0  ;;  %v4841_v12 = vmax.f32 %v4709_v40, 0.0  ;;  %v17530_v53 = vld [vmem:[#allocation83_spill] sm:$0xff] }
 0x5ec   : > { %v5340_v52 = vpop.f32.mrf.mxu1  ;;  %v13716_v33 = vadd.f32 %v5147_v44, %v4831_v34  ;;  %v4518_v34 = vadd.f32 %v17523_v55, %v17520_v39  ;;  %v17526_v39 = vld [vmem:[#allocation44_spill] sm:$0xff]  ;;  %v4719_v40 = vadd.f32 %v17530_v53, %v17528_v36 }
 0x5ed   : > { %v13718_v1 = vadd.f32 %v5340_v52, %v4833_v2  ;;  %v5149_v63 = vpop.f32.mrf.mxu0  ;;  %v4842_v3 = vmax.f32 %v4711_v48, 0.0  ;;  %v4522_v19 = vadd.f32 %v17526_v39, %v17525_v11 }
 0x5ee   : > { %v5342_v46 = vpop.f32.mrf.mxu1  ;;  %v13732_v2 = vadd.f32 %v5149_v63, %v4832_v17  ;;  %v4840_v55 = vmax.f32 %v4518_v34, 0.0 }
 0x5ef   : > { %v13734_v49 = vadd.f32 %v5342_v46, %v4834_v35  ;;  %v5153_v4 = vpop.f32.mrf.mxu0  ;;  %v4836_v35 = vmax.f32 %v4514_v9, 0.0  ;;  %v4838_v46 = vmax.f32 %v4707_v37, 0.0  ;;  %v4526_v9 = vadd.f32 %v17529_v54, %v17528_v36 }
 0x5f0   : > { %v5346_v27 = vpop.f32.mrf.mxu1  ;;  %v5477_v6 = vadd.f32 %v5153_v4, %v4835_v13  ;;  %v4524_v4 = vadd.f32 %v17531_v62, %v17525_v11 }
 0x5f1   : > { %v5155_v17 = vpop.f32.mrf.mxu0  ;;  %v5479_v52 = vadd.f32 %v5346_v27, %v4837_v57  ;;  %v17534_v27 = vld [vmem:[#allocation77_spill] sm:$0xff] }
 0x5f2   : > { %v5348_v63 = vpop.f32.mrf.mxu1  ;;  %v5478_v37 = vadd.f32 %v5155_v17, %v4836_v35  ;;  %v4843_v35 = vmax.f32 %v4522_v19, 0.0  ;;  %v4844_v62 = vmax.f32 %v4524_v4, 0.0 }
 0x5f3   : > { %v5157_v44 = vpop.f32.mrf.mxu0  ;;  %v5480_v34 = vadd.f32 %v5348_v63, %v4838_v46  ;;  %v4849_v46 = vmax.f32 %v4719_v40, 0.0 }
 0x5f4   : > { %v5350_v47 = vpop.f32.mrf.mxu1  ;;  %v5481_v41 = vadd.f32 %v5157_v44, %v4839_v28  ;;  %v17532_v28 = vld [vmem:[#allocation85_spill] sm:$0xff]  ;;  %v4721_v44 = vadd.f32 %v17534_v27, %v17528_v36 }
 0x5f5   : > { %v5483_v20 = vadd.f32 %v5350_v47, %v4841_v12  ;;  %v5159_v48 = vpop.f32.mrf.mxu0  ;;  %v4717_v47 = vadd.f32 %v17532_v28, %v17525_v11  ;;  %v17533_v12 = vld [vmem:[#allocation80_spill] sm:$0xff] }
 0x5f6   : > { %v5352_v5 = vpop.f32.mrf.mxu1  ;;  %v5581_v39 = vpack.c.bf16 %v5481_v41, %v5477_v6  ;;  %v5482_v22 = vadd.f32 %v5159_v48, %v4840_v55  ;;  %v4528_v54 = vadd.f32 %v17533_v12, %v17528_v36  ;;  %v4850_v11 = vmax.f32 %v4721_v44, 0.0 }
 0x5f7   : > { %v5583_v0 = vpack.c.bf16 %v5483_v20, %v5479_v52  ;;  %v5484_v42 = vadd.f32 %v5352_v5, %v4842_v3  ;;  %v5163_v13 = vpop.f32.mrf.mxu0  ;;  %v4845_v3 = vmax.f32 %v4715_v14, 0.0  ;;  %v4847_v5 = vmax.f32 %v4526_v9, 0.0 }
 0x5f8   : > { %v5356_v57 = vpop.f32.mrf.mxu1  ;;  %v5582_v17 = vpack.c.bf16 %v5482_v22, %v5478_v37  ;;  %v4846_v55 = vmax.f32 %v4717_v47, 0.0  ;;  %v4848_v41 = vmax.f32 %v4528_v54, 0.0  ;;  %v5485_v48 = vadd.f32 %v5163_v13, %v4843_v35 }
 0x5f9   : > { %v5584_v63 = vpack.c.bf16 %v5484_v42, %v5480_v34  ;;  %v5165_v6 = vpop.f32.mrf.mxu0  ;;  %v5487_v28 = vadd.f32 %v5356_v57, %v4845_v3  ;;  %v17535_v3 = vpack.c.bf16 %v13732_v2, %v13724_v51  ;;  %v17540_v2 = vpack.c.bf16 %v13698_v18, %v13690_v61 }
 0x5fa   : > { %v5358_v52 = vpop.f32.mrf.mxu1  ;;  %v5486_v27 = vadd.f32 %v5165_v6, %v4844_v62  ;;  %v17543_v61 = vpack.c.bf16 %v13650_v50, %v13642_v59  ;;  %v17548_v50 = vpack.c.bf16 %v13584_v32, %v13576_v21  ;;  %v17550_v62 = vld [vmem:[#allocation148_spill] sm:$0xff]  ;;  %v17556_v21 = vld [vmem:[#allocation119_spill] sm:$0xff] }
 0x5fb   : > { %v5167_v20 = vpop.f32.mrf.mxu0  ;;  %v5488_v25 = vadd.f32 %v5358_v52, %v4846_v55  ;;  %v17553_v55 = vld [vmem:[#allocation69_spill] sm:$0xff] }
 0x5fc   : > { %v5360_v53 = vpop.f32.mrf.mxu1  ;;  %v5489_v12 = vadd.f32 %v5167_v20, %v4847_v5  ;;  %v17536_v5 = vpack.c.bf16 %v13734_v49, %v13726_v30  ;;  %v17539_v30 = vpack.c.bf16 %v13696_v38, %v13688_v7  ;;  %v17544_v38 = vpack.c.bf16 %v13652_v29, %v13644_v16  ;;  %v17558_v20 = vld [vmem:[#allocation145_spill] sm:$0xff] }
 0x5fd   : > { %v5491_v36 = vadd.f32 %v5360_v53, %v4849_v46  ;;  %v5169_v22 = vpop.f32.mrf.mxu0  ;;  %v17547_v16 = vpack.c.bf16 %v13582_v15, %v13574_v45  ;;  %v17555_v15 = vld [vmem:[#allocation147_spill] sm:$0xff]  ;;  %v17559_v53 = vld [vmem:[#allocation70_spill] sm:$0xff] }
 0x5fe   : > { %v5362_v37 = vpop.f32.mrf.mxu1  ;;  %v5585_v34 = vpack.c.bf16 %v5489_v12, %v5485_v48  ;;  %v5490_v19 = vadd.f32 %v5169_v22, %v4848_v41  ;;  %v17557_v32 = vpack.c.bf16 %v17555_v15, %v17556_v21  ;;  %v17560_v48 = vpack.c.bf16 %v17558_v20, %v17559_v53  ;;  %v9576_v15 = vld [vmem:[%s10060_s22 + $0xc4] ss:$16 sps:$4 sm:$0xff]   ;;  %v9577_v21 = vld [vmem:[%s10060_s22 + $0xcc] ss:$16 sps:$4 sm:$0xff]   ;;  %v9578_v53 = vld [vmem:[%s10060_s22 + $0xc0] ss:$16 sps:$4 sm:$0xff]  }
 0x5ff   : > { %v5587_v42 = vpack.c.bf16 %v5491_v36, %v5487_v28  ;;  %v5492_v14 = vadd.f32 %v5362_v37, %v4850_v11  ;;  %v13760_v9 = vpop.f32.mrf.mxu0  ;;  %v17562_v36 = vld [vmem:[#allocation23_spill] sm:$0xff] }
 0x600   : > { %v13762_v40 = vpop.f32.mrf.mxu1  ;;  %v5586_v4 = vpack.c.bf16 %v5490_v19, %v5486_v27  ;;  %v17563_v27 = vld [vmem:[#allocation43_spill] sm:$0xff]  ;;  %v17568_v19 = vld [vmem:[#allocation116_spill] sm:$0xff] }
 0x601   : > { %v5588_v47 = vpack.c.bf16 %v5492_v14, %v5488_v25  ;;  %v13764_v54 = vpop.f32.mrf.mxu0  ;;  %v17564_v22 = vpack.c.bf16 %v17562_v36, %v17563_v27  ;;  %v17565_v37 = vld [vmem:[#allocation71_spill] sm:$0xff]  ;;  %v17569_v14 = vld [vmem:[#allocation29_spill] sm:$0xff] }
 0x602   : > { %v13766_v44 = vpop.f32.mrf.mxu1  ;;  %6279 = vmatprep.subr.bf16.mxu0 %v5586_v4  ;;  %v17570_v4 = vpack.c.bf16 %v17568_v19, %v17569_v14  ;;  %v9338_v20 = vld [vmem:[%s16139_s5 + $0x24] ss:$8 sps:$4 sm:$0xff]  }
 0x603   : > { %6472 = vmatprep.subr.bf16.mxu1 %v5588_v47  ;;  %6280 = vmatpush2.bf16.msra.mxu0 %v5585_v34  ;;  %v13768_v13 = vpop.f32.mrf.mxu0  ;;  %v17566_v34 = vld [vmem:[#allocation114_spill] sm:$0xff]  ;;  %v17571_v47 = vld [vmem:[#allocation56_spill] sm:$0xff] }
 0x604   : > { %6473 = vmatpush2.bf16.msra.mxu1 %v5587_v42  ;;  %v13770_v57 = vpop.f32.mrf.mxu1  ;;  %6281 = vmatprep.subr.bf16.mxu0 %v5582_v17  ;;  %v17567_v42 = vpack.c.bf16 %v17565_v37, %v17566_v34  ;;  %v9581_v37 = vld [vmem:[%s10060_s22 + $0xac] ss:$16 sps:$4 sm:$0xff]   ;;  %v9582_v34 = vld [vmem:[%s10060_s22 + $0xa0] ss:$16 sps:$4 sm:$0xff]  }
 0x605   : > { %6474 = vmatprep.subr.bf16.mxu1 %v5584_v63  ;;  %v13772_v6 = vpop.f32.mrf.mxu0 }
 0x606   : > { %v13774_v52 = vpop.f32.mrf.mxu1 }
 0x607   : > { %6282 = vmatpush2.bf16.msra.mxu0 %v5581_v39  ;;  %v13776_v25 = vpop.f32.mrf.mxu0  ;;  %v17537_v39 = vpack.c.bf16 %v13716_v33, %v13712_v26  ;;  %v17542_v33 = vpack.c.bf16 %v13682_v8, %v13678_v60  ;;  %v17546_v60 = vpack.c.bf16 %v13630_v10, %v13626_v43  ;;  %v17552_v10 = vld [vmem:[#allocation139_spill] sm:$0xff] }
 0x608   : > { %6475 = vmatpush2.bf16.msra.mxu1 %v5583_v0  ;;  %v13778_v35 = vpop.f32.mrf.mxu1  ;;  %6283 = vmatprep.subr.bf16.mxu0 %v17535_v3  ;;  %v17538_v0 = vpack.c.bf16 %v13718_v1, %v13714_v24  ;;  %v17541_v24 = vpack.c.bf16 %v13680_v56, %v13676_v31  ;;  %v17545_v31 = vpack.c.bf16 %v13628_v23, %v13618_v58  ;;  %v17549_v23 = vld [vmem:[#allocation146_spill] sm:$0xff] }
 0x609   : > { %6476 = vmatprep.subr.bf16.mxu1 %v17536_v5  ;;  %v13786_v17 = vpop.f32.mrf.mxu0  ;;  %v17551_v43 = vpack.c.bf16 %v17549_v23, %v17550_v62  ;;  %v17554_v41 = vpack.c.bf16 %v17552_v10, %v17553_v55  ;;  %v17572_v3 = vld [vmem:[#allocation58_spill] sm:$0xff] }
 0x60a   : > { %v13788_v63 = vpop.f32.mrf.mxu1  ;;  %v17573_v5 = vpack.c.bf16 %v17571_v47, %v17572_v3  ;;  %v9575_v10 = vld [vmem:[%s10060_s22 + $0xe8] ss:$16 sps:$4 sm:$0xff]   ;;  %v9585_v47 = vld [vmem:[%s10060_s22 + $0x8c] ss:$16 sps:$4 sm:$0xff]  }
 0x60b   : > { %6284 = vmatpush2.bf16.msra.mxu0 %v17537_v39  ;;  %v13796_v46 = vpop.f32.mrf.mxu0  ;;  %v9336_v3 = vld [vmem:[%s16139_s5 + $0x20] ss:$8 sps:$4 sm:$0xff]  }
 0x60c   : > { %6477 = vmatpush2.bf16.msra.mxu1 %v17538_v0  ;;  %v13798_v51 = vpop.f32.mrf.mxu1  ;;  %6285 = vmatprep.subr.bf16.mxu0 %v17539_v30  ;;  %v9330_v30 = vld [vmem:[%s16139_s5] ss:$8 sps:$4 sm:$0xff]  }
 0x60d   : > { %6478 = vmatprep.subr.bf16.mxu1 %v17540_v2  ;;  %v13806_v49 = vpop.f32.mrf.mxu0  ;;  %v17576_v2 = vld [vmem:[#allocation59_spill] sm:$0xff] }
 0x60e   : > { %v13808_v26 = vpop.f32.mrf.mxu1 }
 0x60f   : > { %6286 = vmatpush2.bf16.msra.mxu0 %v17541_v24  ;;  %v13816_v1 = vpop.f32.mrf.mxu0  ;;  %v17577_v24 = vld [vmem:[#allocation110_spill] sm:$0xff] }
 0x610   : > { %6479 = vmatpush2.bf16.msra.mxu1 %v17542_v33  ;;  %v13818_v7 = vpop.f32.mrf.mxu1  ;;  %6287 = vmatprep.subr.bf16.mxu0 %v17543_v61  ;;  %v17578_v33 = vpack.c.bf16 %v17576_v2, %v17577_v24  ;;  %v17579_v61 = vld [vmem:[#allocation117_spill] sm:$0xff]  ;;  %v9587_v2 = vld [vmem:[%s10060_s22 + $0x88] ss:$16 sps:$4 sm:$0xff]  }
 0x611   : > { %6480 = vmatprep.subr.bf16.mxu1 %v17544_v38  ;;  %v13826_v18 = vpop.f32.mrf.mxu0  ;;  %v17580_v38 = vld [vmem:[#allocation42_spill] sm:$0xff] }
 0x612   : > { %v13828_v56 = vpop.f32.mrf.mxu1 }
 0x613   : > { %6288 = vmatpush2.bf16.msra.mxu0 %v17545_v31  ;;  %v13836_v8 = vpop.f32.mrf.mxu0  ;;  %v17581_v31 = vpack.c.bf16 %v17579_v61, %v17580_v38  ;;  %v9588_v61 = vld [vmem:[%s10060_s22 + $0x64] ss:$16 sps:$4 sm:$0xff]   ;;  %v9589_v38 = vld [vmem:[%s10060_s22 + $0x6c] ss:$16 sps:$4 sm:$0xff]  }
 0x614   : > { %6481 = vmatpush2.bf16.msra.mxu1 %v17546_v60  ;;  %v13838_v59 = vpop.f32.mrf.mxu1  ;;  %6289 = vmatprep.subr.bf16.mxu0 %v17547_v16  ;;  %v9335_v60 = vld [vmem:[%s16139_s5 + $0x14] ss:$8 sps:$4 sm:$0xff]  }
 0x615   : > { %6482 = vmatprep.subr.bf16.mxu1 %v17548_v50  ;;  %v13846_v29 = vpop.f32.mrf.mxu0  ;;  %v9572_v16 = vld [vmem:[%s10060_s22 + $0xe4] ss:$16 sps:$4 sm:$0xff]   ;;  %v9573_v50 = vld [vmem:[%s10060_s22 + $0xec] ss:$16 sps:$4 sm:$0xff]  }
 0x616   : > { %v13848_v58 = vpop.f32.mrf.mxu1 }
 0x617   : > { %6290 = vmatpush2.bf16.msra.mxu0 %v17551_v43  ;;  %v13856_v11 = vpop.f32.mrf.mxu0  ;;  %v9574_v43 = vld [vmem:[%s10060_s22 + $0xe0] ss:$16 sps:$4 sm:$0xff]  }
 0x618   : > { %6483 = vmatpush2.bf16.msra.mxu1 %v17554_v41  ;;  %v13858_v45 = vpop.f32.mrf.mxu1  ;;  %6291 = vmatprep.subr.bf16.mxu0 %v17557_v32  ;;  %v9333_v32 = vld [vmem:[%s16139_s5 + $0x10] ss:$8 sps:$4 sm:$0xff]  }
 0x619   : > { %6484 = vmatprep.subr.bf16.mxu1 %v17560_v48  ;;  %v13866_v28 = vpop.f32.mrf.mxu0  ;;  %v9579_v48 = vld [vmem:[%s10060_s22 + $0xc8] ss:$16 sps:$4 sm:$0xff]  }
 0x61a   : > { %v13868_v12 = vpop.f32.mrf.mxu1 }
 0x61b   : > { %17561 = vst [vmem:[#allocation137_spill] sm:$0xff] %v13868_v12  ;;  %6292 = vmatpush2.bf16.msra.mxu0 %v17564_v22  ;;  %v13882_v39 = vpop.f32.mrf.mxu0  ;;  %v9580_v22 = vld [vmem:[%s10060_s22 + $0xa4] ss:$16 sps:$4 sm:$0xff]  }
 0x61c   : > { %6485 = vmatpush2.bf16.msra.mxu1 %v17567_v42  ;;  %6293 = vmatprep.subr.bf16.mxu0 %v17570_v4  ;;  %17574 = vst [vmem:[#allocation140_spill] sm:$0xff] %v13882_v39  ;;  %v13884_v0 = vpop.f32.mrf.mxu1  ;;  %v9583_v42 = vld [vmem:[%s10060_s22 + $0xa8] ss:$16 sps:$4 sm:$0xff]   ;;  %v9584_v4 = vld [vmem:[%s10060_s22 + $0x84] ss:$16 sps:$4 sm:$0xff]  }
 0x61d   : > { %6486 = vmatprep.subr.bf16.mxu1 %v17573_v5  ;;  %17575 = vst [vmem:[#allocation8_spill] sm:$0xff] %v13884_v0  ;;  %v13900_v23 = vpop.f32.mrf.mxu0  ;;  %v9341_v5 = vld [vmem:[%s16139_s5 + $0x34] ss:$8 sps:$4 sm:$0xff]  }
 0x61e   : > { %17582 = vst [vmem:[#allocation138_spill] sm:$0xff] %v13900_v23  ;;  %v13902_v62 = vpop.f32.mrf.mxu1 }
 0x61f   : > { %6294 = vmatpush2.bf16.msra.mxu0 %v17578_v33  ;;  %17583 = vst [vmem:[#allocation135_spill] sm:$0xff] %v13902_v62  ;;  %v13906_v55 = vpop.f32.mrf.mxu0  ;;  %v9390_v62 = vld [vmem:[%s16145_s11 + $0x60] sm:$0xff]  }
 0x620   : > { %6487 = vmatpush2.bf16.msra.mxu1 %v17581_v31  ;;  %6905 = vmatprep.subr.bf16.mxu0 %v9572_v16  ;;  %17584 = vst [vmem:[#allocation133_spill] sm:$0xff] %v13906_v55  ;;  %v13908_v41 = vpop.f32.mrf.mxu1  ;;  %v9590_v31 = vld [vmem:[%s10060_s22 + $0x60] ss:$16 sps:$4 sm:$0xff]  }
 0x621   : > { %7098 = vmatprep.subr.bf16.mxu1 %v9573_v50  ;;  %17585 = vst [vmem:[#allocation136_spill] sm:$0xff] %v13908_v41  ;;  %v13920_v36 = vpop.f32.mrf.mxu0 }
 0x622   : > { %6296 = vmatmul.mubr.bf16.vlgmr.msra.gmra.mxu0 %v9330_v30  ;;  %17586 = vst [vmem:[#allocation21_spill] sm:$0xff] %v13920_v36  ;;  %v13922_v27 = vpop.f32.mrf.mxu1 }
 0x623   : > { %6489 = vmatmul.mubr.bf16.vlgmr.msra.gmra.mxu1 %v9330_v30  ;;  %6305 = vmatprep.mubr.bf16.mxu0 %v9335_v60  ;;  %17587 = vst [vmem:[#allocation134_spill] sm:$0xff] %v13922_v27  ;;  %v13928_v19 = vpop.f32.mrf.mxu0  ;;  %v9586_v30 = vld [vmem:[%s10060_s22 + $0x80] ss:$16 sps:$4 sm:$0xff]  }
 0x624   : > { %6498 = vmatprep.mubr.bf16.mxu1 %v9335_v60  ;;  %6906 = vmatpush1.bf16.msra.mxu0 %v9574_v43  ;;  %17588 = vst [vmem:[#allocation129_spill] sm:$0xff] %v13928_v19  ;;  %v13930_v14 = vpop.f32.mrf.mxu1  ;;  %v9591_v60 = vld [vmem:[%s10060_s22 + $0x68] ss:$16 sps:$4 sm:$0xff]   ;;  %v9592_v43 = vld [vmem:[%s10060_s22 + $0x44] ss:$16 sps:$4 sm:$0xff]  }
 0x625   : > { %7099 = vmatpush1.bf16.msra.mxu1 %v9575_v10  ;;  %6907 = vmatprep.subr.bf16.mxu0 %v9576_v15  ;;  %17589 = vst [vmem:[#allocation127_spill] sm:$0xff] %v13930_v14  ;;  %v13942_v24 = vpop.f32.mrf.mxu0  ;;  %v9593_v10 = vld [vmem:[%s10060_s22 + $0x4c] ss:$16 sps:$4 sm:$0xff]   ;;  %v9339_v15 = vld [vmem:[%s16139_s5 + $0x30] ss:$8 sps:$4 sm:$0xff]  }
 0x626   : > { %7100 = vmatprep.subr.bf16.mxu1 %v9577_v21  ;;  %17590 = vst [vmem:[#allocation130_spill] sm:$0xff] %v13942_v24  ;;  %v13944_v33 = vpop.f32.mrf.mxu1  ;;  %v9344_v21 = vld [vmem:[%s16139_s5 + $0x44] ss:$8 sps:$4 sm:$0xff]  }
 0x627   : > { %17591 = vst [vmem:[#allocation128_spill] sm:$0xff] %v13944_v33  ;;  %v13950_v16 = vpop.f32.mrf.mxu0 }
 0x628   : > { %6908 = vmatpush1.bf16.msra.mxu0 %v9578_v53  ;;  %17592 = vst [vmem:[#allocation142_spill] sm:$0xff] %v13950_v16  ;;  %v13952_v50 = vpop.f32.mrf.mxu1  ;;  %v9594_v53 = vld [vmem:[%s10060_s22 + $0x40] ss:$16 sps:$4 sm:$0xff]   ;;  %v9389_v16 = vld [vmem:[%s16145_s11 + $0x58] sm:$0xff]  }
 0x629   : > { %7101 = vmatpush1.bf16.msra.mxu1 %v9579_v48  ;;  %6909 = vmatprep.subr.bf16.mxu0 %v9580_v22  ;;  %17593 = vst [vmem:[#allocation73_spill] sm:$0xff] %v13952_v50  ;;  %v9595_v48 = vld [vmem:[%s10060_s22 + $0x48] ss:$16 sps:$4 sm:$0xff]   ;;  %v9596_v22 = vld [vmem:[%s10060_s22 + $0x24] ss:$16 sps:$4 sm:$0xff]  }
 0x62a   : > { %7102 = vmatprep.subr.bf16.mxu1 %v9581_v37  ;;  %6306 = vmatmul.mubr.bf16.gmra.mxu0 %v9333_v32  ;;  %v9597_v37 = vld [vmem:[%s10060_s22 + $0x2c] ss:$16 sps:$4 sm:$0xff]  }
 0x62b   : > { %6499 = vmatmul.mubr.bf16.gmra.mxu1 %v9333_v32  ;;  %6315 = vmatprep.mubr.bf16.mxu0 %v9338_v20  ;;  %v13962_v32 = vpop.f32.mrf.mxu0 }
 0x62c   : > { %6508 = vmatprep.mubr.bf16.mxu1 %v9338_v20  ;;  %6910 = vmatpush1.bf16.msra.mxu0 %v9582_v34  ;;  %17594 = vst [vmem:[#allocation76_spill] sm:$0xff] %v13962_v32  ;;  %v13964_v20 = vpop.f32.mrf.mxu1 }
 0x62d   : > { %7103 = vmatpush1.bf16.msra.mxu1 %v9583_v42  ;;  %6911 = vmatprep.subr.bf16.mxu0 %v9584_v4  ;;  %17595 = vst [vmem:[#allocation115_spill] sm:$0xff] %v13964_v20  ;;  %v13970_v34 = vpop.f32.mrf.mxu0  ;;  %v9598_v4 = vld [vmem:[%s10060_s22 + $0x20] ss:$16 sps:$4 sm:$0xff]  }
 0x62e   : > { %7104 = vmatprep.subr.bf16.mxu1 %v9585_v47  ;;  %17596 = vst [vmem:[#allocation79_spill] sm:$0xff] %v13970_v34  ;;  %v13972_v42 = vpop.f32.mrf.mxu1  ;;  %v9599_v47 = vld [vmem:[%s10060_s22 + $0x28] ss:$16 sps:$4 sm:$0xff]  }
 0x62f   : > { %17597 = vst [vmem:[#allocation82_spill] sm:$0xff] %v13972_v42 }
 0x630   : > { %6912 = vmatpush1.bf16.msra.mxu0 %v9586_v30  ;;  %v9342_v30 = vld [vmem:[%s16139_s5 + $0x40] ss:$8 sps:$4 sm:$0xff]  }
 0x631   : > { %7105 = vmatpush1.bf16.msra.mxu1 %v9587_v2  ;;  %6913 = vmatprep.subr.bf16.mxu0 %v9588_v61  ;;  %v9347_v2 = vld [vmem:[%s16139_s5 + $0x54] ss:$8 sps:$4 sm:$0xff]   ;;  %v13984_v61 = vpop.f32.mrf.mxu0 }
 0x632   : > { %7106 = vmatprep.subr.bf16.mxu1 %v9589_v38  ;;  %6316 = vmatmul.mubr.bf16.gmra.mxu0 %v9336_v3  ;;  %17598 = vst [vmem:[#allocation125_spill] sm:$0xff] %v13984_v61  ;;  %v13986_v38 = vpop.f32.mrf.mxu1 }
 0x633   : > { %6509 = vmatmul.mubr.bf16.gmra.mxu1 %v9336_v3  ;;  %6325 = vmatprep.mubr.bf16.mxu0 %v9341_v5  ;;  %v9600_v3 = vld [vmem:[%s10060_s22 + $0x4] ss:$16 sps:$4 sm:$0xff]   ;;  %17599 = vst [vmem:[#allocation121_spill] sm:$0xff] %v13986_v38 }
 0x634   : > { %6518 = vmatprep.mubr.bf16.mxu1 %v9341_v5  ;;  %6914 = vmatpush1.bf16.msra.mxu0 %v9590_v31  ;;  %v9601_v5 = vld [vmem:[%s10060_s22 + $0xc] ss:$16 sps:$4 sm:$0xff]   ;;  %v9602_v31 = vld [vmem:[%s10060_s22] ss:$16 sps:$4 sm:$0xff]  }
 0x635   : > { %7107 = vmatpush1.bf16.msra.mxu1 %v9591_v60  ;;  %6915 = vmatprep.subr.bf16.mxu0 %v9592_v43  ;;  %v9603_v60 = vld [vmem:[%s10060_s22 + $0x8] ss:$16 sps:$4 sm:$0xff]   ;;  %v13990_v43 = vpop.f32.mrf.mxu0  ;;  %v9388_v38 = vld [vmem:[%s16145_s11 + $0x50] sm:$0xff]  }
 0x636   : > { %7108 = vmatprep.subr.bf16.mxu1 %v9593_v10  ;;  %17600 = vst [vmem:[#allocation126_spill] sm:$0xff] %v13990_v43  ;;  %v13992_v10 = vpop.f32.mrf.mxu1 }
 0x637   : > { %17601 = vst [vmem:[#allocation122_spill] sm:$0xff] %v13992_v10 }
 0x638   : > { %6916 = vmatpush1.bf16.msra.mxu0 %v9594_v53  ;;  %v14000_v53 = vpop.f32.mrf.mxu0 }
 0x639   : > { %7109 = vmatpush1.bf16.msra.mxu1 %v9595_v48  ;;  %6917 = vmatprep.subr.bf16.mxu0 %v9596_v22  ;;  %17602 = vst [vmem:[#allocation18_spill] sm:$0xff] %v14000_v53  ;;  %v14002_v48 = vpop.f32.mrf.mxu1 }
 0x63a   : > { %7110 = vmatprep.subr.bf16.mxu1 %v9597_v37  ;;  %6326 = vmatmul.mubr.bf16.gmra.mxu0 %v9339_v15  ;;  %17603 = vst [vmem:[#allocation25_spill] sm:$0xff] %v14002_v48  ;;  %v14004_v22 = vpop.f32.mrf.mxu0 }
 0x63b   : > { %6519 = vmatmul.mubr.bf16.gmra.mxu1 %v9339_v15  ;;  %6335 = vmatprep.mubr.bf16.mxu0 %v9344_v21  ;;  %v9345_v15 = vld [vmem:[%s16139_s5 + $0x50] ss:$8 sps:$4 sm:$0xff]   ;;  %17604 = vst [vmem:[#allocation14_spill] sm:$0xff] %v14004_v22  ;;  %v14006_v37 = vpop.f32.mrf.mxu1 }
 0x63c   : > { %6528 = vmatprep.mubr.bf16.mxu1 %v9344_v21  ;;  %6918 = vmatpush1.bf16.msra.mxu0 %v9598_v4  ;;  %v9350_v21 = vld [vmem:[%s16139_s5 + $0x64] ss:$8 sps:$4 sm:$0xff]   ;;  %17605 = vst [vmem:[#allocation12_spill] sm:$0xff] %v14006_v37  ;;  %v9348_v4 = vld [vmem:[%s16139_s5 + $0x60] ss:$8 sps:$4 sm:$0xff]  }
 0x63d   : > { %7111 = vmatpush1.bf16.msra.mxu1 %v9599_v47  ;;  %6919 = vmatprep.subr.bf16.mxu0 %v9600_v3  ;;  %v9353_v47 = vld [vmem:[%s16139_s5 + $0x74] ss:$8 sps:$4 sm:$0xff]   ;;  %v14014_v3 = vpop.f32.mrf.mxu0 }
 0x63e   : > { %7112 = vmatprep.subr.bf16.mxu1 %v9601_v5  ;;  %17606 = vst [vmem:[#allocation15_spill] sm:$0xff] %v14014_v3  ;;  %v14016_v5 = vpop.f32.mrf.mxu1 }
 0x63f   : > { %17607 = vst [vmem:[#allocation22_spill] sm:$0xff] %v14016_v5 }
 0x640   : > { %6920 = vmatpush1.bf16.msra.mxu0 %v9602_v31  ;;  %v9351_v31 = vld [vmem:[%s16139_s5 + $0x70] ss:$8 sps:$4 sm:$0xff]  }
 0x641   : > { %7113 = vmatpush1.bf16.msra.mxu1 %v9603_v60  ;;  %v9356_v60 = vld [vmem:[%s16139_s5 + $0x84] ss:$8 sps:$4 sm:$0xff]  }
 0x642   : > { %6336 = vmatmul.mubr.bf16.gmra.mxu0 %v9342_v30 }
 0x643   : > { %6529 = vmatmul.mubr.bf16.gmra.mxu1 %v9342_v30  ;;  %6345 = vmatprep.mubr.bf16.mxu0 %v9347_v2  ;;  %v14018_v30 = vpop.f32.mrf.mxu0 }
 0x644   : > { %6538 = vmatprep.mubr.bf16.mxu1 %v9347_v2  ;;  %17608 = vst [vmem:[#allocation16_spill] sm:$0xff] %v14018_v30  ;;  %v14020_v2 = vpop.f32.mrf.mxu1  ;;  %v9359_v30 = vld [vmem:[%s16139_s5 + $0x94] ss:$8 sps:$4 sm:$0xff]  }
 0x645   : > { %17609 = vst [vmem:[#allocation20_spill] sm:$0xff] %v14020_v2  ;;  %v9354_v2 = vld [vmem:[%s16139_s5 + $0x80] ss:$8 sps:$4 sm:$0xff]  }
 0x64a   : > { %6346 = vmatmul.mubr.bf16.gmra.mxu0 %v9345_v15 }
 0x64b   : > { %6539 = vmatmul.mubr.bf16.gmra.mxu1 %v9345_v15  ;;  %6355 = vmatprep.mubr.bf16.mxu0 %v9350_v21  ;;  %v14028_v15 = vpop.f32.mrf.mxu0 }
 0x64c   : > { %6548 = vmatprep.mubr.bf16.mxu1 %v9350_v21  ;;  %17610 = vst [vmem:[#allocation31_spill] sm:$0xff] %v14028_v15  ;;  %v14030_v21 = vpop.f32.mrf.mxu1 }
 0x64d   : > { %17611 = vst [vmem:[#allocation132_spill] sm:$0xff] %v14030_v21 }
 0x652   : > { %6356 = vmatmul.mubr.bf16.gmra.mxu0 %v9348_v4 }
 0x653   : > { %6549 = vmatmul.mubr.bf16.gmra.mxu1 %v9348_v4  ;;  %6365 = vmatprep.mubr.bf16.mxu0 %v9353_v47  ;;  %v14032_v4 = vpop.f32.mrf.mxu0 }
 0x654   : > { %6558 = vmatprep.mubr.bf16.mxu1 %v9353_v47  ;;  %17612 = vst [vmem:[#allocation81_spill] sm:$0xff] %v14032_v4  ;;  %v14034_v47 = vpop.f32.mrf.mxu1  ;;  %v9362_v4 = vld [vmem:[%s16139_s5 + $0xa4] ss:$8 sps:$4 sm:$0xff]  }
 0x655   : > { %17613 = vst [vmem:[#allocation84_spill] sm:$0xff] %v14034_v47  ;;  %v14042_v5 = vpop.f32.mrf.mxu0  ;;  %v9357_v47 = vld [vmem:[%s16139_s5 + $0x90] ss:$8 sps:$4 sm:$0xff]  }
 0x656   : > { %17614 = vst [vmem:[#allocation141_spill] sm:$0xff] %v14042_v5  ;;  %v14044_v15 = vpop.f32.mrf.mxu1 }
 0x657   : > { %17615 = vst [vmem:[#allocation104_spill] sm:$0xff] %v14044_v15 }
 0x65a   : > { %6366 = vmatmul.mubr.bf16.gmra.mxu0 %v9351_v31 }
 0x65b   : > { %6559 = vmatmul.mubr.bf16.gmra.mxu1 %v9351_v31  ;;  %6375 = vmatprep.mubr.bf16.mxu0 %v9356_v60  ;;  %v14046_v31 = vpop.f32.mrf.mxu0 }
 0x65c   : > { %6568 = vmatprep.mubr.bf16.mxu1 %v9356_v60  ;;  %17616 = vst [vmem:[#allocation62_spill] sm:$0xff] %v14046_v31  ;;  %v14048_v60 = vpop.f32.mrf.mxu1  ;;  %v9365_v31 = vld [vmem:[%s16139_s5 + $0xb4] ss:$8 sps:$4 sm:$0xff]  }
 0x65d   : > { %17617 = vst [vmem:[#allocation106_spill] sm:$0xff] %v14048_v60  ;;  %v14056_v21 = vpop.f32.mrf.mxu0  ;;  %v9360_v60 = vld [vmem:[%s16139_s5 + $0xa0] ss:$8 sps:$4 sm:$0xff]  }
 0x65e   : > { %17618 = vst [vmem:[#allocation72_spill] sm:$0xff] %v14056_v21  ;;  %v14058_v5 = vpop.f32.mrf.mxu1 }
 0x65f   : > { %17619 = vst [vmem:[#allocation46_spill] sm:$0xff] %v14058_v5 }
 0x662   : > { %6376 = vmatmul.mubr.bf16.gmra.mxu0 %v9354_v2 }
 0x663   : > { %6569 = vmatmul.mubr.bf16.gmra.mxu1 %v9354_v2  ;;  %6385 = vmatprep.mubr.bf16.mxu0 %v9359_v30  ;;  %v14062_v2 = vpop.f32.mrf.mxu1 }
 0x664   : > { %6578 = vmatprep.mubr.bf16.mxu1 %v9359_v30  ;;  %v14060_v30 = vpop.f32.mrf.mxu0  ;;  %17621 = vst [vmem:[#allocation113_spill] sm:$0xff] %v14062_v2  ;;  %v9363_v2 = vld [vmem:[%s16139_s5 + $0xb0] ss:$8 sps:$4 sm:$0xff]  }
 0x665   : > { %17620 = vst [vmem:[#allocation105_spill] sm:$0xff] %v14060_v30  ;;  %v14072_v21 = vpop.f32.mrf.mxu1  ;;  %v9368_v30 = vld [vmem:[%s16139_s5 + $0xc4] ss:$8 sps:$4 sm:$0xff]  }
 0x666   : > { %v14070_v15 = vpop.f32.mrf.mxu0  ;;  %17623 = vst [vmem:[#allocation64_spill] sm:$0xff] %v14072_v21 }
 0x667   : > { %17622 = vst [vmem:[#allocation107_spill] sm:$0xff] %v14070_v15 }
 0x66a   : > { %6386 = vmatmul.mubr.bf16.gmra.mxu0 %v9357_v47 }
 0x66b   : > { %6579 = vmatmul.mubr.bf16.gmra.mxu1 %v9357_v47  ;;  %6395 = vmatprep.mubr.bf16.mxu0 %v9362_v4  ;;  %v14076_v47 = vpop.f32.mrf.mxu1 }
 0x66c   : > { %6588 = vmatprep.mubr.bf16.mxu1 %v9362_v4  ;;  %v14074_v4 = vpop.f32.mrf.mxu0  ;;  %17625 = vst [vmem:[#allocation30_spill] sm:$0xff] %v14076_v47  ;;  %v9366_v47 = vld [vmem:[%s16139_s5 + $0xc0] ss:$8 sps:$4 sm:$0xff]  }
 0x66d   : > { %17624 = vst [vmem:[#allocation24_spill] sm:$0xff] %v14074_v4  ;;  %v14086_v15 = vpop.f32.mrf.mxu1  ;;  %v9371_v4 = vld [vmem:[%s16139_s5 + $0xd4] ss:$8 sps:$4 sm:$0xff]  }
 0x66e   : > { %v14084_v5 = vpop.f32.mrf.mxu0  ;;  %17627 = vst [vmem:[#allocation102_spill] sm:$0xff] %v14086_v15 }
 0x66f   : > { %17626 = vst [vmem:[#allocation96_spill] sm:$0xff] %v14084_v5 }
 0x672   : > { %6396 = vmatmul.mubr.bf16.gmra.mxu0 %v9360_v60 }
 0x673   : > { %6589 = vmatmul.mubr.bf16.gmra.mxu1 %v9360_v60  ;;  %6405 = vmatprep.mubr.bf16.mxu0 %v9365_v31  ;;  %v14090_v60 = vpop.f32.mrf.mxu1 }
 0x674   : > { %6598 = vmatprep.mubr.bf16.mxu1 %v9365_v31  ;;  %v14088_v31 = vpop.f32.mrf.mxu0  ;;  %17629 = vst [vmem:[#allocation47_spill] sm:$0xff] %v14090_v60  ;;  %v9369_v60 = vld [vmem:[%s16139_s5 + $0xd0] ss:$8 sps:$4 sm:$0xff]  }
 0x675   : > { %17628 = vst [vmem:[#allocation50_spill] sm:$0xff] %v14088_v31  ;;  %v14100_v5 = vpop.f32.mrf.mxu1  ;;  %v9374_v31 = vld [vmem:[%s16139_s5 + $0xe4] ss:$8 sps:$4 sm:$0xff]  }
 0x676   : > { %v14098_v21 = vpop.f32.mrf.mxu0  ;;  %17631 = vst [vmem:[#allocation93_spill] sm:$0xff] %v14100_v5 }
 0x677   : > { %17630 = vst [vmem:[#allocation19_spill] sm:$0xff] %v14098_v21 }
 0x67a   : > { %6406 = vmatmul.mubr.bf16.gmra.mxu0 %v9363_v2 }
 0x67b   : > { %6599 = vmatmul.mubr.bf16.gmra.mxu1 %v9363_v2  ;;  %6415 = vmatprep.mubr.bf16.mxu0 %v9368_v30  ;;  %v14104_v2 = vpop.f32.mrf.mxu1 }
 0x67c   : > { %6608 = vmatprep.mubr.bf16.mxu1 %v9368_v30  ;;  %v14102_v30 = vpop.f32.mrf.mxu0  ;;  %17633 = vst [vmem:[#allocation111_spill] sm:$0xff] %v14104_v2  ;;  %v9372_v2 = vld [vmem:[%s16139_s5 + $0xe0] ss:$8 sps:$4 sm:$0xff]  }
 0x67d   : > { %17632 = vst [vmem:[#allocation89_spill] sm:$0xff] %v14102_v30  ;;  %v14114_v21 = vpop.f32.mrf.mxu1  ;;  %v9377_v30 = vld [vmem:[%s16139_s5 + $0xf4] ss:$8 sps:$4 sm:$0xff]  }
 0x67e   : > { %v14112_v15 = vpop.f32.mrf.mxu0  ;;  %17635 = vst [vmem:[#allocation109_spill] sm:$0xff] %v14114_v21  ;;  %v9375_v21 = vld [vmem:[%s16139_s5 + $0xf0] ss:$8 sps:$4 sm:$0xff]  }
 0x67f   : > { %17634 = vst [vmem:[#allocation88_spill] sm:$0xff] %v14112_v15 }
 0x682   : > { %6416 = vmatmul.mubr.bf16.gmra.mxu0 %v9366_v47 }
 0x683   : > { %6609 = vmatmul.mubr.bf16.gmra.mxu1 %v9366_v47  ;;  %6425 = vmatprep.mubr.bf16.mxu0 %v9371_v4  ;;  %v14118_v47 = vpop.f32.mrf.mxu1 }
 0x684   : > { %6618 = vmatprep.mubr.bf16.mxu1 %v9371_v4  ;;  %v14116_v4 = vpop.f32.mrf.mxu0  ;;  %17637 = vst [vmem:[#allocation61_spill] sm:$0xff] %v14118_v47 }
 0x685   : > { %17636 = vst [vmem:[#allocation124_spill] sm:$0xff] %v14116_v4  ;;  %v14128_v15 = vpop.f32.mrf.mxu1 }
 0x686   : > { %v14126_v5 = vpop.f32.mrf.mxu0  ;;  %17639 = vst [vmem:[#allocation100_spill] sm:$0xff] %v14128_v15  ;;  %v9378_v15 = vld [vmem:[%s16145_s11] sm:$0xff]  }
 0x687   : > { %17638 = vst [vmem:[#allocation131_spill] sm:$0xff] %v14126_v5  ;;  %v17644_v5 = vmov 0  }
 0x68a   : > { %6426 = vmatmul.mubr.bf16.gmra.mxu0 %v9369_v60 }
 0x68b   : > { %6619 = vmatmul.mubr.bf16.gmra.mxu1 %v9369_v60  ;;  %6435 = vmatprep.mubr.bf16.mxu0 %v9374_v31  ;;  %v14132_v60 = vpop.f32.mrf.mxu1 }
 0x68c   : > { %6628 = vmatprep.mubr.bf16.mxu1 %v9374_v31  ;;  %v14130_v31 = vpop.f32.mrf.mxu0  ;;  %17641 = vst [vmem:[#allocation67_spill] sm:$0xff] %v14132_v60 }
 0x68d   : > { %17640 = vst [vmem:[#allocation91_spill] sm:$0xff] %v14130_v31  ;;  %v14139_v4 = vpop.f32.mrf.mxu1 }
 0x68e   : > { %v14137_v47 = vpop.f32.mrf.mxu0  ;;  %17643 = vst [vmem:[#allocation53_spill] sm:$0xff] %v14139_v4 }
 0x68f   : > { %17642 = vst [vmem:[#allocation101_spill] sm:$0xff] %v14137_v47  ;;  %v9379_v47 = vld [vmem:[%s16145_s11 + $0x8] sm:$0xff]  }
 0x692   : > { %6436 = vmatmul.mubr.bf16.gmra.mxu0 %v9372_v2 }
 0x693   : > { %6629 = vmatmul.mubr.bf16.gmra.mxu1 %v9372_v2  ;;  %6445 = vmatprep.mubr.bf16.mxu0 %v9377_v30  ;;  %v14143_v2 = vpop.f32.mrf.mxu0 }
 0x694   : > { %6638 = vmatprep.mubr.bf16.mxu1 %v9377_v30  ;;  %17645 = vst [vmem:[#allocation118_spill] sm:$0xff] %v14143_v2  ;;  %v14145_v30 = vpop.f32.mrf.mxu1 }
 0x695   : > { %17646 = vst [vmem:[#allocation51_spill] sm:$0xff] %v14145_v30  ;;  %v14150_v60 = vpop.f32.mrf.mxu0 }
 0x696   : > { %17647 = vst [vmem:[#allocation86_spill] sm:$0xff] %v14150_v60  ;;  %v14152_v31 = vpop.f32.mrf.mxu1  ;;  %v9380_v60 = vld [vmem:[%s16145_s11 + $0x10] sm:$0xff]  }
 0x697   : > { %17648 = vst [vmem:[#allocation98_spill] sm:$0xff] %v14152_v31 }
 0x698   : > { %v14158_v4 = vpop.f32.mrf.mxu1 }
 0x699   : > { %17650 = vst [vmem:[#allocation48_spill] sm:$0xff] %v14158_v4 }
 0x69a   : > { %6446 = vmatmul.mubr.bf16.gmra.mxu0 %v9375_v21  ;;  %v14165_v2 = vpop.f32.mrf.mxu1 }
 0x69b   : > { %6639 = vmatmul.mubr.bf16.gmra.mxu1 %v9375_v21  ;;  %6937 = vmatprep.mubr.bf16.mxu0 %v17644_v5  ;;  %v14156_v21 = vpop.f32.mrf.mxu0  ;;  %17652 = vst [vmem:[#allocation45_spill] sm:$0xff] %v14165_v2 }
 0x69c   : > { %7130 = vmatprep.mubr.bf16.mxu1 %v17644_v5  ;;  %17649 = vst [vmem:[#allocation108_spill] sm:$0xff] %v14156_v21  ;;  %v14171_v31 = vpop.f32.mrf.mxu1 }
 0x69d   : > { %v14163_v30 = vpop.f32.mrf.mxu0  ;;  %17654 = vst [vmem:[#allocation103_spill] sm:$0xff] %v14171_v31 }
 0x69e   : > { %17651 = vst [vmem:[#allocation13_spill] sm:$0xff] %v14163_v30  ;;  %v14178_v21 = vpop.f32.mrf.mxu1  ;;  %v9381_v30 = vld [vmem:[%s16145_s11 + $0x18] sm:$0xff]  }
 0x69f   : > { %17656 = vst [vmem:[#allocation38_spill] sm:$0xff] %v14178_v21 }
 0x6a0   : > { %v14184_v2 = vpop.f32.mrf.mxu1 }
 0x6a1   : > { %17658 = vst [vmem:[#allocation94_spill] sm:$0xff] %v14184_v2 }
 0x6a2   : > { %6938 = vmatmul.mubr.bf16.vlgmr.msra.gmra.mxu0 %v9378_v15 }
 0x6a3   : > { %7131 = vmatmul.mubr.bf16.vlgmr.msra.gmra.mxu1 %v9378_v15  ;;  %6947 = vmatprep.mubr.bf16.mxu0 %v17644_v5  ;;  %v14169_v15 = vpop.f32.mrf.mxu0 }
 0x6a4   : > { %7140 = vmatprep.mubr.bf16.mxu1 %v17644_v5  ;;  %17653 = vst [vmem:[#allocation40_spill] sm:$0xff] %v14169_v15  ;;  %v14191_v15 = vpop.f32.mrf.mxu1 }
 0x6a5   : > { %v14176_v4 = vpop.f32.mrf.mxu0  ;;  %17660 = vst [vmem:[#allocation99_spill] sm:$0xff] %v14191_v15 }
 0x6a6   : > { %17655 = vst [vmem:[#allocation123_spill] sm:$0xff] %v14176_v4  ;;  %v14197_v21 = vpop.f32.mrf.mxu1  ;;  %v9382_v4 = vld [vmem:[%s16145_s11 + $0x20] sm:$0xff]  }
 0x6a7   : > { %17662 = vst [vmem:[#allocation75_spill] sm:$0xff] %v14197_v21 }
 0x6aa   : > { %6948 = vmatmul.mubr.bf16.gmra.mxu0 %v9379_v47 }
 0x6ab   : > { %7141 = vmatmul.mubr.bf16.gmra.mxu1 %v9379_v47  ;;  %6957 = vmatprep.mubr.bf16.mxu0 %v17644_v5  ;;  %v14182_v47 = vpop.f32.mrf.mxu0 }
 0x6ac   : > { %7150 = vmatprep.mubr.bf16.mxu1 %v17644_v5  ;;  %17657 = vst [vmem:[#allocation112_spill] sm:$0xff] %v14182_v47  ;;  %v14204_v47 = vpop.f32.mrf.mxu1 }
 0x6ad   : > { %v14189_v31 = vpop.f32.mrf.mxu0  ;;  %17664 = vst [vmem:[#allocation63_spill] sm:$0xff] %v14204_v47 }
 0x6ae   : > { %17659 = vst [vmem:[#allocation95_spill] sm:$0xff] %v14189_v31  ;;  %v14210_v15 = vpop.f32.mrf.mxu1  ;;  %v9383_v31 = vld [vmem:[%s16145_s11 + $0x28] sm:$0xff]  }
 0x6af   : > { %17666 = vst [vmem:[#allocation41_spill] sm:$0xff] %v14210_v15 }
 0x6b2   : > { %6958 = vmatmul.mubr.bf16.gmra.mxu0 %v9380_v60 }
 0x6b3   : > { %7151 = vmatmul.mubr.bf16.gmra.mxu1 %v9380_v60  ;;  %6967 = vmatprep.mubr.bf16.mxu0 %v17644_v5  ;;  %v14195_v60 = vpop.f32.mrf.mxu0 }
 0x6b4   : > { %7160 = vmatprep.mubr.bf16.mxu1 %v17644_v5  ;;  %17661 = vst [vmem:[#allocation55_spill] sm:$0xff] %v14195_v60  ;;  %v14217_v60 = vpop.f32.mrf.mxu1 }
 0x6b5   : > { %v14202_v2 = vpop.f32.mrf.mxu0  ;;  %17668 = vst [vmem:[#allocation78_spill] sm:$0xff] %v14217_v60 }
 0x6b6   : > { %17663 = vst [vmem:[#allocation144_spill] sm:$0xff] %v14202_v2  ;;  %v14223_v47 = vpop.f32.mrf.mxu1  ;;  %v9384_v2 = vld [vmem:[%s16145_s11 + $0x30] sm:$0xff]  }
 0x6b7   : > { %17670 = vst [vmem:[#allocation74_spill] sm:$0xff] %v14223_v47 }
 0x6ba   : > { %6968 = vmatmul.mubr.bf16.gmra.mxu0 %v9381_v30 }
 0x6bb   : > { %7161 = vmatmul.mubr.bf16.gmra.mxu1 %v9381_v30  ;;  %6977 = vmatprep.mubr.bf16.mxu0 %v17644_v5  ;;  %v14208_v30 = vpop.f32.mrf.mxu0 }
 0x6bc   : > { %7170 = vmatprep.mubr.bf16.mxu1 %v17644_v5  ;;  %17665 = vst [vmem:[#allocation36_spill] sm:$0xff] %v14208_v30  ;;  %v14230_v30 = vpop.f32.mrf.mxu1 }
 0x6bd   : > { %v14215_v21 = vpop.f32.mrf.mxu0  ;;  %17672 = vst [vmem:[#allocation39_spill] sm:$0xff] %v14230_v30 }
 0x6be   : > { %17667 = vst [vmem:[#allocation66_spill] sm:$0xff] %v14215_v21  ;;  %v14236_v60 = vpop.f32.mrf.mxu1  ;;  %v9385_v21 = vld [vmem:[%s16145_s11 + $0x38] sm:$0xff]  }
 0x6bf   : > { %17674 = vst [vmem:[#allocation11_spill] sm:$0xff] %v14236_v60  ;;  %v9386_v60 = vld [vmem:[%s16145_s11 + $0x40] sm:$0xff]  }
 0x6c2   : > { %6978 = vmatmul.mubr.bf16.gmra.mxu0 %v9382_v4 }
 0x6c3   : > { %7171 = vmatmul.mubr.bf16.gmra.mxu1 %v9382_v4  ;;  %6987 = vmatprep.mubr.bf16.mxu0 %v17644_v5  ;;  %v14221_v4 = vpop.f32.mrf.mxu0 }
 0x6c4   : > { %7180 = vmatprep.mubr.bf16.mxu1 %v17644_v5  ;;  %17669 = vst [vmem:[#allocation54_spill] sm:$0xff] %v14221_v4  ;;  %v14243_v4 = vpop.f32.mrf.mxu1 }
 0x6c5   : > { %v14228_v15 = vpop.f32.mrf.mxu0  ;;  %17676 = vst [vmem:[#allocation87_spill] sm:$0xff] %v14243_v4 }
 0x6c6   : > { %17671 = vst [vmem:[#allocation97_spill] sm:$0xff] %v14228_v15  ;;  %v14249_v30 = vpop.f32.mrf.mxu1 }
 0x6c7   : > { %17678 = vst [vmem:[#allocation26_spill] sm:$0xff] %v14249_v30 }
 0x6c8   : > { %v14256_v15 = vpop.f32.mrf.mxu1 }
 0x6c9   : > { %17680 = vst [vmem:[#allocation32_spill] sm:$0xff] %v14256_v15  ;;  %v9387_v15 = vld [vmem:[%s16145_s11 + $0x48] sm:$0xff]  }
 0x6ca   : > { %6988 = vmatmul.mubr.bf16.gmra.mxu0 %v9383_v31 }
 0x6cb   : > { %7181 = vmatmul.mubr.bf16.gmra.mxu1 %v9383_v31  ;;  %6997 = vmatprep.mubr.bf16.mxu0 %v17644_v5  ;;  %v14234_v31 = vpop.f32.mrf.mxu0 }
 0x6cc   : > { %7190 = vmatprep.mubr.bf16.mxu1 %v17644_v5  ;;  %17673 = vst [vmem:[#allocation37_spill] sm:$0xff] %v14234_v31 }
 0x6cd   : > { %v14241_v47 = vpop.f32.mrf.mxu0 }
 0x6ce   : > { %17675 = vst [vmem:[#allocation9_spill] sm:$0xff] %v14241_v47 }
 0x6d2   : > { %6998 = vmatmul.mubr.bf16.gmra.mxu0 %v9384_v2 }
 0x6d3   : > { %7191 = vmatmul.mubr.bf16.gmra.mxu1 %v9384_v2  ;;  %7007 = vmatprep.mubr.bf16.mxu0 %v17644_v5  ;;  %v14247_v2 = vpop.f32.mrf.mxu0 }
 0x6d4   : > { %7200 = vmatprep.mubr.bf16.mxu1 %v17644_v5  ;;  %17677 = vst [vmem:[#allocation10_spill] sm:$0xff] %v14247_v2 }
 0x6d5   : > { %v14254_v31 = vpop.f32.mrf.mxu0 }
 0x6d6   : > { %17679 = vst [vmem:[#allocation17_spill] sm:$0xff] %v14254_v31 }
 0x6da   : > { %7008 = vmatmul.mubr.bf16.gmra.mxu0 %v9385_v21 }
 0x6db   : > { %7201 = vmatmul.mubr.bf16.gmra.mxu1 %v9385_v21  ;;  %7017 = vmatprep.mubr.bf16.mxu0 %v17644_v5 }
 0x6dc   : > { %7210 = vmatprep.mubr.bf16.mxu1 %v17644_v5 }
 0x6e2   : > { %v14258_v47 = vpop.f32.mrf.mxu0  ;;  %7018 = vmatmul.mubr.bf16.gmra.mxu0 %v9386_v60 }
 0x6e3   : > { %v14260_v4 = vpop.f32.mrf.mxu1  ;;  %7211 = vmatmul.mubr.bf16.gmra.mxu1 %v9386_v60  ;;  %7027 = vmatprep.mubr.bf16.mxu0 %v17644_v5 }
 0x6e4   : > { %7220 = vmatprep.mubr.bf16.mxu1 %v17644_v5  ;;  %v14264_v21 = vpop.f32.mrf.mxu0 }
 0x6e5   : > { %v14266_v30 = vpop.f32.mrf.mxu1 }
 0x6e6   : > { %v14268_v2 = vpop.f32.mrf.mxu0 }
 0x6e7   : > { %v14270_v3 = vpop.f32.mrf.mxu1 }
 0x6e8   : > { %v14275_v31 = vpop.f32.mrf.mxu0 }
 0x6e9   : > { %v14277_v37 = vpop.f32.mrf.mxu1 }
 0x6ea   : > { %v14279_v60 = vpop.f32.mrf.mxu0  ;;  %7028 = vmatmul.mubr.bf16.gmra.mxu0 %v9387_v15 }
 0x6eb   : > { %v14281_v22 = vpop.f32.mrf.mxu1  ;;  %7221 = vmatmul.mubr.bf16.gmra.mxu1 %v9387_v15  ;;  %7037 = vmatprep.mubr.bf16.mxu0 %v17644_v5 }
 0x6ec   : > { %7230 = vmatprep.mubr.bf16.mxu1 %v17644_v5  ;;  %v14285_v48 = vpop.f32.mrf.mxu0 }
 0x6ed   : > { %v14287_v53 = vpop.f32.mrf.mxu1 }
 0x6ee   : > { %v14289_v10 = vpop.f32.mrf.mxu0 }
 0x6ef   : > { %v14291_v43 = vpop.f32.mrf.mxu1 }
 0x6f0   : > { %v14296_v61 = vpop.f32.mrf.mxu0 }
 0x6f1   : > { %v14298_v20 = vpop.f32.mrf.mxu1 }
 0x6f2   : > { %v14300_v15 = vpop.f32.mrf.mxu0  ;;  %7038 = vmatmul.mubr.bf16.gmra.mxu0 %v9388_v38 }
 0x6f3   : > { %v14302_v32 = vpop.f32.mrf.mxu1  ;;  %7231 = vmatmul.mubr.bf16.gmra.mxu1 %v9388_v38  ;;  %7047 = vmatprep.mubr.bf16.mxu0 %v17644_v5 }
 0x6f4   : > { %7240 = vmatprep.mubr.bf16.mxu1 %v17644_v5  ;;  %v14306_v33 = vpop.f32.mrf.mxu0 }
 0x6f5   : > { %v14308_v42 = vpop.f32.mrf.mxu1 }
 0x6f6   : > { %v14310_v34 = vpop.f32.mrf.mxu0 }
 0x6f7   : > { %v14312_v50 = vpop.f32.mrf.mxu1 }
 0x6f8   : > { %v14317_v24 = vpop.f32.mrf.mxu0 }
 0x6f9   : > { %v14319_v27 = vpop.f32.mrf.mxu1 }
 0x6fa   : > { %v14321_v38 = vpop.f32.mrf.mxu0  ;;  %7048 = vmatmul.mubr.bf16.gmra.mxu0 %v9389_v16 }
 0x6fb   : > { %v14323_v36 = vpop.f32.mrf.mxu1  ;;  %7241 = vmatmul.mubr.bf16.gmra.mxu1 %v9389_v16  ;;  %7057 = vmatprep.mubr.bf16.mxu0 %v17644_v5 }
 0x6fc   : > { %7250 = vmatprep.mubr.bf16.mxu1 %v17644_v5  ;;  %v14327_v14 = vpop.f32.mrf.mxu0 }
 0x6fd   : > { %17681 = vst [vmem:[#allocation92_spill] sm:$0xff] %v14327_v14  ;;  %v14329_v19 = vpop.f32.mrf.mxu1 }
 0x6fe   : > { %17682 = vst [vmem:[#allocation35_spill] sm:$0xff] %v14329_v19  ;;  %v14331_v41 = vpop.f32.mrf.mxu0 }
 0x6ff   : > { %17683 = vst [vmem:[#allocation27_spill] sm:$0xff] %v14331_v41  ;;  %v14333_v55 = vpop.f32.mrf.mxu1 }
 0x700   : > { %17684 = vst [vmem:[#allocation34_spill] sm:$0xff] %v14333_v55  ;;  %v14338_v23 = vpop.f32.mrf.mxu0 }
 0x701   : > { %17685 = vst [vmem:[#allocation33_spill] sm:$0xff] %v14338_v23  ;;  %v14340_v0 = vpop.f32.mrf.mxu1 }
 0x702   : > { %17686 = vst [vmem:[#allocation90_spill] sm:$0xff] %v14340_v0  ;;  %v14342_v16 = vpop.f32.mrf.mxu0  ;;  %7058 = vmatmul.mubr.bf16.gmra.mxu0 %v9390_v62 }
 0x703   : > { %17687 = vst [vmem:[#allocation28_spill] sm:$0xff] %v14342_v16  ;;  %v14344_v39 = vpop.f32.mrf.mxu1  ;;  %7251 = vmatmul.mubr.bf16.gmra.mxu1 %v9390_v62  ;;  %7067 = vmatprep.mubr.bf16.mxu0 %v17644_v5  ;;  %v9391_v16 = vld [vmem:[%s16145_s11 + $0x68] sm:$0xff]  }
 0x704   : > { %17688 = vst [vmem:[#allocation57_spill] sm:$0xff] %v14344_v39  ;;  %7260 = vmatprep.mubr.bf16.mxu1 %v17644_v5  ;;  %v14348_v41 = vpop.f32.mrf.mxu0 }
 0x705   : > { %17689 = vst [vmem:[#allocation52_spill] sm:$0xff] %v14348_v41  ;;  %v14350_v55 = vpop.f32.mrf.mxu1 }
 0x706   : > { %17690 = vst [vmem:[#allocation49_spill] sm:$0xff] %v14350_v55  ;;  %v14352_v19 = vpop.f32.mrf.mxu0 }
 0x707   : > { %17691 = vst [vmem:[#allocation120_spill] sm:$0xff] %v14352_v19  ;;  %v14354_v12 = vpop.f32.mrf.mxu1 }
 0x708   : > { %17692 = vst [vmem:[#allocation44_spill] sm:$0xff] %v14354_v12  ;;  %v14359_v0 = vpop.f32.mrf.mxu0 }
 0x709   : > { %17693 = vst [vmem:[#allocation65_spill] sm:$0xff] %v14359_v0  ;;  %v14361_v39 = vpop.f32.mrf.mxu1 }
 0x70a   : > { %17694 = vst [vmem:[#allocation143_spill] sm:$0xff] %v14361_v39  ;;  %v14363_v62 = vpop.f32.mrf.mxu0  ;;  %7068 = vmatmul.mubr.bf16.gmra.mxu0 %v9391_v16  ;;  %v9392_v39 = vld [vmem:[%s16145_s11 + $0x70] sm:$0xff]  }
 0x70b   : > { %17695 = vst [vmem:[#allocation68_spill] sm:$0xff] %v14363_v62  ;;  %v14365_v23 = vpop.f32.mrf.mxu1  ;;  %7261 = vmatmul.mubr.bf16.gmra.mxu1 %v9391_v16  ;;  %7077 = vmatprep.mubr.bf16.mxu0 %v17644_v5 }
 0x70c   : > { %17696 = vst [vmem:[#allocation83_spill] sm:$0xff] %v14365_v23  ;;  %7270 = vmatprep.mubr.bf16.mxu1 %v17644_v5  ;;  %v14369_v55 = vpop.f32.mrf.mxu0 }
 0x70d   : > { %17697 = vst [vmem:[#allocation60_spill] sm:$0xff] %v14369_v55  ;;  %v14371_v41 = vpop.f32.mrf.mxu1 }
 0x70e   : > { %17698 = vst [vmem:[#allocation85_spill] sm:$0xff] %v14371_v41  ;;  %v14373_v12 = vpop.f32.mrf.mxu0 }
 0x70f   : > { %17699 = vst [vmem:[#allocation80_spill] sm:$0xff] %v14373_v12  ;;  %v14375_v19 = vpop.f32.mrf.mxu1 }
 0x710   : > { %17700 = vst [vmem:[#allocation77_spill] sm:$0xff] %v14375_v19  ;;  %v14380_v62 = vpop.f32.mrf.mxu0 }
 0x711   : > { %17701 = vst [vmem:[#allocation146_spill] sm:$0xff] %v14380_v62  ;;  %v14382_v23 = vpop.f32.mrf.mxu1 }
 0x712   : > { %17702 = vst [vmem:[#allocation148_spill] sm:$0xff] %v14382_v23  ;;  %v14384_v16 = vpop.f32.mrf.mxu0  ;;  %7078 = vmatmul.mubr.bf16.gmra.mxu0 %v9392_v39 }
 0x713   : > { %17703 = vst [vmem:[#allocation139_spill] sm:$0xff] %v14384_v16  ;;  %v14386_v0 = vpop.f32.mrf.mxu1  ;;  %7271 = vmatmul.mubr.bf16.gmra.mxu1 %v9392_v39  ;;  %7087 = vmatprep.mubr.bf16.mxu0 %v17644_v5  ;;  %v9393_v16 = vld [vmem:[%s16145_s11 + $0x78] sm:$0xff]  }
 0x714   : > { %17704 = vst [vmem:[#allocation69_spill] sm:$0xff] %v14386_v0  ;;  %7280 = vmatprep.mubr.bf16.mxu1 %v17644_v5  ;;  %v14390_v41 = vpop.f32.mrf.mxu0 }
 0x715   : > { %17705 = vst [vmem:[#allocation147_spill] sm:$0xff] %v14390_v41  ;;  %v14392_v55 = vpop.f32.mrf.mxu1 }
 0x716   : > { %17706 = vst [vmem:[#allocation119_spill] sm:$0xff] %v14392_v55  ;;  %v14394_v19 = vpop.f32.mrf.mxu0 }
 0x717   : > { %17707 = vst [vmem:[#allocation145_spill] sm:$0xff] %v14394_v19  ;;  %v14396_v12 = vpop.f32.mrf.mxu1 }
 0x718   : > { %17708 = vst [vmem:[#allocation70_spill] sm:$0xff] %v14396_v12  ;;  %v14401_v23 = vpop.f32.mrf.mxu0 }
 0x719   : > { %17709 = vst [vmem:[#allocation23_spill] sm:$0xff] %v14401_v23  ;;  %v14403_v0 = vpop.f32.mrf.mxu1 }
 0x71a   : > { %17710 = vst [vmem:[#allocation43_spill] sm:$0xff] %v14403_v0  ;;  %v14405_v39 = vpop.f32.mrf.mxu0  ;;  %7088 = vmatmul.mubr.bf16.gmra.mxu0 %v9393_v16 }
 0x71b   : > { %17711 = vst [vmem:[#allocation71_spill] sm:$0xff] %v14405_v39  ;;  %v14407_v62 = vpop.f32.mrf.mxu1  ;;  %7281 = vmatmul.mubr.bf16.gmra.mxu1 %v9393_v16 }
 0x71c   : > { %17712 = vst [vmem:[#allocation114_spill] sm:$0xff] %v14407_v62  ;;  %v14409_v5 = vpop.f32.mrf.mxu0 }
 0x71d   : > { %17713 = vst [vmem:[#allocation116_spill] sm:$0xff] %v14409_v5  ;;  %v14411_v55 = vpop.f32.mrf.mxu1 }
 0x71e   : > { %17714 = vst [vmem:[#allocation29_spill] sm:$0xff] %v14411_v55  ;;  %v14413_v19 = vpop.f32.mrf.mxu0 }
 0x71f   : > { %17715 = vst [vmem:[#allocation56_spill] sm:$0xff] %v14413_v19  ;;  %v14415_v12 = vpop.f32.mrf.mxu1 }
 0x720   : > { %17716 = vst [vmem:[#allocation58_spill] sm:$0xff] %v14415_v12  ;;  %v14417_v41 = vpop.f32.mrf.mxu0 }
 0x721   : > { %17717 = vst [vmem:[#allocation59_spill] sm:$0xff] %v14417_v41  ;;  %v14419_v14 = vpop.f32.mrf.mxu1 }
 0x722   : > { %17718 = vst [vmem:[#allocation110_spill] sm:$0xff] %v14419_v14  ;;  %v14421_v23 = vpop.f32.mrf.mxu0 }
 0x723   : > { %17719 = vst [vmem:[#allocation117_spill] sm:$0xff] %v14421_v23  ;;  %v14423_v0 = vpop.f32.mrf.mxu1 }
 0x724   : > { %17720 = vst [vmem:[#allocation42_spill] sm:$0xff] %v14423_v0  ;;  %v14425_v39 = vpop.f32.mrf.mxu0 }
 0x725   : > { %17721 = vst [vmem:[#allocation149_spill] sm:$0xff] %v14425_v39  ;;  %v14427_v62 = vpop.f32.mrf.mxu1 }
 0x726   : > { %17722 = vst [vmem:[#allocation150_spill] sm:$0xff] %v14427_v62  ;;  %v14429_v16 = vpop.f32.mrf.mxu0 }
 0x727   : > { %17723 = vst [vmem:[#allocation151_spill] sm:$0xff] %v14429_v16  ;;  %v14431_v5 = vpop.f32.mrf.mxu1 }
 0x728   : > { %17724 = vst [vmem:[#allocation152_spill] sm:$0xff] %v14431_v5  ;;  %v14433_v55 = vpop.f32.mrf.mxu0 }
 0x729   : > { %17725 = vst [vmem:[#allocation153_spill] sm:$0xff] %v14433_v55  ;;  %v14435_v19 = vpop.f32.mrf.mxu1 }
 0x72a   : > { %17726 = vst [vmem:[#allocation154_spill] sm:$0xff] %v14435_v19  ;;  %v14437_v12 = vpop.f32.mrf.mxu0 }
 0x72b   : > { %17727 = vst [vmem:[#allocation155_spill] sm:$0xff] %v14437_v12  ;;  %v14439_v41 = vpop.f32.mrf.mxu1 }
 0x72c   : > { %17728 = vst [vmem:[#allocation156_spill] sm:$0xff] %v14439_v41  ;;  %v14441_v14 = vpop.f32.mrf.mxu0 }
 0x72d   : > { %17729 = vst [vmem:[#allocation157_spill] sm:$0xff] %v14441_v14  ;;  %v14443_v23 = vpop.f32.mrf.mxu1 }
 0x72e   : > { %17730 = vst [vmem:[#allocation158_spill] sm:$0xff] %v14443_v23  ;;  %v14445_v0 = vpop.f32.mrf.mxu0 }
 0x72f   : > { %17731 = vst [vmem:[#allocation159_spill] sm:$0xff] %v14445_v0  ;;  %v14447_v39 = vpop.f32.mrf.mxu1 }
 0x730   : > { %17732 = vst [vmem:[#allocation160_spill] sm:$0xff] %v14447_v39  ;;  %v14449_v62 = vpop.f32.mrf.mxu0 }
 0x731   : > { %17733 = vst [vmem:[#allocation161_spill] sm:$0xff] %v14449_v62  ;;  %v14451_v16 = vpop.f32.mrf.mxu1 }
 0x732   : > { %17734 = vst [vmem:[#allocation162_spill] sm:$0xff] %v14451_v16  ;;  %v14453_v5 = vpop.f32.mrf.mxu0 }
 0x733   : > { %17735 = vst [vmem:[#allocation163_spill] sm:$0xff] %v14453_v5  ;;  %v14455_v55 = vpop.f32.mrf.mxu1 }
 0x734   : > { %17736 = vst [vmem:[#allocation164_spill] sm:$0xff] %v14455_v55  ;;  %v14457_v19 = vpop.f32.mrf.mxu0 }
 0x735   : > { %17737 = vst [vmem:[#allocation165_spill] sm:$0xff] %v14457_v19  ;;  %v14459_v12 = vpop.f32.mrf.mxu1 }
 0x736   : > { %17738 = vst [vmem:[#allocation166_spill] sm:$0xff] %v14459_v12  ;;  %v14461_v41 = vpop.f32.mrf.mxu0 }
 0x737   : > { %17739 = vst [vmem:[#allocation167_spill] sm:$0xff] %v14461_v41  ;;  %v14463_v14 = vpop.f32.mrf.mxu1 }
 0x738   : > { %17740 = vst [vmem:[#allocation168_spill] sm:$0xff] %v14463_v14  ;;  %v14465_v23 = vpop.f32.mrf.mxu0 }
 0x739   : > { %17741 = vst [vmem:[#allocation169_spill] sm:$0xff] %v14465_v23  ;;  %v14467_v0 = vpop.f32.mrf.mxu1 }
 0x73a   : > { %17742 = vst [vmem:[#allocation170_spill] sm:$0xff] %v14467_v0  ;;  %v14469_v39 = vpop.f32.mrf.mxu0 }
 0x73b   : > { %17743 = vst [vmem:[#allocation171_spill] sm:$0xff] %v14469_v39  ;;  %v14471_v62 = vpop.f32.mrf.mxu1 }
 0x73c   : > { %17744 = vst [vmem:[#allocation172_spill] sm:$0xff] %v14471_v62  ;;  %v14473_v16 = vpop.f32.mrf.mxu0 }
 0x73d   : > { %17745 = vst [vmem:[#allocation173_spill] sm:$0xff] %v14473_v16  ;;  %v14475_v5 = vpop.f32.mrf.mxu1 }
 0x73e   : > { %17746 = vst [vmem:[#allocation174_spill] sm:$0xff] %v14475_v5  ;;  %v14477_v55 = vpop.f32.mrf.mxu0 }
 0x73f   : > { %17747 = vst [vmem:[#allocation175_spill] sm:$0xff] %v14477_v55  ;;  %v14479_v19 = vpop.f32.mrf.mxu1 }
 0x740   : > { %17748 = vst [vmem:[#allocation176_spill] sm:$0xff] %v14479_v19  ;;  %v14481_v12 = vpop.f32.mrf.mxu0 }
 0x741   : > { %17749 = vst [vmem:[#allocation177_spill] sm:$0xff] %v14481_v12  ;;  %v14483_v41 = vpop.f32.mrf.mxu1 }
 0x742   : > { %17750 = vst [vmem:[#allocation178_spill] sm:$0xff] %v14483_v41  ;;  %v14485_v14 = vpop.f32.mrf.mxu0 }
 0x743   : > { %17751 = vst [vmem:[#allocation179_spill] sm:$0xff] %v14485_v14  ;;  %v14487_v23 = vpop.f32.mrf.mxu1 }
 0x744   : > { %17752 = vst [vmem:[#allocation180_spill] sm:$0xff] %v14487_v23  ;;  %v14489_v0 = vpop.f32.mrf.mxu0 }
 0x745   : > { %17753 = vst [vmem:[#allocation181_spill] sm:$0xff] %v14489_v0  ;;  %v14491_v39 = vpop.f32.mrf.mxu1 }
 0x746   : > { %17754 = vst [vmem:[#allocation182_spill] sm:$0xff] %v14491_v39  ;;  %v14493_v62 = vpop.f32.mrf.mxu0 }
 0x747   : > { %17755 = vst [vmem:[#allocation183_spill] sm:$0xff] %v14493_v62  ;;  %v14495_v16 = vpop.f32.mrf.mxu1 }
 0x748   : > { %17756 = vst [vmem:[#allocation184_spill] sm:$0xff] %v14495_v16  ;;  %v14497_v5 = vpop.f32.mrf.mxu0 }
 0x749   : > { %17757 = vst [vmem:[#allocation185_spill] sm:$0xff] %v14497_v5  ;;  %v14499_v55 = vpop.f32.mrf.mxu1 }
 0x74a   : > { %17758 = vst [vmem:[#allocation186_spill] sm:$0xff] %v14499_v55  ;;  %v14501_v19 = vpop.f32.mrf.mxu0 }
 0x74b   : > { %17759 = vst [vmem:[#allocation187_spill] sm:$0xff] %v14501_v19  ;;  %v14503_v12 = vpop.f32.mrf.mxu1 }
 0x74c   : > { %17760 = vst [vmem:[#allocation188_spill] sm:$0xff] %v14503_v12  ;;  %v14505_v41 = vpop.f32.mrf.mxu0 }
 0x74d   : > { %17761 = vst [vmem:[#allocation189_spill] sm:$0xff] %v14505_v41  ;;  %v14507_v14 = vpop.f32.mrf.mxu1 }
 0x74e   : > { %17762 = vst [vmem:[#allocation190_spill] sm:$0xff] %v14507_v14  ;;  %v14509_v23 = vpop.f32.mrf.mxu0 }
 0x74f   : > { %17763 = vst [vmem:[#allocation191_spill] sm:$0xff] %v14509_v23  ;;  %v14511_v0 = vpop.f32.mrf.mxu1 }
 0x750   : > { %17764 = vst [vmem:[#allocation192_spill] sm:$0xff] %v14511_v0  ;;  %v14513_v39 = vpop.f32.mrf.mxu0 }
 0x751   : > { %17765 = vst [vmem:[#allocation193_spill] sm:$0xff] %v14513_v39  ;;  %v14515_v62 = vpop.f32.mrf.mxu1 }
 0x752   : > { %17766 = vst [vmem:[#allocation194_spill] sm:$0xff] %v14515_v62  ;;  %v14517_v16 = vpop.f32.mrf.mxu0 }
 0x753   : > { %17767 = vst [vmem:[#allocation195_spill] sm:$0xff] %v14517_v16  ;;  %v14519_v5 = vpop.f32.mrf.mxu1 }
 0x754   : > { %17768 = vst [vmem:[#allocation196_spill] sm:$0xff] %v14519_v5  ;;  %v14521_v55 = vpop.f32.mrf.mxu0 }
 0x755   : > { %17769 = vst [vmem:[#allocation197_spill] sm:$0xff] %v14521_v55  ;;  %v14523_v19 = vpop.f32.mrf.mxu1  ;;  %v6298_v55 = vadd.f32 %v14258_v47, %v13760_v9  ;;  %v6302_v9 = vadd.f32 %v14268_v2, %v13768_v13 }
 0x756   : > { %17770 = vst [vmem:[#allocation198_spill] sm:$0xff] %v14523_v19  ;;  %v14525_v12 = vpop.f32.mrf.mxu0  ;;  %v6491_v19 = vadd.f32 %v14260_v4, %v13762_v40  ;;  %v6495_v40 = vadd.f32 %v14270_v3, %v13770_v57  ;;  %v6310_v57 = vadd.f32 %v14285_v48, %v13786_v17 }
 0x757   : > { %17771 = vst [vmem:[#allocation199_spill] sm:$0xff] %v14525_v12  ;;  %v14527_v41 = vpop.f32.mrf.mxu1 }
 0x758   : > { %17772 = vst [vmem:[#allocation200_spill] sm:$0xff] %v14527_v41  ;;  %v14529_v14 = vpop.f32.mrf.mxu0  ;;  %v6300_v41 = vadd.f32 %v14264_v21, %v13764_v54  ;;  %v6651_v12 = vmax.f32 %v6491_v19, 0.0  ;;  %v6501_v19 = vadd.f32 %v14281_v22, %v13778_v35  ;;  %v6658_v48 = vmax.f32 %v6310_v57, 0.0 }
 0x759   : > { %17773 = vst [vmem:[#allocation201_spill] sm:$0xff] %v14529_v14  ;;  %v14531_v23 = vpop.f32.mrf.mxu1 }
 0x75a   : > { %17774 = vst [vmem:[#allocation202_spill] sm:$0xff] %v14531_v23  ;;  %v14533_v0 = vpop.f32.mrf.mxu0  ;;  %v6493_v23 = vadd.f32 %v14266_v30, %v13766_v44  ;;  %v6650_v54 = vmax.f32 %v6300_v41, 0.0  ;;  %v6304_v44 = vadd.f32 %v14275_v31, %v13772_v6  ;;  %v6497_v30 = vadd.f32 %v14277_v37, %v13774_v52 }
 0x75b   : > { %17775 = vst [vmem:[#allocation203_spill] sm:$0xff] %v14533_v0  ;;  %v14535_v39 = vpop.f32.mrf.mxu1  ;;  %v6503_v6 = vadd.f32 %v14287_v53, %v13788_v63  ;;  %v6653_v41 = vmax.f32 %v6302_v9, 0.0  ;;  %v6655_v37 = vmax.f32 %v6495_v40, 0.0  ;;  %v6312_v53 = vadd.f32 %v14289_v10, %v13796_v46 }
 0x75c   : > { %17776 = vst [vmem:[#allocation204_spill] sm:$0xff] %v14535_v39  ;;  %v14537_v62 = vpop.f32.mrf.mxu0  ;;  %v6652_v47 = vmax.f32 %v6493_v23, 0.0  ;;  %v6654_v31 = vmax.f32 %v6304_v44, 0.0  ;;  %v6656_v35 = vmax.f32 %v6497_v30, 0.0  ;;  %v6505_v9 = vadd.f32 %v14291_v43, %v13798_v51  ;;  %v17820_v44 = vld [vmem:[#allocation136_spill] sm:$0xff] }
 0x75d   : > { %17777 = vst [vmem:[#allocation205_spill] sm:$0xff] %v14537_v62  ;;  %v14539_v16 = vpop.f32.mrf.mxu1  ;;  %v6660_v63 = vmax.f32 %v6503_v6, 0.0  ;;  %v6507_v46 = vadd.f32 %v14298_v20, %v13808_v26  ;;  %v6318_v51 = vadd.f32 %v14300_v15, %v13816_v1  ;;  %v6511_v43 = vadd.f32 %v14302_v32, %v13818_v7 }
 0x75e   : > { %17778 = vst [vmem:[#allocation206_spill] sm:$0xff] %v14539_v16  ;;  %v14549_v14 = vpop.f32.mrf.mxu0  ;;  %v6649_v16 = vmax.f32 %v6298_v55, 0.0  ;;  %v6308_v55 = vadd.f32 %v14279_v60, %v13776_v25  ;;  %v6661_v20 = vmax.f32 %v6312_v53, 0.0 }
 0x75f   : > { %17779 = vst [vmem:[#allocation207_spill] sm:$0xff] %v14549_v14  ;;  %v14551_v0 = vpop.f32.mrf.mxu1  ;;  %v6664_v32 = vmax.f32 %v6507_v46, 0.0 }
 0x760   : > { %17780 = vst [vmem:[#allocation208_spill] sm:$0xff] %v14551_v0  ;;  %v14553_v39 = vpop.f32.mrf.mxu0  ;;  %v17858_v0 = vld [vmem:[#allocation115_spill] sm:$0xff] }
 0x761   : > { %17781 = vst [vmem:[#allocation209_spill] sm:$0xff] %v14553_v39  ;;  %v14555_v62 = vpop.f32.mrf.mxu1  ;;  %v17857_v39 = vld [vmem:[#allocation60_spill] sm:$0xff] }
 0x762   : > { %17782 = vst [vmem:[#allocation210_spill] sm:$0xff] %v14555_v62  ;;  %v6939_v4 = vpop.f32.mrf.mxu0  ;;  %v17855_v62 = vld [vmem:[#allocation143_spill] sm:$0xff] }
 0x763   : > { %v7132_v21 = vpop.f32.mrf.mxu1  ;;  %v14569_v13 = vadd.f32 %v6939_v4, %v6649_v16  ;;  %v6659_v16 = vmax.f32 %v6501_v19, 0.0 }
 0x764   : > { %v14571_v2 = vadd.f32 %v7132_v21, %v6651_v12  ;;  %v6941_v23 = vpop.f32.mrf.mxu0  ;;  %v6657_v12 = vmax.f32 %v6308_v55, 0.0  ;;  %v6314_v55 = vadd.f32 %v14296_v61, %v13806_v49 }
 0x765   : > { %17783 = vst [vmem:[#allocation211_spill] sm:$0xff] %v14569_v13  ;;  %v7134_v52 = vpop.f32.mrf.mxu1  ;;  %v14577_v3 = vadd.f32 %v6941_v23, %v6650_v54 }
 0x766   : > { %17784 = vst [vmem:[#allocation212_spill] sm:$0xff] %v14571_v2  ;;  %v14579_v25 = vadd.f32 %v7134_v52, %v6652_v47  ;;  %v6943_v22 = vpop.f32.mrf.mxu0  ;;  %v6663_v52 = vmax.f32 %v6505_v9, 0.0  ;;  %v6662_v7 = vmax.f32 %v6314_v55, 0.0  ;;  %v17821_v47 = vld [vmem:[#allocation57_spill] sm:$0xff] }
 0x767   : > { %17785 = vst [vmem:[#allocation213_spill] sm:$0xff] %v14577_v3  ;;  %v7136_v60 = vpop.f32.mrf.mxu1  ;;  %v14581_v4 = vadd.f32 %v6943_v22, %v6653_v41  ;;  %v6531_v6 = vadd.f32 %v17821_v47, %v17820_v44  ;;  %v17860_v2 = vld [vmem:[#allocation125_spill] sm:$0xff] }
 0x768   : > { %17786 = vst [vmem:[#allocation214_spill] sm:$0xff] %v14579_v25  ;;  %v14583_v17 = vadd.f32 %v7136_v60, %v6655_v37  ;;  %v6945_v40 = vpop.f32.mrf.mxu0  ;;  %v17868_v25 = vld [vmem:[#allocation18_spill] sm:$0xff] }
 0x769   : > { %17787 = vst [vmem:[#allocation215_spill] sm:$0xff] %v14581_v4  ;;  %v7138_v54 = vpop.f32.mrf.mxu1  ;;  %v14593_v30 = vadd.f32 %v6945_v40, %v6654_v31  ;;  %v6665_v31 = vmax.f32 %v6318_v51, 0.0  ;;  %v17866_v4 = vld [vmem:[#allocation122_spill] sm:$0xff] }
 0x76a   : > { %17788 = vst [vmem:[#allocation216_spill] sm:$0xff] %v14583_v17  ;;  %v14595_v21 = vadd.f32 %v7138_v54, %v6656_v35  ;;  %v6949_v10 = vpop.f32.mrf.mxu0  ;;  %v6667_v35 = vmax.f32 %v6511_v43, 0.0  ;;  %v17861_v17 = vld [vmem:[#allocation146_spill] sm:$0xff] }
 0x76b   : > { %17789 = vst [vmem:[#allocation217_spill] sm:$0xff] %v14593_v30  ;;  %v7142_v19 = vpop.f32.mrf.mxu1  ;;  %v14609_v23 = vadd.f32 %v6949_v10, %v6657_v12  ;;  %v6320_v12 = vadd.f32 %v14306_v33, %v13826_v18 }
 0x76c   : > { %17790 = vst [vmem:[#allocation218_spill] sm:$0xff] %v14595_v21  ;;  %v14611_v49 = vadd.f32 %v7142_v19, %v6659_v16  ;;  %v6951_v61 = vpop.f32.mrf.mxu0  ;;  %v6513_v16 = vadd.f32 %v14308_v42, %v13828_v56  ;;  %v6324_v56 = vadd.f32 %v14317_v24, %v13846_v29  ;;  %v17869_v21 = vld [vmem:[#allocation147_spill] sm:$0xff] }
 0x76d   : > { %17791 = vst [vmem:[#allocation219_spill] sm:$0xff] %v14609_v23  ;;  %v7144_v26 = vpop.f32.mrf.mxu1  ;;  %v14613_v1 = vadd.f32 %v6951_v61, %v6658_v48  ;;  %v6322_v48 = vadd.f32 %v14310_v34, %v13836_v8  ;;  %v6517_v8 = vadd.f32 %v14319_v27, %v13848_v58  ;;  %v6666_v10 = vmax.f32 %v6320_v12, 0.0  ;;  %v17880_v23 = vld [vmem:[#allocation15_spill] sm:$0xff] }
 0x76e   : > { %17792 = vst [vmem:[#allocation220_spill] sm:$0xff] %v14611_v49  ;;  %v14615_v15 = vadd.f32 %v7144_v26, %v6660_v63  ;;  %v6953_v41 = vpop.f32.mrf.mxu0  ;;  %v6515_v63 = vadd.f32 %v14312_v50, %v13838_v59  ;;  %v6668_v19 = vmax.f32 %v6513_v16, 0.0  ;;  %v6670_v61 = vmax.f32 %v6324_v56, 0.0  ;;  %v17806_v16 = vld [vmem:[#allocation140_spill] sm:$0xff] }
 0x76f   : > { %17793 = vst [vmem:[#allocation221_spill] sm:$0xff] %v14613_v1  ;;  %v7146_v37 = vpop.f32.mrf.mxu1  ;;  %v14617_v22 = vadd.f32 %v6953_v41, %v6661_v20  ;;  %v6669_v29 = vmax.f32 %v6322_v48, 0.0  ;;  %v6672_v58 = vmax.f32 %v6517_v8, 0.0  ;;  %v6328_v27 = vadd.f32 %v14321_v38, %v13856_v11  ;;  %v17802_v41 = vld [vmem:[#allocation137_spill] sm:$0xff]  ;;  %v17807_v48 = vld [vmem:[#allocation27_spill] sm:$0xff]  ;;  %v17809_v11 = vld [vmem:[#allocation34_spill] sm:$0xff] }
 0x770   : > { %17794 = vst [vmem:[#allocation222_spill] sm:$0xff] %v14615_v15  ;;  %v14619_v60 = vadd.f32 %v7146_v37, %v6663_v52  ;;  %v6955_v53 = vpop.f32.mrf.mxu0  ;;  %v6671_v24 = vmax.f32 %v6515_v63, 0.0  ;;  %v6521_v26 = vadd.f32 %v14323_v36, %v13858_v45  ;;  %v17803_v37 = vld [vmem:[#allocation35_spill] sm:$0xff]  ;;  %v6332_v63 = vadd.f32 %v17807_v48, %v17806_v16  ;;  %v17840_v8 = vld [vmem:[#allocation130_spill] sm:$0xff] }
 0x771   : > { %17795 = vst [vmem:[#allocation223_spill] sm:$0xff] %v14617_v22  ;;  %v7148_v9 = vpop.f32.mrf.mxu1  ;;  %v14633_v55 = vadd.f32 %v6955_v53, %v6662_v7  ;;  %v17801_v7 = vld [vmem:[#allocation92_spill] sm:$0xff]  ;;  %v14793_v3 = vadd.f32 %v17869_v21, %v17868_v25  ;;  %v17879_v25 = vld [vmem:[#allocation70_spill] sm:$0xff]  ;;  %v17881_v22 = vld [vmem:[#allocation23_spill] sm:$0xff] }
 0x772   : > { %17796 = vst [vmem:[#allocation224_spill] sm:$0xff] %v14619_v60  ;;  %v14635_v18 = vadd.f32 %v7148_v9, %v6664_v32  ;;  %v6959_v33 = vpop.f32.mrf.mxu0  ;;  %v6330_v32 = vadd.f32 %v17801_v7, %v13866_v28  ;;  %v17808_v53 = vld [vmem:[#allocation8_spill] sm:$0xff]  ;;  %v6675_v16 = vmax.f32 %v6521_v26, 0.0  ;;  %v17841_v28 = vld [vmem:[#allocation65_spill] sm:$0xff]  ;;  %v17883_v15 = vld [vmem:[#allocation43_spill] sm:$0xff] }
 0x773   : > { %17797 = vst [vmem:[#allocation225_spill] sm:$0xff] %v14633_v55  ;;  %v7152_v59 = vpop.f32.mrf.mxu1  ;;  %v14645_v42 = vadd.f32 %v6959_v33, %v6665_v31  ;;  %v6523_v31 = vadd.f32 %v17803_v37, %v17802_v41  ;;  %v6525_v38 = vadd.f32 %v17809_v11, %v17808_v53  ;;  %v6673_v37 = vmax.f32 %v6328_v27, 0.0  ;;  %v17878_v60 = vld [vmem:[#allocation12_spill] sm:$0xff]  ;;  %v17887_v55 = vld [vmem:[#allocation114_spill] sm:$0xff] }
 0x774   : > { %17798 = vst [vmem:[#allocation226_spill] sm:$0xff] %v14635_v18  ;;  %v14647_v46 = vadd.f32 %v7152_v59, %v6667_v35  ;;  %v6961_v51 = vpop.f32.mrf.mxu0  ;;  %v6677_v11 = vmax.f32 %v6332_v63, 0.0  ;;  %v17827_v63 = vld [vmem:[#allocation120_spill] sm:$0xff]  ;;  %v14734_v41 = vadd.f32 %v17841_v28, %v17840_v8  ;;  %v17850_v8 = vld [vmem:[#allocation79_spill] sm:$0xff]  ;;  %v6555_v21 = vadd.f32 %v17879_v25, %v17878_v60 }
 0x775   : > { %17799 = vst [vmem:[#allocation227_spill] sm:$0xff] %v14645_v42  ;;  %v7154_v43 = vpop.f32.mrf.mxu1  ;;  %v14665_v9 = vadd.f32 %v6961_v51, %v6666_v10  ;;  %v17817_v51 = vld [vmem:[#allocation90_spill] sm:$0xff]  ;;  %v6676_v53 = vmax.f32 %v6523_v31, 0.0  ;;  %v17826_v31 = vld [vmem:[#allocation129_spill] sm:$0xff]  ;;  %v17893_v42 = vld [vmem:[#allocation56_spill] sm:$0xff] }
 0x776   : > { %17800 = vst [vmem:[#allocation228_spill] sm:$0xff] %v14647_v46  ;;  %v6963_v20 = vpop.f32.mrf.mxu0  ;;  %v14667_v45 = vadd.f32 %v7154_v43, %v6668_v19  ;;  %v6703_v18 = vmax.f32 %v6555_v21, 0.0  ;;  %v17889_v46 = vld [vmem:[#allocation116_spill] sm:$0xff]  ;;  %v17892_v21 = vld [vmem:[#allocation81_spill] sm:$0xff] }
 0x777   : > { %v7156_v52 = vpop.f32.mrf.mxu1  ;;  %v14657_v35 = vadd.f32 %v6963_v20, %v6669_v29  ;;  %17810 = vst [vmem:[#allocation35_spill] sm:$0xff] %v14665_v9  ;;  %v17814_v29 = vld [vmem:[#allocation138_spill] sm:$0xff]  ;;  %v17897_v9 = vld [vmem:[#allocation59_spill] sm:$0xff] }
 0x778   : > { %v14659_v12 = vadd.f32 %v7156_v52, %v6671_v24  ;;  %17811 = vst [vmem:[#allocation140_spill] sm:$0xff] %v14667_v45  ;;  %v6965_v36 = vpop.f32.mrf.mxu0  ;;  %v17815_v24 = vld [vmem:[#allocation33_spill] sm:$0xff]  ;;  %v17816_v52 = vld [vmem:[#allocation135_spill] sm:$0xff] }
 0x779   : > { %17804 = vst [vmem:[#allocation92_spill] sm:$0xff] %v14657_v35  ;;  %v7158_v56 = vpop.f32.mrf.mxu1  ;;  %v14673_v33 = vadd.f32 %v6965_v36, %v6670_v61  ;;  %v6334_v20 = vadd.f32 %v17815_v24, %v17814_v29  ;;  %v6527_v10 = vadd.f32 %v17817_v51, %v17816_v52  ;;  %v6679_v36 = vmax.f32 %v6525_v38, 0.0  ;;  %v17818_v24 = vld [vmem:[#allocation133_spill] sm:$0xff]  ;;  %v17819_v52 = vld [vmem:[#allocation28_spill] sm:$0xff] }
 0x77a   : > { %17805 = vst [vmem:[#allocation137_spill] sm:$0xff] %v14659_v12  ;;  %v14675_v59 = vadd.f32 %v7158_v56, %v6672_v58  ;;  %v6969_v43 = vpop.f32.mrf.mxu0  ;;  %v6674_v58 = vmax.f32 %v6330_v32, 0.0  ;;  %v6338_v51 = vadd.f32 %v17819_v52, %v17818_v24  ;;  %v6342_v38 = vadd.f32 %v17827_v63, %v17826_v31  ;;  %v17835_v63 = vld [vmem:[#allocation21_spill] sm:$0xff]  ;;  %v17890_v12 = vld [vmem:[#allocation132_spill] sm:$0xff] }
 0x77b   : > { %17812 = vst [vmem:[#allocation27_spill] sm:$0xff] %v14673_v33  ;;  %v7162_v19 = vpop.f32.mrf.mxu1  ;;  %v6678_v56 = vmax.f32 %v6334_v20, 0.0  ;;  %v6680_v29 = vmax.f32 %v6527_v10, 0.0  ;;  %v14689_v40 = vadd.f32 %v6969_v43, %v6673_v37  ;;  %v17828_v20 = vld [vmem:[#allocation127_spill] sm:$0xff]  ;;  %v17829_v10 = vld [vmem:[#allocation44_spill] sm:$0xff] }
 0x77c   : > { %17813 = vst [vmem:[#allocation8_spill] sm:$0xff] %v14675_v59  ;;  %v6971_v61 = vpop.f32.mrf.mxu0  ;;  %v14691_v27 = vadd.f32 %v7162_v19, %v6675_v16  ;;  %v6535_v34 = vadd.f32 %v17829_v10, %v17828_v20  ;;  %v17836_v20 = vld [vmem:[#allocation52_spill] sm:$0xff]  ;;  %v17896_v59 = vld [vmem:[#allocation141_spill] sm:$0xff] }
 0x77d   : > { %v7164_v48 = vpop.f32.mrf.mxu1  ;;  %17822 = vst [vmem:[#allocation34_spill] sm:$0xff] %v14689_v40  ;;  %v14701_v24 = vadd.f32 %v6971_v61, %v6674_v58  ;;  %v9396_v61 = vld [vmem:[%s16141_s7 + $0x4] ss:$8 sps:$4 sm:$0xff]   ;;  %v14726_v10 = vadd.f32 %v17836_v20, %v17835_v63  ;;  %v17848_v20 = vld [vmem:[#allocation73_spill] sm:$0xff]  ;;  %v6374_v33 = vadd.f32 %v17897_v9, %v17896_v59 }
 0x77e   : > { %v6973_v57 = vpop.f32.mrf.mxu0  ;;  %17823 = vst [vmem:[#allocation138_spill] sm:$0xff] %v14691_v27  ;;  %v14703_v52 = vadd.f32 %v7164_v48, %v6676_v53  ;;  %7835 = vmatprep.mubr.bf16.mxu0 %v9396_v61  ;;  %8028 = vmatprep.mubr.bf16.mxu1 %v9396_v61  ;;  %v6687_v31 = vmax.f32 %v6535_v34, 0.0  ;;  %v17847_v61 = vld [vmem:[#allocation68_spill] sm:$0xff]  ;;  %v17909_v59 = vld [vmem:[#allocation149_spill] sm:$0xff] }
 0x77f   : > { %v7166_v54 = vpop.f32.mrf.mxu1  ;;  %v14693_v26 = vadd.f32 %v6973_v57, %v6677_v11  ;;  %17830 = vst [vmem:[#allocation90_spill] sm:$0xff] %v14701_v24  ;;  %v17851_v48 = vld [vmem:[#allocation80_spill] sm:$0xff] }
 0x780   : > { %v14695_v32 = vadd.f32 %v7166_v54, %v6679_v36  ;;  %17831 = vst [vmem:[#allocation133_spill] sm:$0xff] %v14703_v52  ;;  %v6975_v47 = vpop.f32.mrf.mxu0  ;;  %v6681_v36 = vmax.f32 %v6338_v51, 0.0  ;;  %v17894_v35 = vld [vmem:[#allocation84_spill] sm:$0xff] }
 0x781   : > { %17824 = vst [vmem:[#allocation33_spill] sm:$0xff] %v14693_v26  ;;  %v7168_v44 = vpop.f32.mrf.mxu1  ;;  %v14709_v54 = vadd.f32 %v6975_v47, %v6678_v56  ;;  %v6683_v56 = vmax.f32 %v6531_v6, 0.0  ;;  %v17837_v47 = vld [vmem:[#allocation134_spill] sm:$0xff]  ;;  %v17898_v27 = vld [vmem:[#allocation104_spill] sm:$0xff] }
 0x782   : > { %17825 = vst [vmem:[#allocation135_spill] sm:$0xff] %v14695_v32  ;;  %v14711_v19 = vadd.f32 %v7168_v44, %v6680_v29  ;;  %v6979_v37 = vpop.f32.mrf.mxu0  ;;  %v6685_v29 = vmax.f32 %v6342_v38, 0.0  ;;  %v17838_v44 = vld [vmem:[#allocation49_spill] sm:$0xff]  ;;  %v17846_v38 = vld [vmem:[#allocation142_spill] sm:$0xff]  ;;  %v17908_v9 = vld [vmem:[#allocation72_spill] sm:$0xff] }
 0x783   : > { %17832 = vst [vmem:[#allocation28_spill] sm:$0xff] %v14709_v54  ;;  %v7172_v16 = vpop.f32.mrf.mxu1  ;;  %v14730_v50 = vadd.f32 %v17838_v44, %v17837_v47  ;;  %v14736_v43 = vadd.f32 %v6979_v37, %v6681_v36  ;;  %v6348_v63 = vadd.f32 %v17847_v61, %v17846_v38  ;;  %v17849_v47 = vld [vmem:[#allocation83_spill] sm:$0xff]  ;;  %v6352_v37 = vadd.f32 %v17851_v48, %v17850_v8  ;;  %v17852_v36 = vld [vmem:[#allocation82_spill] sm:$0xff] }
 0x784   : > { %17833 = vst [vmem:[#allocation136_spill] sm:$0xff] %v14711_v19  ;;  %v14720_v53 = vpop.f32.mrf.mxu0  ;;  %v14738_v51 = vadd.f32 %v7172_v16, %v6683_v56  ;;  %v6541_v44 = vadd.f32 %v17849_v47, %v17848_v20  ;;  %v17853_v16 = vld [vmem:[#allocation77_spill] sm:$0xff]  ;;  %v17854_v47 = vld [vmem:[#allocation128_spill] sm:$0xff]  ;;  %v14873_v52 = vadd.f32 %v17909_v59, %v17908_v9  ;;  %v17916_v9 = vld [vmem:[#allocation107_spill] sm:$0xff] }
 0x785   : > { %v14722_v11 = vpop.f32.mrf.mxu1  ;;  %17839 = vst [vmem:[#allocation129_spill] sm:$0xff] %v14730_v50  ;;  %17842 = vst [vmem:[#allocation120_spill] sm:$0xff] %v14736_v43  ;;  %v6545_v56 = vadd.f32 %v17853_v16, %v17852_v36  ;;  %v14765_v48 = vadd.f32 %v17855_v62, %v17854_v47  ;;  %v6689_v8 = vmax.f32 %v6348_v63, 0.0  ;;  %v17856_v16 = vld [vmem:[#allocation76_spill] sm:$0xff]  ;;  %v6693_v61 = vmax.f32 %v6352_v37, 0.0  ;;  %v17862_v63 = vld [vmem:[#allocation121_spill] sm:$0xff] }
 0x786   : > { %17834 = vst [vmem:[#allocation57_spill] sm:$0xff] %v14722_v11  ;;  %v6983_v7 = vpop.f32.mrf.mxu0  ;;  %17843 = vst [vmem:[#allocation127_spill] sm:$0xff] %v14738_v51  ;;  %v6691_v36 = vmax.f32 %v6541_v44, 0.0  ;;  %v14781_v62 = vadd.f32 %v17861_v17, %v17860_v2  ;;  %v17863_v44 = vld [vmem:[#allocation148_spill] sm:$0xff]  ;;  %v17870_v37 = vld [vmem:[#allocation25_spill] sm:$0xff] }
 0x787   : > { %v7176_v57 = vpop.f32.mrf.mxu1  ;;  %v14740_v6 = vadd.f32 %v6983_v7, %v6685_v29  ;;  %v14769_v7 = vadd.f32 %v17857_v39, %v17856_v16  ;;  %v6695_v20 = vmax.f32 %v6545_v56, 0.0  ;;  %v14785_v47 = vadd.f32 %v17863_v44, %v17862_v63  ;;  %v17864_v39 = vld [vmem:[#allocation126_spill] sm:$0xff]  ;;  %v17865_v16 = vld [vmem:[#allocation139_spill] sm:$0xff]  ;;  %v17917_v59 = vld [vmem:[#allocation153_spill] sm:$0xff] }
 0x788   : > { %v14742_v34 = vadd.f32 %v7176_v57, %v6687_v31  ;;  %v14748_v58 = vpop.f32.mrf.mxu0  ;;  %v17859_v57 = vld [vmem:[#allocation85_spill] sm:$0xff]  ;;  %v6358_v13 = vadd.f32 %v17865_v16, %v17864_v39  ;;  %v17871_v56 = vld [vmem:[#allocation119_spill] sm:$0xff]  ;;  %v17876_v16 = vld [vmem:[#allocation14_spill] sm:$0xff] }
 0x789   : > { %17844 = vst [vmem:[#allocation44_spill] sm:$0xff] %v14740_v6  ;;  %v14750_v28 = vpop.f32.mrf.mxu1  ;;  %v14773_v14 = vadd.f32 %v17859_v57, %v17858_v0  ;;  %v17867_v0 = vld [vmem:[#allocation69_spill] sm:$0xff]  ;;  %v14797_v30 = vadd.f32 %v17871_v56, %v17870_v37  ;;  %v14813_v37 = vadd.f32 %v17881_v22, %v17880_v23  ;;  %v17882_v56 = vld [vmem:[#allocation22_spill] sm:$0xff] }
 0x78a   : > { %17845 = vst [vmem:[#allocation21_spill] sm:$0xff] %v14742_v34  ;;  %v6989_v29 = vpop.f32.mrf.mxu0  ;;  %v6551_v57 = vadd.f32 %v17867_v0, %v17866_v4  ;;  %v17877_v4 = vld [vmem:[#allocation145_spill] sm:$0xff]  ;;  %v17919_v19 = vld [vmem:[#allocation154_spill] sm:$0xff] }
 0x78b   : > { %v7182_v31 = vpop.f32.mrf.mxu1  ;;  %v14799_v49 = vadd.f32 %v6989_v29, %v6689_v8  ;;  %v6362_v0 = vadd.f32 %v17877_v4, %v17876_v16  ;;  %v14817_v29 = vadd.f32 %v17883_v15, %v17882_v56  ;;  %v17884_v8 = vld [vmem:[#allocation16_spill] sm:$0xff]  ;;  %v6697_v56 = vmax.f32 %v6358_v13, 0.0  ;;  %v17926_v11 = vld [vmem:[#allocation157_spill] sm:$0xff]  ;;  %v17928_v50 = vld [vmem:[#allocation158_spill] sm:$0xff] }
 0x78c   : > { %v14775_v5 = vpop.f32.mrf.mxu0  ;;  %v14801_v63 = vadd.f32 %v7182_v31, %v6691_v36  ;;  %v17885_v36 = vld [vmem:[#allocation71_spill] sm:$0xff]  ;;  %v6702_v23 = vmax.f32 %v14813_v37, 0.0  ;;  %v6372_v37 = vadd.f32 %v17893_v42, %v17892_v21  ;;  %v17904_v42 = vld [vmem:[#allocation62_spill] sm:$0xff] }
 0x78d   : > { %v14777_v38 = vpop.f32.mrf.mxu1  ;;  %17872 = vst [vmem:[#allocation52_spill] sm:$0xff] %v14799_v49  ;;  %v6701_v60 = vmax.f32 %v6362_v0, 0.0  ;;  %v6704_v22 = vmax.f32 %v14817_v29, 0.0  ;;  %v17895_v29 = vld [vmem:[#allocation58_spill] sm:$0xff] }
 0x78e   : > { %v6993_v2 = vpop.f32.mrf.mxu0  ;;  %17873 = vst [vmem:[#allocation134_spill] sm:$0xff] %v14801_v63  ;;  %v6565_v45 = vadd.f32 %v17895_v29, %v17894_v35  ;;  %v17906_v35 = vld [vmem:[#allocation106_spill] sm:$0xff]  ;;  %v6709_v34 = vmax.f32 %v6372_v37, 0.0 }
 0x78f   : > { %v7186_v17 = vpop.f32.mrf.mxu1  ;;  %v14803_v44 = vadd.f32 %v6993_v2, %v6693_v61  ;;  %v14826_v2 = vadd.f32 %v17885_v36, %v17884_v8  ;;  %v17891_v36 = vld [vmem:[#allocation29_spill] sm:$0xff]  ;;  %v17907_v29 = vld [vmem:[#allocation42_spill] sm:$0xff] }
 0x790   : > { %v14805_v39 = vadd.f32 %v7186_v17, %v6695_v20  ;;  %v14819_v31 = vpop.f32.mrf.mxu0  ;;  %v6699_v20 = vmax.f32 %v6551_v57, 0.0  ;;  %v17886_v17 = vld [vmem:[#allocation20_spill] sm:$0xff]  ;;  %v17888_v57 = vld [vmem:[#allocation31_spill] sm:$0xff]  ;;  %v6563_v0 = vadd.f32 %v17891_v36, %v17890_v12  ;;  %v17905_v36 = vld [vmem:[#allocation117_spill] sm:$0xff]  ;;  %v6571_v26 = vadd.f32 %v17907_v29, %v17906_v35 }
 0x791   : > { %17874 = vst [vmem:[#allocation49_spill] sm:$0xff] %v14803_v44  ;;  %v14821_v61 = vpop.f32.mrf.mxu1  ;;  %v6705_v16 = vmax.f32 %v14826_v2, 0.0  ;;  %v6561_v13 = vadd.f32 %v17887_v55, %v17886_v17  ;;  %v6370_v8 = vadd.f32 %v17889_v46, %v17888_v57  ;;  %v17899_v2 = vld [vmem:[#allocation110_spill] sm:$0xff]  ;;  %v6378_v21 = vadd.f32 %v17905_v36, %v17904_v42 }
 0x792   : > { %17875 = vst [vmem:[#allocation130_spill] sm:$0xff] %v14805_v39  ;;  %v6999_v4 = vpop.f32.mrf.mxu0  ;;  %v6567_v32 = vadd.f32 %v17899_v2, %v17898_v27  ;;  %v17910_v27 = vld [vmem:[#allocation46_spill] sm:$0xff]  ;;  %v6708_v36 = vmax.f32 %v6563_v0, 0.0  ;;  %v6711_v43 = vmax.f32 %v6565_v45, 0.0  ;;  %v6710_v35 = vmax.f32 %v6374_v33, 0.0 }
 0x793   : > { %v7192_v25 = vpop.f32.mrf.mxu1  ;;  %v14859_v17 = vadd.f32 %v6999_v4, %v6697_v56  ;;  %v17911_v2 = vld [vmem:[#allocation150_spill] sm:$0xff]  ;;  %v17914_v56 = vld [vmem:[#allocation113_spill] sm:$0xff]  ;;  %v6707_v29 = vmax.f32 %v6561_v13, 0.0  ;;  %v6706_v51 = vmax.f32 %v6370_v8, 0.0  ;;  %v6713_v6 = vmax.f32 %v6378_v21, 0.0 }
 0x794   : > { %v14840_v1 = vpop.f32.mrf.mxu0  ;;  %v14861_v46 = vadd.f32 %v7192_v25, %v6699_v20  ;;  %v14877_v4 = vadd.f32 %v17911_v2, %v17910_v27  ;;  %v14893_v27 = vadd.f32 %v17917_v59, %v17916_v9  ;;  %v17918_v2 = vld [vmem:[#allocation64_spill] sm:$0xff]  ;;  %v6712_v13 = vmax.f32 %v6567_v32, 0.0  ;;  %v17923_v33 = vld [vmem:[#allocation30_spill] sm:$0xff] }
 0x795   : > { %v14842_v15 = vpop.f32.mrf.mxu1  ;;  %17900 = vst [vmem:[#allocation65_spill] sm:$0xff] %v14859_v17  ;;  %v14897_v24 = vadd.f32 %v17919_v19, %v17918_v2  ;;  %v6715_v63 = vmax.f32 %v6571_v26, 0.0  ;;  %v6714_v39 = vmax.f32 %v14873_v52, 0.0  ;;  %v17924_v32 = vld [vmem:[#allocation156_spill] sm:$0xff] }
 0x796   : > { %v7003_v40 = vpop.f32.mrf.mxu0  ;;  %17901 = vst [vmem:[#allocation142_spill] sm:$0xff] %v14861_v46  ;;  %v6716_v19 = vmax.f32 %v14877_v4, 0.0  ;;  %v14912_v0 = vadd.f32 %v17924_v32, %v17923_v33  ;;  %v17927_v32 = vld [vmem:[#allocation102_spill] sm:$0xff] }
 0x797   : > { %v7196_v55 = vpop.f32.mrf.mxu1  ;;  %v14863_v57 = vadd.f32 %v7003_v40, %v6701_v60  ;;  %v17912_v40 = vld [vmem:[#allocation105_spill] sm:$0xff]  ;;  %v17913_v60 = vld [vmem:[#allocation151_spill] sm:$0xff] }
 0x798   : > { %v14865_v12 = vadd.f32 %v7196_v55, %v6703_v18  ;;  %v7005_v20 = vpop.f32.mrf.mxu0  ;;  %v14881_v18 = vadd.f32 %v17913_v60, %v17912_v40  ;;  %v17915_v55 = vld [vmem:[#allocation152_spill] sm:$0xff]  ;;  %v17921_v60 = vld [vmem:[#allocation155_spill] sm:$0xff] }
 0x799   : > { %17902 = vst [vmem:[#allocation68_spill] sm:$0xff] %v14863_v57  ;;  %v7198_v25 = vpop.f32.mrf.mxu1  ;;  %v14885_v42 = vadd.f32 %v17915_v55, %v17914_v56  ;;  %v17920_v40 = vld [vmem:[#allocation24_spill] sm:$0xff]  ;;  %v7344_v44 = vadd.f32 %v7005_v20, %v6702_v23 }
 0x79a   : > { %17903 = vst [vmem:[#allocation73_spill] sm:$0xff] %v14865_v12  ;;  %v14901_v54 = vadd.f32 %v17921_v60, %v17920_v40  ;;  %v7009_v56 = vpop.f32.mrf.mxu0  ;;  %v6717_v2 = vmax.f32 %v14881_v18, 0.0  ;;  %v7346_v18 = vadd.f32 %v7198_v25, %v6704_v22 }
 0x79b   : > { %v7202_v55 = vpop.f32.mrf.mxu1  ;;  %v6719_v40 = vmax.f32 %v14885_v42, 0.0  ;;  %v7347_v21 = vadd.f32 %v7009_v56, %v6705_v16  ;;  %v14920_v16 = vadd.f32 %v17928_v50, %v17927_v32 }
 0x79c   : > { %17922 = vst [vmem:[#allocation83_spill] sm:$0xff] %v14901_v54  ;;  %v7011_v9 = vpop.f32.mrf.mxu0  ;;  %v7349_v52 = vadd.f32 %v7202_v55, %v6707_v29  ;;  %v17925_v54 = vld [vmem:[#allocation96_spill] sm:$0xff] }
 0x79d   : > { %v7204_v59 = vpop.f32.mrf.mxu1  ;;  %v7348_v46 = vadd.f32 %v7011_v9, %v6706_v51  ;;  %v14916_v33 = vadd.f32 %v17926_v11, %v17925_v54  ;;  %v17930_v51 = vmax.f32 %v14797_v30, 0.0  ;;  %v17933_v11 = vld [vmem:[#allocation50_spill] sm:$0xff]  ;;  %v17937_v30 = vmax.f32 %v14781_v62, 0.0  ;;  %v17940_v9 = vld [vmem:[#allocation19_spill] sm:$0xff] }
 0x79e   : > { %v7013_v26 = vpop.f32.mrf.mxu0  ;;  %v7350_v42 = vadd.f32 %v7204_v59, %v6708_v36  ;;  %v17934_v36 = vld [vmem:[#allocation159_spill] sm:$0xff]  ;;  %v17941_v59 = vld [vmem:[#allocation161_spill] sm:$0xff]  ;;  %v17942_v62 = vmax.f32 %v14769_v7, 0.0 }
 0x79f   : > { %v7206_v37 = vpop.f32.mrf.mxu1  ;;  %v7351_v49 = vadd.f32 %v7013_v26, %v6709_v34  ;;  %v7342_v23 = vadd.f32 %v14842_v15, %v17930_v51  ;;  %v14934_v50 = vadd.f32 %v17934_v36, %v17933_v11  ;;  %v17944_v26 = vld [vmem:[#allocation93_spill] sm:$0xff]  ;;  %v17963_v11 = vld [vmem:[#allocation142_spill] sm:$0xff] }
 0x7a0   : > { %v7353_v4 = vadd.f32 %v7206_v37, %v6711_v43  ;;  %v7015_v12 = vpop.f32.mrf.mxu0  ;;  %v17929_v43 = vmax.f32 %v14793_v3, 0.0  ;;  %v17936_v3 = vld [vmem:[#allocation160_spill] sm:$0xff]  ;;  %v17945_v37 = vld [vmem:[#allocation162_spill] sm:$0xff] }
 0x7a1   : > { %v7208_v60 = vpop.f32.mrf.mxu1  ;;  %v7479_v17 = vpack.c.bf16 %v7351_v49, %v7347_v21  ;;  %v7352_v57 = vadd.f32 %v7015_v12, %v6710_v35  ;;  %v17935_v35 = vld [vmem:[#allocation47_spill] sm:$0xff]  ;;  %v6587_v21 = vadd.f32 %v17945_v37, %v17944_v26  ;;  %v17975_v37 = vld [vmem:[#allocation49_spill] sm:$0xff] }
 0x7a2   : > { %v7481_v8 = vpack.c.bf16 %v7353_v4, %v7349_v52  ;;  %v7354_v45 = vadd.f32 %v7208_v60, %v6712_v13  ;;  %v7340_v34 = vadd.f32 %v14840_v1, %v17929_v43  ;;  %v7019_v49 = vpop.f32.mrf.mxu0  ;;  %v14938_v29 = vadd.f32 %v17936_v3, %v17935_v35 }
 0x7a3   : > { %v7212_v22 = vpop.f32.mrf.mxu1  ;;  %v7480_v12 = vpack.c.bf16 %v7352_v57, %v7348_v46  ;;  %v14928_v25 = vadd.f32 %v7019_v49, %v6713_v6  ;;  %v7336_v1 = vadd.f32 %v14819_v31, %v17937_v30  ;;  %v6723_v6 = vmax.f32 %v14912_v0, 0.0 }
 0x7a4   : > { %v7482_v20 = vpack.c.bf16 %v7354_v45, %v7350_v42  ;;  %v14930_v54 = vadd.f32 %v7212_v22, %v6715_v63  ;;  %v7476_v15 = vpack.c.bf16 %v7344_v44, %v7340_v34  ;;  %v7021_v56 = vpop.f32.mrf.mxu0  ;;  %v7478_v57 = vpack.c.bf16 %v7346_v18, %v7342_v23  ;;  %v17958_v34 = vld [vmem:[#allocation57_spill] sm:$0xff] }
 0x7a5   : > { %17931 = vst [vmem:[#allocation79_spill] sm:$0xff] %v14928_v25  ;;  %v7214_v46 = vpop.f32.mrf.mxu1  ;;  %v14944_v63 = vadd.f32 %v7021_v56, %v6714_v39  ;;  %7803 = vmatprep.subr.bf16.mxu0 %v7480_v12  ;;  %v6722_v13 = vmax.f32 %v14916_v33, 0.0  ;;  %v14951_v60 = vadd.f32 %v17941_v59, %v17940_v9  ;;  %v7332_v44 = vadd.f32 %v14775_v5, %v17942_v62  ;;  %v17960_v12 = vld [vmem:[#allocation65_spill] sm:$0xff]  ;;  %v17970_v56 = vld [vmem:[#allocation163_spill] sm:$0xff]  ;;  %v17972_v9 = vld [vmem:[#allocation164_spill] sm:$0xff] }
 0x7a6   : > { %17932 = vst [vmem:[#allocation80_spill] sm:$0xff] %v14930_v54  ;;  %v14946_v55 = vadd.f32 %v7214_v46, %v6716_v19  ;;  %7996 = vmatprep.subr.bf16.mxu1 %v7482_v20  ;;  %v17943_v31 = vmax.f32 %v14785_v47, 0.0  ;;  %v7023_v39 = vpop.f32.mrf.mxu0  ;;  %7804 = vmatpush1.bf16.msra.mxu0 %v7479_v17  ;;  %v6724_v19 = vmax.f32 %v14920_v16, 0.0  ;;  %v17948_v5 = vmax.f32 %v14734_v41, 0.0  ;;  %v17956_v16 = vld [vmem:[#allocation129_spill] sm:$0xff]  ;;  %v18091_v25 = vld [vmem:[#allocation198_spill] sm:$0xff] }
 0x7a7   : > { %17938 = vst [vmem:[#allocation82_spill] sm:$0xff] %v14944_v63  ;;  %v7216_v0 = vpop.f32.mrf.mxu1  ;;  %7997 = vmatpush1.bf16.msra.mxu1 %v7481_v8  ;;  %v14962_v52 = vadd.f32 %v7023_v39, %v6717_v2  ;;  %7805 = vmatprep.subr.bf16.mxu0 %v7476_v15  ;;  %v17949_v47 = vmax.f32 %v14765_v48, 0.0  ;;  %v17950_v17 = vmax.f32 %v14773_v14, 0.0  ;;  %v7472_v18 = vpack.c.bf16 %v7336_v1, %v7332_v44  ;;  %v17969_v15 = vld [vmem:[#allocation89_spill] sm:$0xff] }
 0x7a8   : > { %17939 = vst [vmem:[#allocation77_spill] sm:$0xff] %v14946_v55  ;;  %v7338_v45 = vadd.f32 %v14821_v61, %v17943_v31  ;;  %v14964_v4 = vadd.f32 %v7216_v0, %v6719_v40  ;;  %7998 = vmatprep.subr.bf16.mxu1 %v7478_v57  ;;  %v7328_v7 = vadd.f32 %v14748_v58, %v17948_v5  ;;  %v7025_v42 = vpop.f32.mrf.mxu0  ;;  %v17951_v41 = vmax.f32 %v14893_v27, 0.0  ;;  %v17959_v27 = vld [vmem:[#allocation68_spill] sm:$0xff]  ;;  %v17971_v57 = vld [vmem:[#allocation111_spill] sm:$0xff] }
 0x7a9   : > { %17946 = vst [vmem:[#allocation128_spill] sm:$0xff] %v14962_v52  ;;  %v7330_v61 = vadd.f32 %v14750_v28, %v17949_v47  ;;  %v7334_v8 = vadd.f32 %v14777_v38, %v17950_v17  ;;  %v7218_v2 = vpop.f32.mrf.mxu1  ;;  %v17953_v48 = vmax.f32 %v14897_v24, 0.0  ;;  %v6725_v14 = vmax.f32 %v14934_v50, 0.0  ;;  %v17962_v24 = vld [vmem:[#allocation73_spill] sm:$0xff]  ;;  %v17965_v50 = vld [vmem:[#allocation83_spill] sm:$0xff]  ;;  %v17976_v5 = vld [vmem:[#allocation52_spill] sm:$0xff] }
 0x7aa   : > { %17947 = vst [vmem:[#allocation143_spill] sm:$0xff] %v14964_v4  ;;  %v14981_v58 = vadd.f32 %v7025_v42, %v17951_v41  ;;  %v17955_v38 = vmax.f32 %v14726_v10, 0.0  ;;  %v17957_v43 = vmax.f32 %v17956_v16, 0.0  ;;  %v7029_v49 = vpop.f32.mrf.mxu0  ;;  %v17961_v20 = vpack.c.bf16 %v17959_v27, %v17960_v12  ;;  %v17978_v47 = vld [vmem:[#allocation130_spill] sm:$0xff]  ;;  %v17984_v41 = vld [vmem:[#allocation167_spill] sm:$0xff]  ;;  %v17989_v12 = vld [vmem:[#allocation44_spill] sm:$0xff] }
 0x7ab   : > { %v14985_v28 = vadd.f32 %v7218_v2, %v17953_v48  ;;  %v7474_v23 = vpack.c.bf16 %v7338_v45, %v7334_v8  ;;  %v7222_v22 = vpop.f32.mrf.mxu1  ;;  %v17964_v36 = vpack.c.bf16 %v17962_v24, %v17963_v11  ;;  %v17966_v35 = vmax.f32 %v17965_v50, 0.0  ;;  %v17979_v17 = vld [vmem:[#allocation134_spill] sm:$0xff]  ;;  %v17983_v2 = vld [vmem:[#allocation124_spill] sm:$0xff]  ;;  %v17992_v11 = vld [vmem:[#allocation21_spill] sm:$0xff] }
 0x7ac   : > { %17952 = vst [vmem:[#allocation76_spill] sm:$0xff] %v14981_v58  ;;  %v7324_v32 = vadd.f32 %v14720_v53, %v17955_v38  ;;  %v7326_v51 = vadd.f32 %v17958_v34, %v17957_v43  ;;  %7806 = vmatpush1.bf16.msra.mxu0 %v17961_v20  ;;  %v15008_v30 = vadd.f32 %v7222_v22, %v6723_v6  ;;  %v6727_v1 = vmax.f32 %v14938_v29, 0.0  ;;  %v7031_v44 = vpop.f32.mrf.mxu0  ;;  %v17985_v38 = vld [vmem:[#allocation61_spill] sm:$0xff]  ;;  %v17990_v20 = vld [vmem:[#allocation120_spill] sm:$0xff]  ;;  %v18090_v4 = vld [vmem:[#allocation78_spill] sm:$0xff] }
 0x7ad   : > { %17954 = vst [vmem:[#allocation60_spill] sm:$0xff] %v14985_v28  ;;  %7999 = vmatpush1.bf16.msra.mxu1 %v17964_v36  ;;  %v15006_v3 = vadd.f32 %v7029_v49, %v17966_v35  ;;  %7807 = vmatprep.subr.bf16.mxu0 %v7472_v18  ;;  %v6398_v46 = vadd.f32 %v17970_v56, %v17969_v15  ;;  %v7224_v31 = vpop.f32.mrf.mxu1  ;;  %v6728_v18 = vmax.f32 %v6587_v21, 0.0  ;;  %v9604_v49 = vld [vmem:[%s16148_s14 + $0x70] sm:$0xff]  ;;  %v17993_v36 = vld [vmem:[#allocation127_spill] sm:$0xff]  ;;  %v9618_v21 = vld [vmem:[%s16148_s14 + $0x18] sm:$0xff] }
 0x7ae   : > { %17968 = vst [vmem:[#allocation85_spill] sm:$0xff] %v15008_v30  ;;  %v6591_v59 = vadd.f32 %v17972_v9, %v17971_v57  ;;  %v7468_v62 = vpack.c.bf16 %v7328_v7, %v7324_v32  ;;  %8000 = vmatprep.subr.bf16.mxu1 %v7474_v23  ;;  %v7470_v45 = vpack.c.bf16 %v7330_v61, %v7326_v51  ;;  %v7033_v6 = vpop.f32.mrf.mxu0  ;;  %v6726_v7 = vmax.f32 %v14951_v60, 0.0  ;;  %v17986_v32 = vld [vmem:[#allocation168_spill] sm:$0xff]  ;;  %v17998_v57 = vld [vmem:[#allocation90_spill] sm:$0xff]  ;;  %v18094_v58 = vld [vmem:[#allocation39_spill] sm:$0xff] }
 0x7af   : > { %17967 = vst [vmem:[#allocation115_spill] sm:$0xff] %v15006_v3  ;;  %v15015_v39 = vadd.f32 %v7031_v44, %v6722_v13  ;;  %v15017_v0 = vadd.f32 %v7224_v31, %v6724_v19  ;;  %v7226_v26 = vpop.f32.mrf.mxu1  ;;  %v17977_v29 = vpack.c.bf16 %v17975_v37, %v17976_v5  ;;  %v17980_v8 = vpack.c.bf16 %v17978_v47, %v17979_v17  ;;  %v9606_v5 = vld [vmem:[%s16148_s14 + $0x60] sm:$0xff]  ;;  %v18005_v17 = vld [vmem:[#allocation33_spill] sm:$0xff]  ;;  %v18099_v3 = vld [vmem:[#allocation204_spill] sm:$0xff] }
 0x7b0   : > { %v15026_v42 = vadd.f32 %v7033_v6, %v6725_v14  ;;  %v15028_v61 = vadd.f32 %v7226_v26, %v6727_v1  ;;  %v6729_v13 = vmax.f32 %v6398_v46, 0.0  ;;  %v6731_v19 = vmax.f32 %v6591_v59, 0.0  ;;  %v7035_v43 = vpop.f32.mrf.mxu0  ;;  %v17997_v46 = vld [vmem:[#allocation28_spill] sm:$0xff]  ;;  %v9605_v6 = vld [vmem:[%s16148_s14 + $0x78] sm:$0xff]  ;;  %v18096_v30 = vld [vmem:[#allocation37_spill] sm:$0xff] }
 0x7b1   : > { %17973 = vst [vmem:[#allocation125_spill] sm:$0xff] %v15015_v39  ;;  %17974 = vst [vmem:[#allocation146_spill] sm:$0xff] %v15017_v0  ;;  %7808 = vmatpush1.bf16.msra.mxu0 %v17977_v29  ;;  %8001 = vmatpush1.bf16.msra.mxu1 %v17980_v8  ;;  %v6402_v48 = vadd.f32 %v17984_v41, %v17983_v2  ;;  %v6595_v16 = vadd.f32 %v17986_v32, %v17985_v38  ;;  %v7228_v34 = vpop.f32.mrf.mxu1  ;;  %v9732_v51 = vmov 2   ;;  %v18000_v59 = vld [vmem:[#allocation136_spill] sm:$0xff]  ;;  %v18006_v8 = vld [vmem:[#allocation34_spill] sm:$0xff] }
 0x7b2   : > { %17981 = vst [vmem:[#allocation121_spill] sm:$0xff] %v15026_v42  ;;  %17982 = vst [vmem:[#allocation148_spill] sm:$0xff] %v15028_v61  ;;  %7809 = vmatprep.subr.bf16.mxu0 %v7468_v62  ;;  %8002 = vmatprep.subr.bf16.mxu1 %v7470_v45  ;;  %v15038_v14 = vadd.f32 %v7035_v43, %v6726_v7  ;;  %v15040_v23 = vadd.f32 %v7228_v34, %v6728_v18  ;;  %v7039_v22 = vpop.f32.mrf.mxu0  ;;  %v18001_v62 = vld [vmem:[#allocation133_spill] sm:$0xff]  ;;  %v18008_v18 = vld [vmem:[#allocation135_spill] sm:$0xff] }
 0x7b3   : > { %9055 = vset.pattern.permute.xlu1 %v9732_v51  ;;  %9056 = vset.pattern.permute.xlu0 %v9732_v51  ;;  %v7232_v27 = vpop.f32.mrf.mxu1  ;;  %v17991_v24 = vpack.c.bf16 %v17989_v12, %v17990_v20  ;;  %v17994_v50 = vpack.c.bf16 %v17992_v11, %v17993_v36  ;;  %v15055_v15 = vadd.f32 %v7039_v22, %v6729_v13  ;;  %v6733_v26 = vmax.f32 %v6402_v48, 0.0  ;;  %v18009_v13 = vld [vmem:[#allocation138_spill] sm:$0xff]  ;;  %v18013_v48 = vld [vmem:[#allocation27_spill] sm:$0xff]  ;;  %v18017_v43 = vld [vmem:[#allocation140_spill] sm:$0xff] }
 0x7b4   : > { %17987 = vst [vmem:[#allocation126_spill] sm:$0xff] %v15038_v14  ;;  %17988 = vst [vmem:[#allocation139_spill] sm:$0xff] %v15040_v23  ;;  %7572 = vperm.xlu1 %9055, %v9604_v49   ;;  %v15057_v56 = vadd.f32 %v7232_v27, %v6731_v19  ;;  %v17999_v9 = vpack.c.bf16 %v17997_v46, %v17998_v57  ;;  %v18002_v44 = vpack.c.bf16 %v18000_v59, %v18001_v62  ;;  %v15065_v31 = vpop.f32.mrf.mxu0  ;;  %v18014_v38 = vld [vmem:[#allocation35_spill] sm:$0xff]  ;;  %v18022_v12 = vld [vmem:[#allocation172_spill] sm:$0xff] }
 0x7b5   : > { %7810 = vmatpush1.bf16.msra.mxu0 %v17991_v24  ;;  %8003 = vmatpush1.bf16.msra.mxu1 %v17994_v50  ;;  %17995 = vst [vmem:[#allocation122_spill] sm:$0xff] %v15055_v15  ;;  %18003 = vst [vmem:[#allocation18_spill] sm:$0xff] %v15065_v31  ;;  %v15067_v45 = vpop.f32.mrf.mxu1  ;;  %v6735_v37 = vmax.f32 %v6595_v16, 0.0  ;;  %v18007_v7 = vpack.c.bf16 %v18005_v17, %v18006_v8  ;;  %v18010_v19 = vpack.c.bf16 %v18008_v18, %v18009_v13  ;;  %v18016_v16 = vld [vmem:[#allocation8_spill] sm:$0xff]  ;;  %v18019_v51 = vld [vmem:[#allocation91_spill] sm:$0xff] }
 0x7b6   : > { %17996 = vst [vmem:[#allocation69_spill] sm:$0xff] %v15057_v56  ;;  %7811 = vmatprep.subr.bf16.mxu0 %v17999_v9  ;;  %8004 = vmatprep.subr.bf16.mxu1 %v18002_v44  ;;  %18004 = vst [vmem:[#allocation147_spill] sm:$0xff] %v15067_v45  ;;  %v7043_v29 = vpop.f32.mrf.mxu0  ;;  %v18015_v32 = vpack.c.bf16 %v18013_v48, %v18014_v38  ;;  %v18018_v34 = vpack.c.bf16 %v18016_v16, %v18017_v43  ;;  %v18020_v49 = vld [vmem:[#allocation171_spill] sm:$0xff]  ;;  %v9607_v36 = vld [vmem:[%s16148_s14 + $0x50] sm:$0xff] }
 0x7b7   : > { %7576 = vperm.xlu0 %9056, %v9605_v6   ;;  %v7236_v47 = vpop.f32.mrf.mxu1  ;;  %v15081_v2 = vadd.f32 %v7043_v29, %v6733_v26  ;;  %v6408_v22 = vadd.f32 %v18020_v49, %v18019_v51  ;;  %v18021_v27 = vld [vmem:[#allocation67_spill] sm:$0xff]  ;;  %v18023_v50 = vld [vmem:[#allocation118_spill] sm:$0xff]  ;;  %v18026_v59 = vld [vmem:[#allocation176_spill] sm:$0xff]  ;;  %v15279_v52 = vadd.f32 %v18091_v25, %v18090_v4 }
 0x7b8   : > { %7564 = vperm.xlu1 %9055, %v9606_v5   ;;  %v15083_v41 = vadd.f32 %v7236_v47, %v6735_v37  ;;  %v6601_v20 = vadd.f32 %v18022_v12, %v18021_v27  ;;  %v15095_v24 = vpop.f32.mrf.mxu0  ;;  %v18024_v46 = vld [vmem:[#allocation175_spill] sm:$0xff]  ;;  %v9608_v26 = vld [vmem:[%s16148_s14 + $0x68] sm:$0xff]  ;;  %v18030_v8 = vld [vmem:[#allocation137_spill] sm:$0xff] }
 0x7b9   : > { %7812 = vmatpush1.bf16.msra.mxu0 %v18007_v7  ;;  %8005 = vmatpush1.bf16.msra.mxu1 %v18010_v19  ;;  %18011 = vst [vmem:[#allocation25_spill] sm:$0xff] %v15081_v2  ;;  %v15097_v11 = vpop.f32.mrf.mxu1  ;;  %v6412_v57 = vadd.f32 %v18024_v46, %v18023_v50  ;;  %v18025_v9 = vld [vmem:[#allocation51_spill] sm:$0xff]  ;;  %v18027_v29 = vld [vmem:[#allocation92_spill] sm:$0xff]  ;;  %v18033_v13 = vld [vmem:[#allocation225_spill] sm:$0xff]  ;;  %v6737_v38 = vmax.f32 %v6408_v22, 0.0 }
 0x7ba   : > { %18012 = vst [vmem:[#allocation119_spill] sm:$0xff] %v15083_v41  ;;  %7813 = vmatprep.subr.bf16.mxu0 %v18015_v32  ;;  %8006 = vmatprep.subr.bf16.mxu1 %v18018_v34  ;;  %v6605_v62 = vadd.f32 %v18026_v59, %v18025_v9  ;;  %v7049_v37 = vpop.f32.mrf.mxu0  ;;  %v18028_v47 = vld [vmem:[#allocation227_spill] sm:$0xff]  ;;  %v18031_v7 = vld [vmem:[#allocation228_spill] sm:$0xff]  ;;  %v18034_v19 = vld [vmem:[#allocation221_spill] sm:$0xff]  ;;  %v6739_v27 = vmax.f32 %v6601_v20, 0.0 }
 0x7bb   : > { %7556 = vperm.xlu0 %9056, %v9607_v36   ;;  %v7242_v5 = vpop.f32.mrf.mxu1  ;;  %v18029_v17 = vpack.c.bf16 %v18027_v29, %v18028_v47  ;;  %v18032_v18 = vpack.c.bf16 %v18030_v8, %v18031_v7  ;;  %v18035_v48 = vpack.c.bf16 %v18033_v13, %v18034_v19  ;;  %v18036_v32 = vld [vmem:[#allocation226_spill] sm:$0xff]  ;;  %v9609_v49 = vld [vmem:[%s16148_s14 + $0x40] sm:$0xff]  ;;  %v6741_v12 = vmax.f32 %v6412_v57, 0.0  ;;  %v18043_v47 = vld [vmem:[#allocation224_spill] sm:$0xff] }
 0x7bc   : > { %7568 = vperm.xlu1 %9055, %v9608_v26   ;;  %v18037_v16 = vld [vmem:[#allocation222_spill] sm:$0xff]  ;;  %v15125_v34 = vpop.f32.mrf.mxu0  ;;  %v6743_v36 = vmax.f32 %v6605_v62, 0.0  ;;  %v15135_v50 = vadd.f32 %v7049_v37, %v6737_v38  ;;  %v18040_v59 = vld [vmem:[#allocation223_spill] sm:$0xff]  ;;  %v15143_v20 = vadd.f32 %v7242_v5, %v6739_v27  ;;  %v18049_v7 = vld [vmem:[#allocation217_spill] sm:$0xff] }
 0x7bd   : > { %7814 = vmatpush1.bf16.msra.mxu0 %v18029_v17  ;;  %8007 = vmatpush1.bf16.msra.mxu1 %v18032_v18  ;;  %v18038_v43 = vpack.c.bf16 %v18036_v32, %v18037_v16  ;;  %v15127_v51 = vpop.f32.mrf.mxu1  ;;  %v9610_v22 = vld [vmem:[%s16148_s14 + $0x58] sm:$0xff]  ;;  %v18041_v26 = vld [vmem:[#allocation219_spill] sm:$0xff]  ;;  %v18044_v17 = vld [vmem:[#allocation220_spill] sm:$0xff] }
 0x7be   : > { %7815 = vmatprep.subr.bf16.mxu0 %v18035_v48  ;;  %18039 = vst [vmem:[#allocation14_spill] sm:$0xff] %v15135_v50  ;;  %v7053_v46 = vpop.f32.mrf.mxu0  ;;  %v18042_v29 = vpack.c.bf16 %v18040_v59, %v18041_v26  ;;  %v18045_v8 = vpack.c.bf16 %v18043_v47, %v18044_v17  ;;  %18046 = vst [vmem:[#allocation145_spill] sm:$0xff] %v15143_v20  ;;  %v18050_v18 = vld [vmem:[#allocation213_spill] sm:$0xff]  ;;  %v18052_v13 = vld [vmem:[#allocation218_spill] sm:$0xff] }
 0x7bf   : > { %8008 = vmatprep.subr.bf16.mxu1 %v18038_v43  ;;  %7548 = vperm.xlu0 %9056, %v9609_v49   ;;  %v7246_v9 = vpop.f32.mrf.mxu1  ;;  %v15145_v57 = vadd.f32 %v7053_v46, %v6741_v12  ;;  %v18051_v37 = vpack.c.bf16 %v18049_v7, %v18050_v18  ;;  %v18053_v19 = vld [vmem:[#allocation214_spill] sm:$0xff]  ;;  %v18055_v38 = vld [vmem:[#allocation108_spill] sm:$0xff]  ;;  %v18056_v32 = vld [vmem:[#allocation179_spill] sm:$0xff] }
 0x7c0   : > { %7560 = vperm.xlu1 %9055, %v9610_v22   ;;  %v15147_v62 = vadd.f32 %v7246_v9, %v6743_v36  ;;  %v18054_v48 = vpack.c.bf16 %v18052_v13, %v18053_v19  ;;  %v6418_v16 = vadd.f32 %v18056_v32, %v18055_v38  ;;  %v18057_v43 = vld [vmem:[#allocation48_spill] sm:$0xff]  ;;  %v15159_v5 = vpop.f32.mrf.mxu0  ;;  %v9611_v12 = vld [vmem:[%s16148_s14 + $0x30] sm:$0xff]  ;;  %v18060_v46 = vld [vmem:[#allocation183_spill] sm:$0xff] }
 0x7c1   : > { %7816 = vmatpush1.bf16.msra.mxu0 %v18042_v29  ;;  %8009 = vmatpush1.bf16.msra.mxu1 %v18045_v8  ;;  %18047 = vst [vmem:[#allocation12_spill] sm:$0xff] %v15145_v57  ;;  %v18058_v49 = vld [vmem:[#allocation180_spill] sm:$0xff]  ;;  %v15161_v27 = vpop.f32.mrf.mxu1  ;;  %v18061_v59 = vld [vmem:[#allocation103_spill] sm:$0xff]  ;;  %v18109_v0 = vld [vmem:[#allocation209_spill] sm:$0xff] }
 0x7c2   : > { %18048 = vst [vmem:[#allocation70_spill] sm:$0xff] %v15147_v62  ;;  %7817 = vmatprep.subr.bf16.mxu0 %v18051_v37  ;;  %8010 = vmatprep.subr.bf16.mxu1 %v18054_v48  ;;  %v6611_v22 = vadd.f32 %v18058_v49, %v18057_v43  ;;  %v18059_v36 = vld [vmem:[#allocation40_spill] sm:$0xff]  ;;  %v7059_v7 = vpop.f32.mrf.mxu0  ;;  %v18063_v37 = vld [vmem:[#allocation215_spill] sm:$0xff]  ;;  %v18111_v23 = vld [vmem:[#allocation210_spill] sm:$0xff] }
 0x7c3   : > { %7540 = vperm.xlu0 %9056, %v9611_v12   ;;  %v6422_v9 = vadd.f32 %v18060_v46, %v18059_v36  ;;  %v18062_v26 = vld [vmem:[#allocation184_spill] sm:$0xff]  ;;  %v7252_v18 = vpop.f32.mrf.mxu1  ;;  %v18064_v13 = vld [vmem:[#allocation211_spill] sm:$0xff]  ;;  %v6745_v36 = vmax.f32 %v6418_v16, 0.0  ;;  %v18113_v56 = vld [vmem:[#allocation189_spill] sm:$0xff] }
 0x7c4   : > { %v6615_v29 = vadd.f32 %v18062_v26, %v18061_v59  ;;  %v9612_v8 = vld [vmem:[%s16148_s14 + $0x48] sm:$0xff]  ;;  %v18065_v19 = vpack.c.bf16 %v18063_v37, %v18064_v13  ;;  %v15183_v43 = vpop.f32.mrf.mxu0  ;;  %v9613_v12 = vld [vmem:[%s16148_s14 + $0x20] sm:$0xff]  ;;  %v6747_v46 = vmax.f32 %v6611_v22, 0.0 }
 0x7c5   : > { %7552 = vperm.xlu1 %9055, %v9612_v8   ;;  %v18066_v48 = vld [vmem:[#allocation216_spill] sm:$0xff]  ;;  %v15185_v49 = vpop.f32.mrf.mxu1  ;;  %v6749_v59 = vmax.f32 %v6422_v9, 0.0  ;;  %v9614_v8 = vld [vmem:[%s16148_s14 + $0x38] sm:$0xff]  ;;  %v18073_v16 = vld [vmem:[#allocation187_spill] sm:$0xff] }
 0x7c6   : > { %7818 = vmatpush1.bf16.msra.mxu0 %v18065_v19  ;;  %v18067_v38 = vld [vmem:[#allocation212_spill] sm:$0xff]  ;;  %v6751_v26 = vmax.f32 %v6615_v29, 0.0  ;;  %v7063_v37 = vpop.f32.mrf.mxu0  ;;  %v15193_v19 = vadd.f32 %v7059_v7, %v6745_v36  ;;  %v18074_v9 = vld [vmem:[#allocation94_spill] sm:$0xff]  ;;  %v9615_v7 = vld [vmem:[%s16148_s14 + $0x10] sm:$0xff] }
 0x7c7   : > { %v18068_v32 = vpack.c.bf16 %v18066_v48, %v18067_v38  ;;  %7532 = vperm.xlu0 %9056, %v9613_v12   ;;  %v7256_v13 = vpop.f32.mrf.mxu1  ;;  %v15195_v48 = vadd.f32 %v7252_v18, %v6747_v46  ;;  %v15197_v38 = vadd.f32 %v7063_v37, %v6749_v59  ;;  %v18072_v12 = vld [vmem:[#allocation112_spill] sm:$0xff]  ;;  %v18076_v18 = vld [vmem:[#allocation55_spill] sm:$0xff] }
 0x7c8   : > { %18069 = vst [vmem:[#allocation15_spill] sm:$0xff] %v15193_v19  ;;  %v6428_v22 = vadd.f32 %v18073_v16, %v18072_v12  ;;  %v18075_v29 = vld [vmem:[#allocation188_spill] sm:$0xff]  ;;  %v15205_v40 = vpop.f32.mrf.mxu0  ;;  %v18077_v36 = vld [vmem:[#allocation191_spill] sm:$0xff] }
 0x7c9   : > { %8011 = vmatpush1.bf16.msra.mxu1 %v18068_v32  ;;  %7544 = vperm.xlu1 %9055, %v9614_v8   ;;  %18070 = vst [vmem:[#allocation23_spill] sm:$0xff] %v15195_v48  ;;  %v15199_v32 = vadd.f32 %v7256_v13, %v6751_v26  ;;  %v6621_v33 = vadd.f32 %v18075_v29, %v18074_v9  ;;  %v15207_v53 = vpop.f32.mrf.mxu1  ;;  %v18078_v59 = vld [vmem:[#allocation75_spill] sm:$0xff]  ;;  %v18079_v26 = vld [vmem:[#allocation192_spill] sm:$0xff] }
 0x7ca   : > { %v6432_v46 = vadd.f32 %v18077_v36, %v18076_v18  ;;  %v6625_v8 = vadd.f32 %v18079_v26, %v18078_v59  ;;  %v9616_v12 = vld [vmem:[%s16148_s14 + $0x28] sm:$0xff]  ;;  %v7069_v16 = vpop.f32.mrf.mxu0  ;;  %v9617_v18 = vld [vmem:[%s16148_s14] sm:$0xff]  ;;  %v6753_v36 = vmax.f32 %v6428_v22, 0.0 }
 0x7cb   : > { %18071 = vst [vmem:[#allocation22_spill] sm:$0xff] %v15199_v32  ;;  %7524 = vperm.xlu0 %9056, %v9615_v7   ;;  %v7262_v9 = vpop.f32.mrf.mxu1  ;;  %v6755_v59 = vmax.f32 %v6621_v33, 0.0  ;;  %v18081_v22 = vld [vmem:[#allocation195_spill] sm:$0xff] }
 0x7cc   : > { %v15223_v29 = vpop.f32.mrf.mxu0  ;;  %v6757_v26 = vmax.f32 %v6432_v46, 0.0  ;;  %v6759_v10 = vmax.f32 %v6625_v8, 0.0  ;;  %v15233_v1 = vadd.f32 %v7069_v16, %v6753_v36  ;;  %v18082_v46 = vld [vmem:[#allocation41_spill] sm:$0xff]  ;;  %v18083_v8 = vld [vmem:[#allocation196_spill] sm:$0xff]  ;;  %v18084_v16 = vld [vmem:[#allocation54_spill] sm:$0xff] }
 0x7cd   : > { %7536 = vperm.xlu1 %9055, %v9616_v12   ;;  %v15225_v7 = vpop.f32.mrf.mxu1  ;;  %v15235_v35 = vadd.f32 %v7262_v9, %v6755_v59  ;;  %v6631_v17 = vadd.f32 %v18083_v8, %v18082_v46  ;;  %v18085_v9 = vld [vmem:[#allocation199_spill] sm:$0xff] }
 0x7ce   : > { %v7073_v12 = vpop.f32.mrf.mxu0  ;;  %v6442_v36 = vadd.f32 %v18085_v9, %v18084_v16  ;;  %v9621_v16 = vld [vmem:[%s16148_s14 + $0xe0] sm:$0xff] }
 0x7cf   : > { %7516 = vperm.xlu0 %9056, %v9617_v18   ;;  %v7266_v60 = vpop.f32.mrf.mxu1  ;;  %v15237_v6 = vadd.f32 %v7073_v12, %v6757_v26  ;;  %v18080_v18 = vld [vmem:[#allocation36_spill] sm:$0xff]  ;;  %v9622_v12 = vld [vmem:[%s16148_s14 + $0xf8] sm:$0xff]  ;;  %v18089_v26 = vld [vmem:[#allocation197_spill] sm:$0xff] }
 0x7d0   : > { %v15239_v44 = vadd.f32 %v7266_v60, %v6759_v10  ;;  %v6438_v33 = vadd.f32 %v18081_v22, %v18080_v18  ;;  %v15245_v47 = vpop.f32.mrf.mxu0  ;;  %v18086_v10 = vld [vmem:[#allocation74_spill] sm:$0xff]  ;;  %v18087_v60 = vld [vmem:[#allocation200_spill] sm:$0xff]  ;;  %v18097_v61 = vld [vmem:[#allocation203_spill] sm:$0xff] }
 0x7d1   : > { %7528 = vperm.xlu1 %9055, %v9618_v21   ;;  %v15247_v13 = vpop.f32.mrf.mxu1  ;;  %v9619_v21 = vld [vmem:[%s16148_s14 + $0xf0] sm:$0xff]  ;;  %v6635_v59 = vadd.f32 %v18087_v60, %v18086_v10  ;;  %v9620_v18 = vld [vmem:[%s16148_s14 + $0x8] sm:$0xff]  ;;  %v6763_v10 = vmax.f32 %v6631_v17, 0.0  ;;  %v6765_v60 = vmax.f32 %v6442_v36, 0.0  ;;  %v6448_v25 = vadd.f32 %v18097_v61, %v18096_v30  ;;  %v18098_v4 = vld [vmem:[#allocation11_spill] sm:$0xff] }
 0x7d2   : > { %v7079_v22 = vpop.f32.mrf.mxu0  ;;  %v6761_v9 = vmax.f32 %v6438_v33, 0.0  ;;  %v6641_v42 = vadd.f32 %v18099_v3, %v18098_v4  ;;  %v9624_v3 = vld [vmem:[%s16148_s14 + $0xe8] sm:$0xff]  ;;  %v18104_v61 = vld [vmem:[#allocation9_spill] sm:$0xff]  ;;  %v18106_v4 = vld [vmem:[#allocation87_spill] sm:$0xff] }
 0x7d3   : > { %7636 = vperm.xlu0 %9056, %v9619_v21   ;;  %v7272_v46 = vpop.f32.mrf.mxu1  ;;  %v6767_v37 = vmax.f32 %v6635_v59, 0.0  ;;  %v18092_v59 = vld [vmem:[#allocation97_spill] sm:$0xff]  ;;  %v18112_v30 = vld [vmem:[#allocation95_spill] sm:$0xff] }
 0x7d4   : > { %v15263_v8 = vpop.f32.mrf.mxu0  ;;  %v15283_v17 = vadd.f32 %v7272_v46, %v6763_v10  ;;  %v18102_v10 = vld [vmem:[#allocation26_spill] sm:$0xff]  ;;  %v15321_v41 = vadd.f32 %v18113_v56, %v18112_v30  ;;  %v18114_v15 = vld [vmem:[#allocation99_spill] sm:$0xff]  ;;  %v6771_v30 = vmax.f32 %v6641_v42, 0.0 }
 0x7d5   : > { %7520 = vperm.xlu1 %9055, %v9620_v18   ;;  %v15265_v21 = vpop.f32.mrf.mxu1  ;;  %v18088_v18 = vld [vmem:[#allocation66_spill] sm:$0xff]  ;;  %v9625_v56 = vld [vmem:[%s16148_s14 + $0xc0] sm:$0xff] }
 0x7d6   : > { %v15275_v54 = vadd.f32 %v18089_v26, %v18088_v18  ;;  %v7083_v55 = vpop.f32.mrf.mxu0  ;;  %v18095_v26 = vld [vmem:[#allocation202_spill] sm:$0xff] }
 0x7d7   : > { %7628 = vperm.xlu0 %9056, %v9621_v16   ;;  %v7276_v28 = vpop.f32.mrf.mxu1  ;;  %v15281_v16 = vadd.f32 %v7079_v22, %v6761_v9  ;;  %v15285_v33 = vadd.f32 %v7083_v55, %v6765_v60  ;;  %v6637_v18 = vadd.f32 %v18095_v26, %v18094_v58  ;;  %v9623_v55 = vld [vmem:[%s16148_s14 + $0xd0] sm:$0xff]  ;;  %v18103_v60 = vld [vmem:[#allocation208_spill] sm:$0xff] }
 0x7d8   : > { %v15287_v36 = vadd.f32 %v7276_v28, %v6767_v37  ;;  %v7085_v22 = vpop.f32.mrf.mxu0  ;;  %v18100_v28 = vld [vmem:[#allocation10_spill] sm:$0xff]  ;;  %v18101_v37 = vld [vmem:[#allocation207_spill] sm:$0xff] }
 0x7d9   : > { %7640 = vperm.xlu1 %9055, %v9622_v12   ;;  %v18093_v12 = vld [vmem:[#allocation201_spill] sm:$0xff]  ;;  %v7278_v9 = vpop.f32.mrf.mxu1  ;;  %v6452_v46 = vadd.f32 %v18101_v37, %v18100_v28 }
 0x7da   : > { %v6444_v63 = vadd.f32 %v18093_v12, %v18092_v59  ;;  %v6645_v59 = vadd.f32 %v18103_v60, %v18102_v10  ;;  %v18105_v12 = vld [vmem:[#allocation205_spill] sm:$0xff]  ;;  %v18110_v60 = vld [vmem:[#allocation32_spill] sm:$0xff]  ;;  %v7089_v39 = vpop.f32.mrf.mxu0 }
 0x7db   : > { %7620 = vperm.xlu0 %9056, %v9623_v55   ;;  %v6450_v26 = vadd.f32 %v18105_v12, %v18104_v61  ;;  %v18107_v55 = vld [vmem:[#allocation206_spill] sm:$0xff]  ;;  %v18108_v37 = vld [vmem:[#allocation17_spill] sm:$0xff]  ;;  %v6647_v58 = vadd.f32 %v18111_v23, %v18110_v60  ;;  %v7282_v14 = vpop.f32.mrf.mxu1  ;;  %v18116_v61 = vld [vmem:[#allocation144_spill] sm:$0xff]  ;;  %v6764_v23 = vmax.f32 %v15279_v52, 0.0  ;;  %v6768_v60 = vmax.f32 %v6637_v18, 0.0 }
 0x7dc   : > { %v6643_v28 = vadd.f32 %v18107_v55, %v18106_v4  ;;  %v6454_v10 = vadd.f32 %v18109_v0, %v18108_v37  ;;  %v18117_v12 = vld [vmem:[#allocation193_spill] sm:$0xff]  ;;  %v18118_v4 = vld [vmem:[#allocation63_spill] sm:$0xff]  ;;  %v18119_v55 = vld [vmem:[#allocation194_spill] sm:$0xff]  ;;  %v6762_v0 = vmax.f32 %v15275_v54, 0.0  ;;  %v6766_v37 = vmax.f32 %v6444_v63, 0.0  ;;  %v7091_v50 = vpop.f32.mrf.mxu0 }
 0x7dd   : > { %7632 = vperm.xlu1 %9055, %v9624_v3   ;;  %v18115_v3 = vld [vmem:[#allocation190_spill] sm:$0xff]  ;;  %v6434_v20 = vadd.f32 %v18117_v12, %v18116_v61  ;;  %v6627_v62 = vadd.f32 %v18119_v55, %v18118_v4  ;;  %v7284_v57 = vpop.f32.mrf.mxu1  ;;  %v6775_v61 = vmax.f32 %v6645_v59, 0.0  ;;  %v6770_v54 = vmax.f32 %v6450_v26, 0.0 }
 0x7de   : > { %v15325_v2 = vadd.f32 %v18115_v3, %v18114_v15  ;;  %v6769_v15 = vmax.f32 %v6448_v25, 0.0  ;;  %v6773_v3 = vmax.f32 %v6452_v46, 0.0  ;;  %v9626_v12 = vld [vmem:[%s16148_s14 + $0xd8] sm:$0xff]  ;;  %v6772_v52 = vmax.f32 %v6643_v28, 0.0  ;;  %v7093_v4 = vpop.f32.mrf.mxu0 }
 0x7df   : > { %7612 = vperm.xlu0 %9056, %v9625_v56   ;;  %v6774_v63 = vmax.f32 %v6454_v10, 0.0  ;;  %v6776_v18 = vmax.f32 %v6647_v58, 0.0  ;;  %v7286_v55 = vpop.f32.mrf.mxu1  ;;  %v7413_v31 = vadd.f32 %v7282_v14, %v6771_v30  ;;  %v7408_v56 = vadd.f32 %v7085_v22, %v6766_v37  ;;  %v18120_v14 = vld [vmem:[#allocation123_spill] sm:$0xff]  ;;  %v18121_v22 = vld [vmem:[#allocation185_spill] sm:$0xff] }
 0x7e0   : > { %v7411_v45 = vadd.f32 %v7089_v39, %v6769_v15  ;;  %v7415_v48 = vadd.f32 %v7093_v4, %v6773_v3  ;;  %v7417_v32 = vadd.f32 %v7286_v55, %v6775_v61  ;;  %v7410_v25 = vadd.f32 %v7278_v9, %v6768_v60  ;;  %v7095_v59 = vpop.f32.mrf.mxu0  ;;  %v9628_v39 = vld [vmem:[%s16148_s14 + $0xc8] sm:$0xff]  ;;  %v18123_v9 = vld [vmem:[#allocation186_spill] sm:$0xff]  ;;  %v18126_v61 = vld [vmem:[#allocation45_spill] sm:$0xff] }
 0x7e1   : > { %7624 = vperm.xlu1 %9055, %v9626_v12   ;;  %v7412_v42 = vadd.f32 %v7091_v50, %v6770_v54  ;;  %v7414_v46 = vadd.f32 %v7284_v57, %v6772_v52  ;;  %v7288_v19 = vpop.f32.mrf.mxu1  ;;  %v9627_v12 = vld [vmem:[%s16148_s14 + $0xb0] sm:$0xff]  ;;  %v7416_v58 = vadd.f32 %v7095_v59, %v6774_v63  ;;  %v6424_v50 = vadd.f32 %v18121_v22, %v18120_v14  ;;  %v18122_v57 = vld [vmem:[#allocation38_spill] sm:$0xff] }
 0x7e2   : > { %v7511_v26 = vpack.c.bf16 %v7415_v48, %v7411_v45  ;;  %v7513_v28 = vpack.c.bf16 %v7417_v32, %v7413_v31  ;;  %v7418_v10 = vadd.f32 %v7288_v19, %v6776_v18  ;;  %v6617_v37 = vadd.f32 %v18123_v9, %v18122_v57  ;;  %v18124_v19 = vld [vmem:[#allocation13_spill] sm:$0xff]  ;;  %v18127_v54 = vld [vmem:[#allocation182_spill] sm:$0xff]  ;;  %v18136_v9 = vld [vmem:[#allocation131_spill] sm:$0xff] }
 0x7e3   : > { %7604 = vperm.xlu0 %9056, %v9627_v12   ;;  %v6758_v60 = vmax.f32 %v6434_v20, 0.0  ;;  %v6760_v15 = vmax.f32 %v6627_v62, 0.0  ;;  %v7404_v30 = vadd.f32 %v15263_v8, %v6762_v0  ;;  %v7406_v45 = vadd.f32 %v15265_v21, %v6764_v23  ;;  %v18125_v32 = vld [vmem:[#allocation181_spill] sm:$0xff]  ;;  %v9629_v20 = vld [vmem:[%s16148_s14 + $0xa0] sm:$0xff]  ;;  %v18128_v23 = vld [vmem:[#allocation86_spill] sm:$0xff] }
 0x7e4   : > { %v7512_v31 = vpack.c.bf16 %v7416_v58, %v7412_v42  ;;  %v7514_v48 = vpack.c.bf16 %v7418_v10, %v7414_v46  ;;  %v6420_v3 = vadd.f32 %v18125_v32, %v18124_v19  ;;  %v6613_v52 = vadd.f32 %v18127_v54, %v18126_v61  ;;  %v18129_v4 = vld [vmem:[#allocation177_spill] sm:$0xff]  ;;  %v18130_v42 = vld [vmem:[#allocation98_spill] sm:$0xff] }
 0x7e5   : > { %7616 = vperm.xlu1 %9055, %v9628_v39   ;;  %v6754_v63 = vmax.f32 %v15321_v41, 0.0  ;;  %v7400_v18 = vadd.f32 %v15245_v47, %v6758_v60  ;;  %v6756_v62 = vmax.f32 %v15325_v2, 0.0  ;;  %v7402_v8 = vadd.f32 %v15247_v13, %v6760_v15  ;;  %v18131_v41 = vld [vmem:[#allocation178_spill] sm:$0xff]  ;;  %v18132_v13 = vld [vmem:[#allocation101_spill] sm:$0xff]  ;;  %v18138_v15 = vld [vmem:[#allocation100_spill] sm:$0xff] }
 0x7e6   : > { %v7508_v21 = vpack.c.bf16 %v7408_v56, %v7404_v30  ;;  %v7510_v0 = vpack.c.bf16 %v7410_v25, %v7406_v45  ;;  %7819 = vmatprep.subr.bf16.mxu0 %v7512_v31  ;;  %8012 = vmatprep.subr.bf16.mxu1 %v7514_v48  ;;  %v6414_v55 = vadd.f32 %v18129_v4, %v18128_v23  ;;  %v6750_v47 = vmax.f32 %v6424_v50, 0.0  ;;  %v18133_v56 = vld [vmem:[#allocation173_spill] sm:$0xff]  ;;  %v18135_v10 = vld [vmem:[#allocation174_spill] sm:$0xff] }
 0x7e7   : > { %7596 = vperm.xlu0 %9056, %v9629_v20   ;;  %v6607_v46 = vadd.f32 %v18131_v41, %v18130_v42  ;;  %7820 = vmatpush2.bf16.msra.mxu0 %v7511_v26  ;;  %v6752_v59 = vmax.f32 %v6617_v37, 0.0  ;;  %v7396_v12 = vadd.f32 %v15223_v29, %v6754_v63  ;;  %v7398_v2 = vadd.f32 %v15225_v7, %v6756_v62  ;;  %v18134_v58 = vld [vmem:[#allocation53_spill] sm:$0xff]  ;;  %v9630_v26 = vld [vmem:[%s16148_s14 + $0xb8] sm:$0xff]  ;;  %v18148_v41 = vld [vmem:[#allocation15_spill] sm:$0xff] }
 0x7e8   : > { %8013 = vmatpush2.bf16.msra.mxu1 %v7513_v28  ;;  %7821 = vmatprep.subr.bf16.mxu0 %v7508_v21  ;;  %v6410_v25 = vadd.f32 %v18133_v56, %v18132_v13  ;;  %v6603_v39 = vadd.f32 %v18135_v10, %v18134_v58  ;;  %v6746_v14 = vmax.f32 %v6420_v3, 0.0  ;;  %v6748_v22 = vmax.f32 %v6613_v52, 0.0  ;;  %v9631_v29 = vld [vmem:[%s16148_s14 + $0x90] sm:$0xff]  ;;  %v18139_v30 = vld [vmem:[#allocation170_spill] sm:$0xff]  ;;  %v18142_v3 = vld [vmem:[#allocation88_spill] sm:$0xff] }
 0x7e9   : > { %8014 = vmatprep.subr.bf16.mxu1 %v7510_v0  ;;  %7608 = vperm.xlu1 %9055, %v9630_v26   ;;  %v7392_v7 = vadd.f32 %v15205_v40, %v6750_v47  ;;  %v7394_v28 = vadd.f32 %v15207_v53, %v6752_v59  ;;  %v7504_v50 = vpack.c.bf16 %v7400_v18, %v7396_v12  ;;  %v18137_v37 = vld [vmem:[#allocation169_spill] sm:$0xff]  ;;  %v6742_v19 = vmax.f32 %v6414_v55, 0.0  ;;  %v18145_v63 = vld [vmem:[#allocation166_spill] sm:$0xff] }
 0x7ea   : > { %v7506_v57 = vpack.c.bf16 %v7402_v8, %v7398_v2  ;;  %v6404_v60 = vadd.f32 %v18137_v37, %v18136_v9  ;;  %v6597_v45 = vadd.f32 %v18139_v30, %v18138_v15  ;;  %v18140_v31 = vpack.c.bf16 %v15285_v33, %v15281_v16  ;;  %v18143_v61 = vld [vmem:[#allocation165_spill] sm:$0xff]  ;;  %v9634_v42 = vld [vmem:[%s16148_s14 + $0x98] sm:$0xff]  ;;  %v18154_v2 = vld [vmem:[#allocation147_spill] sm:$0xff] }
 0x7eb   : > { %7588 = vperm.xlu0 %9056, %v9631_v29   ;;  %v18141_v48 = vpack.c.bf16 %v15287_v36, %v15283_v17  ;;  %v6744_v40 = vmax.f32 %v6607_v46, 0.0  ;;  %v7388_v53 = vadd.f32 %v15183_v43, %v6746_v14  ;;  %v7390_v32 = vadd.f32 %v15185_v49, %v6748_v22  ;;  %v18144_v52 = vld [vmem:[#allocation109_spill] sm:$0xff]  ;;  %v9632_v17 = vld [vmem:[%s16148_s14 + $0xa8] sm:$0xff]  ;;  %v9633_v43 = vld [vmem:[%s16148_s14 + $0x80] sm:$0xff] }
 0x7ec   : > { %7822 = vmatpush2.bf16.msra.mxu0 %v18140_v31  ;;  %v6400_v54 = vadd.f32 %v18143_v61, %v18142_v3  ;;  %v6593_v18 = vadd.f32 %v18145_v63, %v18144_v52  ;;  %v6738_v16 = vmax.f32 %v6410_v25, 0.0  ;;  %v6740_v33 = vmax.f32 %v6603_v39, 0.0  ;;  %v18151_v46 = vld [vmem:[#allocation23_spill] sm:$0xff]  ;;  %v18153_v59 = vld [vmem:[#allocation18_spill] sm:$0xff]  ;;  %v18155_v25 = vld [vmem:[#allocation12_spill] sm:$0xff] }
 0x7ed   : > { %8015 = vmatpush2.bf16.msra.mxu1 %v18141_v48  ;;  %7823 = vmatprep.subr.bf16.mxu0 %v7504_v50  ;;  %v7384_v49 = vadd.f32 %v15159_v5, %v6742_v19  ;;  %v7386_v36 = vadd.f32 %v15161_v27, %v6744_v40  ;;  %v7500_v20 = vpack.c.bf16 %v7392_v7, %v7388_v53  ;;  %v6734_v0 = vmax.f32 %v6404_v60, 0.0  ;;  %v18158_v10 = vld [vmem:[#allocation70_spill] sm:$0xff]  ;;  %v18159_v39 = vld [vmem:[#allocation145_spill] sm:$0xff]  ;;  %v18164_v7 = vld [vmem:[#allocation119_spill] sm:$0xff] }
 0x7ee   : > { %8016 = vmatprep.subr.bf16.mxu1 %v7506_v57  ;;  %7600 = vperm.xlu1 %9055, %v9632_v17   ;;  %v7502_v62 = vpack.c.bf16 %v7394_v28, %v7390_v32  ;;  %v18146_v8 = vpack.c.bf16 %v15237_v6, %v15233_v1  ;;  %v18147_v21 = vpack.c.bf16 %v15239_v44, %v15235_v35  ;;  %v6736_v23 = vmax.f32 %v6597_v45, 0.0  ;;  %v18161_v22 = vld [vmem:[#allocation25_spill] sm:$0xff]  ;;  %v18162_v26 = vld [vmem:[#allocation122_spill] sm:$0xff]  ;;  %v18170_v60 = vld [vmem:[#allocation139_spill] sm:$0xff] }
 0x7ef   : > { %7580 = vperm.xlu0 %9056, %v9633_v43   ;;  %v7380_v4 = vadd.f32 %v15125_v34, %v6738_v16  ;;  %v7382_v55 = vadd.f32 %v15127_v51, %v6740_v33  ;;  %v6730_v5 = vmax.f32 %v6400_v54, 0.0  ;;  %v6732_v27 = vmax.f32 %v6593_v18, 0.0  ;;  %v18150_v51 = vld [vmem:[#allocation22_spill] sm:$0xff]  ;;  %v18165_v28 = vld [vmem:[#allocation69_spill] sm:$0xff]  ;;  %v18174_v31 = vld [vmem:[#allocation115_spill] sm:$0xff] }
 0x7f0   : > { %7824 = vmatpush2.bf16.msra.mxu0 %v18146_v8  ;;  %v7376_v1 = vadd.f32 %v15095_v24, %v6734_v0  ;;  %v7378_v35 = vadd.f32 %v15097_v11, %v6736_v23  ;;  %v18149_v34 = vpack.c.bf16 %v15197_v38, %v18148_v41  ;;  %v18152_v47 = vpack.c.bf16 %v18150_v51, %v18151_v46  ;;  %v9635_v24 = vld [vmem:[%s16148_s14 + $0x88] sm:$0xff]  ;;  %v18156_v38 = vld [vmem:[#allocation14_spill] sm:$0xff]  ;;  %v18168_v9 = vld [vmem:[#allocation125_spill] sm:$0xff] }
 0x7f1   : > { %8017 = vmatpush2.bf16.msra.mxu1 %v18147_v21  ;;  %7825 = vmatprep.subr.bf16.mxu0 %v7500_v20  ;;  %v7496_v44 = vpack.c.bf16 %v7384_v49, %v7380_v4  ;;  %v7498_v6 = vpack.c.bf16 %v7386_v36, %v7382_v55  ;;  %v7372_v12 = vadd.f32 %v18153_v59, %v6730_v5  ;;  %v18167_v57 = vld [vmem:[#allocation126_spill] sm:$0xff]  ;;  %v18173_v45 = vld [vmem:[#allocation121_spill] sm:$0xff]  ;;  %v18176_v19 = vld [vmem:[#allocation148_spill] sm:$0xff] }
 0x7f2   : > { %8018 = vmatprep.subr.bf16.mxu1 %v7502_v62  ;;  %7592 = vperm.xlu1 %9055, %v9634_v42   ;;  %v7374_v13 = vadd.f32 %v18154_v2, %v6732_v27  ;;  %v18157_v58 = vpack.c.bf16 %v18155_v25, %v18156_v38  ;;  %v18160_v14 = vpack.c.bf16 %v18158_v10, %v18159_v39  ;;  %v18171_v15 = vld [vmem:[#allocation146_spill] sm:$0xff]  ;;  %v18177_v40 = vld [vmem:[#allocation85_spill] sm:$0xff]  ;;  %v18179_v32 = vld [vmem:[#allocation76_spill] sm:$0xff] }
 0x7f3   : > { %v7492_v11 = vpack.c.bf16 %v7376_v1, %v7372_v12  ;;  %v18163_v29 = vpack.c.bf16 %v18161_v22, %v18162_v26  ;;  %v18166_v50 = vpack.c.bf16 %v18164_v7, %v18165_v28  ;;  %v18169_v37 = vpack.c.bf16 %v18167_v57, %v18168_v9  ;;  %v18180_v3 = vld [vmem:[#allocation82_spill] sm:$0xff]  ;;  %v18182_v54 = vld [vmem:[#allocation60_spill] sm:$0xff]  ;;  %v18183_v52 = vld [vmem:[#allocation77_spill] sm:$0xff] }
 0x7f4   : > { %7826 = vmatpush2.bf16.msra.mxu0 %v18149_v34  ;;  %v7494_v56 = vpack.c.bf16 %v7378_v35, %v7374_v13  ;;  %v18172_v30 = vpack.c.bf16 %v18170_v60, %v18171_v15  ;;  %v18175_v48 = vpack.c.bf16 %v18173_v45, %v18174_v31  ;;  %v18178_v53 = vpack.c.bf16 %v18176_v19, %v18177_v40  ;;  %v9394_v18 = vld [vmem:[%s16141_s7] ss:$8 sps:$4 sm:$0xff]   ;;  %v9399_v20 = vld [vmem:[%s16141_s7 + $0x14] ss:$8 sps:$4 sm:$0xff]   ;;  %v9397_v55 = vld [vmem:[%s16141_s7 + $0x10] ss:$8 sps:$4 sm:$0xff]  }
 0x7f5   : > { %8019 = vmatpush2.bf16.msra.mxu1 %v18152_v47  ;;  %7827 = vmatprep.subr.bf16.mxu0 %v7496_v44  ;;  %v18181_v61 = vpack.c.bf16 %v18179_v32, %v18180_v3  ;;  %v18184_v63 = vpack.c.bf16 %v18182_v54, %v18183_v52  ;;  %v18185_v16 = vld [vmem:[#allocation128_spill] sm:$0xff]  ;;  %v18186_v33 = vld [vmem:[#allocation79_spill] sm:$0xff]  ;;  %v9405_v46 = vld [vmem:[%s16141_s7 + $0x34] ss:$8 sps:$4 sm:$0xff]  }
 0x7f6   : > { %8020 = vmatprep.subr.bf16.mxu1 %v7498_v6  ;;  %7584 = vperm.xlu1 %9055, %v9635_v24   ;;  %v18187_v17 = vpack.c.bf16 %v18185_v16, %v18186_v33  ;;  %v18188_v43 = vld [vmem:[#allocation143_spill] sm:$0xff]  ;;  %v18189_v49 = vld [vmem:[#allocation80_spill] sm:$0xff]  ;;  %v9403_v25 = vld [vmem:[%s16141_s7 + $0x30] ss:$8 sps:$4 sm:$0xff]  }
 0x7f7   : > { %v18190_v36 = vpack.c.bf16 %v18188_v43, %v18189_v49  ;;  %v9636_v62 = vld [vmem:[%s10060_s22 + $0xe4] ss:$16 sps:$4 sm:$0xff]   ;;  %v9637_v8 = vld [vmem:[%s10060_s22 + $0xec] ss:$16 sps:$4 sm:$0xff]   ;;  %v9638_v21 = vld [vmem:[%s10060_s22 + $0xe0] ss:$16 sps:$4 sm:$0xff]  }
 0x7f8   : > { %7828 = vmatpush2.bf16.msra.mxu0 %v18157_v58  ;;  %v9639_v0 = vld [vmem:[%s10060_s22 + $0xe8] ss:$16 sps:$4 sm:$0xff]   ;;  %v9640_v23 = vld [vmem:[%s10060_s22 + $0xc4] ss:$16 sps:$4 sm:$0xff]   ;;  %v9641_v4 = vld [vmem:[%s10060_s22 + $0xcc] ss:$16 sps:$4 sm:$0xff]  }
 0x7f9   : > { %8021 = vmatpush2.bf16.msra.mxu1 %v18160_v14  ;;  %7829 = vmatprep.subr.bf16.mxu0 %v7492_v11  ;;  %v9402_v5 = vld [vmem:[%s16141_s7 + $0x24] ss:$8 sps:$4 sm:$0xff]   ;;  %v9642_v27 = vld [vmem:[%s10060_s22 + $0xc0] ss:$16 sps:$4 sm:$0xff]   ;;  %v9643_v42 = vld [vmem:[%s10060_s22 + $0xc8] ss:$16 sps:$4 sm:$0xff]  }
 0x7fa   : > { %8022 = vmatprep.subr.bf16.mxu1 %v7494_v56  ;;  %v9644_v1 = vld [vmem:[%s10060_s22 + $0xa4] ss:$16 sps:$4 sm:$0xff]   ;;  %v9645_v35 = vld [vmem:[%s10060_s22 + $0xac] ss:$16 sps:$4 sm:$0xff]   ;;  %v9646_v44 = vld [vmem:[%s10060_s22 + $0xa0] ss:$16 sps:$4 sm:$0xff]  }
 0x7fb   : > { %v9647_v6 = vld [vmem:[%s10060_s22 + $0xa8] ss:$16 sps:$4 sm:$0xff]   ;;  %v9648_v41 = vld [vmem:[%s10060_s22 + $0x84] ss:$16 sps:$4 sm:$0xff]   ;;  %v9649_v34 = vld [vmem:[%s10060_s22 + $0x8c] ss:$16 sps:$4 sm:$0xff]  }
 0x7fc   : > { %7830 = vmatpush2.bf16.msra.mxu0 %v18163_v29  ;;  %v9400_v51 = vld [vmem:[%s16141_s7 + $0x20] ss:$8 sps:$4 sm:$0xff]   ;;  %v9652_v12 = vld [vmem:[%s10060_s22 + $0x64] ss:$16 sps:$4 sm:$0xff]   ;;  %v9653_v2 = vld [vmem:[%s10060_s22 + $0x6c] ss:$16 sps:$4 sm:$0xff]  }
 0x7fd   : > { %8023 = vmatpush2.bf16.msra.mxu1 %v18166_v50  ;;  %7831 = vmatprep.subr.bf16.mxu0 %v18169_v37  ;;  %v9650_v47 = vld [vmem:[%s10060_s22 + $0x80] ss:$16 sps:$4 sm:$0xff]   ;;  %v9651_v59 = vld [vmem:[%s10060_s22 + $0x88] ss:$16 sps:$4 sm:$0xff]   ;;  %v9656_v11 = vld [vmem:[%s10060_s22 + $0x44] ss:$16 sps:$4 sm:$0xff]  }
 0x7fe   : > { %8024 = vmatprep.subr.bf16.mxu1 %v18172_v30  ;;  %v9654_v13 = vld [vmem:[%s10060_s22 + $0x60] ss:$16 sps:$4 sm:$0xff]   ;;  %v9655_v24 = vld [vmem:[%s10060_s22 + $0x68] ss:$16 sps:$4 sm:$0xff]   ;;  %v9657_v56 = vld [vmem:[%s10060_s22 + $0x4c] ss:$16 sps:$4 sm:$0xff]  }
 0x7ff   : > { %v9408_v38 = vld [vmem:[%s16141_s7 + $0x44] ss:$8 sps:$4 sm:$0xff]   ;;  %v9658_v58 = vld [vmem:[%s10060_s22 + $0x40] ss:$16 sps:$4 sm:$0xff]   ;;  %v9659_v10 = vld [vmem:[%s10060_s22 + $0x48] ss:$16 sps:$4 sm:$0xff]  }
 0x800   : > { %7832 = vmatpush2.bf16.msra.mxu0 %v18175_v48  ;;  %v9660_v39 = vld [vmem:[%s10060_s22 + $0x24] ss:$16 sps:$4 sm:$0xff]   ;;  %v9661_v14 = vld [vmem:[%s10060_s22 + $0x2c] ss:$16 sps:$4 sm:$0xff]   ;;  %v9662_v22 = vld [vmem:[%s10060_s22 + $0x20] ss:$16 sps:$4 sm:$0xff]  }
 0x801   : > { %8025 = vmatpush2.bf16.msra.mxu1 %v18178_v53  ;;  %7833 = vmatprep.subr.bf16.mxu0 %v18181_v61  ;;  %v9663_v26 = vld [vmem:[%s10060_s22 + $0x28] ss:$16 sps:$4 sm:$0xff]   ;;  %v9664_v29 = vld [vmem:[%s10060_s22 + $0x4] ss:$16 sps:$4 sm:$0xff]   ;;  %v9665_v7 = vld [vmem:[%s10060_s22 + $0xc] ss:$16 sps:$4 sm:$0xff]  }
 0x802   : > { %8026 = vmatprep.subr.bf16.mxu1 %v18184_v63  ;;  %v9406_v28 = vld [vmem:[%s16141_s7 + $0x40] ss:$8 sps:$4 sm:$0xff]   ;;  %v9411_v50 = vld [vmem:[%s16141_s7 + $0x54] ss:$8 sps:$4 sm:$0xff]   ;;  %v9409_v37 = vld [vmem:[%s16141_s7 + $0x50] ss:$8 sps:$4 sm:$0xff]  }
 0x803   : > { %v9666_v57 = vld [vmem:[%s10060_s22] ss:$16 sps:$4 sm:$0xff]   ;;  %v9667_v9 = vld [vmem:[%s10060_s22 + $0x8] ss:$16 sps:$4 sm:$0xff]   ;;  %v9414_v60 = vld [vmem:[%s16141_s7 + $0x64] ss:$8 sps:$4 sm:$0xff]  }
 0x804   : > { %7834 = vmatpush2.bf16.msra.mxu0 %v18187_v17  ;;  %v9412_v15 = vld [vmem:[%s16141_s7 + $0x60] ss:$8 sps:$4 sm:$0xff]   ;;  %v9417_v30 = vld [vmem:[%s16141_s7 + $0x74] ss:$8 sps:$4 sm:$0xff]   ;;  %v9415_v45 = vld [vmem:[%s16141_s7 + $0x70] ss:$8 sps:$4 sm:$0xff]  }
 0x805   : > { %8027 = vmatpush2.bf16.msra.mxu1 %v18190_v36  ;;  %8383 = vmatprep.subr.bf16.mxu0 %v9636_v62  ;;  %v9420_v31 = vld [vmem:[%s16141_s7 + $0x84] ss:$8 sps:$4 sm:$0xff]   ;;  %v9418_v48 = vld [vmem:[%s16141_s7 + $0x80] ss:$8 sps:$4 sm:$0xff]   ;;  %v9423_v19 = vld [vmem:[%s16141_s7 + $0x94] ss:$8 sps:$4 sm:$0xff]  }
 0x806   : > { %8424 = vmatprep.subr.bf16.mxu1 %v9637_v8  ;;  %v9421_v40 = vld [vmem:[%s16141_s7 + $0x90] ss:$8 sps:$4 sm:$0xff]   ;;  %v9426_v53 = vld [vmem:[%s16141_s7 + $0xa4] ss:$8 sps:$4 sm:$0xff]   ;;  %v9424_v32 = vld [vmem:[%s16141_s7 + $0xa0] ss:$8 sps:$4 sm:$0xff]  }
 0x807   : > { %7836 = vmatmul.mubr.bf16.vlgmr.msra.gmra.mxu0 %v9394_v18  ;;  %v9429_v3 = vld [vmem:[%s16141_s7 + $0xb4] ss:$8 sps:$4 sm:$0xff]   ;;  %v9427_v61 = vld [vmem:[%s16141_s7 + $0xb0] ss:$8 sps:$4 sm:$0xff]   ;;  %v9432_v54 = vld [vmem:[%s16141_s7 + $0xc4] ss:$8 sps:$4 sm:$0xff]  }
 0x808   : > { %8029 = vmatmul.mubr.bf16.vlgmr.msra.gmra.mxu1 %v9394_v18  ;;  %7845 = vmatprep.mubr.bf16.mxu0 %v9399_v20  ;;  %v9430_v52 = vld [vmem:[%s16141_s7 + $0xc0] ss:$8 sps:$4 sm:$0xff]   ;;  %v9435_v63 = vld [vmem:[%s16141_s7 + $0xd4] ss:$8 sps:$4 sm:$0xff]   ;;  %v9433_v18 = vld [vmem:[%s16141_s7 + $0xd0] ss:$8 sps:$4 sm:$0xff]  }
 0x809   : > { %8038 = vmatprep.mubr.bf16.mxu1 %v9399_v20  ;;  %8384 = vmatpush1.bf16.msra.mxu0 %v9638_v21  ;;  %v9438_v16 = vld [vmem:[%s16141_s7 + $0xe4] ss:$8 sps:$4 sm:$0xff]   ;;  %v9436_v33 = vld [vmem:[%s16141_s7 + $0xe0] ss:$8 sps:$4 sm:$0xff]   ;;  %v9441_v17 = vld [vmem:[%s16141_s7 + $0xf4] ss:$8 sps:$4 sm:$0xff]  }
 0x80a   : > { %8425 = vmatpush1.bf16.msra.mxu1 %v9639_v0  ;;  %8385 = vmatprep.subr.bf16.mxu0 %v9640_v23  ;;  %v9439_v43 = vld [vmem:[%s16141_s7 + $0xf0] ss:$8 sps:$4 sm:$0xff]   ;;  %v18191_v49 = vmov 0   ;;  %v8382_v36 = vld [vmem:[%s16147_s13] sm:$0xf]  ;;  %s8599_s22 = scalar_lea.sflag [#allocation5], %s10020_s28 }
 0x80b   : > { %8426 = vmatprep.subr.bf16.mxu1 %v9641_v4 }
 0x80d   : > { %8386 = vmatpush1.bf16.msra.mxu0 %v9642_v27 }
 0x80e   : > { %8427 = vmatpush1.bf16.msra.mxu1 %v9643_v42  ;;  %8387 = vmatprep.subr.bf16.mxu0 %v9644_v1 }
 0x80f   : > { %8428 = vmatprep.subr.bf16.mxu1 %v9645_v35  ;;  %7846 = vmatmul.mubr.bf16.gmra.mxu0 %v9397_v55 }
 0x810   : > { %8039 = vmatmul.mubr.bf16.gmra.mxu1 %v9397_v55  ;;  %7855 = vmatprep.mubr.bf16.mxu0 %v9402_v5 }
 0x811   : > { %8048 = vmatprep.mubr.bf16.mxu1 %v9402_v5  ;;  %8388 = vmatpush1.bf16.msra.mxu0 %v9646_v44 }
 0x812   : > { %8429 = vmatpush1.bf16.msra.mxu1 %v9647_v6  ;;  %8389 = vmatprep.subr.bf16.mxu0 %v9648_v41 }
 0x813   : > { %8430 = vmatprep.subr.bf16.mxu1 %v9649_v34 }
 0x815   : > { %8390 = vmatpush1.bf16.msra.mxu0 %v9650_v47 }
 0x816   : > { %8431 = vmatpush1.bf16.msra.mxu1 %v9651_v59  ;;  %8391 = vmatprep.subr.bf16.mxu0 %v9652_v12 }
 0x817   : > { %8432 = vmatprep.subr.bf16.mxu1 %v9653_v2  ;;  %7856 = vmatmul.mubr.bf16.gmra.mxu0 %v9400_v51 }
 0x818   : > { %8049 = vmatmul.mubr.bf16.gmra.mxu1 %v9400_v51  ;;  %7865 = vmatprep.mubr.bf16.mxu0 %v9405_v46 }
 0x819   : > { %8058 = vmatprep.mubr.bf16.mxu1 %v9405_v46  ;;  %8392 = vmatpush1.bf16.msra.mxu0 %v9654_v13 }
 0x81a   : > { %8433 = vmatpush1.bf16.msra.mxu1 %v9655_v24  ;;  %8393 = vmatprep.subr.bf16.mxu0 %v9656_v11 }
 0x81b   : > { %8434 = vmatprep.subr.bf16.mxu1 %v9657_v56 }
 0x81d   : > { %8394 = vmatpush1.bf16.msra.mxu0 %v9658_v58 }
 0x81e   : > { %8435 = vmatpush1.bf16.msra.mxu1 %v9659_v10  ;;  %8395 = vmatprep.subr.bf16.mxu0 %v9660_v39 }
 0x81f   : > { %8436 = vmatprep.subr.bf16.mxu1 %v9661_v14  ;;  %7866 = vmatmul.mubr.bf16.gmra.mxu0 %v9403_v25 }
 0x820   : > { %8059 = vmatmul.mubr.bf16.gmra.mxu1 %v9403_v25  ;;  %7875 = vmatprep.mubr.bf16.mxu0 %v9408_v38 }
 0x821   : > { %8068 = vmatprep.mubr.bf16.mxu1 %v9408_v38  ;;  %8396 = vmatpush1.bf16.msra.mxu0 %v9662_v22 }
 0x822   : > { %8437 = vmatpush1.bf16.msra.mxu1 %v9663_v26  ;;  %8397 = vmatprep.subr.bf16.mxu0 %v9664_v29 }
 0x823   : > { %8438 = vmatprep.subr.bf16.mxu1 %v9665_v7 }
 0x825   : > { %8398 = vmatpush1.bf16.msra.mxu0 %v9666_v57 }
 0x826   : > { %8439 = vmatpush1.bf16.msra.mxu1 %v9667_v9 }
 0x827   : > { %7876 = vmatmul.mubr.bf16.gmra.mxu0 %v9406_v28 }
 0x828   : > { %8069 = vmatmul.mubr.bf16.gmra.mxu1 %v9406_v28  ;;  %7885 = vmatprep.mubr.bf16.mxu0 %v9411_v50 }
 0x829   : > { %8078 = vmatprep.mubr.bf16.mxu1 %v9411_v50 }
 0x82f   : > { %7886 = vmatmul.mubr.bf16.gmra.mxu0 %v9409_v37  ;;  %v15594_v20 = vpop.permute.xlu1 %7572 }
 0x830   : > { %8079 = vmatmul.mubr.bf16.gmra.mxu1 %v9409_v37  ;;  %7895 = vmatprep.mubr.bf16.mxu0 %v9414_v60 }
 0x831   : > { %8088 = vmatprep.mubr.bf16.mxu1 %v9414_v60 }
 0x832   : > { %v15600_v21 = vpop.permute.xlu0 %7576 }
 0x833   : > { %v15596_v62 = vpop.permute.xlu1 %7564 }
 0x836   : > { %v15604_v23 = vpop.permute.xlu0 %7556 }
 0x837   : > { %7896 = vmatmul.mubr.bf16.gmra.mxu0 %v9412_v15  ;;  %v15598_v8 = vpop.permute.xlu1 %7568 }
 0x838   : > { %8089 = vmatmul.mubr.bf16.gmra.mxu1 %v9412_v15  ;;  %7905 = vmatprep.mubr.bf16.mxu0 %v9417_v30 }
 0x839   : > { %8098 = vmatprep.mubr.bf16.mxu1 %v9417_v30 }
 0x83a   : > { %v15608_v55 = vpop.permute.xlu0 %7548 }
 0x83b   : > { %v15602_v0 = vpop.permute.xlu1 %7560 }
 0x83e   : > { %v15612_v27 = vpop.permute.xlu0 %7540 }
 0x83f   : > { %7906 = vmatmul.mubr.bf16.gmra.mxu0 %v9415_v45 }
 0x840   : > { %8099 = vmatmul.mubr.bf16.gmra.mxu1 %v9415_v45  ;;  %7915 = vmatprep.mubr.bf16.mxu0 %v9420_v31  ;;  %v15606_v4 = vpop.permute.xlu1 %7552 }
 0x841   : > { %8108 = vmatprep.mubr.bf16.mxu1 %v9420_v31 }
 0x842   : > { %v15616_v1 = vpop.permute.xlu0 %7532 }
 0x844   : > { %v15610_v5 = vpop.permute.xlu1 %7544 }
 0x846   : > { %v7525_v44 = vpop.permute.xlu0 %7524 }
 0x847   : > { %7916 = vmatmul.mubr.bf16.gmra.mxu0 %v9418_v48 }
 0x848   : > { %8109 = vmatmul.mubr.bf16.gmra.mxu1 %v9418_v48  ;;  %7925 = vmatprep.mubr.bf16.mxu0 %v9423_v19  ;;  %v15614_v42 = vpop.permute.xlu1 %7536 }
 0x849   : > { %8118 = vmatprep.mubr.bf16.mxu1 %v9423_v19 }
 0x84a   : > { %v7517_v51 = vpop.permute.xlu0 %7516 }
 0x84c   : > { %v7529_v35 = vpop.permute.xlu1 %7528 }
 0x84f   : > { %7926 = vmatmul.mubr.bf16.gmra.mxu0 %v9421_v40 }
 0x850   : > { %8119 = vmatmul.mubr.bf16.gmra.mxu1 %v9421_v40  ;;  %7935 = vmatprep.mubr.bf16.mxu0 %v9426_v53  ;;  %v7521_v34 = vpop.permute.xlu1 %7520 }
 0x851   : > { %8128 = vmatprep.mubr.bf16.mxu1 %v9426_v53 }
 0x857   : > { %7936 = vmatmul.mubr.bf16.gmra.mxu0 %v9424_v32 }
 0x858   : > { %8129 = vmatmul.mubr.bf16.gmra.mxu1 %v9424_v32  ;;  %7945 = vmatprep.mubr.bf16.mxu0 %v9429_v3 }
 0x859   : > { %8138 = vmatprep.mubr.bf16.mxu1 %v9429_v3 }
 0x85f   : > { %7946 = vmatmul.mubr.bf16.gmra.mxu0 %v9427_v61 }
 0x860   : > { %8139 = vmatmul.mubr.bf16.gmra.mxu1 %v9427_v61  ;;  %7955 = vmatprep.mubr.bf16.mxu0 %v9432_v54 }
 0x861   : > { %8148 = vmatprep.mubr.bf16.mxu1 %v9432_v54 }
 0x867   : > { %7956 = vmatmul.mubr.bf16.gmra.mxu0 %v9430_v52 }
 0x868   : > { %8149 = vmatmul.mubr.bf16.gmra.mxu1 %v9430_v52  ;;  %7965 = vmatprep.mubr.bf16.mxu0 %v9435_v63 }
 0x869   : > { %8158 = vmatprep.mubr.bf16.mxu1 %v9435_v63 }
 0x86f   : > { %7966 = vmatmul.mubr.bf16.gmra.mxu0 %v9433_v18 }
 0x870   : > { %8159 = vmatmul.mubr.bf16.gmra.mxu1 %v9433_v18  ;;  %7975 = vmatprep.mubr.bf16.mxu0 %v9438_v16 }
 0x871   : > { %8168 = vmatprep.mubr.bf16.mxu1 %v9438_v16 }
 0x877   : > { %7976 = vmatmul.mubr.bf16.gmra.mxu0 %v9436_v33 }
 0x878   : > { %8169 = vmatmul.mubr.bf16.gmra.mxu1 %v9436_v33  ;;  %7985 = vmatprep.mubr.bf16.mxu0 %v9441_v17 }
 0x879   : > { %8178 = vmatprep.mubr.bf16.mxu1 %v9441_v17 }
 0x87f   : > { %7986 = vmatmul.mubr.bf16.gmra.mxu0 %v9439_v43 }
 0x880   : > { %8179 = vmatmul.mubr.bf16.gmra.mxu1 %v9439_v43  ;;  %8415 = vmatprep.mubr.bf16.mxu0 %v18191_v49 }
 0x881   : > { %8456 = vmatprep.mubr.bf16.mxu1 %v18191_v49 }
 0x887   : > { %8416 = vmatmul.mubr.bf16.vlgmr.msra.gmra.mxu0 %v8382_v36 }
 0x888   : > { %8457 = vmatmul.mubr.bf16.vlgmr.msra.gmra.mxu1 %v8382_v36 }
 0x8c7   : > { %v7837_v6 = vpop.f32.mrf.mxu0 }
 0x8c8   : > { %v8030_v41 = vpop.f32.mrf.mxu1  ;;  %v7838_v2 = vadd.f32 %v7837_v6, %v7517_v51 }
 0x8c9   : > { %v7839_v46 = vpop.f32.mrf.mxu0  ;;  %v8031_v13 = vadd.f32 %v8030_v41, %v7517_v51 }
 0x8ca   : > { %v8032_v47 = vpop.f32.mrf.mxu1  ;;  %v7840_v38 = vadd.f32 %v7839_v46, %v7517_v51  ;;  %v8189_v7 = vmax.f32 %v7838_v2, 0.0 }
 0x8cb   : > { %v7841_v59 = vpop.f32.mrf.mxu0  ;;  %v8033_v58 = vadd.f32 %v8032_v47, %v7517_v51  ;;  %v8191_v28 = vmax.f32 %v8031_v13, 0.0 }
 0x8cc   : > { %v8034_v12 = vpop.f32.mrf.mxu1  ;;  %v7842_v24 = vadd.f32 %v7841_v59, %v7521_v34  ;;  %v8190_v60 = vmax.f32 %v7840_v38, 0.0  ;;  %v15644_v38 = vpop.permute.xlu1 %7640 }
 0x8cd   : > { %v8035_v11 = vadd.f32 %v8034_v12, %v7521_v34  ;;  %v7843_v56 = vpop.f32.mrf.mxu0  ;;  %v8192_v15 = vmax.f32 %v8033_v58, 0.0  ;;  %18200 = vst [vmem:[#allocation29_spill] sm:$0xff] %v15644_v38  ;;  %v15646_v58 = vpop.permute.xlu0 %7636 }
 0x8ce   : > { %v8036_v25 = vpop.f32.mrf.mxu1  ;;  %v7844_v10 = vadd.f32 %v7843_v56, %v7521_v34  ;;  %v8193_v14 = vmax.f32 %v7842_v24, 0.0  ;;  %18201 = vst [vmem:[#allocation81_spill] sm:$0xff] %v15646_v58 }
 0x8cf   : > { %v8037_v39 = vadd.f32 %v8036_v25, %v7521_v34  ;;  %v8195_v22 = vmax.f32 %v8035_v11, 0.0  ;;  %v7847_v26 = vpop.f32.mrf.mxu0 }
 0x8d0   : > { %v8040_v29 = vpop.f32.mrf.mxu1  ;;  %v8194_v50 = vmax.f32 %v7844_v10, 0.0  ;;  %v15618_v30 = vpack.c.bf16 %v8193_v14, %v8189_v7  ;;  %v7848_v19 = vadd.f32 %v7847_v26, %v7525_v44  ;;  %v15648_v7 = vpop.permute.xlu1 %7632 }
 0x8d1   : > { %v8196_v57 = vmax.f32 %v8037_v39, 0.0  ;;  %v7849_v9 = vpop.f32.mrf.mxu0  ;;  %v15620_v45 = vpack.c.bf16 %v8195_v22, %v8191_v28  ;;  %v8041_v40 = vadd.f32 %v8040_v29, %v7525_v44  ;;  %18202 = vst [vmem:[#allocation56_spill] sm:$0xff] %v15648_v7  ;;  %v15650_v28 = vpop.permute.xlu0 %7628 }
 0x8d2   : > { %v8042_v37 = vpop.f32.mrf.mxu1  ;;  %18192 = vst [vmem:[#allocation43_spill] sm:$0xff] %v15618_v30  ;;  %v15622_v53 = vpack.c.bf16 %v8194_v50, %v8190_v60  ;;  %v7850_v63 = vadd.f32 %v7849_v9, %v7525_v44  ;;  %v8197_v6 = vmax.f32 %v7848_v19, 0.0  ;;  %18203 = vst [vmem:[#allocation84_spill] sm:$0xff] %v15650_v28 }
 0x8d3   : > { %18193 = vst [vmem:[#allocation16_spill] sm:$0xff] %v15620_v45  ;;  %v7851_v31 = vpop.f32.mrf.mxu0  ;;  %v15624_v32 = vpack.c.bf16 %v8196_v57, %v8192_v15  ;;  %v8043_v18 = vadd.f32 %v8042_v37, %v7525_v44  ;;  %v8199_v41 = vmax.f32 %v8041_v40, 0.0 }
 0x8d4   : > { %v8044_v48 = vpop.f32.mrf.mxu1  ;;  %18194 = vst [vmem:[#allocation71_spill] sm:$0xff] %v15622_v53  ;;  %v7852_v3 = vadd.f32 %v7851_v31, %v7529_v35  ;;  %v8198_v59 = vmax.f32 %v7850_v63, 0.0  ;;  %v15659_v31 = vld [vmem:[%s16146_s12] sm:$0xff] }
 0x8d5   : > { %18195 = vst [vmem:[#allocation20_spill] sm:$0xff] %v15624_v32  ;;  %v8045_v61 = vadd.f32 %v8044_v48, %v7529_v35  ;;  %v7853_v54 = vpop.f32.mrf.mxu0  ;;  %v8200_v12 = vmax.f32 %v8043_v18, 0.0  ;;  %18204 = vst [vmem:[#allocation58_spill] sm:$0xff] %v15659_v31  ;;  %v15661_v48 = vpop.permute.xlu1 %7624  ;;  %v9733_v18 = vmov 3  }
 0x8d6   : > { %v8046_v52 = vpop.f32.mrf.mxu1  ;;  %v7854_v16 = vadd.f32 %v7853_v54, %v7529_v35  ;;  %v8201_v17 = vmax.f32 %v7852_v3, 0.0  ;;  %18205 = vst [vmem:[#allocation141_spill] sm:$0xff] %v15661_v48  ;;  %v15663_v19 = vpop.permute.xlu0 %7620  ;;  %v8554_v54 = vld [vmem:[%s16148_s14] sm:$0x1]  ;;  %9057 = vset.pattern.permute.xlu0 %v9733_v18 }
 0x8d7   : > { %v8047_v33 = vadd.f32 %v8046_v52, %v7529_v35  ;;  %v8203_v43 = vmax.f32 %v8045_v61, 0.0  ;;  %v15626_v49 = vpop.f32.mrf.mxu0  ;;  %18206 = vst [vmem:[#allocation59_spill] sm:$0xff] %v15663_v19  ;;  %v8998_v61 = vcombine.high %v15659_v31, %v15659_v31  ;;  %8557 = vperm.xlu0 %9057, %v8554_v54  }
 0x8d8   : > { %v15628_v36 = vpop.f32.mrf.mxu1  ;;  %v8202_v34 = vmax.f32 %v7854_v16, 0.0  ;;  %v15634_v2 = vpack.c.bf16 %v8201_v17, %v8197_v6 }
 0x8d9   : > { %v8204_v51 = vmax.f32 %v8047_v33, 0.0  ;;  %v15630_v46 = vpop.f32.mrf.mxu0  ;;  %v15636_v44 = vpack.c.bf16 %v8203_v43, %v8199_v41  ;;  %8504 = vmatprep.mubr.bf16.mxu0 %v8998_v61  ;;  %8545 = vmatprep.mubr.bf16.mxu1 %v8998_v61  ;;  %v15674_v17 = vpop.permute.xlu1 %7616 }
 0x8da   : > { %v15632_v47 = vpop.f32.mrf.mxu1  ;;  %18196 = vst [vmem:[#allocation114_spill] sm:$0xff] %v15634_v2  ;;  %v15640_v24 = vpack.c.bf16 %v8202_v34, %v8198_v59  ;;  %18207 = vst [vmem:[#allocation104_spill] sm:$0xff] %v15674_v17  ;;  %v15676_v43 = vpop.permute.xlu0 %7612  ;;  %v15721_v48 = vadd.f32 %v15630_v46, %v15616_v1 }
 0x8db   : > { %18197 = vst [vmem:[#allocation31_spill] sm:$0xff] %v15636_v44  ;;  %v7861_v35 = vpop.f32.mrf.mxu0  ;;  %v15642_v11 = vpack.c.bf16 %v8204_v51, %v8200_v12  ;;  %18208 = vst [vmem:[#allocation110_spill] sm:$0xff] %v15676_v43 }
 0x8dc   : > { %v15638_v13 = vpop.f32.mrf.mxu1  ;;  %18198 = vst [vmem:[#allocation116_spill] sm:$0xff] %v15640_v24  ;;  %v15717_v7 = vadd.f32 %v7861_v35, %v15614_v42 }
 0x8dd   : > { %18199 = vst [vmem:[#allocation132_spill] sm:$0xff] %v15642_v11  ;;  %v7863_v56 = vpop.f32.mrf.mxu0 }
 0x8de   : > { %v8056_v25 = vpop.f32.mrf.mxu1  ;;  %v15682_v12 = vadd.f32 %v7863_v56, %v15614_v42  ;;  %v15700_v58 = vpop.permute.xlu0 %7604  ;;  %v15704_v56 = vadd.f32 %v15626_v49, %v15616_v1  ;;  %v15725_v49 = vadd.f32 %v15632_v47, %v15616_v1 }
 0x8df   : > { %v7867_v10 = vpop.f32.mrf.mxu0  ;;  %v15685_v61 = vadd.f32 %v8056_v25, %v15614_v42  ;;  %18214 = vst [vmem:[#allocation149_spill] sm:$0xff] %v15700_v58  ;;  %v15708_v25 = vadd.f32 %v15628_v36, %v15616_v1 }
 0x8e0   : > { %v8060_v39 = vpop.f32.mrf.mxu1  ;;  %v15679_v59 = vadd.f32 %v7867_v10, %v15612_v27  ;;  %18210 = vst [vmem:[#allocation117_spill] sm:$0xff] %v15682_v12  ;;  %v15698_v10 = vpop.permute.xlu1 %7608  ;;  %18215 = vst [vmem:[#allocation46_spill] sm:$0xff] %v15704_v56 }
 0x8e1   : > { %v7869_v14 = vpop.f32.mrf.mxu0  ;;  %18211 = vst [vmem:[#allocation106_spill] sm:$0xff] %v15685_v61  ;;  %v15690_v54 = vadd.f32 %v8060_v39, %v15612_v27  ;;  %18213 = vst [vmem:[#allocation72_spill] sm:$0xff] %v15698_v10 }
 0x8e2   : > { %v8062_v22 = vpop.f32.mrf.mxu1  ;;  %18209 = vst [vmem:[#allocation62_spill] sm:$0xff] %v15679_v59  ;;  %v15693_v28 = vadd.f32 %v7869_v14, %v15612_v27  ;;  %18216 = vst [vmem:[#allocation150_spill] sm:$0xff] %v15708_v25 }
 0x8e3   : > { %v7871_v26 = vpop.f32.mrf.mxu0  ;;  %18212 = vst [vmem:[#allocation42_spill] sm:$0xff] %v15690_v54  ;;  %v15696_v38 = vadd.f32 %v8062_v22, %v15612_v27 }
 0x8e4   : > { %v8064_v29 = vpop.f32.mrf.mxu1  ;;  %v15711_v39 = vadd.f32 %v7871_v26, %v15610_v5 }
 0x8e5   : > { %v7873_v50 = vpop.f32.mrf.mxu0  ;;  %v15714_v14 = vadd.f32 %v8064_v29, %v15610_v5  ;;  %v15733_v29 = vadd.f32 %v15638_v13, %v15614_v42  ;;  %v15761_v42 = vpop.permute.xlu1 %7600 }
 0x8e6   : > { %v8066_v57 = vpop.f32.mrf.mxu1  ;;  %18217 = vst [vmem:[#allocation105_spill] sm:$0xff] %v15711_v39  ;;  %v15728_v36 = vadd.f32 %v7873_v50, %v15610_v5  ;;  %18219 = vst [vmem:[#allocation113_spill] sm:$0xff] %v15761_v42 }
 0x8e7   : > { %v15652_v9 = vpop.f32.mrf.mxu0  ;;  %18218 = vst [vmem:[#allocation151_spill] sm:$0xff] %v15714_v14  ;;  %v15741_v50 = vadd.f32 %v8066_v57, %v15610_v5 }
 0x8e8   : > { %v15654_v37 = vpop.f32.mrf.mxu1  ;;  %v15780_v58 = vadd.f32 %v15652_v9, %v15608_v55 }
 0x8e9   : > { %v7879_v60 = vpop.f32.mrf.mxu0 }
 0x8ea   : > { %v8072_v15 = vpop.f32.mrf.mxu1  ;;  %v15746_v13 = vadd.f32 %v7879_v60, %v15608_v55  ;;  %v15763_v60 = vpop.permute.xlu0 %7596 }
 0x8eb   : > { %v15665_v40 = vpop.f32.mrf.mxu0  ;;  %v15749_v17 = vadd.f32 %v8072_v15, %v15608_v55  ;;  %18220 = vst [vmem:[#allocation152_spill] sm:$0xff] %v15763_v60 }
 0x8ec   : > { %v15667_v3 = vpop.f32.mrf.mxu1 }
 0x8ed   : > { %v7883_v52 = vpop.f32.mrf.mxu0 }
 0x8ee   : > { %v8076_v63 = vpop.f32.mrf.mxu1  ;;  %v15753_v1 = vadd.f32 %v7883_v52, %v15606_v4 }
 0x8ef   : > { %v7887_v16 = vpop.f32.mrf.mxu0  ;;  %v15756_v5 = vadd.f32 %v8076_v63, %v15606_v4 }
 0x8f0   : > { %v8080_v33 = vpop.f32.mrf.mxu1  ;;  %v15759_v57 = vadd.f32 %v7887_v16, %v15604_v23  ;;  %v15796_v16 = vadd.f32 %v15665_v40, %v15606_v4 }
 0x8f1   : > { %v7889_v6 = vpop.f32.mrf.mxu0  ;;  %v15766_v15 = vadd.f32 %v8080_v33, %v15604_v23 }
 0x8f2   : > { %v8082_v41 = vpop.f32.mrf.mxu1  ;;  %v15769_v26 = vadd.f32 %v7889_v6, %v15604_v23 }
 0x8f3   : > { %v7891_v34 = vpop.f32.mrf.mxu0  ;;  %v15772_v47 = vadd.f32 %v8082_v41, %v15604_v23  ;;  %v15790_v23 = vadd.f32 %v15654_v37, %v15608_v55  ;;  %v15818_v37 = vpop.permute.xlu0 %7588 }
 0x8f4   : > { %v8084_v51 = vpop.f32.mrf.mxu1  ;;  %v15775_v52 = vadd.f32 %v7891_v34, %v15602_v0 }
 0x8f5   : > { %v7893_v18 = vpop.f32.mrf.mxu0  ;;  %v15783_v33 = vadd.f32 %v8084_v51, %v15602_v0  ;;  %v15800_v51 = vadd.f32 %v15667_v3, %v15606_v4 }
 0x8f6   : > { %v15687_v31 = vpop.f32.mrf.mxu1  ;;  %v15786_v6 = vadd.f32 %v7893_v18, %v15602_v0  ;;  %v15816_v18 = vpop.permute.xlu1 %7592 }
 0x8f7   : > { %v7897_v27 = vpop.f32.mrf.mxu0  ;;  %v15813_v3 = vadd.f32 %v15687_v31, %v15602_v0 }
 0x8f8   : > { %v8090_v22 = vpop.f32.mrf.mxu1  ;;  %v15821_v55 = vadd.f32 %v7897_v27, %v15596_v62 }
 0x8f9   : > { %v7899_v19 = vpop.f32.mrf.mxu0  ;;  %v15824_v40 = vadd.f32 %v8090_v22, %v15596_v62 }
 0x8fa   : > { %v8092_v35 = vpop.f32.mrf.mxu1  ;;  %v7900_v32 = vadd.f32 %v7899_v19, %v15596_v62 }
 0x8fb   : > { %v7901_v46 = vpop.f32.mrf.mxu0  ;;  %v8093_v27 = vadd.f32 %v8092_v35, %v15596_v62 }
 0x8fc   : > { %v8094_v10 = vpop.f32.mrf.mxu1  ;;  %v7902_v44 = vadd.f32 %v7901_v46, %v15598_v8 }
 0x8fd   : > { %v7903_v63 = vpop.f32.mrf.mxu0  ;;  %v8095_v11 = vadd.f32 %v8094_v10, %v15598_v8  ;;  %v8240_v14 = vmax.f32 %v8093_v27, 0.0 }
 0x8fe   : > { %v8096_v43 = vpop.f32.mrf.mxu1  ;;  %v7904_v42 = vadd.f32 %v7903_v63, %v15598_v8  ;;  %v8241_v54 = vmax.f32 %v7902_v44, 0.0 }
 0x8ff   : > { %v7907_v9 = vpop.f32.mrf.mxu0  ;;  %v8097_v41 = vadd.f32 %v8096_v43, %v15598_v8  ;;  %v8243_v39 = vmax.f32 %v8095_v11, 0.0  ;;  %v8239_v11 = vmax.f32 %v15824_v40, 0.0  ;;  %v18221_v40 = vmax.f32 %v15769_v26, 0.0 }
 0x900   : > { %v8100_v60 = vpop.f32.mrf.mxu1  ;;  %v7908_v22 = vadd.f32 %v7907_v9, %v15594_v20  ;;  %v8242_v24 = vmax.f32 %v7904_v42, 0.0  ;;  %v8225_v26 = vmax.f32 %v15796_v16, 0.0 }
 0x901   : > { %v7909_v45 = vpop.f32.mrf.mxu0  ;;  %v8101_v19 = vadd.f32 %v8100_v60, %v15594_v20  ;;  %v8244_v25 = vmax.f32 %v8097_v41, 0.0  ;;  %v7581_v60 = vpop.permute.xlu0 %7580 }
 0x902   : > { %v8102_v30 = vpop.f32.mrf.mxu1  ;;  %v7910_v0 = vadd.f32 %v7909_v45, %v15594_v20  ;;  %v8245_v8 = vmax.f32 %v7908_v22, 0.0  ;;  %v8237_v22 = vmax.f32 %v15821_v55, 0.0 }
 0x903   : > { %v7911_v4 = vpop.f32.mrf.mxu0  ;;  %v8103_v31 = vadd.f32 %v8102_v30, %v15594_v20  ;;  %v7585_v20 = vpop.permute.xlu1 %7584  ;;  %v8247_v10 = vmax.f32 %v8101_v19, 0.0 }
 0x904   : > { %v8104_v34 = vpop.f32.mrf.mxu1  ;;  %v7912_v63 = vadd.f32 %v7911_v4, %v15600_v21  ;;  %v8238_v4 = vmax.f32 %v7900_v32, 0.0  ;;  %v8246_v46 = vmax.f32 %v7910_v0, 0.0 }
 0x905   : > { %v8105_v53 = vadd.f32 %v8104_v34, %v15600_v21  ;;  %v7913_v2 = vpop.f32.mrf.mxu0  ;;  %v8248_v61 = vmax.f32 %v8103_v31, 0.0 }
 0x906   : > { %v8106_v43 = vpop.f32.mrf.mxu1  ;;  %v7914_v45 = vadd.f32 %v7913_v2, %v15600_v21  ;;  %v8249_v34 = vmax.f32 %v7912_v63, 0.0 }
 0x907   : > { %v8107_v30 = vadd.f32 %v8106_v43, %v15600_v21  ;;  %v8251_v56 = vmax.f32 %v8105_v53, 0.0  ;;  %v7917_v62 = vpop.f32.mrf.mxu0  ;;  %v8342_v21 = vpack.c.bf16 %v8242_v24, %v8238_v4 }
 0x908   : > { %v8110_v35 = vpop.f32.mrf.mxu1  ;;  %v8250_v9 = vmax.f32 %v7914_v45, 0.0  ;;  %v8345_v63 = vpack.c.bf16 %v8249_v34, %v8245_v8  ;;  %v7918_v0 = vadd.f32 %v7917_v62, %v7581_v60  ;;  %v8236_v45 = vmax.f32 %v15813_v3, 0.0 }
 0x909   : > { %v8252_v12 = vmax.f32 %v8107_v30, 0.0  ;;  %v7919_v42 = vpop.f32.mrf.mxu0  ;;  %v8347_v53 = vpack.c.bf16 %v8251_v56, %v8247_v10  ;;  %v8111_v31 = vadd.f32 %v8110_v35, %v7581_v60  ;;  %v8344_v30 = vpack.c.bf16 %v8244_v25, %v8240_v14 }
 0x90a   : > { %v8112_v2 = vpop.f32.mrf.mxu1  ;;  %v8346_v32 = vpack.c.bf16 %v8250_v9, %v8246_v46  ;;  %v8341_v14 = vpack.c.bf16 %v8241_v54, %v8237_v22  ;;  %v8343_v34 = vpack.c.bf16 %v8243_v39, %v8239_v11  ;;  %v8253_v35 = vmax.f32 %v7918_v0, 0.0 }
 0x90b   : > { %v8348_v41 = vpack.c.bf16 %v8252_v12, %v8248_v61  ;;  %v7921_v43 = vpop.f32.mrf.mxu0  ;;  %v7920_v12 = vadd.f32 %v7919_v42, %v7581_v60  ;;  %v8113_v61 = vadd.f32 %v8112_v2, %v7581_v60  ;;  %v8255_v55 = vmax.f32 %v8111_v31, 0.0 }
 0x90c   : > { %v8114_v59 = vpop.f32.mrf.mxu1  ;;  %8472 = vmatprep.subr.bf16.mxu0 %v8346_v32  ;;  %v7922_v44 = vadd.f32 %v7921_v43, %v7585_v20  ;;  %v18222_v46 = vmax.f32 %v15786_v6, 0.0  ;;  %v18223_v8 = vmax.f32 %v15772_v47, 0.0  ;;  %v8227_v6 = vmax.f32 %v15800_v51, 0.0 }
 0x90d   : > { %8513 = vmatprep.subr.bf16.mxu1 %v8348_v41  ;;  %v8115_v27 = vadd.f32 %v8114_v59, %v7585_v20  ;;  %v7923_v24 = vpop.f32.mrf.mxu0  ;;  %8473 = vmatpush1.bf16.msra.mxu0 %v8345_v63  ;;  %v8254_v54 = vmax.f32 %v7920_v12, 0.0  ;;  %v8256_v39 = vmax.f32 %v8113_v61, 0.0  ;;  %v18226_v41 = vmax.f32 %v15759_v57, 0.0 }
 0x90e   : > { %v8116_v19 = vpop.f32.mrf.mxu1  ;;  %8514 = vmatpush1.bf16.msra.mxu1 %v8347_v53  ;;  %8474 = vmatprep.subr.bf16.mxu0 %v8342_v21  ;;  %v7924_v56 = vadd.f32 %v7923_v24, %v7585_v20  ;;  %v8257_v3 = vmax.f32 %v7922_v44, 0.0  ;;  %v8338_v9 = vpack.c.bf16 %v18222_v46, %v18221_v40  ;;  %v8340_v60 = vpack.c.bf16 %v8236_v45, %v18223_v8 }
 0x90f   : > { %8515 = vmatprep.subr.bf16.mxu1 %v8344_v30  ;;  %v8117_v4 = vadd.f32 %v8116_v19, %v7585_v20  ;;  %v8259_v25 = vmax.f32 %v8115_v27, 0.0  ;;  %v7927_v62 = vpop.f32.mrf.mxu0  ;;  %v18227_v47 = vmax.f32 %v15775_v52, 0.0  ;;  %v18228_v53 = vmax.f32 %v15766_v15, 0.0 }
 0x910   : > { %v8120_v59 = vpop.f32.mrf.mxu1  ;;  %v8258_v10 = vmax.f32 %v7924_v56, 0.0  ;;  %v15848_v21 = vpack.c.bf16 %v8257_v3, %v8253_v35  ;;  %v18229_v43 = vmax.f32 %v15783_v33, 0.0  ;;  %v7928_v30 = vadd.f32 %v7927_v62, %v15818_v37 }
 0x911   : > { %v8260_v42 = vmax.f32 %v8117_v4, 0.0  ;;  %v7929_v2 = vpop.f32.mrf.mxu0  ;;  %8475 = vmatpush1.bf16.msra.mxu0 %v8341_v14  ;;  %v15850_v32 = vpack.c.bf16 %v8259_v25, %v8255_v55  ;;  %v8337_v63 = vpack.c.bf16 %v18227_v47, %v18226_v41  ;;  %v8121_v16 = vadd.f32 %v8120_v59, %v15818_v37  ;;  %v18248_v47 = vld [vmem:[#allocation42_spill] sm:$0xff] }
 0x912   : > { %v8122_v20 = vpop.f32.mrf.mxu1  ;;  %8516 = vmatpush1.bf16.msra.mxu1 %v8343_v34  ;;  %18224 = vst [vmem:[#allocation107_spill] sm:$0xff] %v15848_v21  ;;  %v8339_v0 = vpack.c.bf16 %v18229_v43, %v18228_v53  ;;  %8476 = vmatprep.subr.bf16.mxu0 %v8338_v9  ;;  %v15864_v44 = vpack.c.bf16 %v8258_v10, %v8254_v54  ;;  %v18232_v57 = vmax.f32 %v15746_v13, 0.0  ;;  %v18233_v52 = vmax.f32 %v15753_v1, 0.0  ;;  %v18244_v54 = vld [vmem:[#allocation62_spill] sm:$0xff]  ;;  %v18250_v53 = vld [vmem:[#allocation151_spill] sm:$0xff]  ;;  %v18283_v21 = vld [vmem:[#allocation141_spill] sm:$0xff] }
 0x913   : > { %18225 = vst [vmem:[#allocation153_spill] sm:$0xff] %v15850_v32  ;;  %8517 = vmatprep.subr.bf16.mxu1 %v8340_v60  ;;  %v7931_v31 = vpop.f32.mrf.mxu0  ;;  %v15866_v51 = vpack.c.bf16 %v8260_v42, %v8256_v39  ;;  %v18234_v33 = vmax.f32 %v15749_v17, 0.0  ;;  %v18235_v27 = vmax.f32 %v15756_v5, 0.0  ;;  %v8221_v19 = vmax.f32 %v15780_v58, 0.0  ;;  %v18282_v32 = vld [vmem:[#allocation59_spill] sm:$0xff] }
 0x914   : > { %v8124_v45 = vpop.f32.mrf.mxu1  ;;  %18230 = vst [vmem:[#allocation64_spill] sm:$0xff] %v15864_v44  ;;  %v8334_v15 = vpack.c.bf16 %v18233_v52, %v18232_v57  ;;  %v7932_v11 = vadd.f32 %v7931_v31, %v15816_v18  ;;  %v8223_v12 = vmax.f32 %v15790_v23, 0.0  ;;  %v7930_v1 = vadd.f32 %v7929_v2, %v15818_v37 }
 0x915   : > { %18231 = vst [vmem:[#allocation154_spill] sm:$0xff] %v15866_v51  ;;  %v8336_v22 = vpack.c.bf16 %v18235_v27, %v18234_v33  ;;  %v8125_v24 = vadd.f32 %v8124_v45, %v15816_v18  ;;  %v7933_v61 = vpop.f32.mrf.mxu0  ;;  %8477 = vmatpush1.bf16.msra.mxu0 %v8337_v63  ;;  %v8123_v13 = vadd.f32 %v8122_v20, %v15818_v37  ;;  %v8261_v34 = vmax.f32 %v7928_v30, 0.0  ;;  %v18261_v27 = vld [vmem:[#allocation150_spill] sm:$0xff]  ;;  %v18284_v51 = vld [vmem:[#allocation56_spill] sm:$0xff] }
 0x916   : > { %v8126_v56 = vpop.f32.mrf.mxu1  ;;  %8518 = vmatpush1.bf16.msra.mxu1 %v8339_v0  ;;  %8478 = vmatprep.subr.bf16.mxu0 %v8334_v15  ;;  %v7934_v17 = vadd.f32 %v7933_v61, %v15816_v18  ;;  %v8265_v4 = vmax.f32 %v7932_v11, 0.0  ;;  %v8333_v25 = vpack.c.bf16 %v8225_v26, %v8221_v19  ;;  %v8335_v58 = vpack.c.bf16 %v8227_v6, %v8223_v12  ;;  %v18246_v26 = vld [vmem:[#allocation105_spill] sm:$0xff]  ;;  %v18260_v15 = vld [vmem:[#allocation46_spill] sm:$0xff] }
 0x917   : > { %8519 = vmatprep.subr.bf16.mxu1 %v8336_v22  ;;  %v8127_v5 = vadd.f32 %v8126_v56, %v15816_v18  ;;  %v8267_v3 = vmax.f32 %v8125_v24, 0.0  ;;  %v15884_v14 = vpop.f32.mrf.mxu0  ;;  %v8263_v62 = vmax.f32 %v8121_v16, 0.0  ;;  %v18238_v59 = vmax.f32 %v15693_v28, 0.0  ;;  %v18258_v16 = vld [vmem:[#allocation106_spill] sm:$0xff] }
 0x918   : > { %18236 = vst [vmem:[#allocation24_spill] sm:$0xff] %v15884_v14  ;;  %v15886_v23 = vpop.f32.mrf.mxu1  ;;  %v18239_v37 = vmax.f32 %v15728_v36, 0.0  ;;  %v18240_v55 = vmax.f32 %v15696_v38, 0.0  ;;  %v18241_v40 = vmax.f32 %v15741_v50, 0.0  ;;  %v8266_v46 = vmax.f32 %v7934_v17, 0.0  ;;  %v18262_v17 = vld [vmem:[#allocation116_spill] sm:$0xff] }
 0x919   : > { %18237 = vst [vmem:[#allocation155_spill] sm:$0xff] %v15886_v23  ;;  %v8268_v9 = vmax.f32 %v8127_v5, 0.0  ;;  %v15896_v8 = vpop.f32.mrf.mxu0  ;;  %8479 = vmatpush1.bf16.msra.mxu0 %v8333_v25  ;;  %v8262_v10 = vmax.f32 %v7930_v1, 0.0  ;;  %v8264_v42 = vmax.f32 %v8123_v13, 0.0  ;;  %v15900_v2 = vpack.c.bf16 %v8265_v4, %v8261_v34  ;;  %v18263_v5 = vld [vmem:[#allocation132_spill] sm:$0xff]  ;;  %v18264_v34 = vld [vmem:[#allocation114_spill] sm:$0xff] }
 0x91a   : > { %v8330_v35 = vpack.c.bf16 %v18239_v37, %v18238_v59  ;;  %v8332_v18 = vpack.c.bf16 %v18241_v40, %v18240_v55  ;;  %v15898_v60 = vpop.f32.mrf.mxu1  ;;  %8520 = vmatpush1.bf16.msra.mxu1 %v8335_v58  ;;  %v15902_v28 = vpack.c.bf16 %v8267_v3, %v8263_v62  ;;  %v8209_v36 = vmax.f32 %v15717_v7, 0.0  ;;  %v18265_v62 = vld [vmem:[#allocation31_spill] sm:$0xff]  ;;  %v18267_v37 = vld [vmem:[#allocation20_spill] sm:$0xff] }
 0x91b   : > { %18242 = vst [vmem:[#allocation30_spill] sm:$0xff] %v15900_v2  ;;  %v8211_v38 = vmax.f32 %v15733_v29, 0.0  ;;  %v8206_v50 = vmax.f32 %v15721_v48, 0.0  ;;  %v8208_v20 = vmax.f32 %v15725_v49, 0.0  ;;  %v18245_v39 = vmax.f32 %v18244_v54, 0.0  ;;  %v15916_v31 = vpop.f32.mrf.mxu0  ;;  %v18256_v48 = vld [vmem:[#allocation117_spill] sm:$0xff] }
 0x91c   : > { %18243 = vst [vmem:[#allocation156_spill] sm:$0xff] %v15902_v28  ;;  %8480 = vmatprep.subr.bf16.mxu0 %v8330_v35  ;;  %8521 = vmatprep.subr.bf16.mxu1 %v8332_v18  ;;  %v18247_v6 = vmax.f32 %v18246_v26, 0.0  ;;  %v18249_v63 = vmax.f32 %v18248_v47, 0.0  ;;  %v18251_v43 = vmax.f32 %v18250_v53, 0.0  ;;  %18252 = vst [vmem:[#allocation96_spill] sm:$0xff] %v15916_v31  ;;  %v15918_v7 = vpop.f32.mrf.mxu1  ;;  %v15920_v29 = vpack.c.bf16 %v8266_v46, %v8262_v10  ;;  %v18266_v59 = vld [vmem:[#allocation71_spill] sm:$0xff] }
 0x91d   : > { %18253 = vst [vmem:[#allocation157_spill] sm:$0xff] %v15918_v7  ;;  %v15922_v45 = vpack.c.bf16 %v8268_v9, %v8264_v42  ;;  %v18257_v49 = vmax.f32 %v18256_v48, 0.0  ;;  %v18259_v57 = vmax.f32 %v18258_v16, 0.0  ;;  %v8205_v33 = vmax.f32 %v18260_v15, 0.0  ;;  %v7943_v11 = vpop.f32.mrf.mxu0  ;;  %v18268_v46 = vld [vmem:[#allocation43_spill] sm:$0xff]  ;;  %v18269_v9 = vld [vmem:[#allocation16_spill] sm:$0xff] }
 0x91e   : > { %v8329_v41 = vpack.c.bf16 %v18247_v6, %v18245_v39  ;;  %v8331_v0 = vpack.c.bf16 %v18251_v43, %v18249_v63  ;;  %18254 = vst [vmem:[#allocation102_spill] sm:$0xff] %v15920_v29  ;;  %v8207_v22 = vmax.f32 %v18261_v27, 0.0  ;;  %v8136_v24 = vpop.f32.mrf.mxu1  ;;  %v18286_v29 = vld [vmem:[#allocation29_spill] sm:$0xff] }
 0x91f   : > { %18255 = vst [vmem:[#allocation158_spill] sm:$0xff] %v15922_v45  ;;  %v8326_v30 = vpack.c.bf16 %v18257_v49, %v8206_v50  ;;  %v8328_v52 = vpack.c.bf16 %v18259_v57, %v8208_v20  ;;  %v15930_v19 = vpop.f32.mrf.mxu0  ;;  %v8325_v61 = vpack.c.bf16 %v8209_v36, %v8205_v33  ;;  %v18270_v57 = vld [vmem:[#allocation113_spill] sm:$0xff]  ;;  %v18273_v33 = vld [vmem:[#allocation152_spill] sm:$0xff] }
 0x920   : > { %8481 = vmatpush1.bf16.msra.mxu0 %v8329_v41  ;;  %8522 = vmatpush1.bf16.msra.mxu1 %v8331_v0  ;;  %v15932_v12 = vpop.f32.mrf.mxu1  ;;  %v8327_v56 = vpack.c.bf16 %v8211_v38, %v8207_v22  ;;  %v15962_v15 = vadd.f32 %v8136_v24, %v18270_v57  ;;  %v15966_v27 = vadd.f32 %v15896_v8, %v18273_v33  ;;  %v18280_v8 = vld [vmem:[#allocation110_spill] sm:$0xff] }
 0x921   : > { %8482 = vmatprep.subr.bf16.mxu0 %v8326_v30  ;;  %8523 = vmatprep.subr.bf16.mxu1 %v8328_v52  ;;  %v7949_v1 = vpop.f32.mrf.mxu0  ;;  %v15959_v52 = vadd.f32 %v7943_v11, %v18270_v57  ;;  %v15970_v22 = vadd.f32 %v15898_v60, %v18273_v33  ;;  %v18279_v11 = vld [vmem:[#allocation72_spill] sm:$0xff] }
 0x922   : > { %v8142_v13 = vpop.f32.mrf.mxu1  ;;  %18272 = vst [vmem:[#allocation159_spill] sm:$0xff] %v15962_v15  ;;  %18274 = vst [vmem:[#allocation47_spill] sm:$0xff] %v15966_v27  ;;  %v18287_v27 = vld [vmem:[#allocation84_spill] sm:$0xff] }
 0x923   : > { %v15936_v4 = vpop.f32.mrf.mxu0  ;;  %18271 = vst [vmem:[#allocation50_spill] sm:$0xff] %v15959_v52  ;;  %18275 = vst [vmem:[#allocation160_spill] sm:$0xff] %v15970_v22 }
 0x924   : > { %8483 = vmatpush1.bf16.msra.mxu0 %v8325_v61  ;;  %8524 = vmatpush1.bf16.msra.mxu1 %v8327_v56  ;;  %v15938_v3 = vpop.f32.mrf.mxu1 }
 0x925   : > { %8484 = vmatprep.subr.bf16.mxu0 %v18262_v17  ;;  %8525 = vmatprep.subr.bf16.mxu1 %v18263_v5  ;;  %v7953_v25 = vpop.f32.mrf.mxu0  ;;  %v18276_v17 = vld [vmem:[#allocation149_spill] sm:$0xff] }
 0x926   : > { %v8146_v58 = vpop.f32.mrf.mxu1  ;;  %v15973_v5 = vadd.f32 %v7949_v1, %v18276_v17 }
 0x927   : > { %v15944_v35 = vpop.f32.mrf.mxu0  ;;  %v15982_v24 = vadd.f32 %v8146_v58, %v18279_v11 }
 0x928   : > { %8485 = vmatpush1.bf16.msra.mxu0 %v18264_v34  ;;  %8526 = vmatpush1.bf16.msra.mxu1 %v18265_v62  ;;  %v15946_v55 = vpop.f32.mrf.mxu1  ;;  %18277 = vst [vmem:[#allocation19_spill] sm:$0xff] %v15973_v5  ;;  %v15976_v34 = vadd.f32 %v8142_v13, %v18276_v17  ;;  %v15979_v62 = vadd.f32 %v7953_v25, %v18279_v11 }
 0x929   : > { %8486 = vmatprep.subr.bf16.mxu0 %v18266_v59  ;;  %8527 = vmatprep.subr.bf16.mxu1 %v18267_v37  ;;  %v7959_v40 = vpop.f32.mrf.mxu0  ;;  %v18281_v37 = vld [vmem:[#allocation104_spill] sm:$0xff] }
 0x92a   : > { %v8152_v18 = vpop.f32.mrf.mxu1  ;;  %18278 = vst [vmem:[#allocation161_spill] sm:$0xff] %v15976_v34  ;;  %v15985_v59 = vadd.f32 %v7959_v40, %v18280_v8 }
 0x92b   : > { %v15950_v10 = vpop.f32.mrf.mxu0  ;;  %v15988_v60 = vadd.f32 %v8152_v18, %v18280_v8 }
 0x92c   : > { %8487 = vmatpush1.bf16.msra.mxu0 %v18268_v46  ;;  %8528 = vmatpush1.bf16.msra.mxu1 %v18269_v9  ;;  %v15952_v42 = vpop.f32.mrf.mxu1 }
 0x92d   : > { %v7963_v36 = vpop.f32.mrf.mxu0 }
 0x92e   : > { %v8156_v38 = vpop.f32.mrf.mxu1  ;;  %v15991_v46 = vadd.f32 %v7963_v36, %v18281_v37 }
 0x92f   : > { %v15954_v50 = vpop.f32.mrf.mxu0  ;;  %v15994_v1 = vadd.f32 %v8156_v38, %v18281_v37 }
 0x930   : > { %v15956_v20 = vpop.f32.mrf.mxu1 }
 0x931   : > { %v7969_v54 = vpop.f32.mrf.mxu0 }
 0x932   : > { %v8162_v39 = vpop.f32.mrf.mxu1  ;;  %v15997_v25 = vadd.f32 %v7969_v54, %v18282_v32 }
 0x933   : > { %v7971_v26 = vpop.f32.mrf.mxu0  ;;  %v16000_v58 = vadd.f32 %v8162_v39, %v18282_v32  ;;  %v18285_v39 = vld [vmem:[#allocation81_spill] sm:$0xff] }
 0x934   : > { %v8164_v6 = vpop.f32.mrf.mxu1  ;;  %v16003_v40 = vadd.f32 %v7971_v26, %v18283_v21 }
 0x935   : > { %v7973_v41 = vpop.f32.mrf.mxu0  ;;  %v16006_v18 = vadd.f32 %v8164_v6, %v18283_v21 }
 0x936   : > { %v8166_v47 = vpop.f32.mrf.mxu1  ;;  %v16009_v36 = vadd.f32 %v7973_v41, %v18283_v21 }
 0x937   : > { %v7977_v63 = vpop.f32.mrf.mxu0  ;;  %v16012_v38 = vadd.f32 %v8166_v47, %v18283_v21 }
 0x938   : > { %v8170_v53 = vpop.f32.mrf.mxu1 }
 0x939   : > { %v7979_v43 = vpop.f32.mrf.mxu0 }
 0x93a   : > { %v8172_v0 = vpop.f32.mrf.mxu1  ;;  %v7980_v41 = vadd.f32 %v7979_v43, %v18287_v27 }
 0x93b   : > { %v7981_v48 = vpop.f32.mrf.mxu0  ;;  %v8173_v23 = vadd.f32 %v8172_v0, %v18287_v27 }
 0x93c   : > { %v8174_v49 = vpop.f32.mrf.mxu1  ;;  %v7982_v14 = vadd.f32 %v7981_v48, %v18284_v51  ;;  %v8302_v7 = vmax.f32 %v7980_v41, 0.0 }
 0x93d   : > { %v7983_v30 = vpop.f32.mrf.mxu0 }
 0x93e   : > { %v8176_v16 = vpop.f32.mrf.mxu1  ;;  %v7984_v44 = vadd.f32 %v7983_v30, %v18284_v51  ;;  %v8305_v31 = vmax.f32 %v7982_v14, 0.0  ;;  %v7962_v14 = vadd.f32 %v15950_v10, %v18281_v37  ;;  %v8290_v10 = vmax.f32 %v15991_v46, 0.0 }
 0x93f   : > { %v7987_v61 = vpop.f32.mrf.mxu0  ;;  %v8177_v54 = vadd.f32 %v8176_v16, %v18284_v51  ;;  %v8145_v46 = vadd.f32 %v15938_v3, %v18279_v11 }
 0x940   : > { %v8180_v56 = vpop.f32.mrf.mxu1  ;;  %v7988_v21 = vadd.f32 %v7987_v61, %v18285_v39  ;;  %v8306_v33 = vmax.f32 %v7984_v44, 0.0 }
 0x941   : > { %v7989_v13 = vpop.f32.mrf.mxu0  ;;  %v8181_v47 = vadd.f32 %v8180_v56, %v18285_v39  ;;  %v7978_v56 = vadd.f32 %v7977_v63, %v18287_v27  ;;  %v7968_v63 = vadd.f32 %v15954_v50, %v18282_v32 }
 0x942   : > { %v8182_v9 = vpop.f32.mrf.mxu1  ;;  %v7990_v45 = vadd.f32 %v7989_v13, %v18285_v39  ;;  %v8175_v13 = vadd.f32 %v8174_v49, %v18284_v51  ;;  %v8309_v5 = vmax.f32 %v7988_v21, 0.0  ;;  %v8304_v51 = vmax.f32 %v8173_v23, 0.0 }
 0x943   : > { %v7991_v28 = vpop.f32.mrf.mxu0  ;;  %v8183_v26 = vadd.f32 %v8182_v9, %v18285_v39  ;;  %v8171_v39 = vadd.f32 %v8170_v53, %v18287_v27  ;;  %v8311_v48 = vmax.f32 %v8181_v47, 0.0  ;;  %v8161_v23 = vadd.f32 %v15956_v20, %v18282_v32 }
 0x944   : > { %v8184_v2 = vpop.f32.mrf.mxu1  ;;  %v7992_v22 = vadd.f32 %v7991_v28, %v18286_v29  ;;  %v8310_v52 = vmax.f32 %v7990_v45, 0.0  ;;  %v8300_v45 = vmax.f32 %v16012_v38, 0.0  ;;  %v8301_v53 = vmax.f32 %v7978_v56, 0.0 }
 0x945   : > { %v8185_v6 = vadd.f32 %v8184_v2, %v18286_v29  ;;  %v7993_v30 = vpop.f32.mrf.mxu0  ;;  %v8308_v2 = vmax.f32 %v8177_v54, 0.0  ;;  %v8312_v0 = vmax.f32 %v8183_v26, 0.0  ;;  %v8374_v26 = vpack.c.bf16 %v8306_v33, %v8302_v7 }
 0x946   : > { %v8186_v16 = vpop.f32.mrf.mxu1  ;;  %v7994_v9 = vadd.f32 %v7993_v30, %v18286_v29  ;;  %v8313_v15 = vmax.f32 %v7992_v22, 0.0  ;;  %v8298_v22 = vmax.f32 %v16009_v36, 0.0  ;;  %v8294_v7 = vmax.f32 %v15997_v25, 0.0 }
 0x947   : > { %v8187_v28 = vadd.f32 %v8186_v16, %v18286_v29  ;;  %v8315_v43 = vmax.f32 %v8185_v6, 0.0  ;;  %v8307_v29 = vmax.f32 %v8175_v13, 0.0  ;;  %v8376_v6 = vpack.c.bf16 %v8308_v2, %v8304_v51  ;;  %v16042_v50 = vpop.f32.mrf.mxu0  ;;  %v18291_v51 = vld [vmem:[#allocation161_spill] sm:$0xff] }
 0x948   : > { %v8314_v34 = vmax.f32 %v7994_v9, 0.0  ;;  %v8377_v44 = vpack.c.bf16 %v8313_v15, %v8309_v5  ;;  %v8155_v15 = vadd.f32 %v15952_v42, %v18281_v37  ;;  %v8296_v33 = vmax.f32 %v16000_v58, 0.0  ;;  %v16044_v27 = vpop.f32.mrf.mxu1 }
 0x949   : > { %v8316_v61 = vmax.f32 %v8187_v28, 0.0  ;;  %v8379_v54 = vpack.c.bf16 %v8315_v43, %v8311_v48  ;;  %v8297_v32 = vmax.f32 %v16003_v40, 0.0  ;;  %v8299_v20 = vmax.f32 %v16006_v18, 0.0  ;;  %v16050_v36 = vpop.f32.mrf.mxu0 }
 0x94a   : > { %v8378_v49 = vpack.c.bf16 %v8314_v34, %v8310_v52  ;;  %v8303_v52 = vmax.f32 %v8171_v39, 0.0  ;;  %v8373_v5 = vpack.c.bf16 %v8305_v31, %v8301_v53  ;;  %v8292_v42 = vmax.f32 %v15994_v1, 0.0  ;;  %v16052_v58 = vpop.f32.mrf.mxu1  ;;  %v18290_v39 = vld [vmem:[#allocation19_spill] sm:$0xff] }
 0x94b   : > { %v8380_v30 = vpack.c.bf16 %v8316_v61, %v8312_v0  ;;  %v8370_v37 = vpack.c.bf16 %v8298_v22, %v8294_v7  ;;  %v8372_v25 = vpack.c.bf16 %v8300_v45, %v8296_v33  ;;  %v7958_v38 = vadd.f32 %v15944_v35, %v18280_v8  ;;  %v8421_v35 = vpop.f32.mrf.mxu0  ;;  %v18288_v61 = vld [vmem:[#allocation96_spill] sm:$0xff]  ;;  %v18293_v45 = vld [vmem:[#allocation159_spill] sm:$0xff] }
 0x94c   : > { %8488 = vmatprep.subr.bf16.mxu0 %v8378_v49  ;;  %v8375_v34 = vpack.c.bf16 %v8307_v29, %v8303_v52  ;;  %v8151_v40 = vadd.f32 %v15946_v55, %v18280_v8  ;;  %v8293_v41 = vmax.f32 %v7968_v63, 0.0  ;;  %v8295_v18 = vmax.f32 %v8161_v23, 0.0  ;;  %v8462_v47 = vpop.f32.mrf.mxu1  ;;  %v18294_v23 = vld [vmem:[#allocation152_spill] sm:$0xff]  ;;  %v18296_v52 = vld [vmem:[#allocation155_spill] sm:$0xff]  ;;  %v18304_v35 = vld [vmem:[#allocation154_spill] sm:$0xff] }
 0x94d   : > { %8529 = vmatprep.subr.bf16.mxu1 %v8380_v30  ;;  %8489 = vmatpush2.bf16.msra.mxu0 %v8377_v44  ;;  %v7952_v31 = vadd.f32 %v15936_v4, %v18279_v11  ;;  %v8286_v1 = vmax.f32 %v15985_v59, 0.0  ;;  %v8288_v21 = vmax.f32 %v15988_v60, 0.0  ;;  %v8289_v16 = vmax.f32 %v7962_v14, 0.0  ;;  %v8422_v43 = vpop.f32.mrf.mxu0  ;;  %v18298_v33 = vld [vmem:[#allocation160_spill] sm:$0xff]  ;;  %v18305_v47 = vld [vmem:[#allocation58_spill] sm:$0xff] }
 0x94e   : > { %8530 = vmatpush2.bf16.msra.mxu1 %v8379_v54  ;;  %8490 = vmatprep.subr.bf16.mxu0 %v8374_v26  ;;  %v8291_v55 = vmax.f32 %v8155_v15, 0.0  ;;  %v8369_v8 = vpack.c.bf16 %v8297_v32, %v8293_v41  ;;  %v8371_v13 = vpack.c.bf16 %v8299_v20, %v8295_v18  ;;  %v8282_v9 = vmax.f32 %v15979_v62, 0.0  ;;  %v8463_v3 = vpop.f32.mrf.mxu1  ;;  %v18289_v62 = vld [vmem:[#allocation157_spill] sm:$0xff]  ;;  %v18292_v54 = vld [vmem:[#allocation50_spill] sm:$0xff]  ;;  %v18297_v15 = vld [vmem:[#allocation47_spill] sm:$0xff] }
 0x94f   : > { %8531 = vmatprep.subr.bf16.mxu1 %v8376_v6  ;;  %v8284_v28 = vmax.f32 %v15982_v24, 0.0  ;;  %v8366_v4 = vpack.c.bf16 %v8290_v10, %v8286_v1  ;;  %v8368_v2 = vpack.c.bf16 %v8292_v42, %v8288_v21  ;;  %v7948_v11 = vadd.f32 %v15930_v19, %v18276_v17  ;;  %v18299_v18 = vld [vmem:[#allocation102_spill] sm:$0xff]  ;;  %v18302_v1 = vld [vmem:[#allocation156_spill] sm:$0xff] }
 0x950   : > { %v8141_v59 = vadd.f32 %v15932_v12, %v18276_v17  ;;  %v8285_v60 = vmax.f32 %v7958_v38, 0.0  ;;  %v8287_v0 = vmax.f32 %v8151_v40, 0.0  ;;  %v7942_v56 = vadd.f32 %v18288_v61, %v18270_v57  ;;  %v18303_v21 = vld [vmem:[#allocation64_spill] sm:$0xff] }
 0x951   : > { %8491 = vmatpush2.bf16.msra.mxu0 %v8373_v5  ;;  %v8135_v24 = vadd.f32 %v18289_v62, %v18270_v57  ;;  %v8278_v48 = vmax.f32 %v18290_v39, 0.0  ;;  %v8280_v49 = vmax.f32 %v18291_v51, 0.0  ;;  %v8281_v19 = vmax.f32 %v7952_v31, 0.0  ;;  %v18295_v57 = vld [vmem:[#allocation24_spill] sm:$0xff]  ;;  %v18300_v31 = vld [vmem:[#allocation158_spill] sm:$0xff] }
 0x952   : > { %8532 = vmatpush2.bf16.msra.mxu1 %v8375_v34  ;;  %8492 = vmatprep.subr.bf16.mxu0 %v8370_v37  ;;  %v8283_v30 = vmax.f32 %v8145_v46, 0.0  ;;  %v8365_v29 = vpack.c.bf16 %v8289_v16, %v8285_v60  ;;  %v8367_v12 = vpack.c.bf16 %v8291_v55, %v8287_v0  ;;  %v8274_v22 = vmax.f32 %v18292_v54, 0.0  ;;  %v18301_v46 = vld [vmem:[#allocation30_spill] sm:$0xff]  ;;  %v18306_v55 = vld [vmem:[#allocation107_spill] sm:$0xff]  ;;  %v8558_v60 = vpop.permute.xlu0 %8557 }
 0x953   : > { %8533 = vmatprep.subr.bf16.mxu1 %v8372_v25  ;;  %v8362_v17 = vpack.c.bf16 %v8282_v9, %v8278_v48  ;;  %v8364_v44 = vpack.c.bf16 %v8284_v28, %v8280_v49  ;;  %v8276_v26 = vmax.f32 %v18293_v45, 0.0  ;;  %v8277_v6 = vmax.f32 %v7948_v11, 0.0 }
 0x954   : > { %v8279_v63 = vmax.f32 %v8141_v59, 0.0  ;;  %v7938_v53 = vadd.f32 %v18295_v57, %v18294_v23  ;;  %v8131_v14 = vadd.f32 %v18296_v52, %v18294_v23  ;;  %v8270_v7 = vmax.f32 %v18297_v15, 0.0 }
 0x955   : > { %8493 = vmatpush2.bf16.msra.mxu0 %v8369_v8  ;;  %v8272_v32 = vmax.f32 %v18298_v33, 0.0  ;;  %v8273_v20 = vmax.f32 %v7942_v56, 0.0  ;;  %v8275_v5 = vmax.f32 %v8135_v24, 0.0  ;;  %v8361_v34 = vpack.c.bf16 %v8281_v19, %v8277_v6  ;;  %v18307_v8 = vld [vmem:[#allocation153_spill] sm:$0xff] }
 0x956   : > { %8534 = vmatpush2.bf16.msra.mxu1 %v8371_v13  ;;  %8494 = vmatprep.subr.bf16.mxu0 %v8366_v4  ;;  %v8363_v10 = vpack.c.bf16 %v8283_v30, %v8279_v63  ;;  %v8358_v42 = vpack.c.bf16 %v8274_v22, %v8270_v7  ;;  %v8269_v25 = vmax.f32 %v7938_v53, 0.0  ;;  %v8271_v38 = vmax.f32 %v8131_v14, 0.0 }
 0x957   : > { %8535 = vmatprep.subr.bf16.mxu1 %v8368_v2  ;;  %v8360_v37 = vpack.c.bf16 %v8276_v26, %v8272_v32  ;;  %v8997_v16 = vcombine.low %v18305_v47, %v18305_v47  ;;  %v9734_v13 = vmov 1966171168   ;;  %v8573_v28 = vlaneseq }
 0x958   : > { %v8357_v40 = vpack.c.bf16 %v8273_v20, %v8269_v25  ;;  %v8359_v41 = vpack.c.bf16 %v8275_v5, %v8271_v38  ;;  %v8571_v9 = vunpack.c.l.s4 %v9734_v13 }
 0x959   : > { %8495 = vmatpush2.bf16.msra.mxu0 %v8365_v29  ;;  %v8574_v3 = vshrl.u32 %v8573_v28, 7  ;;  %vm8595_vm0 = vcmp.lt.s32.totalorder %v8573_v28, 512 }
 0x95a   : > { %8536 = vmatpush2.bf16.msra.mxu1 %v8367_v12  ;;  %8496 = vmatprep.subr.bf16.mxu0 %v8362_v17  ;;  %v8572_v43 = vunpack.c.0.s8 %v8571_v9 }
 0x95b   : > { %8537 = vmatprep.subr.bf16.mxu1 %v8364_v44 }
 0x95c   : > { %v8575_v24 = vsub.s32 %v8572_v43, %v8574_v3 }
 0x95d   : > { %8497 = vmatpush2.bf16.msra.mxu0 %v8361_v34 }
 0x95e   : > { %8538 = vmatpush2.bf16.msra.mxu1 %v8363_v10  ;;  %8498 = vmatprep.subr.bf16.mxu0 %v8358_v42 }
 0x95f   : > { %8539 = vmatprep.subr.bf16.mxu1 %v8360_v37 }
 0x961   : > { %8499 = vmatpush2.bf16.msra.mxu0 %v8357_v40 }
 0x962   : > { %8540 = vmatpush2.bf16.msra.mxu1 %v8359_v41  ;;  %8500 = vmatprep.subr.bf16.mxu0 %v18299_v18 }
 0x963   : > { %8541 = vmatprep.subr.bf16.mxu1 %v18300_v31 }
 0x965   : > { %8501 = vmatpush2.bf16.msra.mxu0 %v18301_v46 }
 0x966   : > { %8542 = vmatpush2.bf16.msra.mxu1 %v18302_v1  ;;  %8502 = vmatprep.subr.bf16.mxu0 %v18303_v21 }
 0x967   : > { %8543 = vmatprep.subr.bf16.mxu1 %v18304_v35 }
 0x969   : > { %8503 = vmatpush2.bf16.msra.mxu0 %v18306_v55 }
 0x96a   : > { %8544 = vmatpush2.bf16.msra.mxu1 %v18307_v8 }
 0x96c   : > { %8505 = vmatmul.mubr.bf16.vlgmr.msra.gmra.mxu0 %v8997_v16 }
 0x96d   : > { %8546 = vmatmul.mubr.bf16.vlgmr.msra.gmra.mxu1 %v8997_v16 }
 0xa2c   : > { %v8506_v4 = vpop.f32.mrf.mxu0 }
 0xa2d   : > { %v8547_v2 = vpop.f32.mrf.mxu1  ;;  %v8507_v11 = vadd.f32 %v8506_v4, %v16042_v50 }
 0xa2e   : > { %v8548_v59 = vadd.f32 %v8547_v2, %v16044_v27  ;;  %v8508_v0 = vpop.f32.mrf.mxu0 }
 0xa2f   : > { %v8549_v61 = vpop.f32.mrf.mxu1  ;;  %v8509_v56 = vadd.f32 %v8508_v0, %v16050_v36  ;;  %v8560_v51 = vadd.f32 %v8558_v60, %v8507_v11 }
 0xa30   : > { %v8550_v62 = vadd.f32 %v8549_v61, %v16052_v58  ;;  %v8510_v39 = vpop.f32.mrf.mxu0  ;;  %v8562_v49 = vadd.f32 %v8558_v60, %v8548_v59 }
 0xa31   : > { %v8551_v48 = vpop.f32.mrf.mxu1  ;;  %v8561_v19 = vadd.f32 %v8558_v60, %v8509_v56 }
 0xa32   : > { %v8563_v30 = vadd.f32 %v8558_v60, %v8550_v62  ;;  %v8511_v50 = vpop.f32.mrf.mxu0 }
 0xa33   : > { %v8552_v29 = vpop.f32.mrf.mxu1  ;;  %v8568_v27 = vcombine.low %v8560_v51, %v8561_v19 }
 0xa34   : > { %v8569_v12 = vcombine.low %v8562_v49, %v8563_v30 }
 0xa35   : > { %v8576_v17 = vrot.slane %v8568_v27, %v8575_v24 }
 0xa36   : > { %v8583_v44 = vrot.slane %v8569_v12, %v8575_v24 }
 0xa38   : > { %v8584_v36 = vcombine.low %v8576_v17, %v8583_v44 }
 0xa3a   : > { %v8591_v58 = vrot.slane %v8584_v36, %v8575_v24 }
 0xa3c   : > { %8597 = vst.msk [vmem:[%s676_s16] sm:$0xf] %vm8595_vm0, %v8591_v58 }
 0xa3d   : > { %9681 = shalt.err (!%p9678_p5)
}
 0xa3e   : > { %s9682_s1 = scalar_lea.hbm %s8611_s2, 64  ;;  %s9686_s16 = scalar_lea.hbm %s16149_s15, 256 }
 0xa3f   : > { %p9683_p7 = scmp.ne.s32.totalorder %s8611_s2, %s9682_s1  ;;  %p9687_p11 = scmp.lt.s32.totalorder %s8611_s2, %s16149_s15 }
 0xa40   : > { %p9688_p12 = scmp.lt.s32.totalorder %s9686_s16, %s9682_s1 }
 0xa41   : > { %p9684_p9 = pnand %p9683_p7, %p9858_p6 }
 0xa42   : > { %p9689_p13 = por %p9688_p12, %p9687_p11 }
 0xa43   : > { %p9685_p10 = pneg %p9684_p9 }
 0xa45   : > { %p9690_p0 = pnand %p9689_p13, %p9685_p10 }
 0xa47   : > { %9693 = shalt.err (!%p9690_p0)
}
 0xa48   : > { %9007 = dma.vmem_to_hbm [thread:$0]  (%p9858_p6), %s8614_s0, 64, %s8611_s2, %s8599_s22  }
 0xa49 PF: > { %p9013_p1 = scmp.ge.s32.totalorder %s9728_s21, 2  ;;  %s8625_s3 = sand.u32 1, %s9716_s18  }
 0xa4a   : > { %s8626_s4 = scalar_lea.sflag [#allocation5], %s8625_s3 }
 0xa4b   : > { %p9010_p2 = pnand %p9013_p1, %p9862_p8 }
 0xa4d   : > { %p9011_p3 = pneg %p9010_p2 }
 0xa4f   : > { %9711 = dma.done.wait (%p9011_p3), %s8626_s4, 64  }
 0xa50   : > { %9713 = vsyncadd (%p9011_p3), %s8626_s4, 4294967232  ;;  %s18309_s26 = sld [smem:[#allocation7_spill]]  ;;  %p25_p4 = scmp.ge.s32.totalorder %s9839_s24, 6  }
 0xa51   : > { %s18310_s18 = smov %s9720_s19  ;;  %s18311_s19 = smov %s9724_s20 }
 0xa52   : > { %s18313_s21 = smov %s9839_s24  ;;  %27 = sbr.rel (!%p25_p4) target bundleno = 9 (0x9), region = 174 }
 0xa56   : > { %s18312_s20 = smov %s18309_s26 }
 0xa57   :  { %8631 = vsyncpa [#allocation5], 1 }
 0xa58   :  { %8633 = vsyncpa [#allocation5 + $0x1], 1 }

</bundles_post_ra>
